<compile_context>
chip_gen: v5e
topology: v5e:2x2
jax: 0.10.0
libtpu: 0.0.40
codegen_flags: <defaults>
</compile_context>

<pallas_src>
import functools
import math

import jax
import jax.numpy as jnp
from jax.experimental import pallas as pl
from jax.experimental.pallas import tpu as pltpu


def _adaptive_layer_kernel(x_ref, wq_ref, wk_ref, wv_ref, wo_ref,
                           wg_ref, wu_ref, wd_ref,
                           ln1_g_ref, ln1_b_ref, ln2_g_ref, ln2_b_ref,
                           o_ref, *, num_heads, eps):
    """One batch element: pre-norm MHSA + residual + LN + GLU FFN + residual."""
    x = x_ref[...]                                   # (S, H) f32
    S, H = x.shape
    D = H // num_heads
    scale = 1.0 / math.sqrt(D)

    def layer_norm(v, g, b):
        mu = jnp.mean(v, axis=-1, keepdims=True)
        c = v - mu
        var = jnp.mean(c * c, axis=-1, keepdims=True)
        return c * jax.lax.rsqrt(var + eps) * g + b

    # ---- pre-norm + multi-head self-attention (stand-in for AdaptiveAttention)
    h = layer_norm(x, ln1_g_ref[...], ln1_b_ref[...])
    q = jnp.dot(h, wq_ref[...], preferred_element_type=jnp.float32)
    k = jnp.dot(h, wk_ref[...], preferred_element_type=jnp.float32)
    v = jnp.dot(h, wv_ref[...], preferred_element_type=jnp.float32)

    wo = wo_ref[...]
    attn = jnp.zeros((S, H), jnp.float32)
    for hd in range(num_heads):                      # static unroll over heads
        lo, hi = hd * D, (hd + 1) * D
        qh = q[:, lo:hi]
        kh = k[:, lo:hi]
        vh = v[:, lo:hi]
        s = jnp.einsum('qd,kd->qk', qh, kh,
                       preferred_element_type=jnp.float32) * scale
        s = s - jnp.max(s, axis=-1, keepdims=True)   # stable softmax
        p = jnp.exp(s)
        p = p / jnp.sum(p, axis=-1, keepdims=True)
        ctx_h = jnp.dot(p, vh, preferred_element_type=jnp.float32)      # (S, D)
        # ctx @ Wo == sum_h ctx_h @ Wo[hD:(h+1)D, :]   (fuses output projection)
        attn = attn + jnp.dot(ctx_h, wo[lo:hi, :],
                              preferred_element_type=jnp.float32)

    a = x + attn                                     # residual (dropout = id)
    h2 = layer_norm(a, ln2_g_ref[...], ln2_b_ref[...])   # post-attention LN

    # ---- GatedLinearUnit feed-forward (SiLU gate, bias-free projections)
    gate = jnp.dot(h2, wg_ref[...], preferred_element_type=jnp.float32)
    gate = gate * jax.nn.sigmoid(gate)               # SiLU
    up = jnp.dot(h2, wu_ref[...], preferred_element_type=jnp.float32)
    ff = jnp.dot(gate * up, wd_ref[...], preferred_element_type=jnp.float32)

    o_ref[...] = h2 + ff                             # residual, full-tile store


def adaptive_transformer_layer(x, wq, wk, wv, wo, wg, wu, wd,
                               ln1_g, ln1_b, ln2_g, ln2_b, *,
                               num_heads, eps=1e-5):
    """Pallas-backed forward of AdaptiveTransformerLayer (eval, no mask)."""
    B, S, H = x.shape
    I = wg.shape[1]

    kernel = functools.partial(_adaptive_layer_kernel,
                               num_heads=num_heads, eps=eps)

    def const_spec(shape):
        return pl.BlockSpec(shape, lambda b: (0, 0))   # resident in VMEM

    return pl.pallas_call(
        kernel,
        out_shape=jax.ShapeDtypeStruct((B, S, H), jnp.float32),
        grid_spec=pltpu.PrefetchScalarGridSpec(
            num_scalar_prefetch=0,
            grid=(B,),
            in_specs=[
                pl.BlockSpec((None, S, H), lambda b: (b, 0, 0)),   # x (per batch)
                const_spec((H, H)),      # Wq
                const_spec((H, H)),      # Wk
                const_spec((H, H)),      # Wv
                const_spec((H, H)),      # Wo
                const_spec((H, I)),      # W_gate
                const_spec((H, I)),      # W_up
                const_spec((I, H)),      # W_down
                const_spec((1, H)),      # LN_in gamma
                const_spec((1, H)),      # LN_in beta
                const_spec((1, H)),      # LN_post gamma
                const_spec((1, H)),      # LN_post beta
            ],
            out_specs=pl.BlockSpec((None, S, H), lambda b: (b, 0, 0)),
        ),
        compiler_params=pltpu.CompilerParams(
            dimension_semantics=("parallel",)),        # independent batch rows
    )(x, wq, wk, wv, wo, wg, wu, wd, ln1_g, ln1_b, ln2_g, ln2_b)


def _reference(x, wq, wk, wv, wo, wg, wu, wd, ln1_g, ln1_b, ln2_g, ln2_b,
               num_heads, eps):
    """Pure-JAX transcription of AdaptiveTransformerLayer.forward (eval)."""
    B, S, H = x.shape
    D = H // num_heads

    def ln(v, g, b):
        mu = v.mean(-1, keepdims=True)
        var = ((v - mu) ** 2).mean(-1, keepdims=True)
        return (v - mu) / jnp.sqrt(var + eps) * g + b

    h = ln(x, ln1_g, ln1_b)
    q = (h @ wq).reshape(B, S, num_heads, D).transpose(0, 2, 1, 3)
    k = (h @ wk).reshape(B, S, num_heads, D).transpose(0, 2, 1, 3)
    v = (h @ wv).reshape(B, S, num_heads, D).transpose(0, 2, 1, 3)
    s = jnp.einsum('bhqd,bhkd->bhqk', q, k) / math.sqrt(D)
    p = jax.nn.softmax(s, axis=-1)
    ctx = jnp.einsum('bhqk,bhkd->bhqd', p, v).transpose(0, 2, 1, 3)
    ctx = ctx.reshape(B, S, H)
    attn = ctx @ wo
    a = x + attn
    h2 = ln(a, ln2_g, ln2_b)
    gate = h2 @ wg
    gate = gate * jax.nn.sigmoid(gate)
    up = h2 @ wu
    ff = (gate * up) @ wd
    return h2 + ff


if __name__ == "__main__":
    # Small config consistent with AdaptiveConfig constraints:
    # hidden_size % num_attention_heads == 0, intermediate_size > hidden_size.
    B, S, H, NH, I = 2, 128, 128, 4, 256
    eps = 1e-5
    init = 0.02

    key = jax.random.PRNGKey(0)
    (kx, kq, kk, kv, ko, kg, ku, kd, kg1, kg2) = jax.random.split(key, 10)

    x = jax.random.normal(kx, (B, S, H), jnp.float32)
    wq = init * jax.random.normal(kq, (H, H), jnp.float32)
    wk = init * jax.random.normal(kk, (H, H), jnp.float32)
    wv = init * jax.random.normal(kv, (H, H), jnp.float32)
    wo = init * jax.random.normal(ko, (H, H), jnp.float32)
    wg = init * jax.random.normal(kg, (H, I), jnp.float32)
    wu = init * jax.random.normal(ku, (H, I), jnp.float32)
    wd = init * jax.random.normal(kd, (I, H), jnp.float32)
    # LayerNorm params (perturbed from 1/0 so the affine path is exercised).
    ln1_g = 1.0 + 0.1 * jax.random.normal(kg1, (1, H), jnp.float32)
    ln1_b = 0.1 * jax.random.normal(kg2, (1, H), jnp.float32)
    ln2_g = 1.0 - 0.1 * jax.random.normal(kg2, (1, H), jnp.float32)
    ln2_b = 0.1 * jax.random.normal(kg1, (1, H), jnp.float32)

    out = adaptive_transformer_layer(x, wq, wk, wv, wo, wg, wu, wd,
                                     ln1_g, ln1_b, ln2_g, ln2_b,
                                     num_heads=NH, eps=eps)
    out = jax.block_until_ready(out)

    ref = _reference(x, wq, wk, wv, wo, wg, wu, wd,
                     ln1_g, ln1_b, ln2_g, ln2_b, NH, eps)

    assert out.shape == (B, S, H), out.shape
    err = float(jnp.max(jnp.abs(out - ref)))
    # Tolerance covers possible MXU-vs-XLA f32 matmul pass-count differences.
    assert err < 2e-3, err
    print("KERNEL_OK")
</pallas_src>

<mosaic_0001>
module attributes {stable_mosaic.version = 11 : i64} {
  func.func @_adaptive_layer_kernel(%arg0: i32, %arg1: memref<1x128x128xf32, #tpu.memory_space<vmem>>, %arg2: memref<128x128xf32, #tpu.memory_space<vmem>>, %arg3: memref<128x128xf32, #tpu.memory_space<vmem>>, %arg4: memref<128x128xf32, #tpu.memory_space<vmem>>, %arg5: memref<128x128xf32, #tpu.memory_space<vmem>>, %arg6: memref<128x256xf32, #tpu.memory_space<vmem>>, %arg7: memref<128x256xf32, #tpu.memory_space<vmem>>, %arg8: memref<256x128xf32, #tpu.memory_space<vmem>>, %arg9: memref<1x128xf32, #tpu.memory_space<vmem>>, %arg10: memref<1x128xf32, #tpu.memory_space<vmem>>, %arg11: memref<1x128xf32, #tpu.memory_space<vmem>>, %arg12: memref<1x128xf32, #tpu.memory_space<vmem>>, %arg13: memref<1x128x128xf32, #tpu.memory_space<vmem>>) attributes {dimension_semantics = [#tpu.dimension_semantics<parallel>], iteration_bounds = array<i64: 2>, scalar_prefetch = 0 : i64, scratch_operands = 0 : i64, tpu.core_type = #tpu.core_type<tc>, window_params = [{transform_indices = @transform_0, window_bounds = array<i64: 1, 128, 128>}, {pipeline_mode = #tpu.pipeline_mode<synchronous>, transform_indices = @transform_1, window_bounds = array<i64: 128, 128>}, {pipeline_mode = #tpu.pipeline_mode<synchronous>, transform_indices = @transform_2, window_bounds = array<i64: 128, 128>}, {pipeline_mode = #tpu.pipeline_mode<synchronous>, transform_indices = @transform_3, window_bounds = array<i64: 128, 128>}, {pipeline_mode = #tpu.pipeline_mode<synchronous>, transform_indices = @transform_4, window_bounds = array<i64: 128, 128>}, {pipeline_mode = #tpu.pipeline_mode<synchronous>, transform_indices = @transform_5, window_bounds = array<i64: 128, 256>}, {pipeline_mode = #tpu.pipeline_mode<synchronous>, transform_indices = @transform_6, window_bounds = array<i64: 128, 256>}, {pipeline_mode = #tpu.pipeline_mode<synchronous>, transform_indices = @transform_7, window_bounds = array<i64: 256, 128>}, {pipeline_mode = #tpu.pipeline_mode<synchronous>, transform_indices = @transform_8, window_bounds = array<i64: 1, 128>}, {pipeline_mode = #tpu.pipeline_mode<synchronous>, transform_indices = @transform_9, window_bounds = array<i64: 1, 128>}, {pipeline_mode = #tpu.pipeline_mode<synchronous>, transform_indices = @transform_10, window_bounds = array<i64: 1, 128>}, {pipeline_mode = #tpu.pipeline_mode<synchronous>, transform_indices = @transform_11, window_bounds = array<i64: 1, 128>}, {transform_indices = @transform_12, window_bounds = array<i64: 1, 128, 128>}]} {
    %c0 = arith.constant 0 : index
    %c0_0 = arith.constant 0 : index
    %c0_1 = arith.constant 0 : index
    %0 = vector.load %arg1[%c0, %c0_0, %c0_1] : memref<1x128x128xf32, #tpu.memory_space<vmem>>, vector<1x128x128xf32>
    %1 = vector.shape_cast %0 : vector<1x128x128xf32> to vector<128x128xf32>
    %c0_2 = arith.constant 0 : index
    %c0_3 = arith.constant 0 : index
    %2 = vector.load %arg9[%c0_2, %c0_3] : memref<1x128xf32, #tpu.memory_space<vmem>>, vector<1x128xf32>
    %c0_4 = arith.constant 0 : index
    %c0_5 = arith.constant 0 : index
    %3 = vector.load %arg10[%c0_4, %c0_5] : memref<1x128xf32, #tpu.memory_space<vmem>>, vector<1x128xf32>
    %cst = arith.constant dense<0.000000e+00> : vector<128xf32>
    %4 = vector.multi_reduction <add>, %1, %cst [1] : vector<128x128xf32> to vector<128xf32>
    %5 = vector.shape_cast %4 : vector<128xf32> to vector<128x1xf32>
    %cst_6 = arith.constant 1.280000e+02 : f32
    %6 = vector.broadcast %cst_6 : f32 to vector<128x1xf32>
    %7 = arith.divf %5, %6 : vector<128x1xf32>
    %8 = vector.broadcast %7 : vector<128x1xf32> to vector<128x128xf32>
    %9 = arith.subf %1, %8 : vector<128x128xf32>
    %10 = arith.mulf %9, %9 : vector<128x128xf32>
    %cst_7 = arith.constant dense<0.000000e+00> : vector<128xf32>
    %11 = vector.multi_reduction <add>, %10, %cst_7 [1] : vector<128x128xf32> to vector<128xf32>
    %12 = vector.shape_cast %11 : vector<128xf32> to vector<128x1xf32>
    %cst_8 = arith.constant 1.280000e+02 : f32
    %13 = vector.broadcast %cst_8 : f32 to vector<128x1xf32>
    %14 = arith.divf %12, %13 : vector<128x1xf32>
    %cst_9 = arith.constant 9.99999974E-6 : f32
    %15 = vector.broadcast %cst_9 : f32 to vector<128x1xf32>
    %16 = arith.addf %14, %15 : vector<128x1xf32>
    %17 = math.rsqrt %16 : vector<128x1xf32>
    %18 = vector.broadcast %17 : vector<128x1xf32> to vector<128x128xf32>
    %19 = arith.mulf %9, %18 : vector<128x128xf32>
    %20 = vector.broadcast %2 : vector<1x128xf32> to vector<128x128xf32>
    %21 = arith.mulf %19, %20 : vector<128x128xf32>
    %22 = vector.broadcast %3 : vector<1x128xf32> to vector<128x128xf32>
    %23 = arith.addf %21, %22 : vector<128x128xf32>
    %c0_10 = arith.constant 0 : index
    %c0_11 = arith.constant 0 : index
    %24 = vector.load %arg2[%c0_10, %c0_11] : memref<128x128xf32, #tpu.memory_space<vmem>>, vector<128x128xf32>
    %cst_12 = arith.constant dense<0.000000e+00> : vector<128x128xf32>
    %25 = tpu.matmul %23, %24, %cst_12 {dimension_numbers = #tpu.dot_dimension_numbers<[1], [0], [0], [1], [0, 0, 1, 1], [], []>} : vector<128x128xf32>, vector<128x128xf32>, vector<128x128xf32> -> vector<128x128xf32>
    %c0_13 = arith.constant 0 : index
    %c0_14 = arith.constant 0 : index
    %26 = vector.load %arg3[%c0_13, %c0_14] : memref<128x128xf32, #tpu.memory_space<vmem>>, vector<128x128xf32>
    %cst_15 = arith.constant dense<0.000000e+00> : vector<128x128xf32>
    %27 = tpu.matmul %23, %26, %cst_15 {dimension_numbers = #tpu.dot_dimension_numbers<[1], [0], [0], [1], [0, 0, 1, 1], [], []>} : vector<128x128xf32>, vector<128x128xf32>, vector<128x128xf32> -> vector<128x128xf32>
    %c0_16 = arith.constant 0 : index
    %c0_17 = arith.constant 0 : index
    %28 = vector.load %arg4[%c0_16, %c0_17] : memref<128x128xf32, #tpu.memory_space<vmem>>, vector<128x128xf32>
    %cst_18 = arith.constant dense<0.000000e+00> : vector<128x128xf32>
    %29 = tpu.matmul %23, %28, %cst_18 {dimension_numbers = #tpu.dot_dimension_numbers<[1], [0], [0], [1], [0, 0, 1, 1], [], []>} : vector<128x128xf32>, vector<128x128xf32>, vector<128x128xf32> -> vector<128x128xf32>
    %c0_19 = arith.constant 0 : index
    %c0_20 = arith.constant 0 : index
    %30 = vector.load %arg5[%c0_19, %c0_20] : memref<128x128xf32, #tpu.memory_space<vmem>>, vector<128x128xf32>
    %cst_21 = arith.constant 0.000000e+00 : f32
    %31 = vector.broadcast %cst_21 : f32 to vector<128x128xf32>
    %32 = vector.extract_strided_slice %25 {offsets = [0, 0], sizes = [128, 32], strides = [1, 1]} : vector<128x128xf32> to vector<128x32xf32>
    %33 = vector.extract_strided_slice %27 {offsets = [0, 0], sizes = [128, 32], strides = [1, 1]} : vector<128x128xf32> to vector<128x32xf32>
    %34 = vector.extract_strided_slice %29 {offsets = [0, 0], sizes = [128, 32], strides = [1, 1]} : vector<128x128xf32> to vector<128x32xf32>
    "tpu.trace_start"() <{level = 10 : i32, message = "qd,kd->qk"}> : () -> ()
    %cst_22 = arith.constant dense<0.000000e+00> : vector<128x128xf32>
    %35 = tpu.matmul %32, %33, %cst_22 {dimension_numbers = #tpu.dot_dimension_numbers<[1], [1], [0], [0], [0, 0, 1, 0], [], []>} : vector<128x32xf32>, vector<128x32xf32>, vector<128x128xf32> -> vector<128x128xf32>
    "tpu.trace_stop"() : () -> ()
    %cst_23 = arith.constant 0.176776692 : f32
    %36 = vector.broadcast %cst_23 : f32 to vector<128x128xf32>
    %37 = arith.mulf %35, %36 : vector<128x128xf32>
    %cst_24 = arith.constant dense<0xFF800000> : vector<128xf32>
    %38 = vector.multi_reduction <maximumf>, %37, %cst_24 [1] : vector<128x128xf32> to vector<128xf32>
    %39 = vector.shape_cast %38 : vector<128xf32> to vector<128x1xf32>
    %40 = vector.broadcast %39 : vector<128x1xf32> to vector<128x128xf32>
    %41 = arith.subf %37, %40 : vector<128x128xf32>
    %42 = math.exp %41 : vector<128x128xf32>
    %cst_25 = arith.constant dense<0.000000e+00> : vector<128xf32>
    %43 = vector.multi_reduction <add>, %42, %cst_25 [1] : vector<128x128xf32> to vector<128xf32>
    %44 = vector.shape_cast %43 : vector<128xf32> to vector<128x1xf32>
    %45 = vector.broadcast %44 : vector<128x1xf32> to vector<128x128xf32>
    %46 = arith.divf %42, %45 : vector<128x128xf32>
    %cst_26 = arith.constant dense<0.000000e+00> : vector<128x32xf32>
    %47 = tpu.matmul %46, %34, %cst_26 {dimension_numbers = #tpu.dot_dimension_numbers<[1], [0], [0], [1], [0, 0, 1, 1], [], []>} : vector<128x128xf32>, vector<128x32xf32>, vector<128x32xf32> -> vector<128x32xf32>
    %48 = vector.extract_strided_slice %30 {offsets = [0, 0], sizes = [32, 128], strides = [1, 1]} : vector<128x128xf32> to vector<32x128xf32>
    %cst_27 = arith.constant dense<0.000000e+00> : vector<128x128xf32>
    %49 = tpu.matmul %47, %48, %cst_27 {dimension_numbers = #tpu.dot_dimension_numbers<[1], [0], [0], [1], [0, 0, 1, 1], [], []>} : vector<128x32xf32>, vector<32x128xf32>, vector<128x128xf32> -> vector<128x128xf32>
    %50 = arith.addf %31, %49 : vector<128x128xf32>
    %51 = vector.extract_strided_slice %25 {offsets = [0, 32], sizes = [128, 32], strides = [1, 1]} : vector<128x128xf32> to vector<128x32xf32>
    %52 = vector.extract_strided_slice %27 {offsets = [0, 32], sizes = [128, 32], strides = [1, 1]} : vector<128x128xf32> to vector<128x32xf32>
    %53 = vector.extract_strided_slice %29 {offsets = [0, 32], sizes = [128, 32], strides = [1, 1]} : vector<128x128xf32> to vector<128x32xf32>
    "tpu.trace_start"() <{level = 10 : i32, message = "qd,kd->qk"}> : () -> ()
    %cst_28 = arith.constant dense<0.000000e+00> : vector<128x128xf32>
    %54 = tpu.matmul %51, %52, %cst_28 {dimension_numbers = #tpu.dot_dimension_numbers<[1], [1], [0], [0], [0, 0, 1, 0], [], []>} : vector<128x32xf32>, vector<128x32xf32>, vector<128x128xf32> -> vector<128x128xf32>
    "tpu.trace_stop"() : () -> ()
    %cst_29 = arith.constant 0.176776692 : f32
    %55 = vector.broadcast %cst_29 : f32 to vector<128x128xf32>
    %56 = arith.mulf %54, %55 : vector<128x128xf32>
    %cst_30 = arith.constant dense<0xFF800000> : vector<128xf32>
    %57 = vector.multi_reduction <maximumf>, %56, %cst_30 [1] : vector<128x128xf32> to vector<128xf32>
    %58 = vector.shape_cast %57 : vector<128xf32> to vector<128x1xf32>
    %59 = vector.broadcast %58 : vector<128x1xf32> to vector<128x128xf32>
    %60 = arith.subf %56, %59 : vector<128x128xf32>
    %61 = math.exp %60 : vector<128x128xf32>
    %cst_31 = arith.constant dense<0.000000e+00> : vector<128xf32>
    %62 = vector.multi_reduction <add>, %61, %cst_31 [1] : vector<128x128xf32> to vector<128xf32>
    %63 = vector.shape_cast %62 : vector<128xf32> to vector<128x1xf32>
    %64 = vector.broadcast %63 : vector<128x1xf32> to vector<128x128xf32>
    %65 = arith.divf %61, %64 : vector<128x128xf32>
    %cst_32 = arith.constant dense<0.000000e+00> : vector<128x32xf32>
    %66 = tpu.matmul %65, %53, %cst_32 {dimension_numbers = #tpu.dot_dimension_numbers<[1], [0], [0], [1], [0, 0, 1, 1], [], []>} : vector<128x128xf32>, vector<128x32xf32>, vector<128x32xf32> -> vector<128x32xf32>
    %67 = vector.extract_strided_slice %30 {offsets = [32, 0], sizes = [32, 128], strides = [1, 1]} : vector<128x128xf32> to vector<32x128xf32>
    %cst_33 = arith.constant dense<0.000000e+00> : vector<128x128xf32>
    %68 = tpu.matmul %66, %67, %cst_33 {dimension_numbers = #tpu.dot_dimension_numbers<[1], [0], [0], [1], [0, 0, 1, 1], [], []>} : vector<128x32xf32>, vector<32x128xf32>, vector<128x128xf32> -> vector<128x128xf32>
    %69 = arith.addf %50, %68 : vector<128x128xf32>
    %70 = vector.extract_strided_slice %25 {offsets = [0, 64], sizes = [128, 32], strides = [1, 1]} : vector<128x128xf32> to vector<128x32xf32>
    %71 = vector.extract_strided_slice %27 {offsets = [0, 64], sizes = [128, 32], strides = [1, 1]} : vector<128x128xf32> to vector<128x32xf32>
    %72 = vector.extract_strided_slice %29 {offsets = [0, 64], sizes = [128, 32], strides = [1, 1]} : vector<128x128xf32> to vector<128x32xf32>
    "tpu.trace_start"() <{level = 10 : i32, message = "qd,kd->qk"}> : () -> ()
    %cst_34 = arith.constant dense<0.000000e+00> : vector<128x128xf32>
    %73 = tpu.matmul %70, %71, %cst_34 {dimension_numbers = #tpu.dot_dimension_numbers<[1], [1], [0], [0], [0, 0, 1, 0], [], []>} : vector<128x32xf32>, vector<128x32xf32>, vector<128x128xf32> -> vector<128x128xf32>
    "tpu.trace_stop"() : () -> ()
    %cst_35 = arith.constant 0.176776692 : f32
    %74 = vector.broadcast %cst_35 : f32 to vector<128x128xf32>
    %75 = arith.mulf %73, %74 : vector<128x128xf32>
    %cst_36 = arith.constant dense<0xFF800000> : vector<128xf32>
    %76 = vector.multi_reduction <maximumf>, %75, %cst_36 [1] : vector<128x128xf32> to vector<128xf32>
    %77 = vector.shape_cast %76 : vector<128xf32> to vector<128x1xf32>
    %78 = vector.broadcast %77 : vector<128x1xf32> to vector<128x128xf32>
    %79 = arith.subf %75, %78 : vector<128x128xf32>
    %80 = math.exp %79 : vector<128x128xf32>
    %cst_37 = arith.constant dense<0.000000e+00> : vector<128xf32>
    %81 = vector.multi_reduction <add>, %80, %cst_37 [1] : vector<128x128xf32> to vector<128xf32>
    %82 = vector.shape_cast %81 : vector<128xf32> to vector<128x1xf32>
    %83 = vector.broadcast %82 : vector<128x1xf32> to vector<128x128xf32>
    %84 = arith.divf %80, %83 : vector<128x128xf32>
    %cst_38 = arith.constant dense<0.000000e+00> : vector<128x32xf32>
    %85 = tpu.matmul %84, %72, %cst_38 {dimension_numbers = #tpu.dot_dimension_numbers<[1], [0], [0], [1], [0, 0, 1, 1], [], []>} : vector<128x128xf32>, vector<128x32xf32>, vector<128x32xf32> -> vector<128x32xf32>
    %86 = vector.extract_strided_slice %30 {offsets = [64, 0], sizes = [32, 128], strides = [1, 1]} : vector<128x128xf32> to vector<32x128xf32>
    %cst_39 = arith.constant dense<0.000000e+00> : vector<128x128xf32>
    %87 = tpu.matmul %85, %86, %cst_39 {dimension_numbers = #tpu.dot_dimension_numbers<[1], [0], [0], [1], [0, 0, 1, 1], [], []>} : vector<128x32xf32>, vector<32x128xf32>, vector<128x128xf32> -> vector<128x128xf32>
    %88 = arith.addf %69, %87 : vector<128x128xf32>
    %89 = vector.extract_strided_slice %25 {offsets = [0, 96], sizes = [128, 32], strides = [1, 1]} : vector<128x128xf32> to vector<128x32xf32>
    %90 = vector.extract_strided_slice %27 {offsets = [0, 96], sizes = [128, 32], strides = [1, 1]} : vector<128x128xf32> to vector<128x32xf32>
    %91 = vector.extract_strided_slice %29 {offsets = [0, 96], sizes = [128, 32], strides = [1, 1]} : vector<128x128xf32> to vector<128x32xf32>
    "tpu.trace_start"() <{level = 10 : i32, message = "qd,kd->qk"}> : () -> ()
    %cst_40 = arith.constant dense<0.000000e+00> : vector<128x128xf32>
    %92 = tpu.matmul %89, %90, %cst_40 {dimension_numbers = #tpu.dot_dimension_numbers<[1], [1], [0], [0], [0, 0, 1, 0], [], []>} : vector<128x32xf32>, vector<128x32xf32>, vector<128x128xf32> -> vector<128x128xf32>
    "tpu.trace_stop"() : () -> ()
    %cst_41 = arith.constant 0.176776692 : f32
    %93 = vector.broadcast %cst_41 : f32 to vector<128x128xf32>
    %94 = arith.mulf %92, %93 : vector<128x128xf32>
    %cst_42 = arith.constant dense<0xFF800000> : vector<128xf32>
    %95 = vector.multi_reduction <maximumf>, %94, %cst_42 [1] : vector<128x128xf32> to vector<128xf32>
    %96 = vector.shape_cast %95 : vector<128xf32> to vector<128x1xf32>
    %97 = vector.broadcast %96 : vector<128x1xf32> to vector<128x128xf32>
    %98 = arith.subf %94, %97 : vector<128x128xf32>
    %99 = math.exp %98 : vector<128x128xf32>
    %cst_43 = arith.constant dense<0.000000e+00> : vector<128xf32>
    %100 = vector.multi_reduction <add>, %99, %cst_43 [1] : vector<128x128xf32> to vector<128xf32>
    %101 = vector.shape_cast %100 : vector<128xf32> to vector<128x1xf32>
    %102 = vector.broadcast %101 : vector<128x1xf32> to vector<128x128xf32>
    %103 = arith.divf %99, %102 : vector<128x128xf32>
    %cst_44 = arith.constant dense<0.000000e+00> : vector<128x32xf32>
    %104 = tpu.matmul %103, %91, %cst_44 {dimension_numbers = #tpu.dot_dimension_numbers<[1], [0], [0], [1], [0, 0, 1, 1], [], []>} : vector<128x128xf32>, vector<128x32xf32>, vector<128x32xf32> -> vector<128x32xf32>
    %105 = vector.extract_strided_slice %30 {offsets = [96, 0], sizes = [32, 128], strides = [1, 1]} : vector<128x128xf32> to vector<32x128xf32>
    %cst_45 = arith.constant dense<0.000000e+00> : vector<128x128xf32>
    %106 = tpu.matmul %104, %105, %cst_45 {dimension_numbers = #tpu.dot_dimension_numbers<[1], [0], [0], [1], [0, 0, 1, 1], [], []>} : vector<128x32xf32>, vector<32x128xf32>, vector<128x128xf32> -> vector<128x128xf32>
    %107 = arith.addf %88, %106 : vector<128x128xf32>
    %108 = arith.addf %1, %107 : vector<128x128xf32>
    %c0_46 = arith.constant 0 : index
    %c0_47 = arith.constant 0 : index
    %109 = vector.load %arg11[%c0_46, %c0_47] : memref<1x128xf32, #tpu.memory_space<vmem>>, vector<1x128xf32>
    %c0_48 = arith.constant 0 : index
    %c0_49 = arith.constant 0 : index
    %110 = vector.load %arg12[%c0_48, %c0_49] : memref<1x128xf32, #tpu.memory_space<vmem>>, vector<1x128xf32>
    %cst_50 = arith.constant dense<0.000000e+00> : vector<128xf32>
    %111 = vector.multi_reduction <add>, %108, %cst_50 [1] : vector<128x128xf32> to vector<128xf32>
    %112 = vector.shape_cast %111 : vector<128xf32> to vector<128x1xf32>
    %cst_51 = arith.constant 1.280000e+02 : f32
    %113 = vector.broadcast %cst_51 : f32 to vector<128x1xf32>
    %114 = arith.divf %112, %113 : vector<128x1xf32>
    %115 = vector.broadcast %114 : vector<128x1xf32> to vector<128x128xf32>
    %116 = arith.subf %108, %115 : vector<128x128xf32>
    %117 = arith.mulf %116, %116 : vector<128x128xf32>
    %cst_52 = arith.constant dense<0.000000e+00> : vector<128xf32>
    %118 = vector.multi_reduction <add>, %117, %cst_52 [1] : vector<128x128xf32> to vector<128xf32>
    %119 = vector.shape_cast %118 : vector<128xf32> to vector<128x1xf32>
    %cst_53 = arith.constant 1.280000e+02 : f32
    %120 = vector.broadcast %cst_53 : f32 to vector<128x1xf32>
    %121 = arith.divf %119, %120 : vector<128x1xf32>
    %cst_54 = arith.constant 9.99999974E-6 : f32
    %122 = vector.broadcast %cst_54 : f32 to vector<128x1xf32>
    %123 = arith.addf %121, %122 : vector<128x1xf32>
    %124 = math.rsqrt %123 : vector<128x1xf32>
    %125 = vector.broadcast %124 : vector<128x1xf32> to vector<128x128xf32>
    %126 = arith.mulf %116, %125 : vector<128x128xf32>
    %127 = vector.broadcast %109 : vector<1x128xf32> to vector<128x128xf32>
    %128 = arith.mulf %126, %127 : vector<128x128xf32>
    %129 = vector.broadcast %110 : vector<1x128xf32> to vector<128x128xf32>
    %130 = arith.addf %128, %129 : vector<128x128xf32>
    %c0_55 = arith.constant 0 : index
    %c0_56 = arith.constant 0 : index
    %131 = vector.load %arg6[%c0_55, %c0_56] : memref<128x256xf32, #tpu.memory_space<vmem>>, vector<128x256xf32>
    %cst_57 = arith.constant dense<0.000000e+00> : vector<128x256xf32>
    %132 = tpu.matmul %130, %131, %cst_57 {dimension_numbers = #tpu.dot_dimension_numbers<[1], [0], [0], [1], [0, 0, 1, 1], [], []>} : vector<128x128xf32>, vector<128x256xf32>, vector<128x256xf32> -> vector<128x256xf32>
    %133 = arith.negf %132 : vector<128x256xf32>
    %134 = math.exp %133 : vector<128x256xf32>
    %cst_58 = arith.constant 1.000000e+00 : f32
    %135 = vector.broadcast %cst_58 : f32 to vector<128x256xf32>
    %136 = arith.addf %135, %134 : vector<128x256xf32>
    %137 = arith.divf %135, %136 : vector<128x256xf32>
    %138 = arith.mulf %132, %137 : vector<128x256xf32>
    %c0_59 = arith.constant 0 : index
    %c0_60 = arith.constant 0 : index
    %139 = vector.load %arg7[%c0_59, %c0_60] : memref<128x256xf32, #tpu.memory_space<vmem>>, vector<128x256xf32>
    %cst_61 = arith.constant dense<0.000000e+00> : vector<128x256xf32>
    %140 = tpu.matmul %130, %139, %cst_61 {dimension_numbers = #tpu.dot_dimension_numbers<[1], [0], [0], [1], [0, 0, 1, 1], [], []>} : vector<128x128xf32>, vector<128x256xf32>, vector<128x256xf32> -> vector<128x256xf32>
    %141 = arith.mulf %138, %140 : vector<128x256xf32>
    %c0_62 = arith.constant 0 : index
    %c0_63 = arith.constant 0 : index
    %142 = vector.load %arg8[%c0_62, %c0_63] : memref<256x128xf32, #tpu.memory_space<vmem>>, vector<256x128xf32>
    %cst_64 = arith.constant dense<0.000000e+00> : vector<128x128xf32>
    %143 = tpu.matmul %141, %142, %cst_64 {dimension_numbers = #tpu.dot_dimension_numbers<[1], [0], [0], [1], [0, 0, 1, 1], [], []>} : vector<128x256xf32>, vector<256x128xf32>, vector<128x128xf32> -> vector<128x128xf32>
    %144 = arith.addf %130, %143 : vector<128x128xf32>
    %c0_65 = arith.constant 0 : index
    %c0_66 = arith.constant 0 : index
    %c0_67 = arith.constant 0 : index
    %145 = vector.load %arg13[%c0_65, %c0_66, %c0_67] : memref<1x128x128xf32, #tpu.memory_space<vmem>>, vector<1x128x128xf32>
    %146 = vector.shape_cast %145 : vector<1x128x128xf32> to vector<128x128xf32>
    %147 = vector.shape_cast %144 : vector<128x128xf32> to vector<1x128x128xf32>
    tpu.vector_store %arg13[%c0_65, %c0_66, %c0_67], %147 {strides = array<i32>} : memref<1x128x128xf32, #tpu.memory_space<vmem>>, vector<1x128x128xf32>,
    return
  }
  func.func @transform_0(%arg0: i32) -> (i32, i32, i32) {
    %c0_i32 = arith.constant 0 : i32
    %c0_i32_0 = arith.constant 0 : i32
    %c0_i32_1 = arith.constant 0 : i32
    return %arg0, %c0_i32, %c0_i32_0 : i32, i32, i32
  }
  func.func @transform_1(%arg0: i32) -> (i32, i32) {
    %c0_i32 = arith.constant 0 : i32
    %c0_i32_0 = arith.constant 0 : i32
    %c0_i32_1 = arith.constant 0 : i32
    return %c0_i32, %c0_i32_0 : i32, i32
  }
  func.func @transform_2(%arg0: i32) -> (i32, i32) {
    %c0_i32 = arith.constant 0 : i32
    %c0_i32_0 = arith.constant 0 : i32
    %c0_i32_1 = arith.constant 0 : i32
    return %c0_i32, %c0_i32_0 : i32, i32
  }
  func.func @transform_3(%arg0: i32) -> (i32, i32) {
    %c0_i32 = arith.constant 0 : i32
    %c0_i32_0 = arith.constant 0 : i32
    %c0_i32_1 = arith.constant 0 : i32
    return %c0_i32, %c0_i32_0 : i32, i32
  }
  func.func @transform_4(%arg0: i32) -> (i32, i32) {
    %c0_i32 = arith.constant 0 : i32
    %c0_i32_0 = arith.constant 0 : i32
    %c0_i32_1 = arith.constant 0 : i32
    return %c0_i32, %c0_i32_0 : i32, i32
  }
  func.func @transform_5(%arg0: i32) -> (i32, i32) {
    %c0_i32 = arith.constant 0 : i32
    %c0_i32_0 = arith.constant 0 : i32
    %c0_i32_1 = arith.constant 0 : i32
    return %c0_i32, %c0_i32_0 : i32, i32
  }
  func.func @transform_6(%arg0: i32) -> (i32, i32) {
    %c0_i32 = arith.constant 0 : i32
    %c0_i32_0 = arith.constant 0 : i32
    %c0_i32_1 = arith.constant 0 : i32
    return %c0_i32, %c0_i32_0 : i32, i32
  }
  func.func @transform_7(%arg0: i32) -> (i32, i32) {
    %c0_i32 = arith.constant 0 : i32
    %c0_i32_0 = arith.constant 0 : i32
    %c0_i32_1 = arith.constant 0 : i32
    return %c0_i32, %c0_i32_0 : i32, i32
  }
  func.func @transform_8(%arg0: i32) -> (i32, i32) {
    %c0_i32 = arith.constant 0 : i32
    %c0_i32_0 = arith.constant 0 : i32
    %c0_i32_1 = arith.constant 0 : i32
    return %c0_i32, %c0_i32_0 : i32, i32
  }
  func.func @transform_9(%arg0: i32) -> (i32, i32) {
    %c0_i32 = arith.constant 0 : i32
    %c0_i32_0 = arith.constant 0 : i32
    %c0_i32_1 = arith.constant 0 : i32
    return %c0_i32, %c0_i32_0 : i32, i32
  }
  func.func @transform_10(%arg0: i32) -> (i32, i32) {
    %c0_i32 = arith.constant 0 : i32
    %c0_i32_0 = arith.constant 0 : i32
    %c0_i32_1 = arith.constant 0 : i32
    return %c0_i32, %c0_i32_0 : i32, i32
  }
  func.func @transform_11(%arg0: i32) -> (i32, i32) {
    %c0_i32 = arith.constant 0 : i32
    %c0_i32_0 = arith.constant 0 : i32
    %c0_i32_1 = arith.constant 0 : i32
    return %c0_i32, %c0_i32_0 : i32, i32
  }
  func.func @transform_12(%arg0: i32) -> (i32, i32, i32) {
    %c0_i32 = arith.constant 0 : i32
    %c0_i32_0 = arith.constant 0 : i32
    %c0_i32_1 = arith.constant 0 : i32
    return %arg0, %c0_i32, %c0_i32_0 : i32, i32, i32
  }
}

</mosaic_0001>

<bundles_post_ra>
// kernel: tpu_custom_call.1
= control target key start
LH: loop header
LB: loop body
LE: loop exit
PB: predicated region body
PF: predicated region fallthrough
CT: control target
= control target key end

     0   :  { %s11006_s0 = inlined_call_operand.hbm [shape: f32[2,128,128], index: 0, kind: input, shape index: {}]   ;;  %s11007_s1 = inlined_call_operand.hbm [shape: f32[128,128], index: 1, kind: input, shape index: {}]   ;;  %s11008_s2 = inlined_call_operand.hbm [shape: f32[128,128], index: 2, kind: input, shape index: {}]   ;;  %s11009_s3 = inlined_call_operand.hbm [shape: f32[128,128], index: 3, kind: input, shape index: {}]   ;;  %s11010_s4 = inlined_call_operand.hbm [shape: f32[128,128], index: 4, kind: input, shape index: {}]   ;;  %s11011_s5 = inlined_call_operand.hbm [shape: f32[128,256], index: 5, kind: input, shape index: {}]   ;;  %s11012_s6 = inlined_call_operand.hbm [shape: f32[128,256], index: 6, kind: input, shape index: {}]   ;;  %s11013_s7 = inlined_call_operand.hbm [shape: f32[256,128], index: 7, kind: input, shape index: {}]   ;;  %s11014_s8 = inlined_call_operand.vmem [shape: f32[1,128], index: 8, kind: input, shape index: {}]   ;;  %s11015_s9 = inlined_call_operand.vmem [shape: f32[1,128], index: 9, kind: input, shape index: {}]   ;;  %s11016_s10 = inlined_call_operand.vmem [shape: f32[1,128], index: 10, kind: input, shape index: {}]   ;;  %s11017_s11 = inlined_call_operand.vmem [shape: f32[1,128], index: 11, kind: input, shape index: {}]   ;;  %s11018_s12 = inlined_call_operand.hbm [shape: f32[2,128,128], index: 12, kind: output, shape index: {}]  }
   0x1   :  { %11067 = sst [smem:[#allocation67_spill]] %s11007_s1 }
   0x2   :  { %11068 = sst [smem:[#allocation68_spill]] %s11008_s2 }
   0x3   :  { %11069 = sst [smem:[#allocation69_spill]] %s11009_s3 }
   0x4   :  { %11070 = sst [smem:[#allocation70_spill]] %s11011_s5 }
   0x5   :  { %11071 = sst [smem:[#allocation71_spill]] %s11017_s11 }
   0x6   :  { %11072 = sst [smem:[#allocation72_spill]] %s11018_s12 }
   0x7   :  { %17 = vsyncpa [#allocation3], 0 }
   0x8   :  { %19 = vsyncpa [#allocation3 + $0x1], 0 }
   0x9   :  { %20 = vsyncpa [#allocation6], 0 }
   0xa   :  { %21 = vsyncpa [#allocation9], 0 }
   0xb   :  { %22 = vsyncpa [#allocation12], 0 }
   0xc   :  { %23 = vsyncpa [#allocation15], 0 }
   0xd   :  { %24 = vsyncpa [#allocation4], 0 }
   0xe   :  { %26 = vsyncpa [#allocation4 + $0x1], 0  ;;  %s7446_s21 = smov 0   ;;  %s7448_s22 = smov 0  }
   0xf   :  { %s7450_s23 = smov 0   ;;  %s7452_s24 = smov 0  }
  0x10 LB: > { %s11073_s1 = sld [smem:[#allocation67_spill]]  ;;  %s7470_s28 = sadd.s32 4294967295, %s7362_s24   ;;  %s7362_s24 = sphi %s7452_s24, %s11274_s24   ;;  %s7358_s23 = sphi %s7450_s23, %s11273_s23   ;;  %s7354_s22 = sphi %s7448_s22, %s11272_s22   ;;  %s7350_s21 = sphi %s7446_s21, %s11271_s21  }
  0x11   : > { %p6032_p0 = scmp.ge.s32.totalorder %s7362_s24, 1  ;;  %p53_p1 = scmp.eq.s32.totalorder %s7470_s28, 0 }
  0x12   : > { %p320_p2 = scmp.lt.s32.totalorder %s7362_s24, 3  ;;  %s7364_s30 = smov [#allocation5]  }
  0x13   : > { %s333_s13 = sshll.u32 %s7364_s30, 4  ;;  %s11075_s3 = sld [smem:[#allocation69_spill]]  ;;  %s334_s13 = int_to_ptr.vmem [resolvable:$true] %s333_s13 }
  0x14   : > { %p7475_p3 = pnand %p6032_p0, %p320_p2  ;;  %s11077_s5 = sld [smem:[#allocation70_spill]] }
  0x15   : > { %s7365_s25 = smov [#allocation8]   ;;  %s11021_s30 = smov 128  }
  0x16   : > { %s331_s27 = sshll.u32 %s11073_s1, 4  ;;  %p6353_p4 = pneg %p7475_p3  ;;  %s332_s27 = int_to_ptr.hbm [resolvable:$true] %s331_s27 }
  0x17   : > { %s361_s26 = sshll.u32 %s7365_s25, 4  ;;  %s11022_s1 = smov 8   ;;  %s362_s26 = int_to_ptr.vmem [resolvable:$true] %s361_s26 }
  0x18   : > { %p7487_p6 = pnand %p6353_p4, %p53_p1  ;;  %s7368_s14 = smov [#allocation11]  }
  0x19   : > { %s359_s16 = sshll.u32 %s11075_s3, 4  ;;  %s389_s15 = sshll.u32 %s7368_s14, 4  ;;  %s360_s16 = int_to_ptr.hbm [resolvable:$true] %s359_s16  ;;  %s390_s15 = int_to_ptr.vmem [resolvable:$true] %s389_s15 }
  0x1a   : > { %s387_s20 = sshll.u32 %s11077_s5, 4  ;;  %s11078_s2 = sld [smem:[#allocation68_spill]]  ;;  %s388_s20 = int_to_ptr.hbm [resolvable:$true] %s387_s20 }
  0x1b   : > { %6356 = dma.hbm_to_vmem [thread:$0]  (!%p7487_p6), %s332_s27, 2048, %s334_s13, [#allocation6], %s11021_s30, %s11021_s30, %s11022_s1  }
  0x1c   : > { %6362 = dma.hbm_to_vmem [thread:$0]  (!%p7487_p6), %s360_s16, 2048, %s362_s26, [#allocation9], %s11021_s30, %s11021_s30, %s11022_s1  }
  0x1d   : > { %s7369_s3 = smov 256   ;;  %s7370_s5 = smov 16  }
  0x1e   : > { %6368 = dma.hbm_to_vmem [thread:$0]  (!%p7487_p6), %s388_s20, 4096, %s390_s15, [#allocation12], %s7369_s3, %s7369_s3, %s7370_s5  }
  0x1f   : > { %s7371_s27 = smov [#allocation7]   ;;  %s373_s16 = sshll.u32 %s11010_s4, 4  ;;  %s374_s16 = int_to_ptr.hbm [resolvable:$true] %s373_s16 }
  0x20   : > { %s345_s25 = sshll.u32 %s11078_s2, 4  ;;  %s347_s13 = sshll.u32 %s7371_s27, 4  ;;  %s346_s25 = int_to_ptr.hbm [resolvable:$true] %s345_s25  ;;  %s348_s13 = int_to_ptr.vmem [resolvable:$true] %s347_s13 }
  0x21   : > { %6359 = dma.hbm_to_vmem [thread:$0]  (!%p7487_p6), %s346_s25, 2048, %s348_s13, [#allocation6], %s11021_s30, %s11021_s30, %s11022_s1  }
  0x22   : > { %s401_s20 = sshll.u32 %s11012_s6, 4  ;;  %s7372_s15 = smov [#allocation10]   ;;  %s402_s20 = int_to_ptr.hbm [resolvable:$true] %s401_s20 }
  0x23   : > { %s375_s18 = sshll.u32 %s7372_s15, 4  ;;  %s7373_s11 = smov [#allocation13]   ;;  %s376_s18 = int_to_ptr.vmem [resolvable:$true] %s375_s18 }
  0x24   : > { %6365 = dma.hbm_to_vmem [thread:$0]  (!%p7487_p6), %s374_s16, 2048, %s376_s18, [#allocation9], %s11021_s30, %s11021_s30, %s11022_s1  }
  0x25   : > { %s403_s12 = sshll.u32 %s7373_s11, 4  ;;  %s415_s27 = sshll.u32 %s11013_s7, 4  ;;  %s404_s12 = int_to_ptr.vmem [resolvable:$true] %s403_s12  ;;  %s416_s27 = int_to_ptr.hbm [resolvable:$true] %s415_s27 }
  0x26   : > { %6371 = dma.hbm_to_vmem [thread:$0]  (!%p7487_p6), %s402_s20, 4096, %s404_s12, [#allocation12], %s7369_s3, %s7369_s3, %s7370_s5  }
  0x27   : > { %s7374_s13 = smov [#allocation14]   ;;  %s6031_s16 = sadd.s32 4294967294, %s7362_s24  }
  0x28   : > { %s417_s26 = sshll.u32 %s7374_s13, 4  ;;  %s7537_s14 = sadd.s32 1, %s7362_s24   ;;  %s418_s26 = int_to_ptr.vmem [resolvable:$true] %s417_s26 }
  0x29   : > { %6374 = dma.hbm_to_vmem [thread:$0]  (!%p7487_p6), %s416_s27, 4096, %s418_s26, [#allocation15], %s11021_s30, %s11021_s30, %s11022_s1  }
  0x2a   : > { %s39_s15 = sadd.s32 1, %s7358_s23  ;;  %s36_s18 = ssub.s32 %s7362_s24, %s7537_s14 }
  0x2b   : > { %p46_p7 = scmp.ne.s32.totalorder %s7358_s23, %s7354_s22  ;;  %p37_p8 = scmp.eq.s32.totalorder %s36_s18, 0 }
  0x2c   : > { %p47_p9 = scmp.eq.s32.totalorder %s7362_s24, 0  ;;  %p52_p10 = scmp.ne.s32.totalorder %s7354_s22, %s7350_s21 }
  0x2d   : > { %p307_p11 = scmp.eq.s32.totalorder %s7470_s28, 1  ;;  %p313_p0 = scmp.eq.s32.totalorder %s6031_s16, 1 }
  0x2e   : > { %s7549_s3 = scalar_select %p37_p8, %s7358_s23, %s39_s15  }
  0x2f   : > { %p7553_p12 = por %p53_p1, %p52_p10  ;;  %p7557_p13 = por %p307_p11, %p46_p7 }
  0x30   : > { %p48_p2 = por %p47_p9, %p46_p7  ;;  %s443_s20 = sand.u32 1, %s7358_s23  }
  0x31   : > { %p7562_p4 = por %p313_p0, %p52_p10  ;;  %p6390_p6 = scmp.lt.s32.totalorder %s7362_s24, 2 }
  0x32   : > { %s6041_s12 = sshll.u32 %s443_s20, 7  ;;  %s6283_s19 = sshll.u32 %s7362_s24, 7 }
  0x33   : > { %s452_s13 = scalar_lea.hbm %s11006_s0, %s6283_s19  ;;  %s447_s15 = scalar_lea.vmem [#allocation2], %s6041_s12 }
  0x34   : > { %s453_s26 = sshll.u32 %s452_s13, 4  ;;  %s455_s18 = sshll.u32 %s447_s15, 4  ;;  %s454_s26 = int_to_ptr.hbm [resolvable:$true] %s453_s26  ;;  %s456_s18 = int_to_ptr.vmem [resolvable:$true] %s455_s18 }
  0x35   : > { %p7571_p8 = pnand %p6390_p6, %p48_p2  ;;  %s444_s30 = scalar_lea.sflag [#allocation3], %s443_s20 }
  0x36   : > { %s7250_s1 = sshra.s32 %s454_s26, 4  ;;  %s7257_s12 = scalar_lea.hbm %s11006_s0, 256  ;;  %s7251_s1 = int_to_ptr.hbm [resolvable:$true] %s7250_s1 }
  0x37   : > { %s7252_s2 = scalar_lea.hbm %s7251_s1, 128  ;;  %p7254_p9 = pneg %p7571_p8 }
  0x38   : > { %p7253_p7 = scmp.ne.s32.totalorder %s7251_s1, %s7252_s2  ;;  %p7258_p0 = scmp.lt.s32.totalorder %s7251_s1, %s11006_s0 }
  0x39   : > { %p7259_p2 = scmp.lt.s32.totalorder %s7257_s12, %s7252_s2 }
  0x3a   : > { %p7255_p10 = pnand %p7254_p9, %p7253_p7 }
  0x3b   : > { %p7260_p6 = por %p7259_p2, %p7258_p0 }
  0x3c   : > { %p7256_p11 = pneg %p7255_p10 }
  0x3e   : > { %p7261_p5 = pnand %p7260_p6, %p7256_p11 }
  0x40   : > { %7264 = shalt.err (!%p7261_p5)
}
  0x41   : > { %s11083_s20 = smov 8   ;;  %s11084_s15 = smov 128  }
  0x42   : > { %6378 = dma.hbm_to_vmem [thread:$0]  (!%p7571_p8), %s454_s26, 2048, %s456_s18, %s444_s30, %s11084_s15, %s11084_s15, %s11083_s20  }
  0x43   : > { %467 = sbr.rel (%p7475_p3) target bundleno = 3508 (0xdb4), region = 68 }
  0x48   : > { %s7591_s19 = sand.u32 1, %s7354_s22  }
  0x49   : > { %s6045_s1 = sshll.u32 %s7591_s19, 7  ;;  %s470_s2 = scalar_lea.sflag [#allocation3], %s7591_s19 }
  0x4a   : > { %s7597_s25 = scalar_lea.vmem [#allocation2], %s6045_s1 }
  0x4b   : > { %7325 = dma.done.wait (%p7553_p12), %s470_s2, 2048  }
  0x4c   : > { %7327 = vsyncadd (%p7553_p12), %s470_s2, 4294965248 }
  0x4d   : > { %7329 = dma.done.wait (%p53_p1), [#allocation6], 4096  }
  0x4e   : > { %7331 = vsyncadd (%p53_p1), [#allocation6], 4294963200 }
  0x4f   : > { %7333 = dma.done.wait (%p53_p1), [#allocation9], 4096  }
  0x50   : > { %7335 = vsyncadd (%p53_p1), [#allocation9], 4294963200 }
  0x51   : > { %7337 = dma.done.wait (%p53_p1), [#allocation12], 8192  }
  0x52   : > { %7339 = vsyncadd (%p53_p1), [#allocation12], 4294959104 }
  0x53   : > { %7341 = dma.done.wait (%p53_p1), [#allocation15], 4096  }
  0x54   : > { %7343 = vsyncadd (%p53_p1), [#allocation15], 4294963200  ;;  %v552_v0 = vld [vmem:[%s7597_s25 + $0x10] sm:$0xff]  ;;  %v550_v1 = vld [vmem:[%s7597_s25] sm:$0xff]  ;;  %v7375_v7 = vmov 128.0   ;;  %s7376_s18 = smov 96  }
  0x55   : > { %v7622_v2 = vld [vmem:[%s7597_s25 + $0x20] sm:$0xff]  ;;  %572 = vadd.xlane.f32.xlu1 %v552_v0  ;;  %568 = vadd.xlane.f32.xlu0 %v550_v1  ;;  %v551_v3 = vld [vmem:[%s7597_s25 + $0x8] sm:$0xff]  ;;  %v553_v4 = vld [vmem:[%s7597_s25 + $0x18] sm:$0xff]  ;;  %6572 = vrcp.f32 %v7375_v7  ;;  %s7377_s16 = smov 64   ;;  %s7378_s12 = smov 32  }
  0x56   : > { %576 = vadd.xlane.f32.xlu2 %v7622_v2  ;;  %v555_v5 = vld [vmem:[%s7597_s25 + $0x28] sm:$0xff]  ;;  %v7629_v6 = vld [vmem:[%s7597_s25 + $0x30] sm:$0xff]  ;;  %v7653_v31 = vld [vmem:[%s7597_s25 + $0x38] sm:$0xff]  ;;  %s11183_s2 = sld [smem:[#allocation71_spill]]  ;;  %s10928_s26 = scalar_lea.vmem [#allocation16], %s6045_s1 }
  0x57   : > { %v7650_v30 = vld [vmem:[%s7597_s25 + $0x48] sm:$0xff]  ;;  %v948_v35 = vld [vmem:[#allocation5 + $0x78] sm:$0xff]  ;;  %v947_v38 = vld [vmem:[#allocation5 + $0x70] sm:$0xff]  ;;  %s6284_s1 = sshll.u32 %s7470_s28, 7  ;;  %s5888_s13 = sshll.u32 %s10928_s26, 4  ;;  %s5889_s13 = int_to_ptr.vmem [resolvable:$true] %s5888_s13 }
  0x58   : > { %v1029_v36 = vld [vmem:[#allocation7 + $0x78] sm:$0xff]  ;;  %949 = vmatpush.msra.mxu0 %v948_v35  ;;  %v1028_v39 = vld [vmem:[#allocation7 + $0x70] sm:$0xff]  ;;  %v7669_v44 = vld [vmem:[%s7597_s25 + $0x40] sm:$0xff]  ;;  %s5876_s15 = scalar_lea.sflag [#allocation4], %s7591_s19 }
  0x59   : > { %v1110_v37 = vld [vmem:[#allocation8 + $0x78] sm:$0xff]  ;;  %v1109_v40 = vld [vmem:[#allocation8 + $0x70] sm:$0xff]  ;;  %1030 = vmatpush.msra.mxu1 %v1029_v36  ;;  %v7682_v50 = vld [vmem:[%s7597_s25 + $0x60] sm:$0xff] }
  0x5a   : > { %1111 = vmatpush.msra.mxu2 %v1110_v37  ;;  %950 = vmatpush.msra.mxu0 %v947_v38  ;;  %v7677_v48 = vld [vmem:[%s7597_s25 + $0x50] sm:$0xff]  ;;  %v7692_v53 = vld [vmem:[%s7597_s25 + $0x58] sm:$0xff]  ;;  %v7696_v54 = vld [vmem:[%s7597_s25 + $0x68] sm:$0xff] }
  0x5b   : > { %v6573_v8 = vpop.eup %6572  ;;  %1031 = vmatpush.msra.mxu1 %v1028_v39  ;;  %v946_v55 = vld [vmem:[#allocation5 + $0x68] sm:$0xff]  ;;  %v945_v58 = vld [vmem:[#allocation5 + $0x60] sm:$0xff]  ;;  %v944_v61 = vld [vmem:[#allocation5 + $0x58] sm:$0xff] }
  0x5c   : > { %v601_v9 = vmul.f32 128.0, %v6573_v8  ;;  %vm605_vm0 = vweird.f32 %v6573_v8  ;;  %1112 = vmatpush.msra.mxu2 %v1109_v40  ;;  %v1027_v56 = vld [vmem:[#allocation7 + $0x68] sm:$0xff]  ;;  %951 = vmatpush.msra.mxu0 %v946_v55  ;;  %v1026_v59 = vld [vmem:[#allocation7 + $0x60] sm:$0xff]  ;;  %v1025_v62 = vld [vmem:[#allocation7 + $0x58] sm:$0xff] }
  0x5d   : > { %570 = vadd.xlane.f32.xlu0 %v551_v3  ;;  %574 = vadd.xlane.f32.xlu1 %v553_v4  ;;  %v1108_v57 = vld [vmem:[#allocation8 + $0x68] sm:$0xff]  ;;  %v1107_v60 = vld [vmem:[#allocation8 + $0x60] sm:$0xff]  ;;  %v1106_v63 = vld [vmem:[#allocation8 + $0x58] sm:$0xff] }
  0x5e   : > { %578 = vadd.xlane.f32.xlu2 %v555_v5  ;;  %v602_v10 = vsub.f32 1.0, %v601_v9  ;;  %1032 = vmatpush.msra.mxu1 %v1027_v56  ;;  %v1022_v7 = vld [vmem:[#allocation7 + $0x40] sm:$0xff]  ;;  %v940_v9 = vld [vmem:[#allocation5 + $0x38] sm:$0xff]  ;;  %v934_v35 = vld [vmem:[#allocation5 + $0x8] sm:$0xff] }
  0x5f   : > { %1113 = vmatpush.msra.mxu2 %v1108_v57  ;;  %952 = vmatpush.msra.mxu0 %v945_v58  ;;  %v1015_v36 = vld [vmem:[#allocation7 + $0x8] sm:$0xff]  ;;  %v933_v38 = vld [vmem:[#allocation5] sm:$0xff] }
  0x60   : > { %v603_v11 = vmul.f32 %v6573_v8, %v602_v10  ;;  %1033 = vmatpush.msra.mxu1 %v1026_v59  ;;  %v1021_v10 = vld [vmem:[#allocation7 + $0x38] sm:$0xff]  ;;  %v1096_v37 = vld [vmem:[#allocation8 + $0x8] sm:$0xff]  ;;  %v1014_v39 = vld [vmem:[#allocation7] sm:$0xff] }
  0x61   : > { %1114 = vmatpush.msra.mxu2 %v1107_v60  ;;  %953 = vmatpush.msra.mxu0 %v944_v61  ;;  %v1095_v40 = vld [vmem:[#allocation8] sm:$0xff] }
  0x62   : > { %v604_v12 = vadd.f32 %v6573_v8, %v603_v11  ;;  %1034 = vmatpush.msra.mxu1 %v1025_v62  ;;  %v1102_v11 = vld [vmem:[#allocation8 + $0x38] sm:$0xff] }
  0x63   : > { %1115 = vmatpush.msra.mxu2 %v1106_v63 }
  0x64   : > { %v7632_v13 = vsel %vm605_vm0, %v6573_v8, %v604_v12  ;;  %v1103_v8 = vld [vmem:[#allocation8 + $0x40] sm:$0xff]  ;;  %v939_v12 = vld [vmem:[#allocation5 + $0x30] sm:$0xff] }
  0x65   : > { %580 = vadd.xlane.f32.xlu1 %v7629_v6  ;;  %11085 = vst [vmem:[#allocation23_spill] sm:$0xff] %v7632_v13 }
  0xc8   : > { %v573_v14 = vpop.xlane.xlu1 %572  ;;  %v569_v15 = vpop.xlane.xlu0 %568 }
  0xc9   : > { %v609_v16 = vmul.f32 %v7632_v13, %v573_v14  ;;  %v607_v17 = vmul.f32 %v7632_v13, %v569_v15  ;;  %v577_v18 = vpop.xlane.xlu2 %576  ;;  %v1020_v14 = vld [vmem:[#allocation7 + $0x30] sm:$0xff] }
  0xca   : > { %v611_v43 = vmul.f32 %v7632_v13, %v577_v18  ;;  %v1101_v15 = vld [vmem:[#allocation8 + $0x30] sm:$0xff]  ;;  %v1100_v18 = vld [vmem:[#allocation8 + $0x28] sm:$0xff] }
  0xcb   : > { %v7636_v19 = vsub.f32 %v552_v0, %v609_v16  ;;  %v7638_v20 = vsub.f32 %v550_v1, %v607_v17  ;;  %v943_v0 = vld [vmem:[#allocation5 + $0x50] sm:$0xff]  ;;  %v938_v16 = vld [vmem:[#allocation5 + $0x28] sm:$0xff] }
  0xcc   : > { %v7673_v45 = vsub.f32 %v7622_v2, %v611_v43  ;;  %v1024_v1 = vld [vmem:[#allocation7 + $0x50] sm:$0xff]  ;;  %954 = vmatpush.msra.mxu0 %v943_v0  ;;  %v1019_v17 = vld [vmem:[#allocation7 + $0x28] sm:$0xff] }
  0xcd   : > { %v641_v21 = vmul.f32 %v7636_v19, %v7636_v19  ;;  %v639_v22 = vmul.f32 %v7638_v20, %v7638_v20  ;;  %v1105_v2 = vld [vmem:[#allocation8 + $0x50] sm:$0xff]  ;;  %1035 = vmatpush.msra.mxu1 %v1024_v1 }
  0xce   : > { %v643_v49 = vmul.f32 %v7673_v45, %v7673_v45  ;;  %1116 = vmatpush.msra.mxu2 %v1105_v2 }
  0xcf   : > { %659 = vadd.xlane.f32.xlu1 %v641_v21  ;;  %655 = vadd.xlane.f32.xlu0 %v639_v22  ;;  %v937_v21 = vld [vmem:[#allocation5 + $0x20] sm:$0xff] }
  0xd0   : > { %v571_v23 = vpop.xlane.xlu0 %570  ;;  %v575_v24 = vpop.xlane.xlu1 %574  ;;  %v1018_v22 = vld [vmem:[#allocation7 + $0x20] sm:$0xff] }
  0xd1   : > { %v608_v25 = vmul.f32 %v7632_v13, %v571_v23  ;;  %v579_v26 = vpop.xlane.xlu2 %578  ;;  %v610_v29 = vmul.f32 %v7632_v13, %v575_v24  ;;  %v1099_v23 = vld [vmem:[#allocation8 + $0x20] sm:$0xff]  ;;  %v936_v24 = vld [vmem:[#allocation5 + $0x18] sm:$0xff] }
  0xd2   : > { %v612_v28 = vmul.f32 %v7632_v13, %v579_v26  ;;  %v1098_v26 = vld [vmem:[#allocation8 + $0x18] sm:$0xff] }
  0xd3   : > { %v7645_v27 = vsub.f32 %v551_v3, %v608_v25  ;;  %v7661_v34 = vsub.f32 %v553_v4, %v610_v29  ;;  %v942_v3 = vld [vmem:[#allocation5 + $0x48] sm:$0xff]  ;;  %v1017_v25 = vld [vmem:[#allocation7 + $0x18] sm:$0xff]  ;;  %v1016_v29 = vld [vmem:[#allocation7 + $0x10] sm:$0xff] }
  0xd4   : > { %v7659_v33 = vsub.f32 %v555_v5, %v612_v28  ;;  %v1023_v4 = vld [vmem:[#allocation7 + $0x48] sm:$0xff]  ;;  %955 = vmatpush.msra.mxu0 %v942_v3  ;;  %v935_v28 = vld [vmem:[#allocation5 + $0x10] sm:$0xff] }
  0xd5   : > { %v640_v32 = vmul.f32 %v7645_v27, %v7645_v27  ;;  %v642_v42 = vmul.f32 %v7661_v34, %v7661_v34  ;;  %v1104_v5 = vld [vmem:[#allocation8 + $0x48] sm:$0xff]  ;;  %1036 = vmatpush.msra.mxu1 %v1023_v4 }
  0xd6   : > { %v644_v41 = vmul.f32 %v7659_v33, %v7659_v33  ;;  %1117 = vmatpush.msra.mxu2 %v1104_v5 }
  0xd7   : > { %586 = vadd.xlane.f32.xlu1 %v7650_v30  ;;  %582 = vadd.xlane.f32.xlu0 %v7653_v31 }
  0xd8   : > { %657 = vadd.xlane.f32.xlu2 %v640_v32  ;;  %v581_v46 = vpop.xlane.xlu1 %580  ;;  %1037 = vmatpush.msra.mxu1 %v1022_v7  ;;  %v1097_v32 = vld [vmem:[#allocation8 + $0x10] sm:$0xff] }
  0xd9   : > { %v613_v47 = vmul.f32 %v7632_v13, %v581_v46  ;;  %1118 = vmatpush.msra.mxu2 %v1103_v8 }
  0xda   : > { %1038 = vmatpush.msra.mxu1 %v1021_v10 }
  0xdb   : > { %v7687_v51 = vsub.f32 %v7629_v6, %v613_v47  ;;  %v941_v6 = vld [vmem:[#allocation5 + $0x40] sm:$0xff]  ;;  %1119 = vmatpush.msra.mxu2 %v1102_v11 }
  0xdc   : > { %956 = vmatpush.msra.mxu0 %v941_v6  ;;  %1039 = vmatpush.msra.mxu1 %v1020_v14 }
  0xdd   : > { %v645_v52 = vmul.f32 %v7687_v51, %v7687_v51  ;;  %1120 = vmatpush.msra.mxu2 %v1101_v15 }
  0xde   : > { %957 = vmatpush.msra.mxu0 %v940_v9  ;;  %1040 = vmatpush.msra.mxu1 %v1019_v17  ;;  %v7734_v17 = vld [vmem:[%s7597_s25 + $0x70] sm:$0xff] }
  0xdf   : > { %665 = vadd.xlane.f32.xlu1 %v644_v41  ;;  %661 = vadd.xlane.f32.xlu0 %v642_v42 }
  0xe0   : > { %584 = vadd.xlane.f32.xlu2 %v7669_v44  ;;  %958 = vmatpush.msra.mxu0 %v939_v12 }
  0xe1   : > { %1121 = vmatpush.msra.mxu2 %v1100_v18  ;;  %1041 = vmatpush.msra.mxu1 %v1018_v22 }
  0xe2   : > { %959 = vmatpush.msra.mxu0 %v938_v16 }
  0xe3   : > { %1122 = vmatpush.msra.mxu2 %v1099_v23  ;;  %1042 = vmatpush.msra.mxu1 %v1017_v25 }
  0xe4   : > { %960 = vmatpush.msra.mxu0 %v937_v21 }
  0xe5   : > { %1123 = vmatpush.msra.mxu2 %v1098_v26  ;;  %1043 = vmatpush.msra.mxu1 %v1016_v29 }
  0xe6   : > { %961 = vmatpush.msra.mxu0 %v936_v24  ;;  %v7743_v24 = vld [vmem:[%s11014_s8] ss:$0 sm:$0xff] }
  0xe7   : > { %588 = vadd.xlane.f32.xlu0 %v7677_v48  ;;  %592 = vadd.xlane.f32.xlu1 %v7682_v50 }
  0xe8   : > { %663 = vadd.xlane.f32.xlu2 %v643_v49  ;;  %962 = vmatpush.msra.mxu0 %v935_v28 }
  0xe9   : > { %1124 = vmatpush.msra.mxu2 %v1097_v32  ;;  %1044 = vmatpush.msra.mxu1 %v1015_v36  ;;  %v7752_v32 = vld [vmem:[%s11015_s9] ss:$0 sm:$0xff] }
  0xea   : > { %963 = vmatpush.msra.mxu0 %v934_v35 }
  0xeb   : > { %1125 = vmatpush.msra.mxu2 %v1096_v37  ;;  %1045 = vmatpush.msra.mxu1 %v1014_v39 }
  0xec   : > { %964 = vmatpush.msra.mxu0 %v933_v38 }
  0xed   : > { %1126 = vmatpush.msra.mxu2 %v1095_v40 }
  0xef   : > { %667 = vadd.xlane.f32.xlu0 %v645_v52 }
  0xf0   : > { %590 = vadd.xlane.f32.xlu2 %v7692_v53 }
  0xf7   : > { %594 = vadd.xlane.f32.xlu0 %v7696_v54 }
 0x142   : > { %v660_v41 = vpop.xlane.xlu1 %659  ;;  %v656_v42 = vpop.xlane.xlu0 %655 }
 0x143   : > { %v689_v43 = vmul.f32 %v660_v41, %v7632_v13  ;;  %v687_v46 = vmul.f32 %v656_v42, %v7632_v13 }
 0x145   : > { %v7701_v47 = vadd.f32 1e-05, %v689_v43  ;;  %v703_v49 = vadd.f32 1e-05, %v687_v46 }
 0x147   : > { %6574 = vrsqrt.f32 %v7701_v47  ;;  %vm725_vm2 = vweird.f32 %v703_v49  ;;  %vm745_vm4 = vweird.f32 %v7701_v47 }
 0x148   : > { %6576 = vrsqrt.f32 %v703_v49 }
 0x14a   : > { %v587_v52 = vpop.xlane.xlu1 %586  ;;  %v583_v55 = vpop.xlane.xlu0 %582 }
 0x14b   : > { %v616_v56 = vmul.f32 %v7632_v13, %v587_v52  ;;  %v658_v57 = vpop.xlane.xlu2 %657  ;;  %v614_v58 = vmul.f32 %v7632_v13, %v583_v55 }
 0x14c   : > { %v688_v59 = vmul.f32 %v658_v57, %v7632_v13  ;;  %v7778_v57 = vld [vmem:[%s7597_s25 + $0x78] sm:$0xff] }
 0x14d   : > { %v7707_v60 = vpop.eup %6574  ;;  %v7710_v61 = vsub.f32 %v7650_v30, %v616_v56  ;;  %v7713_v62 = vsub.f32 %v7653_v31, %v614_v58 }
 0x14e   : > { %v6577_v63 = vpop.eup %6576  ;;  %v7715_v0 = vadd.f32 1e-05, %v688_v59  ;;  %v740_v1 = vmul.f32 %v7707_v60, %v7701_v47  ;;  %vm746_vm5 = vweird.f32 %v7707_v60 }
 0x14f   : > { %v720_v2 = vmul.f32 %v6577_v63, %v703_v49  ;;  %v648_v3 = vmul.f32 %v7710_v61, %v7710_v61  ;;  %v646_v4 = vmul.f32 %v7713_v62, %v7713_v62  ;;  %vm726_vm1 = vweird.f32 %v6577_v63  ;;  %vm7771_vm8 = vmor %vm745_vm4, %vm746_vm5 }
 0x150   : > { %6578 = vrsqrt.f32 %v7715_v0  ;;  %v741_v5 = vmul.f32 %v7707_v60, %v740_v1  ;;  %vm727_vm3 = vmor %vm725_vm2, %vm726_vm1  ;;  %vm735_vm6 = vweird.f32 %v7715_v0 }
 0x151   : > { %v721_v30 = vmul.f32 %v6577_v63, %v720_v2  ;;  %673 = vadd.xlane.f32.xlu0 %v648_v3  ;;  %669 = vadd.xlane.f32.xlu2 %v646_v4 }
 0x152   : > { %v662_v31 = vpop.xlane.xlu0 %661  ;;  %v666_v7 = vpop.xlane.xlu1 %665  ;;  %v742_v18 = vmul.f32 0.5, %v741_v5 }
 0x153   : > { %v722_v6 = vmul.f32 0.5, %v721_v30  ;;  %v585_v8 = vpop.xlane.xlu2 %584  ;;  %v690_v9 = vmul.f32 %v662_v31, %v7632_v13  ;;  %v692_v15 = vmul.f32 %v666_v7, %v7632_v13 }
 0x154   : > { %v615_v10 = vmul.f32 %v7632_v13, %v585_v8  ;;  %v743_v35 = vsub.f32 1.5, %v742_v18 }
 0x155   : > { %v723_v11 = vsub.f32 1.5, %v722_v6  ;;  %v7727_v12 = vadd.f32 1e-05, %v690_v9  ;;  %v7746_v26 = vadd.f32 1e-05, %v692_v15 }
 0x156   : > { %v6579_v14 = vpop.eup %6578  ;;  %v7731_v16 = vsub.f32 %v7669_v44, %v615_v10  ;;  %v744_v52 = vmul.f32 %v7707_v60, %v743_v35 }
 0x157   : > { %v724_v21 = vmul.f32 %v6577_v63, %v723_v11  ;;  %v730_v22 = vmul.f32 %v6579_v14, %v7715_v0  ;;  %6580 = vrsqrt.f32 %v7727_v12  ;;  %vm736_vm7 = vweird.f32 %v6579_v14 }
 0x158   : > { %v647_v23 = vmul.f32 %v7731_v16, %v7731_v16  ;;  %6582 = vrsqrt.f32 %v7746_v26  ;;  %vm737_vm9 = vmor %vm735_vm6, %vm736_vm7  ;;  %v748_v31 = vsel %vm7771_vm8, %v7707_v60, %v744_v52  ;;  %vm755_vm10 = vweird.f32 %v7727_v12 }
 0x159   : > { %v731_v44 = vmul.f32 %v6579_v14, %v730_v22  ;;  %596 = vadd.xlane.f32.xlu2 %v7734_v17  ;;  %v728_v25 = vsel %vm727_vm3, %v6577_v63, %v724_v21  ;;  %v881_v11 = vmul.f32 %v748_v31, %v7636_v19  ;;  %vm775_vm0 = vweird.f32 %v7746_v26 }
 0x15a   : > { %671 = vadd.xlane.f32.xlu1 %v647_v23  ;;  %v589_v28 = vpop.xlane.xlu0 %588  ;;  %v879_v29 = vmul.f32 %v728_v25, %v7638_v20  ;;  %v593_v39 = vpop.xlane.xlu1 %592 }
 0x15b   : > { %v732_v36 = vmul.f32 0.5, %v731_v44  ;;  %v664_v37 = vpop.xlane.xlu2 %663  ;;  %v617_v38 = vmul.f32 %v7632_v13, %v589_v28  ;;  %v619_v49 = vmul.f32 %v7632_v13, %v593_v39  ;;  %v900_v22 = vmul.f32 %v7743_v24, %v881_v11 }
 0x15c   : > { %v691_v40 = vmul.f32 %v664_v37, %v7632_v13  ;;  %v898_v20 = vmul.f32 %v7743_v24, %v879_v29 }
 0x15d   : > { %v733_v41 = vsub.f32 1.5, %v732_v36  ;;  %v7761_v42 = vsub.f32 %v7677_v48, %v617_v38  ;;  %v7763_v43 = vpop.eup %6580  ;;  %v7787_v2 = vsub.f32 %v7682_v50, %v619_v49  ;;  %v919_v37 = vadd.f32 %v7752_v32, %v900_v22 }
 0x15e   : > { %v7766_v46 = vadd.f32 1e-05, %v691_v40  ;;  %v917_v47 = vadd.f32 %v7752_v32, %v898_v20  ;;  %v750_v48 = vmul.f32 %v7763_v43, %v7727_v12  ;;  %v7793_v5 = vpop.eup %6582  ;;  %vm756_vm11 = vweird.f32 %v7763_v43 }
 0x15f   : > { %v734_v56 = vmul.f32 %v6579_v14, %v733_v41  ;;  %v649_v58 = vmul.f32 %v7761_v42, %v7761_v42  ;;  %v651_v10 = vmul.f32 %v7787_v2, %v7787_v2  ;;  %vm7810_vm12 = vmor %vm755_vm10, %vm756_vm11  ;;  %vm776_vm1 = vweird.f32 %v7793_v5 }
 0x160   : > { %6584 = vrsqrt.f32 %v7766_v46  ;;  %965 = vmatmul.f32.vlgmr.msra.gmra.mxu0 %v917_v47  ;;  %1046 = vmatmul.f32.vlgmr.msra.gmra.mxu1 %v917_v47  ;;  %v751_v59 = vmul.f32 %v7763_v43, %v750_v48  ;;  %vm765_vm13 = vweird.f32 %v7766_v46  ;;  %vm777_vm2 = vmor %vm775_vm0, %vm776_vm1 }
 0x161   : > { %1127 = vmatmul.f32.vlgmr.msra.gmra.mxu2 %v917_v47  ;;  %675 = vadd.xlane.f32.xlu2 %v649_v58  ;;  %v738_v63 = vsel %vm737_vm9, %v6579_v14, %v734_v56  ;;  %v770_v14 = vmul.f32 %v7793_v5, %v7746_v26 }
 0x162   : > { %598 = vadd.xlane.f32.xlu1 %v7778_v57  ;;  %v668_v0 = vpop.xlane.xlu0 %667  ;;  %v880_v1 = vmul.f32 %v738_v63, %v7645_v27  ;;  %v752_v3 = vmul.f32 0.5, %v751_v59 }
 0x163   : > { %v591_v4 = vpop.xlane.xlu2 %590  ;;  %v693_v30 = vmul.f32 %v668_v0, %v7632_v13  ;;  %v771_v23 = vmul.f32 %v7793_v5, %v770_v14 }
 0x164   : > { %v618_v6 = vmul.f32 %v7632_v13, %v591_v4  ;;  %v899_v7 = vmul.f32 %v7743_v24, %v880_v1  ;;  %v753_v8 = vsub.f32 1.5, %v752_v3 }
 0x165   : > { %v709_v27 = vadd.f32 1e-05, %v693_v30  ;;  %v772_v39 = vmul.f32 0.5, %v771_v23 }
 0x166   : > { %v6585_v50 = vpop.eup %6584  ;;  %v918_v9 = vadd.f32 %v7752_v32, %v899_v7  ;;  %v7803_v60 = vsub.f32 %v7692_v53, %v618_v6  ;;  %v754_v15 = vmul.f32 %v7763_v43, %v753_v8 }
 0x167   : > { %v760_v12 = vmul.f32 %v6585_v50, %v7766_v46  ;;  %6586 = vrsqrt.f32 %v709_v27  ;;  %vm766_vm14 = vweird.f32 %v6585_v50  ;;  %v773_v46 = vsub.f32 1.5, %v772_v39 }
 0x168   : > { %968 = vmatmul.f32.gmra.mxu0 %v918_v9  ;;  %1049 = vmatmul.f32.gmra.mxu1 %v918_v9  ;;  %v650_v53 = vmul.f32 %v7803_v60, %v7803_v60  ;;  %v758_v28 = vsel %vm7810_vm12, %v7763_v43, %v754_v15  ;;  %vm767_vm15 = vmor %vm765_vm13, %vm766_vm14  ;;  %vm785_vm3 = vweird.f32 %v709_v27 }
 0x169   : > { %v761_v21 = vmul.f32 %v6585_v50, %v760_v12  ;;  %1130 = vmatmul.f32.gmra.mxu2 %v918_v9  ;;  %v882_v38 = vmul.f32 %v758_v28, %v7661_v34  ;;  %v774_v52 = vmul.f32 %v7793_v5, %v773_v46 }
 0x16a   : > { %679 = vadd.xlane.f32.xlu1 %v651_v10  ;;  %677 = vadd.xlane.f32.xlu0 %v650_v53  ;;  %v595_v19 = vpop.xlane.xlu0 %594 }
 0x16b   : > { %v762_v44 = vmul.f32 0.5, %v761_v21  ;;  %v620_v25 = vmul.f32 %v7632_v13, %v595_v19  ;;  %v901_v43 = vmul.f32 %v7743_v24, %v882_v38  ;;  %v778_v58 = vsel %vm777_vm2, %v7793_v5, %v774_v52 }
 0x16c   : > { %v884_v59 = vmul.f32 %v778_v58, %v7659_v33 }
 0x16d   : > { %v6587_v29 = vpop.eup %6586  ;;  %v763_v35 = vsub.f32 1.5, %v762_v44  ;;  %v7824_v36 = vsub.f32 %v7696_v54, %v620_v25  ;;  %v920_v34 = vadd.f32 %v7752_v32, %v901_v43 }
 0x16e   : > { %v780_v20 = vmul.f32 %v6587_v29, %v709_v27  ;;  %vm786_vm4 = vweird.f32 %v6587_v29 }
 0x16f   : > { %v764_v40 = vmul.f32 %v6585_v50, %v763_v35  ;;  %v652_v41 = vmul.f32 %v7824_v36, %v7824_v36  ;;  %vm787_vm5 = vmor %vm785_vm3, %vm786_vm4 }
 0x170   : > { %971 = vmatmul.f32.gmra.mxu0 %v919_v37  ;;  %1052 = vmatmul.f32.gmra.mxu1 %v919_v37  ;;  %v781_v54 = vmul.f32 %v6587_v29, %v780_v20 }
 0x171   : > { %1133 = vmatmul.f32.gmra.mxu2 %v919_v37  ;;  %681 = vadd.xlane.f32.xlu2 %v652_v41  ;;  %v768_v47 = vsel %vm767_vm15, %v6585_v50, %v764_v40 }
 0x172   : > { %v883_v49 = vmul.f32 %v768_v47, %v7673_v45  ;;  %v782_v55 = vmul.f32 0.5, %v781_v54  ;;  %v903_v45 = vmul.f32 %v7743_v24, %v884_v59 }
 0x174   : > { %v902_v56 = vmul.f32 %v7743_v24, %v883_v49  ;;  %v783_v48 = vsub.f32 1.5, %v782_v55  ;;  %v922_v1 = vadd.f32 %v7752_v32, %v903_v45 }
 0x176   : > { %v921_v26 = vadd.f32 %v7752_v32, %v902_v56  ;;  %v784_v63 = vmul.f32 %v6587_v29, %v783_v48 }
 0x178   : > { %974 = vmatmul.f32.gmra.mxu0 %v920_v34  ;;  %1055 = vmatmul.f32.gmra.mxu1 %v920_v34  ;;  %v788_v0 = vsel %vm787_vm5, %v6587_v29, %v784_v63 }
 0x179   : > { %1136 = vmatmul.f32.gmra.mxu2 %v920_v34  ;;  %v885_v3 = vmul.f32 %v788_v0, %v7687_v51 }
 0x17b   : > { %v904_v4 = vmul.f32 %v7743_v24, %v885_v3 }
 0x17d   : > { %v923_v30 = vadd.f32 %v7752_v32, %v904_v4 }
 0x180   : > { %977 = vmatmul.f32.gmra.mxu0 %v921_v26  ;;  %1058 = vmatmul.f32.gmra.mxu1 %v921_v26 }
 0x181   : > { %1139 = vmatmul.f32.gmra.mxu2 %v921_v26 }
 0x188   : > { %980 = vmatmul.f32.gmra.mxu0 %v922_v1  ;;  %1061 = vmatmul.f32.gmra.mxu1 %v922_v1 }
 0x189   : > { %1142 = vmatmul.f32.gmra.mxu2 %v922_v1 }
 0x190   : > { %983 = vmatmul.f32.gmra.mxu0 %v923_v30  ;;  %1064 = vmatmul.f32.gmra.mxu1 %v923_v30 }
 0x191   : > { %1145 = vmatmul.f32.gmra.mxu2 %v923_v30 }
 0x1c4   : > { %v670_v33 = vpop.xlane.xlu2 %669  ;;  %v674_v31 = vpop.xlane.xlu0 %673 }
 0x1c5   : > { %v694_v5 = vmul.f32 %v670_v33, %v7632_v13  ;;  %v696_v6 = vmul.f32 %v674_v31, %v7632_v13 }
 0x1c7   : > { %v710_v7 = vadd.f32 1e-05, %v694_v5  ;;  %v712_v8 = vadd.f32 1e-05, %v696_v6 }
 0x1c9   : > { %6588 = vrsqrt.f32 %v710_v7  ;;  %vm795_vm7 = vweird.f32 %v710_v7  ;;  %vm815_vm9 = vweird.f32 %v712_v8 }
 0x1ca   : > { %6590 = vrsqrt.f32 %v712_v8 }
 0x1cc   : > { %v597_v51 = vpop.xlane.xlu2 %596 }
 0x1cd   : > { %v672_v27 = vpop.xlane.xlu1 %671  ;;  %v621_v50 = vmul.f32 %v7632_v13, %v597_v51 }
 0x1ce   : > { %v695_v9 = vmul.f32 %v672_v27, %v7632_v13 }
 0x1cf   : > { %v6589_v10 = vpop.eup %6588  ;;  %v7850_v11 = vsub.f32 %v7734_v17, %v621_v50 }
 0x1d0   : > { %v7852_v14 = vpop.eup %6590  ;;  %v790_v15 = vmul.f32 %v6589_v10, %v710_v7  ;;  %v711_v12 = vadd.f32 1e-05, %v695_v9  ;;  %vm796_vm6 = vweird.f32 %v6589_v10 }
 0x1d1   : > { %v810_v18 = vmul.f32 %v7852_v14, %v712_v8  ;;  %v653_v53 = vmul.f32 %v7850_v11, %v7850_v11  ;;  %vm797_vm8 = vmor %vm795_vm7, %vm796_vm6  ;;  %vm816_vm10 = vweird.f32 %v7852_v14 }
 0x1d2   : > { %v791_v21 = vmul.f32 %v6589_v10, %v790_v15  ;;  %6592 = vrsqrt.f32 %v711_v12  ;;  %vm7885_vm12 = vmor %vm815_vm9, %vm816_vm10  ;;  %vm805_vm13 = vweird.f32 %v711_v12 }
 0x1d3   : > { %683 = vadd.xlane.f32.xlu0 %v653_v53  ;;  %v811_v23 = vmul.f32 %v7852_v14, %v810_v18 }
 0x1d4   : > { %v792_v19 = vmul.f32 0.5, %v791_v21  ;;  %v676_v22 = vpop.xlane.xlu2 %675 }
 0x1d5   : > { %v599_v44 = vpop.xlane.xlu1 %598  ;;  %v697_v17 = vmul.f32 %v676_v22, %v7632_v13  ;;  %v812_v39 = vmul.f32 0.5, %v811_v23 }
 0x1d6   : > { %v793_v25 = vsub.f32 1.5, %v792_v19  ;;  %v622_v28 = vmul.f32 %v7632_v13, %v599_v44 }
 0x1d7   : > { %v7860_v29 = vadd.f32 1e-05, %v697_v17  ;;  %v813_v54 = vsub.f32 1.5, %v812_v39 }
 0x1d8   : > { %v6593_v35 = vpop.eup %6592  ;;  %v794_v37 = vmul.f32 %v6589_v10, %v793_v25  ;;  %v7863_v38 = vsub.f32 %v7778_v57, %v622_v28 }
 0x1d9   : > { %v800_v40 = vmul.f32 %v6593_v35, %v711_v12  ;;  %6594 = vrsqrt.f32 %v7860_v29  ;;  %vm806_vm11 = vweird.f32 %v6593_v35  ;;  %v814_v45 = vmul.f32 %v7852_v14, %v813_v54 }
 0x1da   : > { %v654_v20 = vmul.f32 %v7863_v38, %v7863_v38  ;;  %v798_v41 = vsel %vm797_vm8, %v6589_v10, %v794_v37  ;;  %vm807_vm14 = vmor %vm805_vm13, %vm806_vm11  ;;  %vm825_vm15 = vweird.f32 %v7860_v29 }
 0x1db   : > { %v801_v43 = vmul.f32 %v6593_v35, %v800_v40  ;;  %v886_v46 = vmul.f32 %v798_v41, %v7713_v62  ;;  %v818_v8 = vsel %vm7885_vm12, %v7852_v14, %v814_v45 }
 0x1dc   : > { %685 = vadd.xlane.f32.xlu1 %v654_v20  ;;  %v888_v14 = vmul.f32 %v818_v8, %v7710_v61 }
 0x1dd   : > { %v802_v47 = vmul.f32 0.5, %v801_v43  ;;  %v680_v34 = vpop.xlane.xlu1 %679  ;;  %v7869_v49 = vpop.f32.mrf.mxu0  ;;  %v905_v57 = vmul.f32 %v7743_v24, %v886_v46 }
 0x1de   : > { %11090 = vst [vmem:[#allocation24_spill] sm:$0xff] %v7869_v49  ;;  %v699_v52 = vmul.f32 %v680_v34, %v7632_v13  ;;  %v7874_v55 = vpop.f32.mrf.mxu1  ;;  %v678_v56 = vpop.xlane.xlu0 %677  ;;  %v907_v22 = vmul.f32 %v7743_v24, %v888_v14 }
 0x1df   : > { %11091 = vst [vmem:[#allocation25_spill] sm:$0xff] %v7874_v55  ;;  %v7876_v48 = vpop.eup %6594  ;;  %v803_v58 = vsub.f32 1.5, %v802_v47  ;;  %v698_v62 = vmul.f32 %v678_v56, %v7632_v13  ;;  %v924_v26 = vadd.f32 %v7752_v32, %v905_v57 }
 0x1e0   : > { %v820_v59 = vmul.f32 %v7876_v48, %v7860_v29  ;;  %v7882_v63 = vadd.f32 1e-05, %v699_v52  ;;  %vm826_vm0 = vweird.f32 %v7876_v48 }
 0x1e1   : > { %v804_v1 = vmul.f32 %v6593_v35, %v803_v58  ;;  %v714_v3 = vadd.f32 1e-05, %v698_v62  ;;  %986 = vmatmul.f32.gmra.mxu0 %v924_v26  ;;  %1067 = vmatmul.f32.gmra.mxu1 %v924_v26  ;;  %vm7917_vm1 = vmor %vm825_vm15, %vm826_vm0 }
 0x1e2   : > { %v821_v4 = vmul.f32 %v7876_v48, %v820_v59  ;;  %6596 = vrsqrt.f32 %v7882_v63  ;;  %1148 = vmatmul.f32.gmra.mxu2 %v924_v26  ;;  %vm845_vm5 = vweird.f32 %v7882_v63 }
 0x1e3   : > { %6598 = vrsqrt.f32 %v714_v3  ;;  %v808_v30 = vsel %vm807_vm14, %v6593_v35, %v804_v1  ;;  %vm835_vm2 = vweird.f32 %v714_v3  ;;  %v926_v35 = vadd.f32 %v7752_v32, %v907_v22 }
 0x1e4   : > { %v822_v33 = vmul.f32 0.5, %v821_v4  ;;  %v682_v31 = vpop.xlane.xlu2 %681  ;;  %v887_v5 = vmul.f32 %v808_v30, %v7731_v16 }
 0x1e5   : > { %v7892_v6 = vpop.f32.mrf.mxu0  ;;  %v700_v7 = vmul.f32 %v682_v31, %v7632_v13 }
 0x1e6   : > { %11094 = vst [vmem:[#allocation26_spill] sm:$0xff] %v7892_v6  ;;  %v823_v51 = vsub.f32 1.5, %v822_v33  ;;  %v7898_v27 = vpop.f32.mrf.mxu1  ;;  %1789 = vrot.lane.b32.xlu2 %v7892_v6, %s7376_s18  ;;  %v906_v50 = vmul.f32 %v7743_v24, %v887_v5 }
 0x1e7   : > { %11095 = vst [vmem:[#allocation27_spill] sm:$0xff] %v7898_v27  ;;  %v7905_v16 = vadd.f32 1e-05, %v700_v7  ;;  %2735 = vrot.lane.b32.xlu0 %v7874_v55, %s7377_s16 }
 0x1e8   : > { %v7909_v9 = vpop.eup %6596  ;;  %v925_v10 = vadd.f32 %v7752_v32, %v906_v50  ;;  %v824_v12 = vmul.f32 %v7876_v48, %v823_v51 }
 0x1e9   : > { %v6599_v15 = vpop.eup %6598  ;;  %v840_v18 = vmul.f32 %v7909_v9, %v7882_v63  ;;  %6600 = vrsqrt.f32 %v7905_v16  ;;  %vm846_vm6 = vweird.f32 %v7909_v9  ;;  %vm855_vm8 = vweird.f32 %v7905_v16 }
 0x1ea   : > { %v830_v21 = vmul.f32 %v6599_v15, %v714_v3  ;;  %989 = vmatmul.f32.gmra.mxu0 %v925_v10  ;;  %1070 = vmatmul.f32.gmra.mxu1 %v925_v10  ;;  %v828_v44 = vsel %vm7917_vm1, %v7876_v48, %v824_v12  ;;  %vm836_vm3 = vweird.f32 %v6599_v15  ;;  %vm847_vm7 = vmor %vm845_vm5, %vm846_vm6  ;;  %vm1192_vm1 = vcmask 261120  }
 0x1eb   : > { %1151 = vmatmul.f32.gmra.mxu2 %v925_v10  ;;  %v841_v61 = vmul.f32 %v7909_v9, %v840_v18  ;;  %v889_v37 = vmul.f32 %v828_v44, %v7761_v42  ;;  %vm7937_vm4 = vmor %vm835_vm2, %vm836_vm3 }
 0x1ec   : > { %v831_v19 = vmul.f32 %v6599_v15, %v830_v21 }
 0x1ed   : > { %v7923_v23 = vpop.f32.mrf.mxu0  ;;  %v842_v39 = vmul.f32 0.5, %v841_v61  ;;  %v908_v43 = vmul.f32 %v7743_v24, %v889_v37 }
 0x1ee   : > { %11098 = vst [vmem:[#allocation28_spill] sm:$0xff] %v7923_v23  ;;  %v832_v17 = vmul.f32 0.5, %v831_v19  ;;  %v7928_v25 = vpop.f32.mrf.mxu1  ;;  %2737 = vrot.lane.b32.xlu2 %v7898_v27, %s7377_s16 }
 0x1ef   : > { %11099 = vst [vmem:[#allocation29_spill] sm:$0xff] %v7928_v25  ;;  %v6601_v28 = vpop.eup %6600  ;;  %1821 = vrot.lane.b32.xlu0 %v7898_v27, %s7376_s18  ;;  %v843_v46 = vsub.f32 1.5, %v842_v39  ;;  %v927_v57 = vadd.f32 %v7752_v32, %v908_v43 }
 0x1f0   : > { %v833_v29 = vsub.f32 1.5, %v832_v17  ;;  %v850_v40 = vmul.f32 %v6601_v28, %v7905_v16  ;;  %vm856_vm9 = vweird.f32 %v6601_v28 }
 0x1f1   : > { %v844_v56 = vmul.f32 %v7909_v9, %v843_v46  ;;  %vm857_vm10 = vmor %vm855_vm8, %vm856_vm9 }
 0x1f2   : > { %v834_v20 = vmul.f32 %v6599_v15, %v833_v29  ;;  %992 = vmatmul.f32.gmra.mxu0 %v926_v35  ;;  %1073 = vmatmul.f32.gmra.mxu1 %v926_v35  ;;  %v851_v54 = vmul.f32 %v6601_v28, %v850_v40 }
 0x1f3   : > { %1154 = vmatmul.f32.gmra.mxu2 %v926_v35  ;;  %v848_v59 = vsel %vm847_vm7, %v7909_v9, %v844_v56  ;;  %v8030_v35 = vpop.f32.mrf.mxu2 }
 0x1f4   : > { %v838_v42 = vsel %vm7937_vm4, %v6599_v15, %v834_v20  ;;  %v852_v48 = vmul.f32 0.5, %v851_v54  ;;  %v891_v63 = vmul.f32 %v848_v59, %v7787_v2  ;;  %11111 = vst [vmem:[#allocation39_spill] sm:$0xff] %v8030_v35 }
 0x1f5   : > { %1819 = vrot.lane.b32.xlu1 %v7874_v55, %s7376_s18  ;;  %v7944_v47 = vpop.f32.mrf.mxu0  ;;  %v890_v52 = vmul.f32 %v838_v42, %v7803_v60 }
 0x1f6   : > { %2705 = vrot.lane.b32.xlu2 %v7892_v6, %s7377_s16  ;;  %v7954_v34 = vpop.f32.mrf.mxu1  ;;  %v853_v62 = vsub.f32 1.5, %v852_v48  ;;  %v910_v1 = vmul.f32 %v7743_v24, %v891_v63 }
 0x1f7   : > { %2707 = vrot.lane.b32.xlu0 %v7923_v23, %s7377_s16  ;;  %11102 = vst [vmem:[#allocation30_spill] sm:$0xff] %v7954_v34  ;;  %v909_v58 = vmul.f32 %v7743_v24, %v890_v52 }
 0x1f8   : > { %v854_v45 = vmul.f32 %v6601_v28, %v853_v62  ;;  %v929_v2 = vadd.f32 %v7752_v32, %v910_v1 }
 0x1f9   : > { %v928_v60 = vadd.f32 %v7752_v32, %v909_v58 }
 0x1fa   : > { %995 = vmatmul.f32.gmra.mxu0 %v927_v57  ;;  %1076 = vmatmul.f32.gmra.mxu1 %v927_v57  ;;  %v858_v4 = vsel %vm857_vm10, %v6601_v28, %v854_v45 }
 0x1fb   : > { %1157 = vmatmul.f32.gmra.mxu2 %v927_v57  ;;  %v892_v30 = vmul.f32 %v858_v4, %v7824_v36  ;;  %v8050_v57 = vpop.f32.mrf.mxu2 }
 0x1fc   : > { %11114 = vst [vmem:[#allocation42_spill] sm:$0xff] %v8050_v57 }
 0x1fd   : > { %1787 = vrot.lane.b32.xlu1 %v7869_v49, %s7376_s18  ;;  %v7962_v26 = vpop.f32.mrf.mxu0  ;;  %v911_v31 = vmul.f32 %v7743_v24, %v892_v30 }
 0x1fe   : > { %11103 = vst [vmem:[#allocation31_spill] sm:$0xff] %v7962_v26  ;;  %1791 = vrot.lane.b32.xlu2 %v7923_v23, %s7376_s18  ;;  %v7972_v0 = vpop.f32.mrf.mxu1 }
 0x1ff   : > { %2741 = vrot.lane.b32.xlu0 %v7954_v34, %s7377_s16  ;;  %11104 = vst [vmem:[#allocation32_spill] sm:$0xff] %v7972_v0  ;;  %v930_v36 = vadd.f32 %v7752_v32, %v911_v31 }
 0x202   : > { %998 = vmatmul.f32.gmra.mxu0 %v928_v60  ;;  %1079 = vmatmul.f32.gmra.mxu1 %v928_v60 }
 0x203   : > { %1160 = vmatmul.f32.gmra.mxu2 %v928_v60 }
 0x205   : > { %2703 = vrot.lane.b32.xlu1 %v7869_v49, %s7377_s16  ;;  %v7977_v3 = vpop.f32.mrf.mxu0 }
 0x206   : > { %11105 = vst [vmem:[#allocation33_spill] sm:$0xff] %v7977_v3  ;;  %1825 = vrot.lane.b32.xlu2 %v7954_v34, %s7376_s18  ;;  %v7985_v33 = vpop.f32.mrf.mxu1 }
 0x207   : > { %1795 = vrot.lane.b32.xlu0 %v7962_v26, %s7376_s18  ;;  %11106 = vst [vmem:[#allocation34_spill] sm:$0xff] %v7985_v33 }
 0x20a   : > { %1001 = vmatmul.f32.gmra.mxu0 %v929_v2  ;;  %1082 = vmatmul.f32.gmra.mxu1 %v929_v2 }
 0x20b   : > { %1163 = vmatmul.f32.gmra.mxu2 %v929_v2 }
 0x20d   : > { %1823 = vrot.lane.b32.xlu1 %v7928_v25, %s7376_s18  ;;  %v7990_v5 = vpop.f32.mrf.mxu0 }
 0x20e   : > { %11107 = vst [vmem:[#allocation35_spill] sm:$0xff] %v7990_v5  ;;  %1793 = vrot.lane.b32.xlu2 %v7944_v47, %s7376_s18  ;;  %v7999_v7 = vpop.f32.mrf.mxu1 }
 0x20f   : > { %1799 = vrot.lane.b32.xlu0 %v7990_v5, %s7376_s18  ;;  %11108 = vst [vmem:[#allocation36_spill] sm:$0xff] %v7999_v7 }
 0x212   : > { %1004 = vmatmul.f32.gmra.mxu0 %v930_v36  ;;  %1085 = vmatmul.f32.gmra.mxu1 %v930_v36 }
 0x213   : > { %1166 = vmatmul.f32.gmra.mxu2 %v930_v36 }
 0x215   : > { %2739 = vrot.lane.b32.xlu1 %v7928_v25, %s7377_s16 }
 0x216   : > { %1827 = vrot.lane.b32.xlu2 %v7972_v0, %s7376_s18 }
 0x217   : > { %2747 = vrot.lane.b32.xlu0 %v7999_v7, %s7377_s16 }
 0x21d   : > { %2709 = vrot.lane.b32.xlu1 %v7944_v47, %s7377_s16 }
 0x21e   : > { %2743 = vrot.lane.b32.xlu2 %v7972_v0, %s7377_s16 }
 0x225   : > { %1797 = vrot.lane.b32.xlu1 %v7977_v3, %s7376_s18 }
 0x226   : > { %2711 = vrot.lane.b32.xlu2 %v7962_v26, %s7377_s16 }
 0x22d   : > { %2745 = vrot.lane.b32.xlu1 %v7985_v33, %s7377_s16 }
 0x22e   : > { %1829 = vrot.lane.b32.xlu2 %v7985_v33, %s7376_s18 }
 0x235   : > { %2713 = vrot.lane.b32.xlu1 %v7977_v3, %s7377_s16 }
 0x23d   : > { %1831 = vrot.lane.b32.xlu1 %v7999_v7, %s7376_s18 }
 0x245   : > { %2715 = vrot.lane.b32.xlu1 %v7990_v5, %s7377_s16 }
 0x246   : > { %v684_v8 = vpop.xlane.xlu0 %683 }
 0x247   : > { %v701_v51 = vmul.f32 %v684_v8, %v7632_v13  ;;  %v8121_v8 = vpop.permute.xlu2 %1789 }
 0x249   : > { %v717_v50 = vadd.f32 1e-05, %v701_v51 }
 0x24b   : > { %6602 = vrsqrt.f32 %v717_v50  ;;  %vm865_vm12 = vweird.f32 %v717_v50 }
 0x24f   : > { %v686_v16 = vpop.xlane.xlu1 %685 }
 0x250   : > { %v702_v9 = vmul.f32 %v686_v16, %v7632_v13  ;;  %v8127_v16 = vpop.permute.xlu2 %2737 }
 0x251   : > { %v6603_v10 = vpop.eup %6602  ;;  %11124 = vst [vmem:[#allocation52_spill] sm:$0xff] %v8127_v16 }
 0x252   : > { %v860_v14 = vmul.f32 %v6603_v10, %v717_v50  ;;  %v718_v15 = vadd.f32 1e-05, %v702_v9  ;;  %vm866_vm11 = vweird.f32 %v6603_v10 }
 0x253   : > { %vm867_vm13 = vmor %vm865_vm12, %vm866_vm11 }
 0x254   : > { %v861_v12 = vmul.f32 %v6603_v10, %v860_v14  ;;  %6604 = vrsqrt.f32 %v718_v15  ;;  %vm875_vm15 = vweird.f32 %v718_v15 }
 0x256   : > { %v862_v18 = vmul.f32 0.5, %v861_v12 }
 0x258   : > { %v863_v53 = vsub.f32 1.5, %v862_v18  ;;  %v8133_v14 = vpop.permute.xlu2 %2705 }
 0x259   : > { %11126 = vst [vmem:[#allocation54_spill] sm:$0xff] %v8133_v14  ;;  %v8139_v18 = vpop.permute.xlu0 %2735 }
 0x25a   : > { %v6605_v21 = vpop.eup %6604  ;;  %v864_v19 = vmul.f32 %v6603_v10, %v863_v53  ;;  %11127 = vst [vmem:[#allocation55_spill] sm:$0xff] %v8139_v18 }
 0x25b   : > { %v870_v22 = vmul.f32 %v6605_v21, %v718_v15  ;;  %vm876_vm14 = vweird.f32 %v6605_v21 }
 0x25c   : > { %v868_v61 = vsel %vm867_vm13, %v6603_v10, %v864_v19  ;;  %vm877_vm0 = vmor %vm875_vm15, %vm876_vm14 }
 0x25d   : > { %v871_v44 = vmul.f32 %v6605_v21, %v870_v22  ;;  %v893_v17 = vmul.f32 %v868_v61, %v7850_v11 }
 0x25e   : > { %v8026_v28 = vpop.f32.mrf.mxu0  ;;  %v8028_v29 = vpop.f32.mrf.mxu1 }
 0x25f   : > { %11109 = vst [vmem:[#allocation37_spill] sm:$0xff] %v8026_v28  ;;  %v872_v37 = vmul.f32 0.5, %v871_v44  ;;  %1833 = vrot.lane.b32.xlu1 %v8028_v29, %s7376_s18  ;;  %1801 = vrot.lane.b32.xlu0 %v8026_v28, %s7376_s18  ;;  %v912_v39 = vmul.f32 %v7743_v24, %v893_v17 }
 0x260   : > { %11110 = vst [vmem:[#allocation38_spill] sm:$0xff] %v8028_v29  ;;  %2749 = vrot.lane.b32.xlu2 %v8028_v29, %s7377_s16  ;;  %v8141_v53 = vpop.permute.xlu2 %1791 }
 0x261   : > { %v873_v40 = vsub.f32 1.5, %v872_v37  ;;  %v931_v11 = vadd.f32 %v7752_v32, %v912_v39  ;;  %v8147_v22 = vpop.permute.xlu0 %1821 }
 0x263   : > { %v874_v20 = vmul.f32 %v6605_v21, %v873_v40  ;;  %1007 = vmatmul.f32.gmra.mxu0 %v931_v11  ;;  %1088 = vmatmul.f32.gmra.mxu1 %v931_v11 }
 0x264   : > { %1169 = vmatmul.f32.gmra.mxu2 %v931_v11 }
 0x265   : > { %v878_v41 = vsel %vm877_vm0, %v6605_v21, %v874_v20 }
 0x266   : > { %v894_v43 = vmul.f32 %v878_v41, %v7863_v38 }
 0x267   : > { %v8041_v46 = vpop.f32.mrf.mxu0  ;;  %2717 = vrot.lane.b32.xlu0 %v8026_v28, %s7377_s16  ;;  %v8045_v54 = vpop.f32.mrf.mxu1 }
 0x268   : > { %11112 = vst [vmem:[#allocation40_spill] sm:$0xff] %v8041_v46  ;;  %1803 = vrot.lane.b32.xlu1 %v8041_v46, %s7376_s18  ;;  %v913_v42 = vmul.f32 %v7743_v24, %v894_v43  ;;  %v8063_v24 = vpop.f32.mrf.mxu2  ;;  %v8119_v36 = vpop.permute.xlu1 %1819 }
 0x269   : > { %11113 = vst [vmem:[#allocation41_spill] sm:$0xff] %v8045_v54  ;;  %v8149_v61 = vpop.permute.xlu2 %1825  ;;  %v8155_v37 = vpop.permute.xlu0 %2707 }
 0x26a   : > { %v932_v52 = vadd.f32 %v7752_v32, %v913_v42  ;;  %11130 = vst [vmem:[#allocation58_spill] sm:$0xff] %v8155_v37 }
 0x26c   : > { %1010 = vmatmul.f32.gmra.mxu0 %v932_v52  ;;  %1091 = vmatmul.f32.gmra.mxu1 %v932_v52 }
 0x26d   : > { %1172 = vmatmul.f32.gmra.mxu2 %v932_v52 }
 0x26f   : > { %v8053_v38 = vpop.f32.mrf.mxu0  ;;  %1835 = vrot.lane.b32.xlu0 %v8045_v54, %s7376_s18  ;;  %v8057_v56 = vpop.f32.mrf.mxu1 }
 0x270   : > { %11115 = vst [vmem:[#allocation43_spill] sm:$0xff] %v8053_v38  ;;  %2751 = vrot.lane.b32.xlu1 %v8045_v54, %s7377_s16  ;;  %1837 = vrot.lane.b32.xlu2 %v8057_v56, %s7376_s18  ;;  %v8075_v58 = vpop.f32.mrf.mxu2  ;;  %v8125_v50 = vpop.permute.xlu1 %1787 }
 0x271   : > { %11116 = vst [vmem:[#allocation44_spill] sm:$0xff] %v8057_v56  ;;  %v8157_v39 = vpop.permute.xlu2 %1793  ;;  %v8165_v43 = vpop.permute.xlu0 %2741 }
 0x277   : > { %v8065_v48 = vpop.f32.mrf.mxu0  ;;  %1805 = vrot.lane.b32.xlu0 %v8053_v38, %s7376_s18  ;;  %v8069_v32 = vpop.f32.mrf.mxu1 }
 0x278   : > { %11117 = vst [vmem:[#allocation45_spill] sm:$0xff] %v8065_v48  ;;  %1807 = vrot.lane.b32.xlu1 %v8065_v48, %s7376_s18  ;;  %1839 = vrot.lane.b32.xlu2 %v8069_v32, %s7376_s18  ;;  %v8087_v60 = vpop.f32.mrf.mxu2  ;;  %v8131_v10 = vpop.permute.xlu1 %2703 }
 0x279   : > { %11118 = vst [vmem:[#allocation46_spill] sm:$0xff] %v8069_v32  ;;  %v8171_v42 = vpop.permute.xlu2 %1827  ;;  %v8183_v37 = vpop.permute.xlu0 %1795 }
 0x27a   : > { %11125 = vst [vmem:[#allocation53_spill] sm:$0xff] %v8131_v10 }
 0x27f   : > { %v8077_v62 = vpop.f32.mrf.mxu0  ;;  %2753 = vrot.lane.b32.xlu0 %v8057_v56, %s7377_s16  ;;  %v8081_v59 = vpop.f32.mrf.mxu1 }
 0x280   : > { %11119 = vst [vmem:[#allocation47_spill] sm:$0xff] %v8077_v62  ;;  %2755 = vrot.lane.b32.xlu2 %v8069_v32, %s7377_s16  ;;  %2757 = vrot.lane.b32.xlu1 %v8081_v59, %s7377_s16  ;;  %v8105_v2 = vpop.f32.mrf.mxu2  ;;  %v8137_v12 = vpop.permute.xlu1 %1823 }
 0x281   : > { %11120 = vst [vmem:[#allocation48_spill] sm:$0xff] %v8081_v59  ;;  %v8189_v14 = vpop.permute.xlu2 %2743 }
 0x287   : > { %v8089_v63 = vpop.f32.mrf.mxu0  ;;  %1841 = vrot.lane.b32.xlu0 %v8081_v59, %s7376_s18  ;;  %v8093_v45 = vpop.f32.mrf.mxu1 }
 0x288   : > { %11121 = vst [vmem:[#allocation49_spill] sm:$0xff] %v8089_v63  ;;  %1843 = vrot.lane.b32.xlu1 %v8093_v45, %s7376_s18  ;;  %1809 = vrot.lane.b32.xlu2 %v8077_v62, %s7376_s18  ;;  %v8113_v30 = vpop.f32.mrf.mxu2  ;;  %v8145_v19 = vpop.permute.xlu1 %2739 }
 0x289   : > { %11122 = vst [vmem:[#allocation50_spill] sm:$0xff] %v8093_v45 }
 0x28a   : > { %11128 = vst [vmem:[#allocation56_spill] sm:$0xff] %v8145_v19  ;;  %v8199_v19 = vpop.permute.xlu0 %1799 }
 0x28f   : > { %v8099_v1 = vpop.f32.mrf.mxu0  ;;  %1811 = vrot.lane.b32.xlu0 %v8089_v63, %s7376_s18  ;;  %v8103_v4 = vpop.f32.mrf.mxu1 }
 0x290   : > { %11123 = vst [vmem:[#allocation51_spill] sm:$0xff] %v8103_v4  ;;  %2761 = vrot.lane.b32.xlu2 %v8103_v4, %s7377_s16  ;;  %1813 = vrot.lane.b32.xlu1 %v8099_v1, %s7376_s18  ;;  %v8117_v31 = vpop.f32.mrf.mxu2  ;;  %v8153_v17 = vpop.permute.xlu1 %2709 }
 0x291   : > { %11129 = vst [vmem:[#allocation57_spill] sm:$0xff] %v8153_v17 }
 0x297   : > { %2759 = vrot.lane.b32.xlu0 %v8093_v45, %s7377_s16 }
 0x298   : > { %v8123_v51 = vpop.f32.mrf.mxu2  ;;  %v8159_v11 = vpop.permute.xlu1 %1797 }
 0x29f   : > { %1845 = vrot.lane.b32.xlu0 %v8103_v4, %s7376_s18 }
 0x2a0   : > { %v8129_v9 = vpop.f32.mrf.mxu2  ;;  %v8173_v13 = vpop.permute.xlu1 %2745 }
 0x2a8   : > { %v8135_v15 = vpop.f32.mrf.mxu2  ;;  %v8197_v16 = vpop.permute.xlu1 %2713 }
 0x2a9   : > { %11133 = vst [vmem:[#allocation61_spill] sm:$0xff] %v8197_v16 }
 0x2b0   : > { %v8143_v21 = vpop.f32.mrf.mxu2  ;;  %v8212_v16 = vpop.permute.xlu1 %1831 }
 0x2b8   : > { %v8151_v44 = vpop.f32.mrf.mxu2 }
 0x2c0   : > { %v1167_v40 = vpop.f32.mrf.mxu2 }
 0x2e0   : > { %v8161_v20 = vpop.f32.mrf.mxu0  ;;  %v8163_v41 = vpop.f32.mrf.mxu1 }
 0x2e1   : > { %11131 = vst [vmem:[#allocation59_spill] sm:$0xff] %v8163_v41  ;;  %1847 = vrot.lane.b32.xlu1 %v8163_v41, %s7376_s18  ;;  %1815 = vrot.lane.b32.xlu0 %v8161_v20, %s7376_s18 }
 0x2e7   : > { %v1170_v52 = vpop.f32.mrf.mxu2 }
 0x2e9   : > { %v8175_v17 = vpop.f32.mrf.mxu1  ;;  %2763 = vrot.lane.b32.xlu1 %v8163_v41, %s7377_s16  ;;  %v8191_v10 = vpop.f32.mrf.mxu0 }
 0x2ea   : > { %11132 = vst [vmem:[#allocation60_spill] sm:$0xff] %v8175_v17  ;;  %1849 = vrot.lane.b32.xlu2 %v8175_v17, %s7376_s18  ;;  %6054 = vmatpush.xpose.msk.msra.mxu3 %vm1192_vm1, %v8175_v17 }
 0x2eb   : > { %2765 = vrot.lane.b32.xlu0 %v8175_v17, %s7377_s16 }
 0x2ee   : > { %6055 = vmatpush.xpose.msk.msra.mxu3 %vm1192_vm1, %v8163_v41  ;;  %v8207_v41 = vpop.permute.xlu2 %2711 }
 0x2ef   : > { %11134 = vst [vmem:[#allocation62_spill] sm:$0xff] %v8207_v41 }
 0x2f0   : > { %v1173_v18 = vpop.f32.mrf.mxu2 }
 0x2f1   : > { %1722 = vmatpush.msrb.mxu0 %v1173_v18  ;;  %1817 = vrot.lane.b32.xlu1 %v8191_v10, %s7376_s18  ;;  %v8220_v17 = vpack.i.bf16 %v1170_v52, %v1173_v18 }
 0x2f2   : > { %6056 = vmatpush.xpose.msk.msra.mxu3 %vm1192_vm1, %v8103_v4  ;;  %v8217_v4 = vpop.permute.xlu0 %2747 }
 0x2f3   : > { %1723 = vmatpush.msrb.mxu0 %v1170_v52  ;;  %11135 = vst [vmem:[#allocation63_spill] sm:$0xff] %v8220_v17 }
 0x2f5   : > { %1724 = vmatpush.msrb.mxu0 %v1167_v40 }
 0x2f6   : > { %6057 = vmatpush.xpose.msk.msra.mxu3 %vm1192_vm1, %v8093_v45  ;;  %v8228_v41 = vpop.permute.xlu2 %1829 }
 0x2f7   : > { %1725 = vmatpush.msrb.mxu0 %v8151_v44 }
 0x2f9   : > { %1726 = vmatpush.msrb.mxu0 %v8143_v21  ;;  %2721 = vrot.lane.b32.xlu1 %v8053_v38, %s7377_s16 }
 0x2fa   : > { %6058 = vmatpush.xpose.msk.msra.mxu3 %vm1192_vm1, %v8081_v59  ;;  %v8235_v18 = vpop.permute.xlu0 %1801 }
 0x2fb   : > { %1727 = vmatpush.msrb.mxu0 %v8135_v15 }
 0x2fd   : > { %1728 = vmatpush.msrb.mxu0 %v8129_v9 }
 0x2fe   : > { %6059 = vmatpush.xpose.msk.msra.mxu3 %vm1192_vm1, %v8069_v32  ;;  %v8233_v32 = vpop.permute.xlu1 %2715  ;;  %v8244_v52 = vpop.permute.xlu2 %2749 }
 0x2ff   : > { %1729 = vmatpush.msrb.mxu0 %v8123_v51  ;;  %11136 = vst [vmem:[#allocation64_spill] sm:$0xff] %v8233_v32 }
 0x301   : > { %1730 = vmatpush.msrb.mxu0 %v8117_v31  ;;  %6449 = vrot.lane.b32.xlu1 %v8220_v17, %s7376_s18 }
 0x302   : > { %6060 = vmatpush.xpose.msk.msra.mxu3 %vm1192_vm1, %v8057_v56  ;;  %v8253_v56 = vpop.permute.xlu0 %2717 }
 0x303   : > { %1731 = vmatpush.msrb.mxu0 %v8113_v30  ;;  %11138 = vst [vmem:[#allocation66_spill] sm:$0xff] %v8253_v56 }
 0x305   : > { %1732 = vmatpush.msrb.mxu0 %v8105_v2 }
 0x306   : > { %6061 = vmatpush.xpose.msk.msra.mxu3 %vm1192_vm1, %v8045_v54  ;;  %v1834_v32 = vpop.permute.xlu1 %1833  ;;  %v8251_v54 = vpack.i.bf16 %v8151_v44, %v1167_v40 }
 0x307   : > { %1733 = vmatpush.msrb.mxu0 %v8087_v60 }
 0x308   : > { %11137 = vst [vmem:[#allocation65_spill] sm:$0xff] %v8251_v54 }
 0x309   : > { %1734 = vmatpush.msrb.mxu0 %v8075_v58  ;;  %2723 = vrot.lane.b32.xlu1 %v8065_v48, %s7377_s16 }
 0x30a   : > { %6062 = vmatpush.xpose.msk.msra.mxu3 %vm1192_vm1, %v8028_v29  ;;  %v1838_v29 = vpop.permute.xlu2 %1837 }
 0x30b   : > { %1735 = vmatpush.msrb.mxu0 %v8063_v24 }
 0x30d   : > { %1736 = vmatpush.msrb.mxu0 %v8050_v57 }
 0x30e   : > { %6063 = vmatpush.xpose.msk.msra.mxu3 %vm1192_vm1, %v7999_v7  ;;  %v8261_v17 = vpop.permute.xlu1 %1803  ;;  %v1836_v7 = vpop.permute.xlu0 %1835 }
 0x30f   : > { %1737 = vmatpush.msrb.mxu0 %v8030_v35 }
 0x311   : > { %6454 = vrot.lane.b32.xlu1 %v8251_v54, %s7376_s18 }
 0x312   : > { %6064 = vmatpush.xpose.msk.msra.mxu3 %vm1192_vm1, %v7985_v33  ;;  %v1840_v44 = vpop.permute.xlu2 %1839 }
 0x316   : > { %6065 = vmatpush.xpose.msk.msra.mxu3 %vm1192_vm1, %v7972_v0  ;;  %v8269_v40 = vpop.permute.xlu1 %2751  ;;  %v8271_v56 = vpop.permute.xlu0 %1805 }
 0x31a   : > { %6066 = vmatpush.xpose.msk.msra.mxu3 %vm1192_vm1, %v7954_v34  ;;  %v8275_v0 = vpop.permute.xlu2 %2755 }
 0x31e   : > { %6067 = vmatpush.xpose.msk.msra.mxu3 %vm1192_vm1, %v7928_v25  ;;  %v8279_v34 = vpop.permute.xlu1 %1807  ;;  %v8281_v33 = vpop.permute.xlu0 %2753 }
 0x322   : > { %6068 = vmatpush.xpose.msk.msra.mxu3 %vm1192_vm1, %v7898_v27  ;;  %v8285_v27 = vpop.permute.xlu2 %1809 }
 0x326   : > { %6069 = vmatpush.xpose.msk.msra.mxu3 %vm1192_vm1, %v7874_v55  ;;  %v8287_v25 = vpop.permute.xlu1 %2757  ;;  %v1842_v59 = vpop.permute.xlu0 %1841 }
 0x329   : > { %6070 = vmatmul.msk.f32.vlgmr.msra.gmra.mxu3 %vm1192_vm1, %v7869_v49 }
 0x32a   : > { %v8291_v55 = vpop.permute.xlu2 %2761 }
 0x32e   : > { %v1844_v45 = vpop.permute.xlu1 %1843  ;;  %v8295_v49 = vpop.permute.xlu0 %1811 }
 0x331   : > { %6071 = vmatmul.msk.f32.gmra.mxu3 %vm1192_vm1, %v7892_v6 }
 0x336   : > { %v8300_v6 = vpop.permute.xlu1 %1813  ;;  %v8302_v57 = vpop.permute.xlu0 %2759 }
 0x339   : > { %6072 = vmatmul.msk.f32.gmra.mxu3 %vm1192_vm1, %v7923_v23 }
 0x33e   : > { %v1846_v54 = vpop.permute.xlu0 %1845 }
 0x341   : > { %6073 = vmatmul.msk.f32.gmra.mxu3 %vm1192_vm1, %v7944_v47 }
 0x344   : > { %v1850_v35 = vpop.permute.xlu2 %1849 }
 0x345   : > { %6086 = vmatpush.xpose.msk.msrb.mxu1 %vm1192_vm1, %v1850_v35 }
 0x349   : > { %6074 = vmatmul.msk.f32.gmra.mxu3 %vm1192_vm1, %v7962_v26 }
 0x351   : > { %6075 = vmatmul.msk.f32.gmra.mxu3 %vm1192_vm1, %v7977_v3 }
 0x353   : > { %v1848_v23 = vpop.permute.xlu1 %1847 }
 0x354   : > { %6087 = vmatpush.xpose.msk.msrb.mxu1 %vm1192_vm1, %v1848_v23 }
 0x358   : > { %6088 = vmatpush.xpose.msk.msrb.mxu1 %vm1192_vm1, %v1846_v54  ;;  %v1179_v54 = vld [vmem:[#allocation10 + $0x18] sm:$0xff] }
 0x359   : > { %6076 = vmatmul.msk.f32.gmra.mxu3 %vm1192_vm1, %v7990_v5  ;;  %2650 = vmatpush.msra.mxu0 %v1179_v54 }
 0x35b   : > { %v2764_v35 = vpop.permute.xlu1 %2763 }
 0x35c   : > { %6089 = vmatpush.xpose.msk.msrb.mxu1 %vm1192_vm1, %v1844_v45  ;;  %v1178_v45 = vld [vmem:[#allocation10 + $0x10] sm:$0xff] }
 0x35d   : > { %2651 = vmatpush.msra.mxu0 %v1178_v45 }
 0x360   : > { %6090 = vmatpush.xpose.msk.msrb.mxu1 %vm1192_vm1, %v1842_v59  ;;  %v1177_v59 = vld [vmem:[#allocation10 + $0x8] sm:$0xff] }
 0x361   : > { %6077 = vmatmul.msk.f32.gmra.mxu3 %vm1192_vm1, %v8026_v28  ;;  %2652 = vmatpush.msra.mxu0 %v1177_v59 }
 0x363   : > { %v8314_v26 = vpop.permute.xlu1 %1817 }
 0x364   : > { %6091 = vmatpush.xpose.msk.msrb.mxu1 %vm1192_vm1, %v1840_v44 }
 0x368   : > { %6092 = vmatpush.xpose.msk.msrb.mxu1 %vm1192_vm1, %v1838_v29  ;;  %v1176_v29 = vld [vmem:[#allocation10] sm:$0xff] }
 0x369   : > { %6078 = vmatmul.msk.f32.gmra.mxu3 %vm1192_vm1, %v8041_v46  ;;  %2653 = vmatpush.msra.mxu0 %v1176_v29 }
 0x36b   : > { %v8320_v23 = vpop.permute.xlu1 %2721 }
 0x36c   : > { %6093 = vmatpush.xpose.msk.msrb.mxu1 %vm1192_vm1, %v1836_v7 }
 0x370   : > { %6094 = vmatpush.xpose.msk.msrb.mxu1 %vm1192_vm1, %v1834_v32 }
 0x371   : > { %6079 = vmatmul.msk.f32.gmra.mxu3 %vm1192_vm1, %v8053_v38 }
 0x373   : > { %v6450_v44 = vpop.permute.xlu1 %6449 }
 0x374   : > { %6095 = vmatpush.xpose.msk.msrb.mxu1 %vm1192_vm1, %v8212_v16  ;;  %v6451_v5 = vunpack.i.l.bf16 %v6450_v44  ;;  %v6452_v7 = vunpack.i.h.bf16 %v6450_v44 }
 0x376   : > { %2412 = vmatpush.msrb.mxu2 %v6451_v5 }
 0x378   : > { %6096 = vmatpush.xpose.msk.msrb.mxu1 %vm1192_vm1, %v8228_v41  ;;  %2413 = vmatpush.msrb.mxu2 %v6452_v7 }
 0x379   : > { %6080 = vmatmul.msk.f32.gmra.mxu3 %vm1192_vm1, %v8065_v48 }
 0x37b   : > { %v8332_v32 = vpop.permute.xlu1 %2723 }
 0x37c   : > { %6097 = vmatpush.xpose.msk.msrb.mxu1 %vm1192_vm1, %v8171_v42  ;;  %v8346_v42 = vpop.permute.xlu0 %1815 }
 0x380   : > { %6098 = vmatpush.xpose.msk.msrb.mxu1 %vm1192_vm1, %v8149_v61 }
 0x381   : > { %6081 = vmatmul.msk.f32.gmra.mxu3 %vm1192_vm1, %v8077_v62 }
 0x383   : > { %v6455_v5 = vpop.permute.xlu1 %6454 }
 0x384   : > { %6099 = vmatpush.xpose.msk.msrb.mxu1 %vm1192_vm1, %v8137_v12  ;;  %v6456_v16 = vunpack.i.l.bf16 %v6455_v5  ;;  %v6457_v41 = vunpack.i.h.bf16 %v6455_v5  ;;  %v2766_v12 = vpop.permute.xlu0 %2765 }
 0x386   : > { %2414 = vmatpush.msrb.mxu2 %v6456_v16 }
 0x388   : > { %6100 = vmatpush.xpose.msk.msrb.mxu1 %vm1192_vm1, %v8147_v22  ;;  %2415 = vmatpush.msrb.mxu2 %v6457_v41 }
 0x389   : > { %6082 = vmatmul.msk.f32.gmra.mxu3 %vm1192_vm1, %v8089_v63 }
 0x38c   : > { %6101 = vmatpush.xpose.msk.msrb.mxu1 %vm1192_vm1, %v8119_v36 }
 0x38f   : > { %6102 = vmatmul.msk.f32.vlgmr.msrb.gmra.mxu1 %vm1192_vm1, %v8125_v50  ;;  %v11140_v50 = vld [vmem:[#allocation52_spill] sm:$0xff] }
 0x390   : > { %6285 = vmatpush.msra.mxu1 %v1179_v54 }
 0x391   : > { %6083 = vmatmul.msk.f32.gmra.mxu3 %vm1192_vm1, %v8099_v1 }
 0x392   : > { %6286 = vmatpush.msra.mxu1 %v1178_v45 }
 0x394   : > { %6287 = vmatpush.msra.mxu1 %v1177_v59 }
 0x396   : > { %6288 = vmatpush.msra.mxu1 %v1176_v29 }
 0x397   : > { %6103 = vmatmul.msk.f32.gmra.mxu1 %vm1192_vm1, %v8121_v8 }
 0x398   : > { %6150 = vmatpush.xpose.msk.msrb.mxu1 %vm1192_vm1, %v2766_v12 }
 0x399   : > { %6084 = vmatmul.msk.f32.gmra.mxu3 %vm1192_vm1, %v8161_v20 }
 0x39c   : > { %6151 = vmatpush.xpose.msk.msrb.mxu1 %vm1192_vm1, %v2764_v35 }
 0x39f   : > { %6104 = vmatmul.msk.f32.gmra.mxu1 %vm1192_vm1, %v8141_v53 }
 0x3a0   : > { %6152 = vmatpush.xpose.msk.msrb.mxu1 %vm1192_vm1, %v8291_v55 }
 0x3a1   : > { %6085 = vmatmul.msk.f32.gmra.mxu3 %vm1192_vm1, %v8191_v10 }
 0x3a4   : > { %6153 = vmatpush.xpose.msk.msrb.mxu1 %vm1192_vm1, %v8302_v57 }
 0x3a7   : > { %6105 = vmatmul.msk.f32.gmra.mxu1 %vm1192_vm1, %v8157_v39 }
 0x3a8   : > { %6154 = vmatpush.xpose.msk.msrb.mxu1 %vm1192_vm1, %v8287_v25 }
 0x3ac   : > { %6155 = vmatpush.xpose.msk.msrb.mxu1 %vm1192_vm1, %v8275_v0  ;;  %v1306_v36 = vpop.f32.mrf.mxu3 }
 0x3ad   : > { %v8376_v55 = vmul.f32 0.17677669, %v1306_v36 }
 0x3af   : > { %1370 = vmax.xlane.f32.xlu2 %v8376_v55  ;;  %6106 = vmatmul.msk.f32.gmra.mxu1 %vm1192_vm1, %v8183_v37 }
 0x3b0   : > { %6156 = vmatpush.xpose.msk.msrb.mxu1 %vm1192_vm1, %v8281_v33 }
 0x3b4   : > { %6157 = vmatpush.xpose.msk.msrb.mxu1 %vm1192_vm1, %v8269_v40  ;;  %v1309_v25 = vpop.f32.mrf.mxu3 }
 0x3b5   : > { %v8385_v57 = vmul.f32 0.17677669, %v1309_v25 }
 0x3b7   : > { %1372 = vmax.xlane.f32.xlu0 %v8385_v57  ;;  %6107 = vmatmul.msk.f32.gmra.mxu1 %vm1192_vm1, %v8159_v11 }
 0x3b8   : > { %6158 = vmatpush.xpose.msk.msrb.mxu1 %vm1192_vm1, %v8244_v52 }
 0x3bc   : > { %6159 = vmatpush.xpose.msk.msrb.mxu1 %vm1192_vm1, %v8217_v4  ;;  %v1312_v0 = vpop.f32.mrf.mxu3 }
 0x3bd   : > { %v8394_v33 = vmul.f32 0.17677669, %v1312_v0 }
 0x3bf   : > { %1374 = vmax.xlane.f32.xlu1 %v8394_v33  ;;  %6108 = vmatmul.msk.f32.gmra.mxu1 %vm1192_vm1, %v8199_v19 }
 0x3c0   : > { %6160 = vmatpush.xpose.msk.msrb.mxu1 %vm1192_vm1, %v8173_v13  ;;  %v11139_v13 = vld [vmem:[#allocation56_spill] sm:$0xff] }
 0x3c4   : > { %6161 = vmatpush.xpose.msk.msrb.mxu1 %vm1192_vm1, %v8189_v14  ;;  %v1315_v8 = vpop.f32.mrf.mxu3  ;;  %v11141_v14 = vld [vmem:[#allocation55_spill] sm:$0xff] }
 0x3c7   : > { %2719 = vrot.lane.b32.xlu2 %v8041_v46, %s7377_s16  ;;  %6109 = vmatmul.msk.f32.gmra.mxu1 %vm1192_vm1, %v8235_v18 }
 0x3c8   : > { %6162 = vmatpush.xpose.msk.msrb.mxu1 %vm1192_vm1, %v8165_v43  ;;  %v8432_v43 = vmul.f32 0.17677669, %v1315_v8 }
 0x3cc   : > { %6163 = vmatpush.xpose.msk.msrb.mxu1 %vm1192_vm1, %v11139_v13  ;;  %v1318_v4 = vpop.f32.mrf.mxu3 }
 0x3cd   : > { %v8411_v53 = vmul.f32 0.17677669, %v1318_v4 }
 0x3cf   : > { %1378 = vmax.xlane.f32.xlu0 %v8411_v53  ;;  %6110 = vmatmul.msk.f32.gmra.mxu1 %vm1192_vm1, %v8261_v17 }
 0x3d0   : > { %6164 = vmatpush.xpose.msk.msrb.mxu1 %vm1192_vm1, %v11140_v50 }
 0x3d4   : > { %6165 = vmatpush.xpose.msk.msrb.mxu1 %vm1192_vm1, %v11141_v14  ;;  %v1321_v19 = vpop.f32.mrf.mxu3 }
 0x3d5   : > { %v8418_v22 = vmul.f32 0.17677669, %v1321_v19 }
 0x3d7   : > { %1380 = vmax.xlane.f32.xlu1 %v8418_v22  ;;  %6111 = vmatmul.msk.f32.gmra.mxu1 %vm1192_vm1, %v8271_v56 }
 0x3dc   : > { %v1324_v61 = vpop.f32.mrf.mxu3 }
 0x3dd   : > { %v8440_v18 = vmul.f32 0.17677669, %v1324_v61 }
 0x3df   : > { %6112 = vmatmul.msk.f32.gmra.mxu1 %vm1192_vm1, %v8279_v34 }
 0x3e4   : > { %v1327_v37 = vpop.f32.mrf.mxu3 }
 0x3e5   : > { %v8425_v39 = vmul.f32 0.17677669, %v1327_v37 }
 0x3e7   : > { %1384 = vmax.xlane.f32.xlu1 %v8425_v39  ;;  %6113 = vmatmul.msk.f32.gmra.mxu1 %vm1192_vm1, %v8285_v27 }
 0x3ec   : > { %v1330_v17 = vpop.f32.mrf.mxu3 }
 0x3ed   : > { %v8430_v11 = vmul.f32 0.17677669, %v1330_v17 }
 0x3ef   : > { %1386 = vmax.xlane.f32.xlu0 %v8430_v11  ;;  %6114 = vmatmul.msk.f32.gmra.mxu1 %vm1192_vm1, %v8295_v49 }
 0x3f0   : > { %1376 = vmax.xlane.f32.xlu2 %v8432_v43 }
 0x3f4   : > { %v1333_v34 = vpop.f32.mrf.mxu3 }
 0x3f5   : > { %v8438_v56 = vmul.f32 0.17677669, %v1333_v34 }
 0x3f7   : > { %1388 = vmax.xlane.f32.xlu0 %v8438_v56  ;;  %6115 = vmatmul.msk.f32.gmra.mxu1 %vm1192_vm1, %v8300_v6 }
 0x3f8   : > { %1382 = vmax.xlane.f32.xlu2 %v8440_v18 }
 0x3fc   : > { %v1336_v27 = vpop.f32.mrf.mxu3 }
 0x3fd   : > { %v8446_v52 = vmul.f32 0.17677669, %v1336_v27 }
 0x3ff   : > { %6116 = vmatmul.msk.f32.gmra.mxu1 %vm1192_vm1, %v8346_v42 }
 0x400   : > { %1390 = vmax.xlane.f32.xlu2 %v8446_v52 }
 0x404   : > { %v1339_v49 = vpop.f32.mrf.mxu3 }
 0x405   : > { %v8451_v40 = vmul.f32 0.17677669, %v1339_v49 }
 0x407   : > { %1392 = vmax.xlane.f32.xlu0 %v8451_v40  ;;  %6117 = vmatmul.msk.f32.gmra.mxu1 %vm1192_vm1, %v8314_v26 }
 0x40c   : > { %v1342_v35 = vpop.f32.mrf.mxu3  ;;  %v1932_v6 = vpop.f32.mrf.mxu1 }
 0x40d   : > { %v8456_v54 = vmul.f32 0.17677669, %v1342_v35  ;;  %v8465_v5 = vmul.f32 0.17677669, %v1932_v6 }
 0x40f   : > { %1394 = vmax.xlane.f32.xlu1 %v8456_v54 }
 0x414   : > { %v1345_v45 = vpop.f32.mrf.mxu3  ;;  %v1935_v59 = vpop.f32.mrf.mxu1 }
 0x415   : > { %v8459_v44 = vmul.f32 0.17677669, %v1345_v45  ;;  %v8461_v29 = vmul.f32 0.17677669, %v1935_v59 }
 0x417   : > { %1396 = vmax.xlane.f32.xlu0 %v8459_v44  ;;  %1998 = vmax.xlane.f32.xlu2 %v8461_v29 }
 0x41c   : > { %v1938_v7 = vpop.f32.mrf.mxu1  ;;  %v1348_v16 = vpop.f32.mrf.mxu3 }
 0x41d   : > { %v8467_v26 = vmul.f32 0.17677669, %v1938_v7  ;;  %v8471_v12 = vmul.f32 0.17677669, %v1348_v16 }
 0x41f   : > { %1996 = vmax.xlane.f32.xlu0 %v8465_v5  ;;  %2000 = vmax.xlane.f32.xlu1 %v8467_v26 }
 0x422   : > { %v1371_v42 = vpop.xlane.xlu2 %1370 }
 0x423   : > { %v1402_v25 = vsub.f32 %v8376_v55, %v1371_v42 }
 0x424   : > { %v1941_v41 = vpop.f32.mrf.mxu1  ;;  %v1351_v0 = vpop.f32.mrf.mxu3 }
 0x425   : > { %v8473_v36 = vmul.f32 0.17677669, %v1941_v41  ;;  %v1418_v4 = vmul.f32 1.442695, %v1402_v25  ;;  %v8479_v14 = vmul.f32 0.17677669, %v1351_v0 }
 0x427   : > { %1398 = vmax.xlane.f32.xlu0 %v8471_v12  ;;  %2002 = vmax.xlane.f32.xlu2 %v8473_v36 }
 0x42a   : > { %v1373_v8 = vpop.xlane.xlu0 %1372  ;;  %v8504_v6 = vpop.permute.xlu2 %2719 }
 0x42b   : > { %v1403_v13 = vsub.f32 %v8385_v57, %v1373_v8 }
 0x42c   : > { %v1944_v19 = vpop.f32.mrf.mxu1 }
 0x42d   : > { %v1420_v50 = vmul.f32 1.442695, %v1403_v13  ;;  %v8493_v35 = vmul.f32 0.17677669, %v1944_v19 }
 0x42f   : > { %6606 = vpow2.f32 %v1420_v50  ;;  %1400 = vmax.xlane.f32.xlu0 %v8479_v14 }
 0x430   : > { %6608 = vpow2.f32 %v1418_v4 }
 0x432   : > { %v1375_v61 = vpop.xlane.xlu1 %1374 }
 0x433   : > { %v1404_v37 = vsub.f32 %v8394_v33, %v1375_v61  ;;  %v8500_v33 = vpack.i.bf16 %v8135_v15, %v8143_v21 }
 0x434   : > { %v1947_v57 = vpop.f32.mrf.mxu1 }
 0x435   : > { %v8483_v17 = vpop.eup %6606  ;;  %v1422_v34 = vmul.f32 1.442695, %v1404_v37  ;;  %v8489_v27 = vmul.f32 0.17677669, %v1947_v57 }
 0x436   : > { %v8485_v55 = vpop.eup %6608  ;;  %1452 = vadd.xlane.f32.xlu2 %v8483_v17 }
 0x437   : > { %6610 = vpow2.f32 %v1422_v34  ;;  %1450 = vadd.xlane.f32.xlu0 %v8485_v55 }
 0x43c   : > { %v1950_v4 = vpop.f32.mrf.mxu1 }
 0x43d   : > { %v8491_v49 = vpop.eup %6610  ;;  %v8514_v34 = vmul.f32 0.17677669, %v1950_v4 }
 0x43e   : > { %1454 = vadd.xlane.f32.xlu1 %v8491_v49  ;;  %2006 = vmax.xlane.f32.xlu2 %v8489_v27 }
 0x43f   : > { %2004 = vmax.xlane.f32.xlu0 %v8493_v35 }
 0x442   : > { %v1379_v45 = vpop.xlane.xlu0 %1378 }
 0x443   : > { %v1406_v50 = vsub.f32 %v8411_v53, %v1379_v45 }
 0x445   : > { %v1426_v57 = vmul.f32 1.442695, %v1406_v50 }
 0x457   : > { %6459 = vrot.lane.b32.xlu1 %v8500_v33, %s7376_s18 }
 0x462   : > { %v1387_v59 = vpop.xlane.xlu0 %1386 }
 0x463   : > { %v1377_v7 = vpop.xlane.xlu2 %1376  ;;  %v1410_v21 = vsub.f32 %v8430_v11, %v1387_v59 }
 0x464   : > { %v1405_v16 = vsub.f32 %v8432_v43, %v1377_v7  ;;  %v1381_v43 = vpop.xlane.xlu1 %1380 }
 0x465   : > { %v1434_v19 = vmul.f32 1.442695, %v1410_v21  ;;  %v1407_v53 = vsub.f32 %v8418_v22, %v1381_v43 }
 0x466   : > { %v1424_v41 = vmul.f32 1.442695, %v1405_v16 }
 0x467   : > { %v1428_v16 = vmul.f32 1.442695, %v1407_v53 }
 0x468   : > { %6612 = vpow2.f32 %v1424_v41 }
 0x46a   : > { %v1389_v0 = vpop.xlane.xlu0 %1388 }
 0x46b   : > { %v1383_v42 = vpop.xlane.xlu2 %1382  ;;  %v1411_v13 = vsub.f32 %v8438_v56, %v1389_v0 }
 0x46c   : > { %v1408_v25 = vsub.f32 %v8440_v18, %v1383_v42  ;;  %v1385_v56 = vpop.xlane.xlu1 %1384 }
 0x46d   : > { %v1436_v61 = vmul.f32 1.442695, %v1411_v13 }
 0x46e   : > { %v8508_v8 = vpop.eup %6612  ;;  %v1430_v15 = vmul.f32 1.442695, %v1408_v25 }
 0x46f   : > { %1456 = vadd.xlane.f32.xlu0 %v8508_v8 }
 0x470   : > { %6614 = vpow2.f32 %v1430_v15 }
 0x471   : > { %6616 = vpow2.f32 %v1434_v19 }
 0x472   : > { %6618 = vpow2.f32 %v1436_v61 }
 0x473   : > { %v1391_v37 = vpop.xlane.xlu2 %1390  ;;  %6620 = vpow2.f32 %v1426_v57 }
 0x474   : > { %v1412_v11 = vsub.f32 %v8446_v52, %v1391_v37  ;;  %v1409_v52 = vsub.f32 %v8425_v39, %v1385_v56 }
 0x476   : > { %v8516_v18 = vpop.eup %6614  ;;  %v1438_v45 = vmul.f32 1.442695, %v1412_v11  ;;  %v1432_v21 = vmul.f32 1.442695, %v1409_v52 }
 0x477   : > { %2008 = vmax.xlane.f32.xlu0 %v8514_v34  ;;  %1462 = vadd.xlane.f32.xlu2 %v8516_v18  ;;  %v8522_v59 = vpop.eup %6616 }
 0x478   : > { %v8524_v7 = vpop.eup %6618  ;;  %6622 = vpow2.f32 %v1438_v45 }
 0x479   : > { %v8528_v41 = vpop.eup %6620  ;;  %6624 = vpow2.f32 %v1428_v16 }
 0x47a   : > { %v1393_v22 = vpop.xlane.xlu0 %1392 }
 0x47b   : > { %v1413_v4 = vsub.f32 %v8451_v40, %v1393_v22  ;;  %v8552_v40 = vpack.i.bf16 %v8123_v51, %v8129_v9  ;;  %v8565_v51 = vpack.i.bf16 %v8113_v30, %v8117_v31 }
 0x47d   : > { %v1440_v19 = vmul.f32 1.442695, %v1413_v4 }
 0x47e   : > { %v8533_v15 = vpop.eup %6622 }
 0x47f   : > { %1466 = vadd.xlane.f32.xlu0 %v8522_v59  ;;  %1468 = vadd.xlane.f32.xlu2 %v8524_v7  ;;  %v8536_v13 = vpop.eup %6624 }
 0x481   : > { %1458 = vadd.xlane.f32.xlu1 %v8528_v41 }
 0x482   : > { %v1395_v42 = vpop.xlane.xlu1 %1394 }
 0x483   : > { %v1414_v25 = vsub.f32 %v8456_v54, %v1395_v42 }
 0x485   : > { %v1442_v0 = vmul.f32 1.442695, %v1414_v25 }
 0x487   : > { %6626 = vpow2.f32 %v1442_v0  ;;  %1470 = vadd.xlane.f32.xlu0 %v8533_v15 }
 0x488   : > { %6628 = vpow2.f32 %v1432_v21 }
 0x489   : > { %1460 = vadd.xlane.f32.xlu1 %v8536_v13 }
 0x48a   : > { %v1397_v50 = vpop.xlane.xlu0 %1396  ;;  %v8559_v56 = vpop.xlane.xlu2 %1998 }
 0x48b   : > { %v1415_v39 = vsub.f32 %v8459_v44, %v1397_v50 }
 0x48d   : > { %v8541_v43 = vpop.eup %6626  ;;  %v1444_v54 = vmul.f32 1.442695, %v1415_v39 }
 0x48e   : > { %v8544_v61 = vpop.eup %6628 }
 0x48f   : > { %6630 = vpow2.f32 %v1444_v54  ;;  %1474 = vadd.xlane.f32.xlu0 %v8541_v43 }
 0x490   : > { %6632 = vpow2.f32 %v1440_v19 }
 0x491   : > { %1464 = vadd.xlane.f32.xlu1 %v8544_v61 }
 0x492   : > { %v1997_v37 = vpop.xlane.xlu0 %1996  ;;  %v8576_v25 = vpop.xlane.xlu1 %2000 }
 0x493   : > { %v2028_v57 = vsub.f32 %v8465_v5, %v1997_v37 }
 0x495   : > { %v8548_v11 = vpop.eup %6630  ;;  %v2044_v44 = vmul.f32 1.442695, %v2028_v57 }
 0x496   : > { %v8557_v53 = vpop.eup %6632 }
 0x497   : > { %6464 = vrot.lane.b32.xlu2 %v8552_v40, %s7376_s18  ;;  %1476 = vadd.xlane.f32.xlu0 %v8548_v11  ;;  %6634 = vpow2.f32 %v2044_v44 }
 0x499   : > { %1472 = vadd.xlane.f32.xlu1 %v8557_v53 }
 0x49a   : > { %v1399_v5 = vpop.xlane.xlu0 %1398  ;;  %v8571_v52 = vpop.xlane.xlu2 %2002 }
 0x49b   : > { %v1416_v45 = vsub.f32 %v8471_v12, %v1399_v5 }
 0x49d   : > { %v1446_v9 = vmul.f32 1.442695, %v1416_v45  ;;  %v8569_v16 = vpop.eup %6634 }
 0x49f   : > { %6469 = vrot.lane.b32.xlu2 %v8565_v51, %s7376_s18  ;;  %6636 = vpow2.f32 %v1446_v9 }
 0x4a1   : > { %2076 = vadd.xlane.f32.xlu1 %v8569_v16 }
 0x4a2   : > { %v1401_v22 = vpop.xlane.xlu0 %1400 }
 0x4a3   : > { %v1417_v9 = vsub.f32 %v8479_v14, %v1401_v22  ;;  %v8585_v22 = vpack.i.bf16 %v8087_v60, %v8105_v2 }
 0x4a5   : > { %v8574_v42 = vpop.eup %6636 }
 0x4a9   : > { %v1453_v12 = vpop.xlane.xlu2 %1452  ;;  %1478 = vadd.xlane.f32.xlu1 %v8574_v42 }
 0x4aa   : > { %6638 = vrcp.f32 %v1453_v12  ;;  %v1451_v30 = vpop.xlane.xlu0 %1450  ;;  %vm1502_vm7 = vweird.f32 %v1453_v12  ;;  %v1506_v3 = vand.u32 2147483647, %v1453_v12 }
 0x4ab   : > { %6640 = vrcp.f32 %v1451_v30  ;;  %2725 = vrot.lane.b32.xlu0 %v8077_v62, %s7377_s16  ;;  %v1493_v19 = vand.u32 2147483648, %v1451_v30  ;;  %v1491_v57 = vand.u32 2147483647, %v1451_v30  ;;  %vm1487_vm3 = vweird.f32 %v1451_v30 }
 0x4ac   : > { %vm1507_vm9 = vcmp.eq.f32.partialorder %v1506_v3, 8.507059e+37 }
 0x4ad   : > { %v1494_v38 = vor.u32 1.1754944e-38, %v1493_v19  ;;  %vm1492_vm5 = vcmp.eq.f32.partialorder %v1491_v57, 8.507059e+37 }
 0x4b0   : > { %v6639_v31 = vpop.eup %6638 }
 0x4b1   : > { %v6641_v0 = vpop.eup %6640  ;;  %v1498_v21 = vmul.f32 %v6639_v31, %v1453_v12  ;;  %v1455_v4 = vpop.xlane.xlu1 %1454  ;;  %vm1503_vm6 = vweird.f32 %v6639_v31 }
 0x4b2   : > { %v1483_v50 = vmul.f32 %v6641_v0, %v1451_v30  ;;  %6642 = vrcp.f32 %v1455_v4  ;;  %vm1488_vm2 = vweird.f32 %v6641_v0  ;;  %vm1504_vm8 = vmor %vm1502_vm7, %vm1503_vm6  ;;  %vm1517_vm11 = vweird.f32 %v1455_v4 }
 0x4b3   : > { %v1499_v39 = vsub.f32 1.0, %v1498_v21  ;;  %vm1489_vm4 = vmor %vm1487_vm3, %vm1488_vm2 }
 0x4b4   : > { %v1484_v54 = vsub.f32 1.0, %v1483_v50  ;;  %v1508_v50 = vand.u32 2147483648, %v1453_v12 }
 0x4b5   : > { %v1500_v44 = vmul.f32 %v6639_v31, %v1499_v39  ;;  %v1448_v39 = vmul.f32 1.442695, %v1417_v9 }
 0x4b6   : > { %v1485_v37 = vmul.f32 %v6641_v0, %v1484_v54  ;;  %v1509_v14 = vor.u32 1.1754944e-38, %v1508_v50 }
 0x4b7   : > { %v1501_v62 = vadd.f32 %v6639_v31, %v1500_v44  ;;  %6644 = vpow2.f32 %v1448_v39  ;;  %v8599_v44 = vpop.xlane.xlu0 %2004 }
 0x4b8   : > { %v6643_v5 = vpop.eup %6642  ;;  %v1486_v45 = vadd.f32 %v6641_v0, %v1485_v37 }
 0x4b9   : > { %v1513_v48 = vmul.f32 %v6643_v5, %v1455_v4  ;;  %v1505_v30 = vsel %vm1504_vm8, %v6639_v31, %v1501_v62  ;;  %vm1518_vm10 = vweird.f32 %v6643_v5 }
 0x4ba   : > { %v1490_v28 = vsel %vm1489_vm4, %v6641_v0, %v1486_v45  ;;  %v1510_v0 = vsel %vm1507_vm9, %v1509_v14, %v1505_v30  ;;  %vm1519_vm12 = vmor %vm1517_vm11, %vm1518_vm10  ;;  %v8606_v45 = vpop.xlane.xlu2 %2006 }
 0x4bb   : > { %v1514_v46 = vsub.f32 1.0, %v1513_v48  ;;  %v1495_v21 = vsel %vm1492_vm5, %v1494_v38, %v1490_v28  ;;  %v1523_v38 = vand.u32 2147483648, %v1455_v4  ;;  %v1511_v48 = vmul.f32 %v8483_v17, %v1510_v0 }
 0x4bc   : > { %v1496_v54 = vmul.f32 %v8485_v55, %v1495_v21  ;;  %v1521_v55 = vand.u32 2147483647, %v1455_v4  ;;  %v1953_v4 = vpop.f32.mrf.mxu1 }
 0x4bd   : > { %v1515_v37 = vmul.f32 %v6643_v5, %v1514_v46  ;;  %v8590_v62 = vpop.eup %6644  ;;  %v1524_v60 = vor.u32 1.1754944e-38, %v1523_v38  ;;  %v8596_v19 = vmul.f32 0.17677669, %v1953_v4 }
 0x4be   : > { %1738 = vmatmul.f32.vlgmr.msrb.gmra.mxu0 %v1496_v54  ;;  %vm1522_vm13 = vcmp.eq.f32.partialorder %v1521_v55, 8.507059e+37 }
 0x4bf   : > { %v1516_v28 = vadd.f32 %v6643_v5, %v1515_v37 }
 0x4c1   : > { %v1520_v46 = vsel %vm1519_vm12, %v6643_v5, %v1516_v28  ;;  %v8614_v28 = vpack.i.bf16 %v8063_v24, %v8075_v58 }
 0x4c2   : > { %6474 = vrot.lane.b32.xlu1 %v8585_v22, %s7376_s18  ;;  %v1525_v2 = vsel %vm1522_vm13, %v1524_v60, %v1520_v46 }
 0x4c3   : > { %v1526_v17 = vmul.f32 %v8491_v49, %v1525_v2 }
 0x4c4   : > { %v1956_v57 = vpop.f32.mrf.mxu1 }
 0x4c5   : > { %v8601_v5 = vmul.f32 0.17677669, %v1956_v57 }
 0x4c6   : > { %1741 = vmatmul.f32.gmra.mxu0 %v1511_v48 }
 0x4c8   : > { %1480 = vadd.xlane.f32.xlu2 %v8590_v62 }
 0x4c9   : > { %v6460_v3 = vpop.permute.xlu1 %6459 }
 0x4ca   : > { %2729 = vrot.lane.b32.xlu1 %v8099_v1, %s7377_s16  ;;  %v6461_v12 = vunpack.i.l.bf16 %v6460_v3  ;;  %v6462_v31 = vunpack.i.h.bf16 %v6460_v3 }
 0x4cc   : > { %2416 = vmatpush.msrb.mxu2 %v6461_v12  ;;  %v8608_v9 = vpop.f32.mrf.mxu1 }
 0x4ce   : > { %1744 = vmatmul.f32.gmra.mxu0 %v1526_v17  ;;  %2417 = vmatpush.msrb.mxu2 %v6462_v31  ;;  %v2029_v17 = vsub.f32 %v8461_v29, %v8559_v56 }
 0x4d4   : > { %v1962_v30 = vpop.f32.mrf.mxu1 }
 0x4d5   : > { %2010 = vmax.xlane.f32.xlu0 %v8596_v19  ;;  %v8618_v55 = vmul.f32 0.17677669, %v1962_v30  ;;  %v2046_v30 = vmul.f32 1.442695, %v2029_v17 }
 0x4dc   : > { %v1965_v58 = vpop.f32.mrf.mxu1 }
 0x4dd   : > { %2012 = vmax.xlane.f32.xlu0 %v8601_v5  ;;  %v8625_v12 = vmul.f32 0.17677669, %v1965_v58 }
 0x4e0   : > { %2727 = vrot.lane.b32.xlu2 %v8089_v63, %s7377_s16 }
 0x4e2   : > { %v1457_v49 = vpop.xlane.xlu0 %1456 }
 0x4e3   : > { %6646 = vrcp.f32 %v1457_v49  ;;  %v1538_v37 = vand.u32 2147483648, %v1457_v49  ;;  %v1536_v0 = vand.u32 2147483647, %v1457_v49  ;;  %vm1532_vm15 = vweird.f32 %v1457_v49 }
 0x4e5   : > { %v1539_v48 = vor.u32 1.1754944e-38, %v1538_v37  ;;  %vm1537_vm2 = vcmp.eq.f32.partialorder %v1536_v0, 8.507059e+37 }
 0x4e9   : > { %v6647_v21 = vpop.eup %6646 }
 0x4ea   : > { %v1528_v50 = vmul.f32 %v6647_v21, %v1457_v49  ;;  %v8610_v54 = vpop.xlane.xlu2 %1462  ;;  %vm1533_vm14 = vweird.f32 %v6647_v21  ;;  %v8629_v31 = vpop.xlane.xlu0 %2008 }
 0x4eb   : > { %vm1534_vm0 = vmor %vm1532_vm15, %vm1533_vm14  ;;  %vm1577_vm12 = vweird.f32 %v8610_v54 }
 0x4ec   : > { %v1529_v39 = vsub.f32 1.0, %v1528_v50 }
 0x4ee   : > { %v1530_v14 = vmul.f32 %v6647_v21, %v1529_v39 }
 0x4f0   : > { %v1531_v38 = vadd.f32 %v6647_v21, %v1530_v14 }
 0x4f1   : > { %6479 = vrot.lane.b32.xlu0 %v8614_v28, %s7376_s18 }
 0x4f2   : > { %v8620_v46 = vpop.xlane.xlu2 %1468  ;;  %v1535_v60 = vsel %vm1534_vm0, %v6647_v21, %v1531_v38 }
 0x4f3   : > { %v1540_v3 = vsel %vm1537_vm2, %v1539_v48, %v1535_v60 }
 0x4f4   : > { %v1459_v2 = vpop.xlane.xlu1 %1458  ;;  %2016 = vmax.xlane.f32.xlu1 %v8618_v55  ;;  %v1541_v24 = vmul.f32 %v8508_v8, %v1540_v3 }
 0x4f5   : > { %6648 = vrcp.f32 %v1459_v2  ;;  %v1553_v14 = vand.u32 2147483648, %v1459_v2  ;;  %v1551_v0 = vand.u32 2147483647, %v1459_v2  ;;  %vm1547_vm4 = vweird.f32 %v1459_v2 }
 0x4f6   : > { %1747 = vmatmul.f32.gmra.mxu0 %v1541_v24  ;;  %6650 = vrcp.f32 %v8610_v54 }
 0x4f7   : > { %v1554_v24 = vor.u32 1.1754944e-38, %v1553_v14  ;;  %vm1552_vm6 = vcmp.eq.f32.partialorder %v1551_v0, 8.507059e+37 }
 0x4fa   : > { %v6465_v4 = vpop.permute.xlu2 %6464 }
 0x4fb   : > { %v6649_v57 = vpop.eup %6648  ;;  %v6466_v49 = vunpack.i.l.bf16 %v6465_v4  ;;  %v6467_v39 = vunpack.i.h.bf16 %v6465_v4  ;;  %v8636_v4 = vpop.xlane.xlu0 %1466 }
 0x4fc   : > { %v1543_v21 = vmul.f32 %v6649_v57, %v1459_v2  ;;  %v1461_v50 = vpop.xlane.xlu1 %1460  ;;  %2018 = vmax.xlane.f32.xlu1 %v8625_v12  ;;  %v8632_v8 = vpop.eup %6650  ;;  %vm1548_vm3 = vweird.f32 %v6649_v57 }
 0x4fd   : > { %6652 = vrcp.f32 %v1461_v50  ;;  %2418 = vmatpush.msrb.mxu2 %v6466_v49  ;;  %v1573_v29 = vmul.f32 %v8632_v8, %v8610_v54  ;;  %vm1549_vm5 = vmor %vm1547_vm4, %vm1548_vm3  ;;  %v1568_v14 = vand.u32 2147483648, %v1461_v50  ;;  %v1566_v63 = vand.u32 2147483647, %v1461_v50 }
 0x4fe   : > { %v1544_v37 = vsub.f32 1.0, %v1543_v21  ;;  %6654 = vpow2.f32 %v2046_v30  ;;  %vm1562_vm8 = vweird.f32 %v1461_v50  ;;  %vm1578_vm10 = vweird.f32 %v8632_v8 }
 0x4ff   : > { %2419 = vmatpush.msrb.mxu2 %v6467_v39  ;;  %v1574_v58 = vsub.f32 1.0, %v1573_v29  ;;  %vm1567_vm11 = vcmp.eq.f32.partialorder %v1566_v63, 8.507059e+37  ;;  %vm1579_vm13 = vmor %vm1577_vm12, %vm1578_vm10 }
 0x500   : > { %v1545_v56 = vmul.f32 %v6649_v57, %v1544_v37 }
 0x502   : > { %v6470_v38 = vpop.permute.xlu2 %6469  ;;  %v1546_v48 = vadd.f32 %v6649_v57, %v1545_v56 }
 0x503   : > { %v6653_v60 = vpop.eup %6652  ;;  %v6471_v3 = vunpack.i.l.bf16 %v6470_v38  ;;  %v6472_v39 = vunpack.i.h.bf16 %v6470_v38 }
 0x504   : > { %v1558_v17 = vmul.f32 %v6653_v60, %v1461_v50  ;;  %v8638_v49 = vpop.xlane.xlu1 %1464  ;;  %v1550_v21 = vsel %vm1549_vm5, %v6649_v57, %v1546_v48  ;;  %v8643_v29 = vpop.eup %6654  ;;  %vm1563_vm7 = vweird.f32 %v6653_v60  ;;  %v1575_v57 = vmul.f32 %v8632_v8, %v1574_v58 }
 0x505   : > { %6656 = vrcp.f32 %v8638_v49  ;;  %2420 = vmatpush.msrb.mxu2 %v6471_v3  ;;  %v1555_v30 = vsel %vm1552_vm6, %v1554_v24, %v1550_v21  ;;  %vm1564_vm9 = vmor %vm1562_vm8, %vm1563_vm7  ;;  %v1569_v48 = vor.u32 1.1754944e-38, %v1568_v14  ;;  %v1581_v50 = vand.u32 2147483647, %v8610_v54 }
 0x506   : > { %v1559_v37 = vsub.f32 1.0, %v1558_v17  ;;  %v1556_v2 = vmul.f32 %v8528_v41, %v1555_v30  ;;  %6658 = vrcp.f32 %v8636_v4  ;;  %v1576_v24 = vadd.f32 %v8632_v8, %v1575_v57  ;;  %v8657_v57 = vpop.xlane.xlu0 %1470 }
 0x507   : > { %2421 = vmatpush.msrb.mxu2 %v6472_v39  ;;  %v1583_v39 = vand.u32 2147483648, %v8610_v54  ;;  %6660 = vrcp.f32 %v8620_v46  ;;  %vm1582_vm14 = vcmp.eq.f32.partialorder %v1581_v50, 8.507059e+37  ;;  %v11142_v54 = vld [vmem:[#allocation65_spill] sm:$0xff]  ;;  %vm1592_vm0 = vweird.f32 %v8638_v49 }
 0x508   : > { %1750 = vmatmul.f32.gmra.mxu0 %v1556_v2  ;;  %v1560_v56 = vmul.f32 %v6653_v60, %v1559_v37  ;;  %v1580_v63 = vsel %vm1579_vm13, %v8632_v8, %v1576_v24  ;;  %v1596_v8 = vand.u32 2147483647, %v8638_v49  ;;  %6662 = vrcp.f32 %v8657_v57 }
 0x509   : > { %2078 = vadd.xlane.f32.xlu2 %v8643_v29  ;;  %v1584_v2 = vor.u32 1.1754944e-38, %v1583_v39  ;;  %vm1607_vm5 = vweird.f32 %v8636_v4  ;;  %vm1637_vm13 = vweird.f32 %v8657_v57 }
 0x50a   : > { %v1561_v0 = vadd.f32 %v6653_v60, %v1560_v56  ;;  %vm1597_vm3 = vcmp.eq.f32.partialorder %v1596_v8, 8.507059e+37 }
 0x50b   : > { %v6657_v38 = vpop.eup %6656  ;;  %v1585_v14 = vsel %vm1582_vm14, %v1584_v2, %v1580_v63  ;;  %v1613_v63 = vand.u32 2147483648, %v8636_v4  ;;  %v11144_v2 = vld [vmem:[#allocation39_spill] sm:$0xff] }
 0x50c   : > { %v1588_v41 = vmul.f32 %v6657_v38, %v8638_v49  ;;  %v1565_v3 = vsel %vm1564_vm9, %v6653_v60, %v1561_v0  ;;  %v6659_v17 = vpop.eup %6658  ;;  %vm1593_vm15 = vweird.f32 %v6657_v38  ;;  %v8667_v24 = vpop.xlane.xlu1 %1472  ;;  %vm1622_vm9 = vweird.f32 %v8620_v46 }
 0x50d   : > { %v1570_v21 = vsel %vm1567_vm11, %v1569_v48, %v1565_v3  ;;  %v1603_v37 = vmul.f32 %v6659_v17, %v8636_v4  ;;  %v6661_v0 = vpop.eup %6660  ;;  %v1598_v48 = vand.u32 2147483648, %v8638_v49  ;;  %vm1594_vm2 = vmor %vm1592_vm0, %vm1593_vm15  ;;  %vm1608_vm4 = vweird.f32 %v6659_v17 }
 0x50e   : > { %v1589_v58 = vsub.f32 1.0, %v1588_v41  ;;  %v1571_v30 = vmul.f32 %v8536_v13, %v1570_v21  ;;  %v1586_v41 = vmul.f32 %v8516_v18, %v1585_v14  ;;  %v1618_v3 = vmul.f32 %v6661_v0, %v8620_v46  ;;  %vm1609_vm6 = vmor %vm1607_vm5, %vm1608_vm4 }
 0x50f   : > { %v1604_v56 = vsub.f32 1.0, %v1603_v37  ;;  %v6663_v37 = vpop.eup %6662  ;;  %6664 = vrcp.f32 %v8667_v24  ;;  %vm1623_vm8 = vweird.f32 %v6661_v0 }
 0x510   : > { %1753 = vmatmul.f32.gmra.mxu0 %v1571_v30  ;;  %v1590_v60 = vmul.f32 %v6657_v38, %v1589_v58  ;;  %v8670_v58 = vmul.f32 0.17677669, %v8608_v9  ;;  %v1599_v30 = vor.u32 1.1754944e-38, %v1598_v48  ;;  %v1619_v50 = vsub.f32 1.0, %v1618_v3  ;;  %vm1624_vm10 = vmor %vm1622_vm9, %vm1623_vm8 }
 0x511   : > { %v1605_v39 = vmul.f32 %v6659_v17, %v1604_v56  ;;  %v1611_v9 = vand.u32 2147483647, %v8636_v4  ;;  %v1633_v56 = vmul.f32 %v6663_v37, %v8657_v57  ;;  %vm1638_vm12 = vweird.f32 %v6663_v37 }
 0x512   : > { %v1591_v13 = vadd.f32 %v6657_v38, %v1590_v60  ;;  %v11143_v60 = vld [vmem:[#allocation42_spill] sm:$0xff]  ;;  %v1620_v48 = vmul.f32 %v6661_v0, %v1619_v50  ;;  %v1626_v50 = vand.u32 2147483647, %v8620_v46  ;;  %vm1639_vm14 = vmor %vm1637_vm13, %vm1638_vm12 }
 0x513   : > { %v1606_v49 = vadd.f32 %v6659_v17, %v1605_v39  ;;  %v8682_v14 = vpack.i.bf16 %v11144_v2, %v11143_v60  ;;  %vm1612_vm7 = vcmp.eq.f32.partialorder %v1611_v9, 8.507059e+37  ;;  %v1634_v3 = vsub.f32 1.0, %v1633_v56 }
 0x514   : > { %v1595_v21 = vsel %vm1594_vm2, %v6657_v38, %v1591_v13  ;;  %v8689_v8 = vpop.xlane.xlu1 %2076  ;;  %vm1627_vm11 = vcmp.eq.f32.partialorder %v1626_v50, 8.507059e+37  ;;  %vm1652_vm2 = vweird.f32 %v8667_v24 }
 0x515   : > { %6494 = vrot.lane.b32.xlu1 %v11142_v54, %s7377_s16  ;;  %v1600_v18 = vsel %vm1597_vm3, %v1599_v30, %v1595_v21  ;;  %v1610_v13 = vsel %vm1609_vm6, %v6659_v17, %v1606_v49  ;;  %v1621_v21 = vadd.f32 %v6661_v0, %v1620_v48  ;;  %v6665_v39 = vpop.eup %6664  ;;  %v11145_v30 = vld [vmem:[#allocation50_spill] sm:$0xff]  ;;  %v1628_v17 = vand.u32 2147483648, %v8620_v46  ;;  %v11146_v48 = vld [vmem:[#allocation48_spill] sm:$0xff] }
 0x516   : > { %v1601_v38 = vmul.f32 %v8544_v61, %v1600_v18  ;;  %v1614_v61 = vor.u32 1.1754944e-38, %v1613_v63  ;;  %v1648_v49 = vmul.f32 %v6665_v39, %v8667_v24  ;;  %vm1653_vm0 = vweird.f32 %v6665_v39 }
 0x517   : > { %v1625_v63 = vsel %vm1624_vm10, %v6661_v0, %v1621_v21  ;;  %v1629_v9 = vor.u32 1.1754944e-38, %v1628_v17  ;;  %v1643_v0 = vand.u32 2147483648, %v8657_v57  ;;  %vm1654_vm3 = vmor %vm1652_vm2, %vm1653_vm0 }
 0x518   : > { %1756 = vmatmul.f32.gmra.mxu0 %v1586_v41  ;;  %v8687_v41 = vpop.xlane.xlu0 %1474  ;;  %v1615_v4 = vsel %vm1612_vm7, %v1614_v61, %v1610_v13 }
 0x519   : > { %v1616_v18 = vmul.f32 %v8522_v59, %v1615_v4  ;;  %6666 = vrcp.f32 %v8687_v41  ;;  %v1630_v60 = vsel %vm1627_vm11, %v1629_v9, %v1625_v63  ;;  %v1649_v59 = vsub.f32 1.0, %v1648_v49 }
 0x51a   : > { %v1631_v61 = vmul.f32 %v8524_v7, %v1630_v60  ;;  %v1641_v4 = vand.u32 2147483647, %v8657_v57  ;;  %v1644_v17 = vor.u32 1.1754944e-38, %v1643_v0  ;;  %v11147_v57 = vld [vmem:[#allocation34_spill] sm:$0xff]  ;;  %v1658_v9 = vand.u32 2147483648, %v8667_v24 }
 0x51b   : > { %2014 = vmax.xlane.f32.xlu0 %v8670_v58  ;;  %vm1667_vm6 = vweird.f32 %v8687_v41 }
 0x51c   : > { %v8703_v56 = vpop.xlane.xlu1 %1478  ;;  %vm1642_vm15 = vcmp.eq.f32.partialorder %v1641_v4, 8.507059e+37 }
 0x51d   : > { %6499 = vrot.lane.b32.xlu1 %v8500_v33, %s7377_s16 }
 0x51f   : > { %v6667_v13 = vpop.eup %6666 }
 0x520   : > { %1759 = vmatmul.f32.gmra.mxu0 %v1601_v38  ;;  %v1635_v38 = vmul.f32 %v6663_v37, %v1634_v3  ;;  %v8701_v2 = vpop.xlane.xlu0 %1476  ;;  %v1663_v3 = vmul.f32 %v6667_v13, %v8687_v41  ;;  %vm1668_vm5 = vweird.f32 %v6667_v13 }
 0x521   : > { %6484 = vrot.lane.b32.xlu2 %v8682_v14, %s7376_s18  ;;  %6668 = vrcp.f32 %v8701_v2  ;;  %vm1669_vm7 = vmor %vm1667_vm6, %vm1668_vm5  ;;  %vm1682_vm10 = vweird.f32 %v8701_v2 }
 0x522   : > { %v1636_v46 = vadd.f32 %v6663_v37, %v1635_v38  ;;  %v1664_v50 = vsub.f32 1.0, %v1663_v3  ;;  %6670 = vrcp.f32 %v8703_v56 }
 0x524   : > { %v1640_v21 = vsel %vm1639_vm14, %v6663_v37, %v1636_v46  ;;  %v1656_v37 = vand.u32 2147483647, %v8667_v24  ;;  %v1665_v0 = vmul.f32 %v6667_v13, %v1664_v50  ;;  %v1968_v50 = vpop.f32.mrf.mxu1  ;;  %vm1697_vm14 = vweird.f32 %v8703_v56 }
 0x525   : > { %3562 = vrot.lane.b32.xlu1 %v11145_v30, %s7378_s12  ;;  %v1650_v30 = vmul.f32 %v6665_v39, %v1649_v59 }
 0x526   : > { %vm1657_vm4 = vcmp.eq.f32.partialorder %v1656_v37, 8.507059e+37 }
 0x527   : > { %v1651_v49 = vadd.f32 %v6665_v39, %v1650_v30  ;;  %v6669_v63 = vpop.eup %6668  ;;  %v11148_v30 = vld [vmem:[#allocation32_spill] sm:$0xff] }
 0x528   : > { %1762 = vmatmul.f32.gmra.mxu0 %v1616_v18  ;;  %v1645_v18 = vsel %vm1642_vm15, %v1644_v17, %v1640_v21  ;;  %v1678_v46 = vmul.f32 %v6669_v63, %v8701_v2  ;;  %v1666_v21 = vadd.f32 %v6667_v13, %v1665_v0  ;;  %v6671_v24 = vpop.eup %6670  ;;  %v1673_v17 = vand.u32 2147483648, %v8687_v41 }
 0x529   : > { %2731 = vrot.lane.b32.xlu2 %v8161_v20, %s7377_s16  ;;  %v1646_v60 = vmul.f32 %v8533_v15, %v1645_v18  ;;  %vm1683_vm9 = vweird.f32 %v6669_v63  ;;  %vm1698_vm13 = vweird.f32 %v6671_v24 }
 0x52a   : > { %v1679_v3 = vsub.f32 1.0, %v1678_v46  ;;  %vm1684_vm11 = vmor %vm1682_vm10, %vm1683_vm9 }
 0x52b   : > { %vm1699_vm15 = vmor %vm1697_vm14, %vm1698_vm13 }
 0x52d   : > { %3560 = vrot.lane.b32.xlu1 %v11146_v48, %s7378_s12  ;;  %v1655_v48 = vsel %vm1654_vm3, %v6665_v39, %v1651_v49  ;;  %v1671_v39 = vand.u32 2147483647, %v8687_v41  ;;  %v1670_v49 = vsel %vm1669_vm7, %v6667_v13, %v1666_v21  ;;  %v1688_v41 = vand.u32 2147483648, %v8701_v2 }
 0x52e   : > { %vm2113_vm7 = vweird.f32 %v8689_v8 }
 0x52f   : > { %2733 = vrot.lane.b32.xlu0 %v8191_v10, %s7377_s16  ;;  %vm1672_vm8 = vcmp.eq.f32.partialorder %v1671_v39, 8.507059e+37  ;;  %v1689_v21 = vor.u32 1.1754944e-38, %v1688_v41 }
 0x530   : > { %1765 = vmatmul.f32.gmra.mxu0 %v1631_v61  ;;  %v1659_v61 = vor.u32 1.1754944e-38, %v1658_v9 }
 0x532   : > { %v1660_v4 = vsel %vm1657_vm4, %v1659_v61, %v1655_v48  ;;  %v1686_v48 = vand.u32 2147483647, %v8701_v2  ;;  %v1701_v2 = vand.u32 2147483647, %v8703_v56 }
 0x533   : > { %v1661_v18 = vmul.f32 %v8557_v53, %v1660_v4  ;;  %v1971_v4 = vpop.f32.mrf.mxu1 }
 0x534   : > { %v6475_v7 = vpop.permute.xlu1 %6474  ;;  %vm1687_vm12 = vcmp.eq.f32.partialorder %v1686_v48, 8.507059e+37  ;;  %vm1702_vm0 = vcmp.eq.f32.partialorder %v1701_v2, 8.507059e+37  ;;  %v2033_v2 = vsub.f32 %v8489_v27, %v8606_v45  ;;  %v2034_v27 = vsub.f32 %v8514_v34, %v8629_v31 }
 0x535   : > { %3548 = vrot.lane.b32.xlu1 %v11147_v57, %s7378_s12  ;;  %v6476_v38 = vunpack.i.l.bf16 %v6475_v7  ;;  %v6477_v59 = vunpack.i.h.bf16 %v6475_v7  ;;  %v1693_v7 = vmul.f32 %v6671_v24, %v8703_v56  ;;  %v1680_v57 = vmul.f32 %v6669_v63, %v1679_v3  ;;  %v8740_v3 = vpop.permute.xlu0 %2725 }
 0x536   : > { %v2117_v31 = vand.u32 2147483647, %v8689_v8 }
 0x537   : > { %2422 = vmatpush.msrb.mxu2 %v6476_v38  ;;  %v1674_v38 = vor.u32 1.1754944e-38, %v1673_v17  ;;  %v1681_v37 = vadd.f32 %v6669_v63, %v1680_v57 }
 0x538   : > { %1768 = vmatmul.f32.gmra.mxu0 %v1646_v60  ;;  %v1694_v60 = vsub.f32 1.0, %v1693_v7  ;;  %vm2118_vm9 = vcmp.eq.f32.partialorder %v2117_v31, 8.507059e+37  ;;  %v11156_v31 = vld [vmem:[#allocation41_spill] sm:$0xff] }
 0x539   : > { %2423 = vmatpush.msrb.mxu2 %v6477_v59  ;;  %v1675_v9 = vsel %vm1672_vm8, %v1674_v38, %v1670_v49  ;;  %v11149_v59 = vld [vmem:[#allocation24_spill] sm:$0xff]  ;;  %v1685_v0 = vsel %vm1684_vm11, %v6669_v63, %v1681_v37  ;;  %v8746_v63 = vmul.f32 0.17677669, %v1971_v4 }
 0x53a   : > { %v1676_v46 = vmul.f32 %v8541_v43, %v1675_v9  ;;  %v1695_v61 = vmul.f32 %v6671_v24, %v1694_v60  ;;  %v1703_v43 = vand.u32 2147483648, %v8703_v56 }
 0x53b   : > { %v8723_v15 = vpop.xlane.xlu2 %1480  ;;  %v1974_v9 = vpop.f32.mrf.mxu1 }
 0x53c   : > { %6672 = vrcp.f32 %v8723_v15  ;;  %v1704_v38 = vor.u32 1.1754944e-38, %v1703_v43  ;;  %vm1712_vm3 = vweird.f32 %v8723_v15  ;;  %v8757_v41 = vmul.f32 0.17677669, %v1974_v9  ;;  %v1739_v4 = vpop.f32.mrf.mxu0  ;;  %v11150_v43 = vld [vmem:[#allocation63_spill] sm:$0xff] }
 0x53d   : > { %3546 = vrot.lane.b32.xlu1 %v11148_v30, %s7378_s12  ;;  %v1690_v30 = vsel %vm1687_vm12, %v1689_v21, %v1685_v0 }
 0x53e   : > { %v1691_v39 = vmul.f32 %v8548_v11, %v1690_v30  ;;  %v1718_v11 = vand.u32 2147483648, %v8723_v15 }
 0x540   : > { %1771 = vmatmul.f32.gmra.mxu0 %v1661_v18  ;;  %v1696_v18 = vadd.f32 %v6671_v24, %v1695_v61  ;;  %v1719_v48 = vor.u32 1.1754944e-38, %v1718_v11 }
 0x542   : > { %v6673_v53 = vpop.eup %6672  ;;  %v1700_v7 = vsel %vm1699_vm15, %v6671_v24, %v1696_v18  ;;  %v8755_v24 = vmul.f32 0.17677669, %v1968_v50  ;;  %v2032_v18 = vsub.f32 %v8493_v35, %v8599_v44  ;;  %v2054_v44 = vmul.f32 1.442695, %v2033_v2 }
 0x543   : > { %v1708_v13 = vmul.f32 %v6673_v53, %v8723_v15  ;;  %v1705_v60 = vsel %vm1702_vm0, %v1704_v38, %v1700_v7  ;;  %vm1713_vm2 = vweird.f32 %v6673_v53  ;;  %v1977_v0 = vpop.f32.mrf.mxu1  ;;  %v8782_v7 = vpop.permute.xlu2 %2727 }
 0x544   : > { %v1706_v56 = vmul.f32 %v8574_v42, %v1705_v60  ;;  %vm1714_vm4 = vmor %vm1712_vm3, %vm1713_vm2  ;;  %v8766_v50 = vmul.f32 0.17677669, %v1977_v0  ;;  %v11151_v60 = vld [vmem:[#allocation60_spill] sm:$0xff] }
 0x545   : > { %3506 = vrot.lane.b32.xlu1 %v11149_v59, %s7378_s12  ;;  %v1709_v17 = vsub.f32 1.0, %v1708_v13  ;;  %v1716_v59 = vand.u32 2147483647, %v8723_v15  ;;  %v2030_v15 = vsub.f32 %v8467_v26, %v8576_v25  ;;  %v1742_v26 = vpop.f32.mrf.mxu0  ;;  %v2052_v25 = vmul.f32 1.442695, %v2032_v18 }
 0x547   : > { %v1710_v49 = vmul.f32 %v6673_v53, %v1709_v17  ;;  %vm1717_vm5 = vcmp.eq.f32.partialorder %v1716_v59, 8.507059e+37  ;;  %v11152_v59 = vld [vmem:[#allocation46_spill] sm:$0xff] }
 0x548   : > { %1774 = vmatmul.f32.gmra.mxu0 %v1676_v46  ;;  %v8748_v57 = vpop.xlane.xlu0 %2010 }
 0x549   : > { %v1711_v37 = vadd.f32 %v6673_v53, %v1710_v49  ;;  %v2035_v34 = vsub.f32 %v8596_v19, %v8748_v57 }
 0x54b   : > { %v1715_v46 = vsel %vm1714_vm4, %v6673_v53, %v1711_v37  ;;  %v2048_v53 = vmul.f32 1.442695, %v2030_v15  ;;  %v2056_v37 = vmul.f32 1.442695, %v2034_v27 }
 0x54c   : > { %v1720_v42 = vsel %vm1717_vm5, %v1719_v48, %v1715_v46 }
 0x54d   : > { %v1721_v61 = vmul.f32 %v8590_v62, %v1720_v42  ;;  %6674 = vpow2.f32 %v2048_v53  ;;  %v1745_v38 = vpop.f32.mrf.mxu0  ;;  %v2119_v42 = vand.u32 2147483648, %v8689_v8  ;;  %v2058_v53 = vmul.f32 1.442695, %v2035_v34 }
 0x54e   : > { %6676 = vrcp.f32 %v8689_v8 }
 0x54f   : > { %6678 = vpow2.f32 %v2052_v25  ;;  %v2120_v15 = vor.u32 1.1754944e-38, %v2119_v42  ;;  %v11155_v42 = vld [vmem:[#allocation51_spill] sm:$0xff] }
 0x550   : > { %1777 = vmatmul.f32.gmra.mxu0 %v1691_v39  ;;  %v8761_v13 = vpop.xlane.xlu0 %2012  ;;  %6680 = vpow2.f32 %v2054_v44 }
 0x552   : > { %2022 = vmax.xlane.f32.xlu2 %v8746_v63 }
 0x553   : > { %v8773_v62 = vpop.eup %6674 }
 0x554   : > { %v6677_v39 = vpop.eup %6676 }
 0x555   : > { %v2109_v35 = vmul.f32 %v6677_v39, %v8689_v8  ;;  %v8786_v9 = vpop.eup %6678  ;;  %vm2114_vm6 = vweird.f32 %v6677_v39 }
 0x556   : > { %v8796_v48 = vpop.eup %6680  ;;  %vm2115_vm8 = vmor %vm2113_vm7, %vm2114_vm6 }
 0x557   : > { %v2110_v49 = vsub.f32 1.0, %v2109_v35  ;;  %v2036_v35 = vsub.f32 %v8601_v5, %v8761_v13  ;;  %v11154_v5 = vld [vmem:[#allocation44_spill] sm:$0xff] }
 0x558   : > { %1780 = vmatmul.f32.gmra.mxu0 %v1706_v56 }
 0x559   : > { %2020 = vmax.xlane.f32.xlu0 %v8755_v24  ;;  %v2111_v45 = vmul.f32 %v6677_v39, %v2110_v49 }
 0x55a   : > { %2024 = vmax.xlane.f32.xlu2 %v8757_v41 }
 0x55b   : > { %v2112_v46 = vadd.f32 %v6677_v39, %v2111_v45  ;;  %v2060_v45 = vmul.f32 1.442695, %v2036_v35  ;;  %v11161_v35 = vld [vmem:[#allocation25_spill] sm:$0xff] }
 0x55d   : > { %v2116_v0 = vsel %vm2115_vm8, %v6677_v39, %v2112_v46 }
 0x560   : > { %1783 = vmatmul.f32.gmra.mxu0 %v1721_v61  ;;  %v11153_v61 = vld [vmem:[#allocation59_spill] sm:$0xff] }
 0x562   : > { %2026 = vmax.xlane.f32.xlu2 %v8766_v50 }
 0x563   : > { %v6480_v21 = vpop.permute.xlu0 %6479 }
 0x564   : > { %v6481_v30 = vunpack.i.l.bf16 %v6480_v21  ;;  %v6482_v17 = vunpack.i.h.bf16 %v6480_v21  ;;  %v8807_v21 = vpop.permute.xlu1 %2729 }
 0x566   : > { %2424 = vmatpush.msrb.mxu2 %v6481_v30  ;;  %v2121_v30 = vsel %vm2118_vm9, %v2120_v15, %v2116_v0 }
 0x567   : > { %v2122_v39 = vmul.f32 %v8569_v16, %v2121_v30 }
 0x568   : > { %2425 = vmatpush.msrb.mxu2 %v6482_v17  ;;  %6134 = vmatmul.msk.f32.vlgmr.msra.gmra.mxu0 %vm1192_vm1, %v1739_v4 }
 0x56c   : > { %v2017_v16 = vpop.xlane.xlu1 %2016 }
 0x56d   : > { %6489 = vrot.lane.b32.xlu0 %v11150_v43, %s7377_s16 }
 0x56f   : > { %2080 = vadd.xlane.f32.xlu1 %v8773_v62 }
 0x570   : > { %6135 = vmatmul.msk.f32.gmra.mxu0 %vm1192_vm1, %v1742_v26 }
 0x573   : > { %v1748_v56 = vpop.f32.mrf.mxu0 }
 0x574   : > { %v2019_v15 = vpop.xlane.xlu1 %2018 }
 0x575   : > { %6509 = vrot.lane.b32.xlu0 %v8565_v51, %s7377_s16 }
 0x577   : > { %2084 = vadd.xlane.f32.xlu1 %v8786_v9 }
 0x578   : > { %6136 = vmatmul.msk.f32.gmra.mxu0 %vm1192_vm1, %v1745_v38 }
 0x57a   : > { %3568 = vrot.lane.b32.xlu2 %v11151_v60, %s7378_s12 }
 0x57c   : > { %v2079_v11 = vpop.xlane.xlu2 %2078 }
 0x57d   : > { %6682 = vrcp.f32 %v2079_v11  ;;  %3558 = vrot.lane.b32.xlu0 %v11152_v59, %s7378_s12  ;;  %v2134_v2 = vand.u32 2147483648, %v2079_v11  ;;  %v2132_v49 = vand.u32 2147483647, %v2079_v11  ;;  %vm2128_vm11 = vweird.f32 %v2079_v11 }
 0x57e   : > { %6684 = vpow2.f32 %v2056_v37 }
 0x57f   : > { %2086 = vadd.xlane.f32.xlu1 %v8796_v48  ;;  %6686 = vpow2.f32 %v2058_v53  ;;  %v2135_v27 = vor.u32 1.1754944e-38, %v2134_v2  ;;  %vm2133_vm13 = vcmp.eq.f32.partialorder %v2132_v49, 8.507059e+37 }
 0x580   : > { %6137 = vmatmul.msk.f32.gmra.mxu0 %vm1192_vm1, %v1748_v56  ;;  %6688 = vpow2.f32 %v2060_v45  ;;  %v11163_v45 = vld [vmem:[#allocation26_spill] sm:$0xff] }
 0x582   : > { %3566 = vrot.lane.b32.xlu2 %v11153_v61, %s7378_s12 }
 0x583   : > { %v6683_v4 = vpop.eup %6682 }
 0x584   : > { %v2124_v19 = vmul.f32 %v6683_v4, %v2079_v11  ;;  %v6485_v57 = vpop.permute.xlu2 %6484  ;;  %v8811_v18 = vpop.eup %6684  ;;  %vm2129_vm10 = vweird.f32 %v6683_v4 }
 0x585   : > { %6524 = vrot.lane.b32.xlu0 %v8682_v14, %s7377_s16  ;;  %v1751_v8 = vpop.f32.mrf.mxu0  ;;  %v6486_v17 = vunpack.i.l.bf16 %v6485_v57  ;;  %v6487_v25 = vunpack.i.h.bf16 %v6485_v57  ;;  %vm2130_vm12 = vmor %vm2128_vm11, %vm2129_vm10  ;;  %v8820_v37 = vpop.eup %6686 }
 0x586   : > { %v2125_v26 = vsub.f32 1.0, %v2124_v19  ;;  %v8832_v61 = vpop.eup %6688 }
 0x587   : > { %2088 = vadd.xlane.f32.xlu1 %v8811_v18  ;;  %2426 = vmatpush.msrb.mxu2 %v6486_v17  ;;  %v8843_v57 = vpop.permute.xlu1 %6494 }
 0x588   : > { %6138 = vmatmul.msk.f32.gmra.mxu0 %vm1192_vm1, %v1751_v8  ;;  %v2126_v44 = vmul.f32 %v6683_v4, %v2125_v26  ;;  %v11159_v26 = vld [vmem:[#allocation36_spill] sm:$0xff] }
 0x589   : > { %2427 = vmatpush.msrb.mxu2 %v6487_v25  ;;  %v11160_v25 = vld [vmem:[#allocation29_spill] sm:$0xff] }
 0x58a   : > { %6504 = vrot.lane.b32.xlu2 %v8552_v40, %s7377_s16  ;;  %2428 = vmatmul.f32.vlgmr.msrb.gmra.mxu2 %v2122_v39  ;;  %v2127_v38 = vadd.f32 %v6683_v4, %v2126_v44  ;;  %v11162_v44 = vld [vmem:[#allocation27_spill] sm:$0xff] }
 0x58c   : > { %v2131_v60 = vsel %vm2130_vm12, %v6683_v4, %v2127_v38  ;;  %v11157_v4 = vld [vmem:[#allocation38_spill] sm:$0xff] }
 0x58d   : > { %3556 = vrot.lane.b32.xlu0 %v11154_v5, %s7378_s12  ;;  %v1754_v13 = vpop.f32.mrf.mxu0  ;;  %v2136_v56 = vsel %vm2133_vm13, %v2135_v27, %v2131_v60  ;;  %v8871_v27 = vpop.permute.xlu2 %2731 }
 0x58e   : > { %v2015_v59 = vpop.xlane.xlu0 %2014  ;;  %v2137_v11 = vmul.f32 %v8643_v29, %v2136_v56 }
 0x58f   : > { %2090 = vadd.xlane.f32.xlu1 %v8820_v37  ;;  %v2037_v46 = vsub.f32 %v8670_v58, %v2015_v59  ;;  %v2038_v58 = vsub.f32 %v8618_v55, %v2017_v16  ;;  %v11158_v55 = vld [vmem:[#allocation30_spill] sm:$0xff]  ;;  %v8855_v17 = vpop.permute.xlu1 %6499 }
 0x590   : > { %6139 = vmatmul.msk.f32.gmra.mxu0 %vm1192_vm1, %v1754_v13 }
 0x591   : > { %v2062_v34 = vmul.f32 1.442695, %v2037_v46  ;;  %v2064_v29 = vmul.f32 1.442695, %v2038_v58  ;;  %v2031_v46 = vsub.f32 %v8473_v36, %v8571_v52 }
 0x592   : > { %3564 = vrot.lane.b32.xlu2 %v11155_v42, %s7378_s12  ;;  %2431 = vmatmul.f32.gmra.mxu2 %v2137_v11 }
 0x593   : > { %6690 = vpow2.f32 %v2062_v34 }
 0x594   : > { %6692 = vpow2.f32 %v2064_v29 }
 0x595   : > { %3554 = vrot.lane.b32.xlu0 %v11156_v31, %s7378_s12  ;;  %v1757_v0 = vpop.f32.mrf.mxu0 }
 0x597   : > { %2092 = vadd.xlane.f32.xlu1 %v8832_v61  ;;  %v8862_v2 = vpop.permute.xlu1 %3562 }
 0x598   : > { %6140 = vmatmul.msk.f32.gmra.mxu0 %vm1192_vm1, %v1757_v0  ;;  %v2050_v0 = vmul.f32 1.442695, %v2031_v46 }
 0x599   : > { %v8841_v19 = vpop.eup %6690 }
 0x59a   : > { %6514 = vrot.lane.b32.xlu2 %v8585_v22, %s7377_s16  ;;  %v8851_v8 = vpop.eup %6692 }
 0x59d   : > { %3552 = vrot.lane.b32.xlu0 %v11157_v4, %s7378_s12  ;;  %v1760_v53 = vpop.f32.mrf.mxu0 }
 0x59f   : > { %2094 = vadd.xlane.f32.xlu1 %v8841_v19  ;;  %v8869_v38 = vpop.permute.xlu1 %3560 }
 0x5a0   : > { %6141 = vmatmul.msk.f32.gmra.mxu0 %vm1192_vm1, %v1760_v53 }
 0x5a1   : > { %v8882_v11 = vpop.permute.xlu0 %2733 }
 0x5a2   : > { %6519 = vrot.lane.b32.xlu2 %v8614_v28, %s7377_s16 }
 0x5a5   : > { %3544 = vrot.lane.b32.xlu0 %v11158_v55, %s7378_s12  ;;  %v1763_v30 = vpop.f32.mrf.mxu0 }
 0x5a6   : > { %6142 = vmatmul.msk.f32.vlgmr.msra.gmra.mxu1 %vm1192_vm1, %v1763_v30 }
 0x5a7   : > { %2096 = vadd.xlane.f32.xlu1 %v8851_v8  ;;  %v8876_v13 = vpop.permute.xlu1 %3548 }
 0x5aa   : > { %3550 = vrot.lane.b32.xlu2 %v11159_v26, %s7378_s12 }
 0x5ad   : > { %3542 = vrot.lane.b32.xlu0 %v11160_v25, %s7378_s12  ;;  %v1766_v39 = vpop.f32.mrf.mxu0 }
 0x5ae   : > { %6143 = vmatmul.msk.f32.gmra.mxu1 %vm1192_vm1, %v1766_v39 }
 0x5af   : > { %v8887_v58 = vpop.permute.xlu1 %3546 }
 0x5b2   : > { %3538 = vrot.lane.b32.xlu2 %v11161_v35, %s7378_s12 }
 0x5b5   : > { %3540 = vrot.lane.b32.xlu0 %v11162_v44, %s7378_s12  ;;  %v1769_v49 = vpop.f32.mrf.mxu0 }
 0x5b6   : > { %6144 = vmatmul.msk.f32.gmra.mxu1 %vm1192_vm1, %v1769_v49 }
 0x5b7   : > { %v8895_v30 = vpop.permute.xlu1 %3506 }
 0x5bd   : > { %3508 = vrot.lane.b32.xlu0 %v11163_v45, %s7378_s12  ;;  %v1772_v16 = vpop.f32.mrf.mxu0 }
 0x5be   : > { %6145 = vmatmul.msk.f32.gmra.mxu1 %vm1192_vm1, %v1772_v16 }
 0x5c5   : > { %v2023_v60 = vpop.xlane.xlu2 %2022  ;;  %v1775_v5 = vpop.f32.mrf.mxu0 }
 0x5c6   : > { %v2041_v56 = vsub.f32 %v8746_v63, %v2023_v60  ;;  %6146 = vmatmul.msk.f32.gmra.mxu1 %vm1192_vm1, %v1775_v5  ;;  %v2039_v63 = vsub.f32 %v8625_v12, %v2019_v15 }
 0x5c8   : > { %v2070_v59 = vmul.f32 1.442695, %v2041_v56  ;;  %v2066_v36 = vmul.f32 1.442695, %v2039_v63  ;;  %v6497_v56 = vunpack.i.h.bf16 %v8843_v57  ;;  %v6502_v63 = vunpack.i.h.bf16 %v8855_v17 }
 0x5ca   : > { %6694 = vpow2.f32 %v2070_v59  ;;  %v11164_v59 = vld [vmem:[#allocation53_spill] sm:$0xff] }
 0x5cb   : > { %6696 = vpow2.f32 %v2050_v0 }
 0x5cc   : > { %v2021_v29 = vpop.xlane.xlu0 %2020  ;;  %6698 = vpow2.f32 %v2066_v36 }
 0x5cd   : > { %v2025_v42 = vpop.xlane.xlu2 %2024  ;;  %v1778_v34 = vpop.f32.mrf.mxu0  ;;  %v2040_v52 = vsub.f32 %v8755_v24, %v2021_v29 }
 0x5ce   : > { %6147 = vmatmul.msk.f32.gmra.mxu1 %vm1192_vm1, %v1778_v34  ;;  %v2042_v25 = vsub.f32 %v8757_v41, %v2025_v42  ;;  %v6496_v41 = vunpack.i.l.bf16 %v8843_v57  ;;  %v6501_v42 = vunpack.i.l.bf16 %v8855_v17 }
 0x5cf   : > { %v2068_v26 = vmul.f32 1.442695, %v2040_v52  ;;  %v11165_v52 = vld [vmem:[#allocation54_spill] sm:$0xff] }
 0x5d0   : > { %v8885_v31 = vpop.eup %6694  ;;  %v2072_v24 = vmul.f32 1.442695, %v2042_v25 }
 0x5d1   : > { %2102 = vadd.xlane.f32.xlu1 %v8885_v31  ;;  %v8893_v55 = vpop.eup %6696  ;;  %6700 = vpow2.f32 %v2068_v26 }
 0x5d2   : > { %v8904_v44 = vpop.eup %6698 }
 0x5d5   : > { %v2027_v4 = vpop.xlane.xlu2 %2026  ;;  %v1781_v53 = vpop.f32.mrf.mxu0 }
 0x5d6   : > { %6148 = vmatmul.msk.f32.gmra.mxu1 %vm1192_vm1, %v1781_v53  ;;  %v2043_v16 = vsub.f32 %v8766_v50, %v2027_v4 }
 0x5d7   : > { %v8911_v5 = vpop.eup %6700 }
 0x5d8   : > { %v2074_v50 = vmul.f32 1.442695, %v2043_v16 }
 0x5db   : > { %2082 = vadd.xlane.f32.xlu2 %v8893_v55 }
 0x5dd   : > { %v8899_v39 = vpop.permute.xlu2 %3568  ;;  %v1784_v12 = vpop.f32.mrf.mxu0 }
 0x5de   : > { %6149 = vmatmul.msk.f32.gmra.mxu1 %vm1192_vm1, %v1784_v12  ;;  %6198 = vmatpush.xpose.msk.msrb.mxu0 %vm1192_vm1, %v8899_v39  ;;  %v1183_v12 = vld [vmem:[#allocation10 + $0x38] sm:$0xff] }
 0x5df   : > { %v6490_v15 = vpop.permute.xlu0 %6489  ;;  %2537 = vmatpush.msrb.mxu3 %v1183_v12 }
 0x5e0   : > { %v6491_v35 = vunpack.i.l.bf16 %v6490_v15  ;;  %v6492_v49 = vunpack.i.h.bf16 %v6490_v15  ;;  %v1182_v15 = vld [vmem:[#allocation10 + $0x30] sm:$0xff] }
 0x5e1   : > { %2538 = vmatpush.msrb.mxu3 %v1182_v15 }
 0x5e2   : > { %v2081_v45 = vpop.xlane.xlu1 %2080  ;;  %3312 = vmatpush.msra.mxu2 %v6491_v35 }
 0x5e3   : > { %6702 = vrcp.f32 %v2081_v45  ;;  %2098 = vadd.xlane.f32.xlu2 %v8904_v44  ;;  %v2149_v53 = vand.u32 2147483648, %v2081_v45  ;;  %v2147_v25 = vand.u32 2147483647, %v2081_v45  ;;  %vm2143_vm15 = vweird.f32 %v2081_v45 }
 0x5e4   : > { %6704 = vpow2.f32 %v2072_v24  ;;  %3313 = vmatpush.msra.mxu2 %v6492_v49 }
 0x5e5   : > { %v8909_v60 = vpop.permute.xlu2 %3566  ;;  %6706 = vpow2.f32 %v2074_v50  ;;  %v2150_v49 = vor.u32 1.1754944e-38, %v2149_v53  ;;  %vm2148_vm2 = vcmp.eq.f32.partialorder %v2147_v25, 8.507059e+37  ;;  %v11168_v25 = vld [vmem:[#allocation62_spill] sm:$0xff] }
 0x5e6   : > { %6166 = vmatmul.msk.f32.vlgmr.msrb.gmra.mxu1 %vm1192_vm1, %v11164_v59  ;;  %3314 = vmatpush.msra.mxu2 %v6496_v41 }
 0x5e7   : > { %6199 = vmatpush.xpose.msk.msrb.mxu0 %vm1192_vm1, %v8909_v60  ;;  %2100 = vadd.xlane.f32.xlu0 %v8911_v5  ;;  %v6510_v46 = vpop.permute.xlu0 %6509 }
 0x5e8   : > { %3315 = vmatpush.msra.mxu2 %v6497_v56  ;;  %v6511_v16 = vunpack.i.l.bf16 %v6510_v46  ;;  %v6512_v50 = vunpack.i.h.bf16 %v6510_v46 }
 0x5e9   : > { %v6703_v34 = vpop.eup %6702 }
 0x5ea   : > { %v8920_v0 = vpop.eup %6704  ;;  %v2139_v57 = vmul.f32 %v6703_v34, %v2081_v45  ;;  %3316 = vmatpush.msra.mxu2 %v6501_v42  ;;  %vm2144_vm14 = vweird.f32 %v6703_v34  ;;  %v11166_v45 = vld [vmem:[#allocation58_spill] sm:$0xff] }
 0x5eb   : > { %2104 = vadd.xlane.f32.xlu2 %v8920_v0  ;;  %vm2145_vm0 = vmor %vm2143_vm15, %vm2144_vm14  ;;  %v8928_v41 = vpop.eup %6706 }
 0x5ec   : > { %v2140_v29 = vsub.f32 1.0, %v2139_v57  ;;  %3317 = vmatpush.msra.mxu2 %v6502_v63  ;;  %v1181_v57 = vld [vmem:[#allocation10 + $0x28] sm:$0xff] }
 0x5ed   : > { %v6505_v4 = vpop.permute.xlu2 %6504  ;;  %2539 = vmatpush.msrb.mxu3 %v1181_v57 }
 0x5ee   : > { %v6506_v36 = vunpack.i.l.bf16 %v6505_v4  ;;  %6167 = vmatmul.msk.f32.gmra.mxu1 %vm1192_vm1, %v11165_v52  ;;  %v2141_v26 = vmul.f32 %v6703_v34, %v2140_v29  ;;  %v6507_v17 = vunpack.i.h.bf16 %v6505_v4  ;;  %v1180_v4 = vld [vmem:[#allocation10 + $0x20] sm:$0xff] }
 0x5ef   : > { %v8926_v24 = vpop.permute.xlu0 %3558  ;;  %2540 = vmatpush.msrb.mxu3 %v1180_v4 }
 0x5f0   : > { %3318 = vmatpush.msra.mxu2 %v6506_v36  ;;  %v2142_v35 = vadd.f32 %v6703_v34, %v2141_v26 }
 0x5f2   : > { %3319 = vmatpush.msra.mxu2 %v6507_v17  ;;  %v2146_v56 = vsel %vm2145_vm0, %v6703_v34, %v2142_v35 }
 0x5f3   : > { %2106 = vadd.xlane.f32.xlu2 %v8928_v41  ;;  %v2151_v59 = vsel %vm2148_vm2, %v2150_v49, %v2146_v56 }
 0x5f4   : > { %3320 = vmatpush.msra.mxu2 %v6511_v16  ;;  %v2152_v42 = vmul.f32 %v8773_v62, %v2151_v59  ;;  %v11167_v62 = vld [vmem:[#allocation57_spill] sm:$0xff] }
 0x5f5   : > { %v3565_v63 = vpop.permute.xlu2 %3564  ;;  %v11169_v16 = vld [vmem:[#allocation61_spill] sm:$0xff] }
 0x5f6   : > { %2434 = vmatmul.f32.gmra.mxu2 %v2152_v42  ;;  %6168 = vmatmul.msk.f32.gmra.mxu1 %vm1192_vm1, %v11166_v45 }
 0x5f7   : > { %3321 = vmatpush.msra.mxu2 %v6512_v50  ;;  %6200 = vmatpush.xpose.msk.msrb.mxu0 %vm1192_vm1, %v3565_v63  ;;  %v6525_v29 = vpop.permute.xlu0 %6524  ;;  %v11170_v50 = vld [vmem:[#allocation64_spill] sm:$0xff] }
 0x5f8   : > { %v6526_v17 = vunpack.i.l.bf16 %v6525_v29  ;;  %v6527_v35 = vunpack.i.h.bf16 %v6525_v29 }
 0x5fb   : > { %6201 = vmatpush.xpose.msk.msrb.mxu0 %vm1192_vm1, %v8862_v2 }
 0x5fd   : > { %v6515_v34 = vpop.permute.xlu2 %6514 }
 0x5fe   : > { %v6516_v53 = vunpack.i.l.bf16 %v6515_v34  ;;  %6169 = vmatmul.msk.f32.gmra.mxu1 %vm1192_vm1, %v11167_v62  ;;  %v6517_v36 = vunpack.i.h.bf16 %v6515_v34 }
 0x5ff   : > { %6202 = vmatpush.xpose.msk.msrb.mxu0 %vm1192_vm1, %v8869_v38  ;;  %v3557_v46 = vpop.permute.xlu0 %3556 }
 0x600   : > { %3322 = vmatpush.msra.mxu2 %v6516_v53 }
 0x602   : > { %3323 = vmatpush.msra.mxu2 %v6517_v36 }
 0x603   : > { %6203 = vmatpush.xpose.msk.msrb.mxu0 %vm1192_vm1, %v8926_v24 }
 0x605   : > { %v6520_v52 = vpop.permute.xlu2 %6519 }
 0x606   : > { %v6521_v26 = vunpack.i.l.bf16 %v6520_v52  ;;  %6170 = vmatmul.msk.f32.gmra.mxu1 %vm1192_vm1, %v11168_v25  ;;  %v6522_v15 = vunpack.i.h.bf16 %v6520_v52 }
 0x607   : > { %6204 = vmatpush.xpose.msk.msrb.mxu0 %vm1192_vm1, %v3557_v46  ;;  %v3555_v12 = vpop.permute.xlu0 %3554 }
 0x608   : > { %3324 = vmatpush.msra.mxu2 %v6521_v26 }
 0x60a   : > { %3325 = vmatpush.msra.mxu2 %v6522_v15 }
 0x60b   : > { %6205 = vmatpush.xpose.msk.msrb.mxu0 %vm1192_vm1, %v3555_v12 }
 0x60c   : > { %3326 = vmatpush.msra.mxu2 %v6526_v17 }
 0x60d   : > { %v2429_v49 = vpop.f32.mrf.mxu2  ;;  %v3551_v59 = vpop.permute.xlu2 %3550 }
 0x60e   : > { %6118 = vmatmul.msk.f32.vlgmr.msrb.gmra.mxu3 %vm1192_vm1, %v2429_v49  ;;  %6171 = vmatmul.msk.f32.gmra.mxu1 %vm1192_vm1, %v11169_v16 }
 0x60f   : > { %3327 = vmatpush.msra.mxu2 %v6527_v35  ;;  %v3553_v56 = vpop.permute.xlu0 %3552 }
 0x610   : > { %6206 = vmatpush.xpose.msk.msrb.mxu0 %vm1192_vm1, %v3553_v56 }
 0x611   : > { %6289 = vmatpush.xpose.msk.msrb.mxu2 %vm1192_vm1, %v8899_v39  ;;  %v11171_v39 = vld [vmem:[#allocation66_spill] sm:$0xff] }
 0x614   : > { %6207 = vmatpush.xpose.msk.msrb.mxu0 %vm1192_vm1, %v3551_v59 }
 0x615   : > { %6290 = vmatpush.xpose.msk.msrb.mxu2 %vm1192_vm1, %v8909_v60  ;;  %v2432_v42 = vpop.f32.mrf.mxu2 }
 0x616   : > { %6119 = vmatmul.msk.f32.gmra.mxu3 %vm1192_vm1, %v2432_v42  ;;  %6172 = vmatmul.msk.f32.gmra.mxu1 %vm1192_vm1, %v11170_v50 }
 0x617   : > { %v3545_v57 = vpop.permute.xlu0 %3544 }
 0x618   : > { %6208 = vmatpush.xpose.msk.msrb.mxu0 %vm1192_vm1, %v8876_v13 }
 0x619   : > { %6291 = vmatpush.xpose.msk.msrb.mxu2 %vm1192_vm1, %v3565_v63  ;;  %v3539_v63 = vpop.permute.xlu2 %3538 }
 0x61c   : > { %6209 = vmatpush.xpose.msk.msrb.mxu0 %vm1192_vm1, %v8887_v58 }
 0x61d   : > { %6292 = vmatpush.xpose.msk.msrb.mxu2 %vm1192_vm1, %v8862_v2 }
 0x61e   : > { %6173 = vmatmul.msk.f32.gmra.mxu1 %vm1192_vm1, %v11171_v39 }
 0x61f   : > { %v3543_v60 = vpop.permute.xlu0 %3542 }
 0x620   : > { %6210 = vmatpush.xpose.msk.msrb.mxu0 %vm1192_vm1, %v3545_v57 }
 0x621   : > { %6293 = vmatpush.xpose.msk.msrb.mxu2 %vm1192_vm1, %v8869_v38 }
 0x623   : > { %v8971_v45 = vpop.f32.mrf.mxu1 }
 0x624   : > { %6211 = vmatpush.xpose.msk.msrb.mxu0 %vm1192_vm1, %v3543_v60 }
 0x625   : > { %6294 = vmatpush.xpose.msk.msrb.mxu2 %vm1192_vm1, %v8926_v24  ;;  %v2085_v24 = vpop.xlane.xlu1 %2084 }
 0x626   : > { %6174 = vmatmul.msk.f32.gmra.mxu1 %vm1192_vm1, %v8504_v6  ;;  %6708 = vrcp.f32 %v2085_v24  ;;  %vm2173_vm8 = vweird.f32 %v2085_v24 }
 0x627   : > { %v3541_v2 = vpop.permute.xlu0 %3540 }
 0x628   : > { %6212 = vmatpush.xpose.msk.msrb.mxu0 %vm1192_vm1, %v3541_v2 }
 0x629   : > { %6295 = vmatpush.xpose.msk.msrb.mxu2 %vm1192_vm1, %v3557_v46 }
 0x62b   : > { %v8980_v29 = vpop.f32.mrf.mxu1 }
 0x62c   : > { %6213 = vmatpush.xpose.msk.msrb.mxu0 %vm1192_vm1, %v3539_v63 }
 0x62d   : > { %6296 = vmatpush.xpose.msk.msrb.mxu2 %vm1192_vm1, %v3555_v12  ;;  %v9006_v4 = vpop.xlane.xlu1 %2086 }
 0x62e   : > { %6175 = vmatmul.msk.f32.gmra.mxu1 %vm1192_vm1, %v8320_v23  ;;  %vm2188_vm12 = vweird.f32 %v9006_v4 }
 0x62f   : > { %6214 = vmatmul.msk.f32.vlgmr.msrb.gmra.mxu0 %vm1192_vm1, %v8895_v30  ;;  %v3509_v38 = vpop.permute.xlu0 %3508 }
 0x631   : > { %6297 = vmatpush.xpose.msk.msrb.mxu2 %vm1192_vm1, %v3553_v56 }
 0x633   : > { %v8989_v6 = vpop.f32.mrf.mxu1 }
 0x635   : > { %6298 = vmatpush.xpose.msk.msrb.mxu2 %vm1192_vm1, %v3551_v59 }
 0x636   : > { %6176 = vmatmul.msk.f32.gmra.mxu1 %vm1192_vm1, %v8332_v32 }
 0x637   : > { %6215 = vmatmul.msk.f32.gmra.mxu0 %vm1192_vm1, %v3509_v38 }
 0x639   : > { %6299 = vmatpush.xpose.msk.msrb.mxu2 %vm1192_vm1, %v8876_v13  ;;  %v6709_v13 = vpop.eup %6708 }
 0x63a   : > { %v2169_v34 = vmul.f32 %v6709_v13, %v2085_v24  ;;  %vm2174_vm6 = vweird.f32 %v6709_v13 }
 0x63b   : > { %v8997_v23 = vpop.f32.mrf.mxu1  ;;  %vm2175_vm9 = vmor %vm2173_vm8, %vm2174_vm6 }
 0x63c   : > { %v2170_v62 = vsub.f32 1.0, %v2169_v34 }
 0x63d   : > { %6300 = vmatpush.xpose.msk.msrb.mxu2 %vm1192_vm1, %v8887_v58 }
 0x63e   : > { %6177 = vmatmul.msk.f32.gmra.mxu1 %vm1192_vm1, %v8740_v3  ;;  %v9015_v3 = vpop.xlane.xlu1 %2088  ;;  %v2171_v25 = vmul.f32 %v6709_v13, %v2170_v62 }
 0x63f   : > { %vm2203_vm0 = vweird.f32 %v9015_v3 }
 0x640   : > { %v2172_v59 = vadd.f32 %v6709_v13, %v2171_v25 }
 0x641   : > { %6301 = vmatpush.xpose.msk.msrb.mxu2 %vm1192_vm1, %v3545_v57  ;;  %v2179_v57 = vand.u32 2147483648, %v2085_v24 }
 0x643   : > { %v9004_v30 = vpop.f32.mrf.mxu1  ;;  %v2180_v34 = vor.u32 1.1754944e-38, %v2179_v57 }
 0x645   : > { %6302 = vmatpush.xpose.msk.msrb.mxu2 %vm1192_vm1, %v3543_v60  ;;  %v2177_v60 = vand.u32 2147483647, %v2085_v24 }
 0x646   : > { %6178 = vmatmul.msk.f32.gmra.mxu1 %vm1192_vm1, %v8782_v7  ;;  %v9024_v52 = vpop.xlane.xlu1 %2090 }
 0x647   : > { %vm2178_vm10 = vcmp.eq.f32.partialorder %v2177_v60, 8.507059e+37 }
 0x649   : > { %6303 = vmatpush.xpose.msk.msrb.mxu2 %vm1192_vm1, %v3541_v2 }
 0x64b   : > { %v9012_v32 = vpop.f32.mrf.mxu1 }
 0x64d   : > { %6304 = vmatpush.xpose.msk.msrb.mxu2 %vm1192_vm1, %v3539_v63 }
 0x64e   : > { %v2083_v58 = vpop.xlane.xlu2 %2082  ;;  %6179 = vmatmul.msk.f32.gmra.mxu1 %vm1192_vm1, %v8807_v21  ;;  %v9035_v38 = vpop.xlane.xlu1 %2092 }
 0x64f   : > { %6710 = vrcp.f32 %v2083_v58  ;;  %v2164_v21 = vand.u32 2147483648, %v2083_v58  ;;  %v2162_v17 = vand.u32 2147483647, %v2083_v58  ;;  %vm2158_vm4 = vweird.f32 %v2083_v58 }
 0x650   : > { %6712 = vrcp.f32 %v9006_v4 }
 0x651   : > { %6714 = vrcp.f32 %v9015_v3  ;;  %v2165_v16 = vor.u32 1.1754944e-38, %v2164_v21  ;;  %vm2163_vm7 = vcmp.eq.f32.partialorder %v2162_v17, 8.507059e+37 }
 0x652   : > { %6716 = vrcp.f32 %v9024_v52 }
 0x653   : > { %v9020_v53 = vpop.f32.mrf.mxu1  ;;  %6718 = vrcp.f32 %v9035_v38 }
 0x655   : > { %v6711_v7 = vpop.eup %6710 }
 0x656   : > { %v2154_v46 = vmul.f32 %v6711_v7, %v2083_v58  ;;  %6180 = vmatmul.msk.f32.gmra.mxu1 %vm1192_vm1, %v8871_v27  ;;  %v6713_v36 = vpop.eup %6712  ;;  %vm2159_vm3 = vweird.f32 %v6711_v7 }
 0x657   : > { %v2184_v12 = vmul.f32 %v6713_v36, %v9006_v4  ;;  %vm2160_vm5 = vmor %vm2158_vm4, %vm2159_vm3  ;;  %v6715_v42 = vpop.eup %6714  ;;  %vm2189_vm11 = vweird.f32 %v6713_v36 }
 0x658   : > { %v2155_v26 = vsub.f32 1.0, %v2154_v46  ;;  %v2199_v63 = vmul.f32 %v6715_v42, %v9015_v3  ;;  %v6717_v24 = vpop.eup %6716  ;;  %vm2190_vm13 = vmor %vm2188_vm12, %vm2189_vm11  ;;  %vm2204_vm15 = vweird.f32 %v6715_v42 }
 0x659   : > { %v2185_v27 = vsub.f32 1.0, %v2184_v12  ;;  %v2214_v12 = vmul.f32 %v6717_v24, %v9024_v52  ;;  %vm2205_vm2 = vmor %vm2203_vm0, %vm2204_vm15  ;;  %vm2219_vm4 = vweird.f32 %v6717_v24 }
 0x65a   : > { %v2156_v15 = vmul.f32 %v6711_v7, %v2155_v26  ;;  %v2200_v46 = vsub.f32 1.0, %v2199_v63  ;;  %v2194_v26 = vand.u32 2147483648, %v9006_v4 }
 0x65b   : > { %v9028_v35 = vpop.f32.mrf.mxu1  ;;  %v2186_v2 = vmul.f32 %v6713_v36, %v2185_v27 }
 0x65c   : > { %v2157_v49 = vadd.f32 %v6711_v7, %v2156_v15  ;;  %v2201_v21 = vmul.f32 %v6715_v42, %v2200_v46 }
 0x65e   : > { %6181 = vmatmul.msk.f32.gmra.mxu1 %vm1192_vm1, %v8882_v11  ;;  %v2161_v56 = vsel %vm2160_vm5, %v6711_v7, %v2157_v49  ;;  %v2176_v11 = vsel %vm2175_vm9, %v6709_v13, %v2172_v59  ;;  %v2192_v13 = vand.u32 2147483647, %v9006_v4  ;;  %v2195_v49 = vor.u32 1.1754944e-38, %v2194_v26  ;;  %v6719_v59 = vpop.eup %6718 }
 0x65f   : > { %v2166_v50 = vsel %vm2163_vm7, %v2165_v16, %v2161_v56  ;;  %v2181_v62 = vsel %vm2178_vm10, %v2180_v34, %v2176_v11  ;;  %v9046_v16 = vpop.xlane.xlu1 %2094  ;;  %v2215_v56 = vsub.f32 1.0, %v2214_v12  ;;  %v2202_v4 = vadd.f32 %v6715_v42, %v2201_v21 }
 0x660   : > { %v2167_v39 = vmul.f32 %v8893_v55, %v2166_v50  ;;  %v2187_v55 = vadd.f32 %v6713_v36, %v2186_v2  ;;  %v2182_v25 = vmul.f32 %v8786_v9, %v2181_v62  ;;  %vm2193_vm14 = vcmp.eq.f32.partialorder %v2192_v13, 8.507059e+37 }
 0x661   : > { %v2209_v50 = vand.u32 2147483648, %v9015_v3  ;;  %6720 = vrcp.f32 %v9046_v16  ;;  %v2229_v60 = vmul.f32 %v6719_v59, %v9035_v38  ;;  %v2206_v2 = vsel %vm2205_vm2, %v6715_v42, %v2202_v4 }
 0x662   : > { %2437 = vmatmul.f32.gmra.mxu2 %v2167_v39  ;;  %v2191_v15 = vsel %vm2190_vm13, %v6713_v36, %v2187_v55  ;;  %v2207_v36 = vand.u32 2147483647, %v9015_v3  ;;  %v2216_v39 = vmul.f32 %v6717_v24, %v2215_v56  ;;  %v2224_v55 = vand.u32 2147483648, %v9024_v52  ;;  %v9071_v56 = vpop.xlane.xlu2 %2098 }
 0x663   : > { %v2848_v58 = vpop.f32.mrf.mxu1  ;;  %v2196_v9 = vsel %vm2193_vm14, %v2195_v49, %v2191_v15  ;;  %v2210_v11 = vor.u32 1.1754944e-38, %v2209_v50  ;;  %v2230_v62 = vsub.f32 1.0, %v2229_v60  ;;  %vm2218_vm5 = vweird.f32 %v9024_v52 }
 0x664   : > { %v9037_v7 = vmul.f32 0.17677669, %v2848_v58  ;;  %v2197_v57 = vmul.f32 %v8796_v48, %v2196_v9  ;;  %vm2208_vm3 = vcmp.eq.f32.partialorder %v2207_v36, 8.507059e+37  ;;  %v2217_v3 = vadd.f32 %v6717_v24, %v2216_v39  ;;  %vm2220_vm6 = vmor %vm2218_vm5, %vm2219_vm4 }
 0x665   : > { %v2211_v34 = vsel %vm2208_vm3, %v2210_v11, %v2206_v2  ;;  %v2222_v42 = vand.u32 2147483647, %v9024_v52  ;;  %v2231_v13 = vmul.f32 %v6719_v59, %v2230_v62  ;;  %vm2234_vm8 = vweird.f32 %v6719_v59 }
 0x666   : > { %2912 = vmax.xlane.f32.xlu2 %v9037_v7  ;;  %v2212_v26 = vmul.f32 %v8811_v18, %v2211_v34  ;;  %v2221_v12 = vsel %vm2220_vm6, %v6717_v24, %v2217_v3  ;;  %v2239_v50 = vand.u32 2147483648, %v9035_v38  ;;  %vm2233_vm9 = vweird.f32 %v9035_v38  ;;  %v9082_v3 = vpop.xlane.xlu0 %2100 }
 0x667   : > { %v9059_v48 = vpop.xlane.xlu1 %2096  ;;  %v6721_v46 = vpop.eup %6720  ;;  %vm2223_vm7 = vcmp.eq.f32.partialorder %v2222_v42, 8.507059e+37  ;;  %v2232_v52 = vadd.f32 %v6719_v59, %v2231_v13  ;;  %vm2235_vm10 = vmor %vm2233_vm9, %vm2234_vm8  ;;  %vm2248_vm13 = vweird.f32 %v9046_v16  ;;  %vm2278_vm6 = vweird.f32 %v9071_v56 }
 0x668   : > { %6722 = vrcp.f32 %v9059_v48  ;;  %v2244_v21 = vmul.f32 %v6721_v46, %v9046_v16  ;;  %v2240_v2 = vor.u32 1.1754944e-38, %v2239_v50  ;;  %vm2249_vm12 = vweird.f32 %v6721_v46 }
 0x669   : > { %6724 = vrcp.f32 %v9071_v56  ;;  %v2236_v60 = vsel %vm2235_vm10, %v6719_v59, %v2232_v52  ;;  %vm2250_vm14 = vmor %vm2248_vm13, %vm2249_vm12  ;;  %v2269_v52 = vand.u32 2147483648, %v9059_v48  ;;  %vm2263_vm2 = vweird.f32 %v9059_v48 }
 0x66a   : > { %2440 = vmatmul.f32.gmra.mxu2 %v2182_v25  ;;  %v2245_v9 = vsub.f32 1.0, %v2244_v21  ;;  %6726 = vrcp.f32 %v9082_v3  ;;  %v2267_v50 = vand.u32 2147483647, %v9059_v48  ;;  %vm2293_vm10 = vweird.f32 %v9082_v3 }
 0x66b   : > { %v2851_v17 = vpop.f32.mrf.mxu1 }
 0x66c   : > { %v9048_v27 = vmul.f32 0.17677669, %v2851_v17  ;;  %v2225_v17 = vor.u32 1.1754944e-38, %v2224_v55  ;;  %v2246_v36 = vmul.f32 %v6721_v46, %v2245_v9  ;;  %v2254_v55 = vand.u32 2147483648, %v9046_v16 }
 0x66d   : > { %vm2268_vm4 = vcmp.eq.f32.partialorder %v2267_v50, 8.507059e+37 }
 0x66e   : > { %2914 = vmax.xlane.f32.xlu0 %v9048_v27  ;;  %v2226_v18 = vsel %vm2223_vm7, %v2225_v17, %v2221_v12  ;;  %v6723_v4 = vpop.eup %6722  ;;  %v2255_v21 = vor.u32 1.1754944e-38, %v2254_v55  ;;  %v2282_v55 = vand.u32 2147483647, %v9071_v56 }
 0x66f   : > { %v2227_v24 = vmul.f32 %v8820_v37, %v2226_v18  ;;  %v2259_v39 = vmul.f32 %v6723_v4, %v9059_v48  ;;  %v2247_v37 = vadd.f32 %v6721_v46, %v2246_v36  ;;  %v9093_v18 = vpop.xlane.xlu1 %2102  ;;  %vm2264_vm0 = vweird.f32 %v6723_v4 }
 0x670   : > { %6728 = vrcp.f32 %v9093_v18  ;;  %vm2265_vm3 = vmor %vm2263_vm2, %vm2264_vm0  ;;  %vm2283_vm8 = vcmp.eq.f32.partialorder %v2282_v55, 8.507059e+37 }
 0x671   : > { %v2260_v62 = vsub.f32 1.0, %v2259_v39  ;;  %v2251_v13 = vsel %vm2250_vm14, %v6721_v46, %v2247_v37  ;;  %v2270_v39 = vor.u32 1.1754944e-38, %v2269_v52  ;;  %v2284_v37 = vand.u32 2147483648, %v9071_v56 }
 0x672   : > { %2443 = vmatmul.f32.gmra.mxu2 %v2197_v57  ;;  %v2237_v57 = vand.u32 2147483647, %v9035_v38  ;;  %v6725_v38 = vpop.eup %6724  ;;  %v2297_v52 = vand.u32 2147483647, %v9082_v3  ;;  %vm2308_vm14 = vweird.f32 %v9093_v18 }
 0x673   : > { %v2854_v63 = vpop.f32.mrf.mxu1  ;;  %v2261_v42 = vmul.f32 %v6723_v4, %v2260_v62  ;;  %vm2279_vm5 = vweird.f32 %v6725_v38 }
 0x674   : > { %v9057_v58 = vmul.f32 0.17677669, %v2854_v63  ;;  %vm2238_vm11 = vcmp.eq.f32.partialorder %v2237_v57, 8.507059e+37  ;;  %vm2280_vm7 = vmor %vm2278_vm6, %vm2279_vm5  ;;  %vm2298_vm12 = vcmp.eq.f32.partialorder %v2297_v52, 8.507059e+37 }
 0x675   : > { %v2241_v34 = vsel %vm2238_vm11, %v2240_v2, %v2236_v60  ;;  %v9102_v2 = vpop.xlane.xlu2 %2104 }
 0x676   : > { %2916 = vmax.xlane.f32.xlu1 %v9057_v58  ;;  %v2242_v59 = vmul.f32 %v8832_v61, %v2241_v34  ;;  %v2262_v61 = vadd.f32 %v6723_v4, %v2261_v42  ;;  %6730 = vrcp.f32 %v9102_v2 }
 0x678   : > { %v2266_v36 = vsel %vm2265_vm3, %v6723_v4, %v2262_v61  ;;  %v2299_v61 = vand.u32 2147483648, %v9082_v3  ;;  %vm2323_vm3 = vweird.f32 %v9102_v2 }
 0x679   : > { %v2435_v25 = vpop.f32.mrf.mxu2  ;;  %v2271_v34 = vsel %vm2268_vm4, %v2270_v39, %v2266_v36 }
 0x67a   : > { %2446 = vmatmul.f32.gmra.mxu2 %v2212_v26  ;;  %6120 = vmatmul.msk.f32.gmra.mxu3 %vm1192_vm1, %v2435_v25  ;;  %v2252_v26 = vand.u32 2147483647, %v9046_v16  ;;  %v2274_v25 = vmul.f32 %v6725_v38, %v9071_v56  ;;  %v6727_v16 = vpop.eup %6726  ;;  %v2272_v4 = vmul.f32 %v8851_v8, %v2271_v34 }
 0x67b   : > { %v2857_v15 = vpop.f32.mrf.mxu1  ;;  %v2289_v57 = vmul.f32 %v6727_v16, %v9082_v3  ;;  %v6729_v48 = vpop.eup %6728  ;;  %vm2294_vm9 = vweird.f32 %v6727_v16 }
 0x67c   : > { %v9069_v49 = vmul.f32 0.17677669, %v2857_v15  ;;  %vm2253_vm15 = vcmp.eq.f32.partialorder %v2252_v26, 8.507059e+37  ;;  %v2275_v9 = vsub.f32 1.0, %v2274_v25  ;;  %v2285_v25 = vor.u32 1.1754944e-38, %v2284_v37  ;;  %v6731_v56 = vpop.eup %6730  ;;  %vm2295_vm11 = vmor %vm2293_vm10, %vm2294_vm9 }
 0x67d   : > { %v2256_v17 = vsel %vm2253_vm15, %v2255_v21, %v2251_v13  ;;  %v2290_v62 = vsub.f32 1.0, %v2289_v57  ;;  %v2319_v50 = vmul.f32 %v6731_v56, %v9102_v2  ;;  %v2300_v57 = vor.u32 1.1754944e-38, %v2299_v61 }
 0x67e   : > { %2918 = vmax.xlane.f32.xlu2 %v9069_v49  ;;  %v2257_v46 = vmul.f32 %v8841_v19, %v2256_v17  ;;  %vm2309_vm13 = vweird.f32 %v6729_v48  ;;  %vm2324_vm2 = vweird.f32 %v6731_v56 }
 0x67f   : > { %v2291_v26 = vmul.f32 %v6727_v16, %v2290_v62  ;;  %v2320_v34 = vsub.f32 1.0, %v2319_v50  ;;  %v2314_v62 = vand.u32 2147483648, %v9093_v18  ;;  %vm2310_vm15 = vmor %vm2308_vm14, %vm2309_vm13 }
 0x680   : > { %vm2325_vm4 = vmor %vm2323_vm3, %vm2324_vm2 }
 0x681   : > { %v2292_v8 = vadd.f32 %v6727_v16, %v2291_v26  ;;  %v2321_v37 = vmul.f32 %v6731_v56, %v2320_v34 }
 0x682   : > { %2449 = vmatmul.f32.gmra.mxu2 %v2227_v24  ;;  %v2276_v24 = vmul.f32 %v6725_v38, %v2275_v9  ;;  %v9115_v9 = vpop.xlane.xlu2 %2106 }
 0x683   : > { %v2860_v63 = vpop.f32.mrf.mxu1  ;;  %6732 = vrcp.f32 %v9115_v9 }
 0x684   : > { %v9080_v11 = vmul.f32 0.17677669, %v2860_v63  ;;  %v2277_v19 = vadd.f32 %v6725_v38, %v2276_v24  ;;  %v2296_v24 = vsel %vm2295_vm11, %v6727_v16, %v2292_v8  ;;  %v2312_v16 = vand.u32 2147483647, %v9093_v18 }
 0x686   : > { %2920 = vmax.xlane.f32.xlu0 %v9080_v11  ;;  %v2281_v42 = vsel %vm2280_vm7, %v6725_v38, %v2277_v19  ;;  %vm2313_vm0 = vcmp.eq.f32.partialorder %v2312_v16, 8.507059e+37  ;;  %vm2338_vm7 = vweird.f32 %v9115_v9 }
 0x689   : > { %v6733_v3 = vpop.eup %6732 }
 0x68a   : > { %2452 = vmatmul.f32.gmra.mxu2 %v2242_v59  ;;  %v2304_v59 = vmul.f32 %v6729_v48, %v9093_v18  ;;  %vm2339_vm6 = vweird.f32 %v6733_v3 }
 0x68b   : > { %v2863_v12 = vpop.f32.mrf.mxu1 }
 0x68c   : > { %v9091_v15 = vmul.f32 0.17677669, %v2863_v12  ;;  %v2286_v12 = vsel %vm2283_vm8, %v2285_v25, %v2281_v42  ;;  %v2305_v17 = vsub.f32 1.0, %v2304_v59  ;;  %v2315_v59 = vor.u32 1.1754944e-38, %v2314_v62  ;;  %vm2340_vm8 = vmor %vm2338_vm7, %vm2339_vm6 }
 0x68d   : > { %v2287_v38 = vmul.f32 %v8904_v44, %v2286_v12  ;;  %v2322_v12 = vadd.f32 %v6731_v56, %v2321_v37 }
 0x68e   : > { %2922 = vmax.xlane.f32.xlu1 %v9091_v15 }
 0x68f   : > { %v2326_v8 = vsel %vm2325_vm4, %v6731_v56, %v2322_v12 }
 0x692   : > { %2455 = vmatmul.f32.gmra.mxu2 %v2257_v46  ;;  %v2306_v46 = vmul.f32 %v6729_v48, %v2305_v17  ;;  %v2327_v17 = vand.u32 2147483647, %v9102_v2 }
 0x693   : > { %v2866_v60 = vpop.f32.mrf.mxu1 }
 0x694   : > { %v9104_v63 = vmul.f32 0.17677669, %v2866_v60  ;;  %v2301_v60 = vsel %vm2298_vm12, %v2300_v57, %v2296_v24  ;;  %v2307_v44 = vadd.f32 %v6729_v48, %v2306_v46  ;;  %vm2328_vm5 = vcmp.eq.f32.partialorder %v2327_v17, 8.507059e+37 }
 0x695   : > { %v2302_v19 = vmul.f32 %v8911_v5, %v2301_v60  ;;  %v2329_v5 = vand.u32 2147483648, %v9102_v2  ;;  %v2344_v24 = vand.u32 2147483648, %v9115_v9  ;;  %v2342_v2 = vand.u32 2147483647, %v9115_v9 }
 0x696   : > { %2924 = vmax.xlane.f32.xlu0 %v9104_v63  ;;  %v2311_v55 = vsel %vm2310_vm15, %v6729_v48, %v2307_v44 }
 0x697   : > { %v2316_v25 = vsel %vm2313_vm0, %v2315_v59, %v2311_v55  ;;  %v2330_v61 = vor.u32 1.1754944e-38, %v2329_v5  ;;  %v2345_v57 = vor.u32 1.1754944e-38, %v2344_v24  ;;  %vm2343_vm9 = vcmp.eq.f32.partialorder %v2342_v2, 8.507059e+37  ;;  %v11174_v24 = vld [vmem:[#allocation28_spill] sm:$0xff] }
 0x698   : > { %v2317_v18 = vmul.f32 %v8885_v31, %v2316_v25 }
 0x699   : > { %v2331_v46 = vsel %vm2328_vm5, %v2330_v61, %v2326_v8 }
 0x69a   : > { %2458 = vmatmul.f32.gmra.mxu2 %v2272_v4  ;;  %v2334_v4 = vmul.f32 %v6733_v3, %v9115_v9  ;;  %v2332_v31 = vmul.f32 %v8920_v0, %v2331_v46 }
 0x69b   : > { %v2869_v13 = vpop.f32.mrf.mxu1 }
 0x69c   : > { %v9113_v21 = vmul.f32 0.17677669, %v2869_v13  ;;  %v2335_v13 = vsub.f32 1.0, %v2334_v4 }
 0x69e   : > { %2926 = vmax.xlane.f32.xlu2 %v9113_v21  ;;  %v2336_v48 = vmul.f32 %v6733_v3, %v2335_v13 }
 0x6a0   : > { %v2337_v50 = vadd.f32 %v6733_v3, %v2336_v48 }
 0x6a2   : > { %2461 = vmatmul.f32.gmra.mxu2 %v2287_v38  ;;  %v2341_v56 = vsel %vm2340_vm8, %v6733_v3, %v2337_v50  ;;  %v11173_v50 = vld [vmem:[#allocation33_spill] sm:$0xff] }
 0x6a3   : > { %v2872_v36 = vpop.f32.mrf.mxu1  ;;  %v2346_v34 = vsel %vm2343_vm9, %v2345_v57, %v2341_v56 }
 0x6a4   : > { %v9124_v39 = vmul.f32 0.17677669, %v2872_v36  ;;  %v2347_v44 = vmul.f32 %v8928_v41, %v2346_v34 }
 0x6a6   : > { %2928 = vmax.xlane.f32.xlu1 %v9124_v39 }
 0x6aa   : > { %2464 = vmatmul.f32.gmra.mxu2 %v2302_v19 }
 0x6ab   : > { %v2875_v26 = vpop.f32.mrf.mxu1 }
 0x6ac   : > { %v9132_v42 = vmul.f32 0.17677669, %v2875_v26 }
 0x6ae   : > { %2930 = vmax.xlane.f32.xlu1 %v9132_v42 }
 0x6b2   : > { %2467 = vmatmul.f32.gmra.mxu2 %v2317_v18 }
 0x6b3   : > { %v2878_v38 = vpop.f32.mrf.mxu1 }
 0x6b4   : > { %v9139_v52 = vmul.f32 0.17677669, %v2878_v38 }
 0x6b6   : > { %2932 = vmax.xlane.f32.xlu1 %v9139_v52 }
 0x6ba   : > { %2470 = vmatmul.f32.gmra.mxu2 %v2332_v31 }
 0x6bb   : > { %v2881_v36 = vpop.f32.mrf.mxu1 }
 0x6bc   : > { %v9146_v60 = vmul.f32 0.17677669, %v2881_v36 }
 0x6be   : > { %2934 = vmax.xlane.f32.xlu2 %v9146_v60 }
 0x6c2   : > { %2473 = vmatmul.f32.gmra.mxu2 %v2347_v44 }
 0x6c3   : > { %v2884_v62 = vpop.f32.mrf.mxu1 }
 0x6c4   : > { %v9150_v19 = vmul.f32 0.17677669, %v2884_v62 }
 0x6c6   : > { %2936 = vmax.xlane.f32.xlu2 %v9150_v19 }
 0x6cb   : > { %v2887_v0 = vpop.f32.mrf.mxu1 }
 0x6cc   : > { %v9153_v9 = vmul.f32 0.17677669, %v2887_v0 }
 0x6ce   : > { %2938 = vmax.xlane.f32.xlu1 %v9153_v9 }
 0x6d3   : > { %v2890_v3 = vpop.f32.mrf.mxu1 }
 0x6d4   : > { %v9156_v16 = vmul.f32 0.17677669, %v2890_v3 }
 0x6d6   : > { %2940 = vmax.xlane.f32.xlu2 %v9156_v16 }
 0x6d9   : > { %v2913_v37 = vpop.xlane.xlu2 %2912 }
 0x6da   : > { %v2944_v4 = vsub.f32 %v9037_v7, %v2913_v37 }
 0x6db   : > { %v2893_v41 = vpop.f32.mrf.mxu1 }
 0x6dc   : > { %v2960_v55 = vmul.f32 1.442695, %v2944_v4  ;;  %v9160_v59 = vmul.f32 0.17677669, %v2893_v41 }
 0x6de   : > { %6734 = vpow2.f32 %v2960_v55  ;;  %2942 = vmax.xlane.f32.xlu0 %v9160_v59 }
 0x6e1   : > { %v2915_v26 = vpop.xlane.xlu0 %2914 }
 0x6e2   : > { %v2945_v25 = vsub.f32 %v9048_v27, %v2915_v26 }
 0x6e4   : > { %v9164_v13 = vpop.eup %6734  ;;  %v2962_v12 = vmul.f32 1.442695, %v2945_v25 }
 0x6e5   : > { %2992 = vadd.xlane.f32.xlu1 %v9164_v13  ;;  %v2438_v5 = vpop.f32.mrf.mxu2 }
 0x6e6   : > { %6736 = vpow2.f32 %v2962_v12  ;;  %6121 = vmatmul.msk.f32.gmra.mxu3 %vm1192_vm1, %v2438_v5 }
 0x6e9   : > { %v2917_v7 = vpop.xlane.xlu1 %2916 }
 0x6ea   : > { %v2946_v18 = vsub.f32 %v9057_v58, %v2917_v7  ;;  %v11172_v58 = vld [vmem:[#allocation31_spill] sm:$0xff] }
 0x6ec   : > { %v9169_v17 = vpop.eup %6736  ;;  %v2964_v48 = vmul.f32 1.442695, %v2946_v18 }
 0x6ed   : > { %2994 = vadd.xlane.f32.xlu0 %v9169_v17  ;;  %v2441_v8 = vpop.f32.mrf.mxu2 }
 0x6ee   : > { %6738 = vpow2.f32 %v2964_v48  ;;  %6122 = vmatmul.msk.f32.gmra.mxu3 %vm1192_vm1, %v2441_v8 }
 0x6f4   : > { %v9173_v27 = vpop.eup %6738 }
 0x6f5   : > { %2996 = vadd.xlane.f32.xlu2 %v9173_v27  ;;  %v2444_v61 = vpop.f32.mrf.mxu2 }
 0x6f6   : > { %6123 = vmatmul.msk.f32.gmra.mxu3 %vm1192_vm1, %v2444_v61 }
 0x6f9   : > { %v2921_v34 = vpop.xlane.xlu0 %2920 }
 0x6fa   : > { %v2948_v3 = vsub.f32 %v9080_v11, %v2921_v34  ;;  %v11175_v34 = vld [vmem:[#allocation40_spill] sm:$0xff] }
 0x6fc   : > { %v2968_v25 = vmul.f32 1.442695, %v2948_v3 }
 0x6fd   : > { %v2447_v38 = vpop.f32.mrf.mxu2 }
 0x6fe   : > { %3512 = vrot.lane.b32.xlu1 %v7944_v47, %s7378_s12  ;;  %6124 = vmatmul.msk.f32.gmra.mxu3 %vm1192_vm1, %v2447_v38  ;;  %v2919_v47 = vpop.xlane.xlu2 %2918 }
 0x6ff   : > { %v2947_v57 = vsub.f32 %v9069_v49, %v2919_v47 }
 0x701   : > { %3514 = vrot.lane.b32.xlu0 %v11172_v58, %s7378_s12  ;;  %v2923_v2 = vpop.xlane.xlu1 %2922  ;;  %v2966_v44 = vmul.f32 1.442695, %v2947_v57 }
 0x702   : > { %v2949_v0 = vsub.f32 %v9091_v15, %v2923_v2 }
 0x703   : > { %6740 = vpow2.f32 %v2966_v44 }
 0x704   : > { %v2970_v41 = vmul.f32 1.442695, %v2949_v0  ;;  %v11176_v0 = vld [vmem:[#allocation47_spill] sm:$0xff] }
 0x705   : > { %v2450_v46 = vpop.f32.mrf.mxu2 }
 0x706   : > { %6125 = vmatmul.msk.f32.gmra.mxu3 %vm1192_vm1, %v2450_v46  ;;  %6742 = vpow2.f32 %v2970_v41  ;;  %v11178_v41 = vld [vmem:[#allocation35_spill] sm:$0xff] }
 0x707   : > { %6744 = vpow2.f32 %v2968_v25 }
 0x709   : > { %3516 = vrot.lane.b32.xlu0 %v11173_v50, %s7378_s12  ;;  %v2925_v37 = vpop.xlane.xlu0 %2924  ;;  %v9194_v26 = vpop.eup %6740 }
 0x70a   : > { %v2950_v49 = vsub.f32 %v9104_v63, %v2925_v37 }
 0x70c   : > { %v2972_v15 = vmul.f32 1.442695, %v2950_v49  ;;  %v9201_v8 = vpop.eup %6742 }
 0x70d   : > { %3510 = vrot.lane.b32.xlu2 %v11174_v24, %s7378_s12  ;;  %v2453_v31 = vpop.f32.mrf.mxu2  ;;  %v9206_v38 = vpop.eup %6744 }
 0x70e   : > { %6126 = vmatmul.msk.f32.gmra.mxu3 %vm1192_vm1, %v2453_v31  ;;  %6746 = vpow2.f32 %v2972_v15 }
 0x711   : > { %v2927_v12 = vpop.xlane.xlu2 %2926 }
 0x712   : > { %v2951_v11 = vsub.f32 %v9113_v21, %v2927_v12 }
 0x714   : > { %v2974_v61 = vmul.f32 1.442695, %v2951_v11  ;;  %v9209_v46 = vpop.eup %6746 }
 0x715   : > { %v2456_v56 = vpop.f32.mrf.mxu2 }
 0x716   : > { %6127 = vmatmul.msk.f32.gmra.mxu3 %vm1192_vm1, %v2456_v56 }
 0x719   : > { %v2929_v36 = vpop.xlane.xlu1 %2928 }
 0x71a   : > { %v2952_v5 = vsub.f32 %v9124_v39, %v2929_v36 }
 0x71c   : > { %v2976_v7 = vmul.f32 1.442695, %v2952_v5  ;;  %v11179_v5 = vld [vmem:[#allocation43_spill] sm:$0xff] }
 0x71d   : > { %v2459_v62 = vpop.f32.mrf.mxu2 }
 0x71e   : > { %6128 = vmatmul.msk.f32.gmra.mxu3 %vm1192_vm1, %v2459_v62  ;;  %6748 = vpow2.f32 %v2976_v7 }
 0x71f   : > { %6750 = vpow2.f32 %v2974_v61 }
 0x721   : > { %v2931_v4 = vpop.xlane.xlu1 %2930 }
 0x722   : > { %v2953_v63 = vsub.f32 %v9132_v42, %v2931_v4  ;;  %v11177_v4 = vld [vmem:[#allocation37_spill] sm:$0xff] }
 0x724   : > { %v2978_v58 = vmul.f32 1.442695, %v2953_v63  ;;  %v9213_v42 = vpop.eup %6748 }
 0x725   : > { %v2462_v55 = vpop.f32.mrf.mxu2  ;;  %v9217_v31 = vpop.eup %6750 }
 0x726   : > { %6129 = vmatmul.msk.f32.gmra.mxu3 %vm1192_vm1, %v2462_v55  ;;  %6752 = vpow2.f32 %v2978_v58 }
 0x728   : > { %2998 = vadd.xlane.f32.xlu1 %v9194_v26 }
 0x729   : > { %v2933_v48 = vpop.xlane.xlu1 %2932 }
 0x72a   : > { %v2954_v39 = vsub.f32 %v9139_v52, %v2933_v48 }
 0x72c   : > { %v2980_v50 = vmul.f32 1.442695, %v2954_v39  ;;  %v9220_v56 = vpop.eup %6752 }
 0x72d   : > { %v2465_v18 = vpop.f32.mrf.mxu2 }
 0x72e   : > { %6130 = vmatmul.msk.f32.gmra.mxu3 %vm1192_vm1, %v2465_v18  ;;  %6754 = vpow2.f32 %v2980_v50 }
 0x730   : > { %3002 = vadd.xlane.f32.xlu1 %v9201_v8 }
 0x731   : > { %v2935_v21 = vpop.xlane.xlu2 %2934 }
 0x732   : > { %v2955_v52 = vsub.f32 %v9146_v60, %v2935_v21 }
 0x733   : > { %3000 = vadd.xlane.f32.xlu0 %v9206_v38 }
 0x734   : > { %v2982_v2 = vmul.f32 1.442695, %v2955_v52  ;;  %v9224_v57 = vpop.eup %6754 }
 0x735   : > { %v2468_v24 = vpop.f32.mrf.mxu2 }
 0x736   : > { %3004 = vadd.xlane.f32.xlu2 %v9209_v46  ;;  %6131 = vmatmul.msk.f32.gmra.mxu3 %vm1192_vm1, %v2468_v24  ;;  %6756 = vpow2.f32 %v2982_v2  ;;  %v11180_v24 = vld [vmem:[#allocation45_spill] sm:$0xff] }
 0x738   : > { %3008 = vadd.xlane.f32.xlu1 %v9213_v42 }
 0x739   : > { %v9233_v62 = vpop.xlane.xlu2 %2936 }
 0x73b   : > { %3006 = vadd.xlane.f32.xlu0 %v9217_v31 }
 0x73c   : > { %v9227_v60 = vpop.eup %6756 }
 0x73d   : > { %v2471_v47 = vpop.f32.mrf.mxu2 }
 0x73e   : > { %3010 = vadd.xlane.f32.xlu2 %v9220_v56  ;;  %6132 = vmatmul.msk.f32.gmra.mxu3 %vm1192_vm1, %v2471_v47 }
 0x740   : > { %3012 = vadd.xlane.f32.xlu1 %v9224_v57 }
 0x741   : > { %v2939_v44 = vpop.xlane.xlu1 %2938 }
 0x745   : > { %v2474_v36 = vpop.f32.mrf.mxu2 }
 0x746   : > { %3014 = vadd.xlane.f32.xlu2 %v9227_v60  ;;  %6133 = vmatmul.msk.f32.gmra.mxu3 %vm1192_vm1, %v2474_v36  ;;  %v9250_v36 = vpop.f32.mrf.mxu0 }
 0x749   : > { %v9243_v49 = vpop.xlane.xlu2 %2940 }
 0x74f   : > { %3522 = vrot.lane.b32.xlu0 %v11175_v34, %s7378_s12 }
 0x751   : > { %v9237_v3 = vpop.xlane.xlu0 %2942 }
 0x757   : > { %3528 = vrot.lane.b32.xlu0 %v11176_v0, %s7378_s12 }
 0x758   : > { %v2993_v37 = vpop.xlane.xlu1 %2992 }
 0x759   : > { %6758 = vrcp.f32 %v2993_v37  ;;  %3520 = vrot.lane.b32.xlu1 %v11177_v4, %s7378_s12  ;;  %v3035_v11 = vand.u32 2147483648, %v2993_v37  ;;  %v3033_v18 = vand.u32 2147483647, %v2993_v37  ;;  %vm3029_vm11 = vweird.f32 %v2993_v37 }
 0x75b   : > { %v3036_v61 = vor.u32 1.1754944e-38, %v3035_v11  ;;  %vm3034_vm13 = vcmp.eq.f32.partialorder %v3033_v18, 8.507059e+37 }
 0x75e   : > { %3518 = vrot.lane.b32.xlu2 %v11178_v41, %s7378_s12 }
 0x75f   : > { %v6759_v55 = vpop.eup %6758 }
 0x760   : > { %v3025_v25 = vmul.f32 %v6759_v55, %v2993_v37  ;;  %v2995_v12 = vpop.xlane.xlu0 %2994  ;;  %vm3030_vm10 = vweird.f32 %v6759_v55 }
 0x761   : > { %6760 = vrcp.f32 %v2995_v12  ;;  %3524 = vrot.lane.b32.xlu1 %v11179_v5, %s7378_s12  ;;  %vm3031_vm12 = vmor %vm3029_vm11, %vm3030_vm10  ;;  %v3050_v47 = vand.u32 2147483648, %v2995_v12  ;;  %v3048_v0 = vand.u32 2147483647, %v2995_v12  ;;  %vm3044_vm15 = vweird.f32 %v2995_v12 }
 0x762   : > { %v3026_v15 = vsub.f32 1.0, %v3025_v25 }
 0x763   : > { %v3051_v41 = vor.u32 1.1754944e-38, %v3050_v47  ;;  %vm3049_vm2 = vcmp.eq.f32.partialorder %v3048_v0, 8.507059e+37  ;;  %v2956_v47 = vsub.f32 %v9150_v19, %v9233_v62  ;;  %v2958_v0 = vsub.f32 %v9156_v16, %v9243_v49  ;;  %v11181_v19 = vld [vmem:[#allocation49_spill] sm:$0xff] }
 0x764   : > { %v3027_v7 = vmul.f32 %v6759_v55, %v3026_v15  ;;  %v2957_v15 = vsub.f32 %v9153_v9, %v2939_v44 }
 0x766   : > { %v3028_v48 = vadd.f32 %v6759_v55, %v3027_v7 }
 0x767   : > { %v6761_v63 = vpop.eup %6760 }
 0x768   : > { %v3032_v39 = vsel %vm3031_vm12, %v6759_v55, %v3028_v48  ;;  %v3040_v58 = vmul.f32 %v6761_v63, %v2995_v12  ;;  %v2997_v21 = vpop.xlane.xlu2 %2996  ;;  %vm3045_vm14 = vweird.f32 %v6761_v63 }
 0x769   : > { %v3037_v50 = vsel %vm3034_vm13, %v3036_v61, %v3032_v39  ;;  %6762 = vrcp.f32 %v2997_v21  ;;  %3526 = vrot.lane.b32.xlu1 %v11180_v24, %s7378_s12  ;;  %vm3046_vm0 = vmor %vm3044_vm15, %vm3045_vm14  ;;  %v3065_v12 = vand.u32 2147483648, %v2997_v21  ;;  %v3063_v48 = vand.u32 2147483647, %v2997_v21  ;;  %v9257_v61 = vpop.f32.mrf.mxu0 }
 0x76a   : > { %v3041_v52 = vsub.f32 1.0, %v3040_v58  ;;  %v3038_v2 = vmul.f32 %v9164_v13, %v3037_v50  ;;  %vm3059_vm4 = vweird.f32 %v2997_v21 }
 0x76b   : > { %v3066_v58 = vor.u32 1.1754944e-38, %v3065_v12  ;;  %vm3064_vm6 = vcmp.eq.f32.partialorder %v3063_v48, 8.507059e+37 }
 0x76c   : > { %v3042_v34 = vmul.f32 %v6761_v63, %v3041_v52  ;;  %3328 = vmatmul.f32.vlgmr.msra.gmra.mxu2 %v3038_v2 }
 0x76e   : > { %v3043_v37 = vadd.f32 %v6761_v63, %v3042_v34  ;;  %v2984_v34 = vmul.f32 1.442695, %v2956_v47 }
 0x76f   : > { %v6763_v4 = vpop.eup %6762 }
 0x770   : > { %v3055_v55 = vmul.f32 %v6763_v4, %v2997_v21  ;;  %v3511_v25 = vpop.permute.xlu2 %3510  ;;  %v3047_v5 = vsel %vm3046_vm0, %v6761_v63, %v3043_v37  ;;  %vm3060_vm3 = vweird.f32 %v6763_v4  ;;  %v2986_v63 = vmul.f32 1.442695, %v2957_v15  ;;  %v3513_v50 = vpop.permute.xlu1 %3512 }
 0x771   : > { %3532 = vrot.lane.b32.xlu1 %v8099_v1, %s7378_s12  ;;  %6216 = vmatmul.msk.f32.gmra.mxu0 %vm1192_vm1, %v3511_v25  ;;  %v3052_v13 = vsel %vm3049_vm2, %v3051_v41, %v3047_v5  ;;  %vm3061_vm5 = vmor %vm3059_vm4, %vm3060_vm3  ;;  %v2959_v1 = vsub.f32 %v9160_v59, %v9237_v3  ;;  %v9265_v21 = vpop.f32.mrf.mxu0 }
 0x772   : > { %v3056_v11 = vsub.f32 1.0, %v3055_v55  ;;  %v3053_v7 = vmul.f32 %v9169_v17, %v3052_v13  ;;  %6764 = vpow2.f32 %v2986_v63 }
 0x773   : > { %v2990_v24 = vmul.f32 1.442695, %v2959_v1  ;;  %v3515_v52 = vpop.permute.xlu0 %3514 }
 0x774   : > { %v3057_v18 = vmul.f32 %v6763_v4, %v3056_v11  ;;  %3331 = vmatmul.f32.gmra.mxu2 %v3053_v7 }
 0x775   : > { %6766 = vpow2.f32 %v2990_v24 }
 0x776   : > { %v3058_v39 = vadd.f32 %v6763_v4, %v3057_v18  ;;  %6768 = vpow2.f32 %v2984_v34 }
 0x778   : > { %v3062_v9 = vsel %vm3061_vm5, %v6763_v4, %v3058_v39  ;;  %v9263_v2 = vpop.eup %6764  ;;  %v2988_v4 = vmul.f32 1.442695, %v2958_v0 }
 0x779   : > { %6217 = vmatmul.msk.f32.gmra.mxu0 %vm1192_vm1, %v3513_v50  ;;  %v3067_v17 = vsel %vm3064_vm6, %v3066_v58, %v3062_v9 }
 0x77a   : > { %v3068_v44 = vmul.f32 %v9173_v27, %v3067_v17  ;;  %v9273_v27 = vpop.f32.mrf.mxu0  ;;  %6770 = vpow2.f32 %v2988_v4 }
 0x77b   : > { %v9269_v59 = vpop.eup %6766  ;;  %v3517_v3 = vpop.permute.xlu0 %3516 }
 0x77c   : > { %3334 = vmatmul.f32.gmra.mxu2 %v3068_v44  ;;  %v9283_v41 = vpop.eup %6768 }
 0x780   : > { %v9290_v16 = vpop.eup %6770 }
 0x781   : > { %3018 = vadd.xlane.f32.xlu0 %v9263_v2  ;;  %6218 = vmatmul.msk.f32.gmra.mxu0 %vm1192_vm1, %v3515_v52 }
 0x782   : > { %v9279_v37 = vpop.f32.mrf.mxu0 }
 0x787   : > { %3022 = vadd.xlane.f32.xlu2 %v9269_v59 }
 0x789   : > { %6219 = vmatmul.msk.f32.gmra.mxu0 %vm1192_vm1, %v3517_v3 }
 0x78a   : > { %v9286_v25 = vpop.f32.mrf.mxu0 }
 0x792   : > { %v9296_v7 = vpop.f32.mrf.mxu0 }
 0x795   : > { %3534 = vrot.lane.b32.xlu0 %v8161_v20, %s7378_s12 }
 0x79a   : > { %v9309_v0 = vpop.f32.mrf.mxu0 }
 0x79b   : > { %3016 = vadd.xlane.f32.xlu1 %v9283_v41  ;;  %v2999_v55 = vpop.xlane.xlu1 %2998 }
 0x79c   : > { %6772 = vrcp.f32 %v2999_v55  ;;  %v3080_v11 = vand.u32 2147483648, %v2999_v55  ;;  %v3078_v12 = vand.u32 2147483647, %v2999_v55  ;;  %vm3074_vm8 = vweird.f32 %v2999_v55 }
 0x79e   : > { %v3081_v39 = vor.u32 1.1754944e-38, %v3080_v11  ;;  %vm3079_vm10 = vcmp.eq.f32.partialorder %v3078_v12, 8.507059e+37 }
 0x79f   : > { %3530 = vrot.lane.b32.xlu2 %v11181_v19, %s7378_s12 }
 0x7a2   : > { %v6773_v62 = vpop.eup %6772 }
 0x7a3   : > { %v3070_v49 = vmul.f32 %v6773_v62, %v2999_v55  ;;  %3020 = vadd.xlane.f32.xlu1 %v9290_v16  ;;  %v9293_v20 = vpop.xlane.xlu1 %3002  ;;  %vm3075_vm7 = vweird.f32 %v6773_v62 }
 0x7a4   : > { %6774 = vrcp.f32 %v9293_v20  ;;  %vm3076_vm9 = vmor %vm3074_vm8, %vm3075_vm7  ;;  %vm3104_vm0 = vweird.f32 %v9293_v20 }
 0x7a5   : > { %v3071_v5 = vsub.f32 1.0, %v3070_v49 }
 0x7a6   : > { %v3001_v13 = vpop.xlane.xlu0 %3000 }
 0x7a7   : > { %v3072_v15 = vmul.f32 %v6773_v62, %v3071_v5  ;;  %6776 = vrcp.f32 %v3001_v13  ;;  %v3095_v55 = vand.u32 2147483648, %v3001_v13  ;;  %v3093_v19 = vand.u32 2147483647, %v3001_v13 }
 0x7a8   : > { %vm3089_vm12 = vweird.f32 %v3001_v13 }
 0x7a9   : > { %v9298_v18 = vpop.xlane.xlu2 %3004  ;;  %v3073_v48 = vadd.f32 %v6773_v62, %v3072_v15  ;;  %v3096_v5 = vor.u32 1.1754944e-38, %v3095_v55  ;;  %vm3094_vm14 = vcmp.eq.f32.partialorder %v3093_v19, 8.507059e+37 }
 0x7aa   : > { %v6775_v63 = vpop.eup %6774  ;;  %6778 = vrcp.f32 %v9298_v18  ;;  %vm3119_vm5 = vweird.f32 %v9298_v18 }
 0x7ab   : > { %v3100_v58 = vmul.f32 %v6775_v63, %v9293_v20  ;;  %v3077_v1 = vsel %vm3076_vm9, %v6773_v62, %v3073_v48  ;;  %v9314_v11 = vpop.xlane.xlu1 %3008  ;;  %vm3105_vm15 = vweird.f32 %v6775_v63 }
 0x7ac   : > { %v3082_v9 = vsel %vm3079_vm10, %v3081_v39, %v3077_v1  ;;  %vm3106_vm2 = vmor %vm3104_vm0, %vm3105_vm15 }
 0x7ad   : > { %v6777_v50 = vpop.eup %6776  ;;  %v3083_v44 = vmul.f32 %v9194_v26, %v3082_v9  ;;  %v3101_v24 = vsub.f32 1.0, %v3100_v58  ;;  %v3110_v58 = vand.u32 2147483648, %v9293_v20 }
 0x7ae   : > { %v3085_v17 = vmul.f32 %v6777_v50, %v3001_v13  ;;  %v9303_v52 = vpop.xlane.xlu0 %3006  ;;  %vm3090_vm11 = vweird.f32 %v6777_v50 }
 0x7af   : > { %3337 = vmatmul.f32.gmra.mxu2 %v3083_v44  ;;  %6780 = vrcp.f32 %v9303_v52  ;;  %v3102_v62 = vmul.f32 %v6775_v63, %v3101_v24  ;;  %vm3091_vm13 = vmor %vm3089_vm12, %vm3090_vm11  ;;  %v3651_v44 = vpop.f32.mrf.mxu0  ;;  %vm3134_vm9 = vweird.f32 %v9303_v52 }
 0x7b0   : > { %v9305_v3 = vpop.eup %6778  ;;  %v3086_v47 = vsub.f32 1.0, %v3085_v17  ;;  %v3108_v17 = vand.u32 2147483647, %v9293_v20  ;;  %6782 = vrcp.f32 %v9314_v11  ;;  %v9330_v55 = vmul.f32 0.17677669, %v3651_v44 }
 0x7b1   : > { %v9307_v34 = vpop.xlane.xlu2 %3010  ;;  %v3115_v26 = vmul.f32 %v9305_v3, %v9298_v18  ;;  %v3103_v48 = vadd.f32 %v6775_v63, %v3102_v62  ;;  %vm3120_vm4 = vweird.f32 %v9305_v3  ;;  %v3140_v44 = vand.u32 2147483648, %v9303_v52 }
 0x7b2   : > { %v3087_v4 = vmul.f32 %v6777_v50, %v3086_v47  ;;  %vm3109_vm3 = vcmp.eq.f32.partialorder %v3108_v17, 8.507059e+37  ;;  %6784 = vrcp.f32 %v9307_v34  ;;  %vm3121_vm6 = vmor %vm3119_vm5, %vm3120_vm4 }
 0x7b3   : > { %v3116_v15 = vsub.f32 1.0, %v3115_v26  ;;  %v3107_v47 = vsel %vm3106_vm2, %v6775_v63, %v3103_v48  ;;  %v3125_v26 = vand.u32 2147483648, %v9298_v18  ;;  %vm3164_vm2 = vweird.f32 %v9307_v34 }
 0x7b4   : > { %v3088_v49 = vadd.f32 %v6777_v50, %v3087_v4  ;;  %v3111_v4 = vor.u32 1.1754944e-38, %v3110_v58 }
 0x7b5   : > { %v9316_v39 = vpop.eup %6780  ;;  %v3126_v58 = vor.u32 1.1754944e-38, %v3125_v26  ;;  %v1185_v26 = vld [vmem:[#allocation10 + $0x48] sm:$0xff] }
 0x7b6   : > { %v3092_v12 = vsel %vm3091_vm13, %v6777_v50, %v3088_v49  ;;  %v3117_v50 = vmul.f32 %v9305_v3, %v3116_v15  ;;  %v3130_v24 = vmul.f32 %v9316_v39, %v9303_v52  ;;  %v9335_v62 = vpop.eup %6782  ;;  %v3123_v49 = vand.u32 2147483647, %v9298_v18 }
 0x7b7   : > { %v3097_v1 = vsel %vm3094_vm14, %v3096_v5, %v3092_v12  ;;  %v3145_v5 = vmul.f32 %v9335_v62, %v9314_v11  ;;  %v9346_v12 = vpop.xlane.xlu1 %3012  ;;  %vm3135_vm8 = vweird.f32 %v9316_v39  ;;  %vm3150_vm12 = vweird.f32 %v9335_v62 }
 0x7b8   : > { %v3098_v13 = vmul.f32 %v9206_v38, %v3097_v1  ;;  %v3112_v38 = vsel %vm3109_vm3, %v3111_v4, %v3107_v47  ;;  %v3131_v20 = vsub.f32 1.0, %v3130_v24  ;;  %v3118_v19 = vadd.f32 %v9305_v3, %v3117_v50  ;;  %v1187_v1 = vld [vmem:[#allocation10 + $0x58] sm:$0xff]  ;;  %v6785_v17 = vpop.eup %6784  ;;  %vm3136_vm10 = vmor %vm3134_vm9, %vm3135_vm8 }
 0x7b9   : > { %v9320_v9 = vpop.xlane.xlu2 %3014  ;;  %vm3124_vm7 = vcmp.eq.f32.partialorder %v3123_v49, 8.507059e+37  ;;  %v3146_v18 = vsub.f32 1.0, %v3145_v5  ;;  %3437 = vmatpush.msra.mxu3 %v1187_v1  ;;  %v3138_v24 = vand.u32 2147483647, %v9303_v52  ;;  %6786 = vrcp.f32 %v9346_v12 }
 0x7ba   : > { %3340 = vmatmul.f32.gmra.mxu2 %v3098_v13  ;;  %v3132_v15 = vmul.f32 %v9316_v39, %v3131_v20  ;;  %v3122_v48 = vsel %vm3121_vm6, %v9305_v3, %v3118_v19  ;;  %v3160_v47 = vmul.f32 %v6785_v17, %v9307_v34  ;;  %v1186_v20 = vld [vmem:[#allocation10 + $0x50] sm:$0xff]  ;;  %v3141_v19 = vor.u32 1.1754944e-38, %v3140_v44 }
 0x7bb   : > { %v3147_v3 = vmul.f32 %v9335_v62, %v3146_v18  ;;  %3438 = vmatpush.msra.mxu3 %v1186_v20  ;;  %vm3139_vm11 = vcmp.eq.f32.partialorder %v3138_v24, 8.507059e+37  ;;  %v3155_v5 = vand.u32 2147483648, %v9314_v11  ;;  %vm3149_vm13 = vweird.f32 %v9314_v11 }
 0x7bc   : > { %3536 = vrot.lane.b32.xlu1 %v8191_v10, %s7378_s12  ;;  %v3113_v10 = vmul.f32 %v9201_v8, %v3112_v38  ;;  %v3127_v8 = vsel %vm3124_vm7, %v3126_v58, %v3122_v48  ;;  %v3133_v13 = vadd.f32 %v9316_v39, %v3132_v15  ;;  %v3161_v52 = vsub.f32 1.0, %v3160_v47  ;;  %vm3151_vm14 = vmor %vm3149_vm13, %vm3150_vm12 }
 0x7bd   : > { %v3128_v50 = vmul.f32 %v9209_v46, %v3127_v8  ;;  %3439 = vmatpush.msra.mxu3 %v1185_v26  ;;  %v3153_v15 = vand.u32 2147483647, %v9314_v11  ;;  %6788 = vrcp.f32 %v9320_v9  ;;  %v3156_v18 = vor.u32 1.1754944e-38, %v3155_v5 }
 0x7be   : > { %v3137_v38 = vsel %vm3136_vm10, %v9316_v39, %v3133_v13  ;;  %v3162_v48 = vmul.f32 %v6785_v17, %v3161_v52  ;;  %vm3165_vm0 = vweird.f32 %v6785_v17  ;;  %v3170_v11 = vand.u32 2147483648, %v9307_v34 }
 0x7bf   : > { %3715 = vmax.xlane.f32.xlu0 %v9330_v55  ;;  %v3142_v46 = vsel %vm3139_vm11, %v3141_v19, %v3137_v38  ;;  %v6787_v49 = vpop.eup %6786  ;;  %vm3154_vm15 = vcmp.eq.f32.partialorder %v3153_v15, 8.507059e+37  ;;  %v3168_v47 = vand.u32 2147483647, %v9307_v34  ;;  %vm3166_vm3 = vmor %vm3164_vm2, %vm3165_vm0  ;;  %v3185_v52 = vand.u32 2147483648, %v9346_v12 }
 0x7c0   : > { %v3143_v39 = vmul.f32 %v9217_v31, %v3142_v46  ;;  %v3175_v58 = vmul.f32 %v6787_v49, %v9346_v12  ;;  %v3171_v20 = vor.u32 1.1754944e-38, %v3170_v11  ;;  %vm3180_vm5 = vweird.f32 %v6787_v49 }
 0x7c1   : > { %v3519_v63 = vpop.permute.xlu2 %3518  ;;  %v3523_v8 = vpop.permute.xlu0 %3522  ;;  %vm3169_vm4 = vcmp.eq.f32.partialorder %v3168_v47, 8.507059e+37  ;;  %vm3179_vm6 = vweird.f32 %v9346_v12  ;;  %v3183_v34 = vand.u32 2147483647, %v9346_v12  ;;  %v3186_v15 = vor.u32 1.1754944e-38, %v3185_v52 }
 0x7c2   : > { %6220 = vmatmul.msk.f32.gmra.mxu0 %vm1192_vm1, %v3519_v63  ;;  %3343 = vmatmul.f32.gmra.mxu2 %v3113_v10  ;;  %v3148_v63 = vadd.f32 %v9335_v62, %v3147_v3  ;;  %v1184_v10 = vld [vmem:[#allocation10 + $0x40] sm:$0xff]  ;;  %v3176_v44 = vsub.f32 1.0, %v3175_v58  ;;  %vm3181_vm7 = vmor %vm3179_vm6, %vm3180_vm5  ;;  %vm3194_vm10 = vweird.f32 %v9320_v9 }
 0x7c3   : > { %3440 = vmatpush.msra.mxu3 %v1184_v10  ;;  %v6789_v31 = vpop.eup %6788  ;;  %vm3184_vm8 = vcmp.eq.f32.partialorder %v3183_v34, 8.507059e+37 }
 0x7c4   : > { %v3152_v1 = vsel %vm3151_vm14, %v9335_v62, %v3148_v63  ;;  %v3177_v62 = vmul.f32 %v6787_v49, %v3176_v44  ;;  %v3654_v63 = vpop.f32.mrf.mxu0  ;;  %vm3195_vm9 = vweird.f32 %v6789_v31 }
 0x7c5   : > { %v3157_v13 = vsel %vm3154_vm15, %v3156_v18, %v3152_v1  ;;  %vm3196_vm11 = vmor %vm3194_vm10, %vm3195_vm9 }
 0x7c6   : > { %v3158_v3 = vmul.f32 %v9213_v42, %v3157_v13  ;;  %v3178_v46 = vadd.f32 %v6787_v49, %v3177_v62 }
 0x7c8   : > { %v3182_v5 = vsel %vm3181_vm7, %v6787_v49, %v3178_v46 }
 0x7c9   : > { %v3529_v49 = vpop.permute.xlu0 %3528 }
 0x7ca   : > { %3346 = vmatmul.f32.gmra.mxu2 %v3128_v50  ;;  %v3163_v50 = vadd.f32 %v6785_v17, %v3162_v48  ;;  %v3187_v48 = vsel %vm3184_vm8, %v3186_v15, %v3182_v5 }
 0x7cb   : > { %v3521_v4 = vpop.permute.xlu1 %3520  ;;  %v3188_v12 = vmul.f32 %v9224_v57, %v3187_v48 }
 0x7cc   : > { %6221 = vmatmul.msk.f32.gmra.mxu0 %vm1192_vm1, %v3521_v4  ;;  %v3190_v4 = vmul.f32 %v6789_v31, %v9320_v9  ;;  %v3167_v38 = vsel %vm3166_vm3, %v6785_v17, %v3163_v50 }
 0x7cd   : > { %v3172_v19 = vsel %vm3169_vm4, %v3171_v20, %v3167_v38 }
 0x7ce   : > { %v3191_v26 = vsub.f32 1.0, %v3190_v4  ;;  %v3173_v42 = vmul.f32 %v9220_v56, %v3172_v19  ;;  %v3200_v56 = vand.u32 2147483648, %v9320_v9 }
 0x7d0   : > { %v3192_v10 = vmul.f32 %v6789_v31, %v3191_v26  ;;  %v3201_v18 = vor.u32 1.1754944e-38, %v3200_v56 }
 0x7d2   : > { %3349 = vmatmul.f32.gmra.mxu2 %v3143_v39  ;;  %v9380_v39 = vmul.f32 0.17677669, %v3654_v63  ;;  %v3193_v58 = vadd.f32 %v6789_v31, %v3192_v10 }
 0x7d3   : > { %v3525_v24 = vpop.permute.xlu1 %3524 }
 0x7d4   : > { %6222 = vmatmul.msk.f32.gmra.mxu0 %vm1192_vm1, %v3523_v8  ;;  %v3198_v8 = vand.u32 2147483647, %v9320_v9  ;;  %v3197_v1 = vsel %vm3196_vm11, %v6789_v31, %v3193_v58 }
 0x7d6   : > { %vm3199_vm12 = vcmp.eq.f32.partialorder %v3198_v8, 8.507059e+37 }
 0x7d7   : > { %v3202_v44 = vsel %vm3199_vm12, %v3201_v18, %v3197_v1 }
 0x7d8   : > { %v3203_v57 = vmul.f32 %v9227_v60, %v3202_v44 }
 0x7da   : > { %3352 = vmatmul.f32.gmra.mxu2 %v3158_v3 }
 0x7db   : > { %v3527_v17 = vpop.permute.xlu1 %3526 }
 0x7dc   : > { %6223 = vmatmul.msk.f32.gmra.mxu0 %vm1192_vm1, %v3525_v24 }
 0x7e2   : > { %3355 = vmatmul.f32.gmra.mxu2 %v3173_v42 }
 0x7e3   : > { %v9405_v38 = vpop.permute.xlu1 %3532 }
 0x7e4   : > { %6224 = vmatmul.msk.f32.gmra.mxu0 %vm1192_vm1, %v3527_v17 }
 0x7e6   : > { %3717 = vmax.xlane.f32.xlu1 %v9380_v39 }
 0x7ea   : > { %3358 = vmatmul.f32.gmra.mxu2 %v3188_v12 }
 0x7ec   : > { %6225 = vmatmul.msk.f32.gmra.mxu0 %vm1192_vm1, %v3529_v49 }
 0x7ee   : > { %v3657_v13 = vpop.f32.mrf.mxu0 }
 0x7ef   : > { %v9389_v50 = vmul.f32 0.17677669, %v3657_v13  ;;  %v3329_v11 = vpop.f32.mrf.mxu2 }
 0x7f0   : > { %6182 = vmatmul.msk.f32.vlgmr.msra.gmra.mxu3 %vm1192_vm1, %v3329_v11 }
 0x7f1   : > { %3719 = vmax.xlane.f32.xlu2 %v9389_v50 }
 0x7f2   : > { %3361 = vmatmul.f32.gmra.mxu2 %v3203_v57 }
 0x7f4   : > { %v3019_v20 = vpop.xlane.xlu0 %3018 }
 0x7f5   : > { %6790 = vrcp.f32 %v3019_v20  ;;  %v3230_v13 = vand.u32 2147483648, %v3019_v20  ;;  %vm3224_vm3 = vweird.f32 %v3019_v20 }
 0x7f6   : > { %v3660_v9 = vpop.f32.mrf.mxu0 }
 0x7f7   : > { %v9394_v24 = vmul.f32 0.17677669, %v3660_v9  ;;  %v3332_v31 = vpop.f32.mrf.mxu2 }
 0x7f8   : > { %6183 = vmatmul.msk.f32.gmra.mxu3 %vm1192_vm1, %v3332_v31 }
 0x7f9   : > { %3721 = vmax.xlane.f32.xlu0 %v9394_v24 }
 0x7fa   : > { %v9398_v3 = vpop.xlane.xlu2 %3022 }
 0x7fb   : > { %v6791_v52 = vpop.eup %6790  ;;  %vm3254_vm11 = vweird.f32 %v9398_v3 }
 0x7fc   : > { %v3220_v63 = vmul.f32 %v6791_v52, %v3019_v20  ;;  %vm3225_vm0 = vweird.f32 %v6791_v52 }
 0x7fd   : > { %vm3226_vm4 = vmor %vm3224_vm3, %vm3225_vm0 }
 0x7fe   : > { %v3663_v47 = vpop.f32.mrf.mxu0  ;;  %v3221_v34 = vsub.f32 1.0, %v3220_v63 }
 0x7ff   : > { %v9400_v62 = vmul.f32 0.17677669, %v3663_v47  ;;  %v3335_v4 = vpop.f32.mrf.mxu2  ;;  %v3231_v47 = vor.u32 1.1754944e-38, %v3230_v13 }
 0x800   : > { %6184 = vmatmul.msk.f32.gmra.mxu3 %vm1192_vm1, %v3335_v4 }
 0x801   : > { %3723 = vmax.xlane.f32.xlu1 %v9400_v62 }
 0x802   : > { %v3531_v60 = vpop.permute.xlu2 %3530 }
 0x803   : > { %6226 = vmatmul.msk.f32.gmra.mxu0 %vm1192_vm1, %v3531_v60 }
 0x806   : > { %v3666_v19 = vpop.f32.mrf.mxu0 }
 0x807   : > { %v9407_v26 = vmul.f32 0.17677669, %v3666_v19 }
 0x809   : > { %6534 = vrot.lane.b32.xlu2 %v11142_v54, %s7378_s12  ;;  %3725 = vmax.xlane.f32.xlu0 %v9407_v26  ;;  %v3222_v54 = vmul.f32 %v6791_v52, %v3221_v34 }
 0x80b   : > { %v3223_v1 = vadd.f32 %v6791_v52, %v3222_v54 }
 0x80d   : > { %v3227_v31 = vsel %vm3226_vm4, %v6791_v52, %v3223_v1 }
 0x80e   : > { %v3017_v46 = vpop.xlane.xlu1 %3016 }
 0x80f   : > { %6792 = vrcp.f32 %v3017_v46  ;;  %v3215_v15 = vand.u32 2147483648, %v3017_v46  ;;  %vm3209_vm14 = vweird.f32 %v3017_v46 }
 0x811   : > { %6544 = vrot.lane.b32.xlu2 %v8552_v40, %s7378_s12  ;;  %v3213_v40 = vand.u32 2147483647, %v3017_v46  ;;  %v3216_v12 = vor.u32 1.1754944e-38, %v3215_v15  ;;  %v3260_v15 = vand.u32 2147483648, %v9398_v3 }
 0x813   : > { %vm3214_vm2 = vcmp.eq.f32.partialorder %v3213_v40, 8.507059e+37  ;;  %v3261_v40 = vor.u32 1.1754944e-38, %v3260_v15 }
 0x815   : > { %v6793_v42 = vpop.eup %6792 }
 0x816   : > { %v3205_v10 = vmul.f32 %v6793_v42, %v3017_v46  ;;  %v3021_v17 = vpop.xlane.xlu1 %3020  ;;  %vm3210_vm13 = vweird.f32 %v6793_v42 }
 0x817   : > { %6794 = vrcp.f32 %v3021_v17  ;;  %vm3211_vm15 = vmor %vm3209_vm14, %vm3210_vm13  ;;  %v3245_v46 = vand.u32 2147483648, %v3021_v17  ;;  %vm3239_vm7 = vweird.f32 %v3021_v17 }
 0x818   : > { %v3206_v5 = vsub.f32 1.0, %v3205_v10  ;;  %6796 = vrcp.f32 %v9398_v3 }
 0x819   : > { %6549 = vrot.lane.b32.xlu2 %v8565_v51, %s7378_s12  ;;  %v3246_v10 = vor.u32 1.1754944e-38, %v3245_v46 }
 0x81a   : > { %v3207_v48 = vmul.f32 %v6793_v42, %v3206_v5  ;;  %6529 = vrot.lane.b32.xlu1 %v11150_v43, %s7378_s12  ;;  %v3228_v43 = vand.u32 2147483647, %v3019_v20  ;;  %v3535_v20 = vpop.permute.xlu0 %3534 }
 0x81c   : > { %v3208_v58 = vadd.f32 %v6793_v42, %v3207_v48  ;;  %vm3229_vm5 = vcmp.eq.f32.partialorder %v3228_v43, 8.507059e+37  ;;  %v3258_v48 = vand.u32 2147483647, %v9398_v3 }
 0x81d   : > { %v6795_v56 = vpop.eup %6794  ;;  %v3232_v4 = vsel %vm3229_vm5, %v3231_v47, %v3227_v31 }
 0x81e   : > { %v3235_v8 = vmul.f32 %v6795_v56, %v3021_v17  ;;  %v3212_v49 = vsel %vm3211_vm15, %v6793_v42, %v3208_v58  ;;  %v6797_v18 = vpop.eup %6796  ;;  %vm3240_vm6 = vweird.f32 %v6795_v56  ;;  %v3233_v63 = vmul.f32 %v9263_v2, %v3232_v4 }
 0x81f   : > { %v3217_v51 = vsel %vm3214_vm2, %v3216_v12, %v3212_v49  ;;  %v3250_v57 = vmul.f32 %v6797_v18, %v9398_v3  ;;  %v3243_v42 = vand.u32 2147483647, %v3021_v17  ;;  %vm3241_vm8 = vmor %vm3239_vm7, %vm3240_vm6  ;;  %vm3255_vm10 = vweird.f32 %v6797_v18 }
 0x820   : > { %v3236_v44 = vsub.f32 1.0, %v3235_v8  ;;  %v3218_v11 = vmul.f32 %v9283_v41, %v3217_v51  ;;  %vm3256_vm12 = vmor %vm3254_vm11, %vm3255_vm10  ;;  %vm3259_vm13 = vcmp.eq.f32.partialorder %v3258_v48, 8.507059e+37 }
 0x821   : > { %v3251_v60 = vsub.f32 1.0, %v3250_v57  ;;  %vm3244_vm9 = vcmp.eq.f32.partialorder %v3243_v42, 8.507059e+37  ;;  %v9446_v57 = vpop.f32.mrf.mxu3 }
 0x822   : > { %v3237_v9 = vmul.f32 %v6795_v56, %v3236_v44  ;;  %3364 = vmatmul.f32.gmra.mxu2 %v3218_v11 }
 0x823   : > { %v3252_v41 = vmul.f32 %v6797_v18, %v3251_v60 }
 0x824   : > { %v3238_v19 = vadd.f32 %v6795_v56, %v3237_v9 }
 0x825   : > { %v3253_v52 = vadd.f32 %v6797_v18, %v3252_v41 }
 0x826   : > { %v3242_v34 = vsel %vm3241_vm8, %v6795_v56, %v3238_v19 }
 0x827   : > { %v3247_v5 = vsel %vm3244_vm9, %v3246_v10, %v3242_v34  ;;  %v3257_v17 = vsel %vm3256_vm12, %v6797_v18, %v3253_v52 }
 0x828   : > { %v3248_v54 = vmul.f32 %v9290_v16, %v3247_v5  ;;  %v3262_v12 = vsel %vm3259_vm13, %v3261_v40, %v3257_v17 }
 0x829   : > { %v3263_v8 = vmul.f32 %v9269_v59, %v3262_v12  ;;  %v9457_v60 = vpop.f32.mrf.mxu3 }
 0x82a   : > { %3367 = vmatmul.f32.gmra.mxu2 %v3233_v63 }
 0x82e   : > { %v3537_v13 = vpop.permute.xlu1 %3536 }
 0x831   : > { %v9462_v63 = vpop.f32.mrf.mxu3 }
 0x832   : > { %v3716_v2 = vpop.xlane.xlu0 %3715  ;;  %3370 = vmatmul.f32.gmra.mxu2 %v3248_v54  ;;  %v3338_v58 = vpop.f32.mrf.mxu2 }
 0x833   : > { %6185 = vmatmul.msk.f32.gmra.mxu3 %vm1192_vm1, %v3338_v58  ;;  %v3747_v56 = vsub.f32 %v9330_v55, %v3716_v2 }
 0x835   : > { %v3763_v49 = vmul.f32 1.442695, %v3747_v56 }
 0x837   : > { %6798 = vpow2.f32 %v3763_v49 }
 0x83a   : > { %3373 = vmatmul.f32.gmra.mxu2 %v3263_v8 }
 0x83d   : > { %v3341_v16 = vpop.f32.mrf.mxu2  ;;  %v9435_v18 = vpop.eup %6798 }
 0x83e   : > { %6186 = vmatmul.msk.f32.gmra.mxu3 %vm1192_vm1, %v3341_v16 }
 0x83f   : > { %v3669_v3 = vpop.f32.mrf.mxu0 }
 0x840   : > { %v9430_v1 = vmul.f32 0.17677669, %v3669_v3 }
 0x842   : > { %3727 = vmax.xlane.f32.xlu0 %v9430_v1  ;;  %6227 = vmatmul.msk.f32.vlgmr.msrb.gmra.mxu2 %vm1192_vm1, %v9405_v38 }
 0x844   : > { %3795 = vadd.xlane.f32.xlu1 %v9435_v18 }
 0x845   : > { %v3344_v55 = vpop.f32.mrf.mxu2 }
 0x846   : > { %6187 = vmatmul.msk.f32.gmra.mxu3 %vm1192_vm1, %v3344_v55 }
 0x849   : > { %v3672_v11 = vpop.f32.mrf.mxu0 }
 0x84a   : > { %6228 = vmatmul.msk.f32.gmra.mxu2 %vm1192_vm1, %v3535_v20  ;;  %v9468_v20 = vpop.f32.mrf.mxu3  ;;  %v9472_v10 = vmul.f32 0.17677669, %v3672_v11 }
 0x84d   : > { %v3347_v59 = vpop.f32.mrf.mxu2 }
 0x84e   : > { %6188 = vmatmul.msk.f32.gmra.mxu3 %vm1192_vm1, %v3347_v59 }
 0x852   : > { %6229 = vmatmul.msk.f32.gmra.mxu2 %vm1192_vm1, %v3537_v13 }
 0x855   : > { %v3350_v51 = vpop.f32.mrf.mxu2 }
 0x856   : > { %6539 = vrot.lane.b32.xlu0 %v8500_v33, %s7378_s12  ;;  %6189 = vmatmul.msk.f32.gmra.mxu3 %vm1192_vm1, %v3350_v51  ;;  %v3675_v33 = vpop.f32.mrf.mxu0  ;;  %v9497_v51 = vpop.f32.mrf.mxu3 }
 0x857   : > { %v9480_v58 = vmul.f32 0.17677669, %v3675_v33 }
 0x859   : > { %v3718_v38 = vpop.xlane.xlu1 %3717 }
 0x85a   : > { %v3748_v44 = vsub.f32 %v9380_v39, %v3718_v38 }
 0x85c   : > { %v3765_v43 = vmul.f32 1.442695, %v3748_v44 }
 0x85d   : > { %6554 = vrot.lane.b32.xlu1 %v8585_v22, %s7378_s12  ;;  %v3353_v9 = vpop.f32.mrf.mxu2 }
 0x85e   : > { %6800 = vpow2.f32 %v3765_v43  ;;  %6190 = vmatmul.msk.f32.gmra.mxu3 %vm1192_vm1, %v3353_v9  ;;  %v3678_v42 = vpop.f32.mrf.mxu0  ;;  %v9500_v44 = vpop.f32.mrf.mxu3 }
 0x864   : > { %v9451_v31 = vpop.eup %6800  ;;  %v3720_v47 = vpop.xlane.xlu2 %3719 }
 0x865   : > { %v3749_v4 = vsub.f32 %v9389_v50, %v3720_v47  ;;  %3797 = vadd.xlane.f32.xlu2 %v9451_v31  ;;  %6564 = vrot.lane.b32.xlu1 %v8682_v14, %s7378_s12  ;;  %v3356_v39 = vpop.f32.mrf.mxu2  ;;  %v9466_v50 = vmul.f32 0.17677669, %v3678_v42 }
 0x866   : > { %6191 = vmatmul.msk.f32.gmra.mxu3 %vm1192_vm1, %v3356_v39  ;;  %v3681_v34 = vpop.f32.mrf.mxu0  ;;  %v9503_v43 = vpop.f32.mrf.mxu3 }
 0x867   : > { %v3767_v19 = vmul.f32 1.442695, %v3749_v4  ;;  %v9474_v5 = vmul.f32 0.17677669, %v3681_v34 }
 0x869   : > { %6802 = vpow2.f32 %v3767_v19 }
 0x86c   : > { %v3722_v14 = vpop.xlane.xlu0 %3721  ;;  %v6535_v49 = vpop.permute.xlu2 %6534 }
 0x86d   : > { %v3359_v22 = vpop.f32.mrf.mxu2  ;;  %v3750_v15 = vsub.f32 %v9394_v24, %v3722_v14  ;;  %v6536_v3 = vunpack.i.l.bf16 %v6535_v49  ;;  %v6537_v55 = vunpack.i.h.bf16 %v6535_v49 }
 0x86e   : > { %6192 = vmatmul.msk.f32.gmra.mxu3 %vm1192_vm1, %v3359_v22  ;;  %v3684_v48 = vpop.f32.mrf.mxu0  ;;  %v9508_v22 = vpop.f32.mrf.mxu3 }
 0x86f   : > { %v9460_v46 = vpop.eup %6802  ;;  %v3769_v2 = vmul.f32 1.442695, %v3750_v15  ;;  %v9482_v56 = vmul.f32 0.17677669, %v3684_v48 }
 0x870   : > { %3799 = vadd.xlane.f32.xlu2 %v9460_v46 }
 0x871   : > { %6804 = vpow2.f32 %v3769_v2 }
 0x874   : > { %v3724_v17 = vpop.xlane.xlu1 %3723  ;;  %v6545_v14 = vpop.permute.xlu2 %6544 }
 0x875   : > { %v3362_v41 = vpop.f32.mrf.mxu2  ;;  %v6546_v48 = vunpack.i.l.bf16 %v6545_v14 }
 0x876   : > { %6193 = vmatmul.msk.f32.gmra.mxu3 %vm1192_vm1, %v3362_v41 }
 0x877   : > { %v9486_v8 = vpop.eup %6804 }
 0x878   : > { %3733 = vmax.xlane.f32.xlu2 %v9466_v50 }
 0x87c   : > { %v3726_v52 = vpop.xlane.xlu0 %3725 }
 0x87d   : > { %v3752_v54 = vsub.f32 %v9407_v26, %v3726_v52 }
 0x87f   : > { %v3773_v40 = vmul.f32 1.442695, %v3752_v54 }
 0x880   : > { %3729 = vmax.xlane.f32.xlu0 %v9472_v10  ;;  %3735 = vmax.xlane.f32.xlu2 %v9474_v5  ;;  %v3687_v59 = vpop.f32.mrf.mxu0 }
 0x881   : > { %6806 = vpow2.f32 %v3773_v40  ;;  %v9492_v13 = vmul.f32 0.17677669, %v3687_v59 }
 0x887   : > { %v9488_v26 = vpop.eup %6806 }
 0x888   : > { %3731 = vmax.xlane.f32.xlu0 %v9480_v58  ;;  %3737 = vmax.xlane.f32.xlu2 %v9482_v56 }
 0x88c   : > { %v6530_v24 = vpop.permute.xlu1 %6529 }
 0x88d   : > { %v6531_v12 = vunpack.i.l.bf16 %v6530_v24  ;;  %v6532_v16 = vunpack.i.h.bf16 %v6530_v24  ;;  %v6547_v24 = vunpack.i.h.bf16 %v6545_v14 }
 0x88f   : > { %4115 = vmatpush.msra.mxu1 %v6531_v12  ;;  %3801 = vadd.xlane.f32.xlu1 %v9486_v8 }
 0x890   : > { %6305 = vmatpush.msra.mxu2 %v6531_v12  ;;  %3805 = vadd.xlane.f32.xlu2 %v9488_v26 }
 0x891   : > { %4116 = vmatpush.msra.mxu1 %v6532_v16 }
 0x892   : > { %6306 = vmatpush.msra.mxu2 %v6532_v16 }
 0x893   : > { %4117 = vmatpush.msra.mxu1 %v6536_v3 }
 0x894   : > { %6307 = vmatpush.msra.mxu2 %v6536_v3 }
 0x895   : > { %4118 = vmatpush.msra.mxu1 %v6537_v55 }
 0x896   : > { %6308 = vmatpush.msra.mxu2 %v6537_v55 }
 0x898   : > { %3739 = vmax.xlane.f32.xlu2 %v9492_v13 }
 0x89c   : > { %6559 = vrot.lane.b32.xlu0 %v8614_v28, %s7378_s12  ;;  %v3751_v28 = vsub.f32 %v9400_v62, %v3724_v17  ;;  %v6550_v17 = vpop.permute.xlu2 %6549  ;;  %s11268_s12 = sld [smem:[#allocation72_spill]] }
 0x89d   : > { %v6551_v12 = vunpack.i.l.bf16 %v6550_v17  ;;  %v6552_v16 = vunpack.i.h.bf16 %v6550_v17 }
 0x89e   : > { %v3771_v39 = vmul.f32 1.442695, %v3751_v28 }
 0x8a2   : > { %s5887_s27 = scalar_lea.hbm %s11268_s12, %s6284_s1  ;;  %s7300_s5 = scalar_lea.hbm %s11268_s12, 256 }
 0x8a3   : > { %s5890_s20 = sshll.u32 %s5887_s27, 4  ;;  %s5891_s20 = int_to_ptr.hbm [resolvable:$true] %s5890_s20 }
 0x8a4   : > { %s7294_s28 = sshra.s32 %s5891_s20, 4  ;;  %s7295_s28 = int_to_ptr.hbm [resolvable:$true] %s7294_s28 }
 0x8a5   : > { %v3365_v38 = vpop.f32.mrf.mxu2  ;;  %p7301_p12 = scmp.lt.s32.totalorder %s7295_s28, %s11268_s12 }
 0x8a6   : > { %6194 = vmatmul.msk.f32.gmra.mxu3 %vm1192_vm1, %v3365_v38 }
 0x8ad   : > { %v3368_v11 = vpop.f32.mrf.mxu2 }
 0x8ae   : > { %6195 = vmatmul.msk.f32.gmra.mxu3 %vm1192_vm1, %v3368_v11 }
 0x8b5   : > { %v3728_v9 = vpop.xlane.xlu0 %3727  ;;  %v3371_v47 = vpop.f32.mrf.mxu2 }
 0x8b6   : > { %v3753_v33 = vsub.f32 %v9430_v1, %v3728_v9  ;;  %6196 = vmatmul.msk.f32.gmra.mxu3 %vm1192_vm1, %v3371_v47 }
 0x8b7   : > { %v9520_v15 = vpop.xlane.xlu1 %3795 }
 0x8b8   : > { %v3775_v4 = vmul.f32 1.442695, %v3753_v33  ;;  %vm3832_vm15 = vweird.f32 %v9520_v15 }
 0x8ba   : > { %6808 = vpow2.f32 %v3775_v4 }
 0x8bb   : > { %6810 = vpow2.f32 %v3771_v39 }
 0x8bc   : > { %6812 = vrcp.f32 %v9520_v15 }
 0x8bd   : > { %v3374_v19 = vpop.f32.mrf.mxu2 }
 0x8be   : > { %6197 = vmatmul.msk.f32.gmra.mxu3 %vm1192_vm1, %v3374_v19 }
 0x8c0   : > { %v9511_v42 = vpop.eup %6808 }
 0x8c1   : > { %3807 = vadd.xlane.f32.xlu2 %v9511_v42  ;;  %v9514_v41 = vpop.eup %6810 }
 0x8c5   : > { %v3690_v1 = vpop.f32.mrf.mxu2 }
 0x8c6   : > { %v9516_v34 = vmul.f32 0.17677669, %v3690_v1  ;;  %3803 = vadd.xlane.f32.xlu0 %v9514_v41 }
 0x8c8   : > { %v6540_v62 = vpop.permute.xlu0 %6539 }
 0x8c9   : > { %v6541_v52 = vunpack.i.l.bf16 %v6540_v62  ;;  %3741 = vmax.xlane.f32.xlu2 %v9516_v34  ;;  %v6542_v54 = vunpack.i.h.bf16 %v6540_v62 }
 0x8cb   : > { %4119 = vmatpush.msra.mxu1 %v6541_v52  ;;  %6309 = vmatpush.msra.mxu2 %v6541_v52 }
 0x8cd   : > { %v3693_v2 = vpop.f32.mrf.mxu2  ;;  %4120 = vmatpush.msra.mxu1 %v6542_v54  ;;  %6310 = vmatpush.msra.mxu2 %v6542_v54 }
 0x8ce   : > { %v9522_v40 = vmul.f32 0.17677669, %v3693_v2  ;;  %v6813_v2 = vpop.eup %6812 }
 0x8cf   : > { %4121 = vmatpush.msra.mxu1 %v6546_v48  ;;  %6311 = vmatpush.msra.mxu2 %v6546_v48  ;;  %v6555_v49 = vpop.permute.xlu1 %6554  ;;  %vm3833_vm14 = vweird.f32 %v6813_v2 }
 0x8d0   : > { %3743 = vmax.xlane.f32.xlu1 %v9522_v40  ;;  %v6556_v3 = vunpack.i.l.bf16 %v6555_v49  ;;  %v6557_v38 = vunpack.i.h.bf16 %v6555_v49  ;;  %vm3834_vm0 = vmor %vm3832_vm15, %vm3833_vm14 }
 0x8d1   : > { %4122 = vmatpush.msra.mxu1 %v6547_v24  ;;  %6312 = vmatpush.msra.mxu2 %v6547_v24 }
 0x8d3   : > { %4123 = vmatpush.msra.mxu1 %v6551_v12  ;;  %6313 = vmatpush.msra.mxu2 %v6551_v12 }
 0x8d5   : > { %v3696_v55 = vpop.f32.mrf.mxu2  ;;  %4124 = vmatpush.msra.mxu1 %v6552_v16  ;;  %6314 = vmatpush.msra.mxu2 %v6552_v16 }
 0x8d6   : > { %v9525_v59 = vmul.f32 0.17677669, %v3696_v55 }
 0x8d7   : > { %4125 = vmatpush.msra.mxu1 %v6556_v3  ;;  %6315 = vmatpush.msra.mxu2 %v6556_v3  ;;  %v6565_v49 = vpop.permute.xlu1 %6564 }
 0x8d8   : > { %3745 = vmax.xlane.f32.xlu2 %v9525_v59  ;;  %v9528_v11 = vpop.xlane.xlu2 %3797 }
 0x8d9   : > { %4126 = vmatpush.msra.mxu1 %v6557_v38  ;;  %6316 = vmatpush.msra.mxu2 %v6557_v38  ;;  %vm3847_vm4 = vweird.f32 %v9528_v11 }
 0x8e3   : > { %v9530_v9 = vpop.xlane.xlu2 %3799 }
 0x8e4   : > { %vm3862_vm8 = vweird.f32 %v9530_v9 }
 0x8eb   : > { %v3734_v47 = vpop.xlane.xlu2 %3733 }
 0x8ec   : > { %v3756_v1 = vsub.f32 %v9466_v50, %v3734_v47 }
 0x8ee   : > { %v3781_v54 = vmul.f32 1.442695, %v3756_v1  ;;  %v3838_v1 = vand.u32 2147483648, %v9520_v15 }
 0x8f3   : > { %v3736_v33 = vpop.xlane.xlu2 %3735  ;;  %v3730_v28 = vpop.xlane.xlu0 %3729 }
 0x8f4   : > { %v3757_v4 = vsub.f32 %v9474_v5, %v3736_v33  ;;  %v3754_v39 = vsub.f32 %v9472_v10, %v3730_v28  ;;  %v3828_v10 = vmul.f32 %v6813_v2, %v9520_v15 }
 0x8f6   : > { %v3783_v19 = vmul.f32 1.442695, %v3757_v4  ;;  %v3777_v14 = vmul.f32 1.442695, %v3754_v39 }
 0x8f8   : > { %6814 = vpow2.f32 %v3783_v19 }
 0x8f9   : > { %6816 = vpow2.f32 %v3777_v14 }
 0x8fa   : > { %6818 = vrcp.f32 %v9528_v11 }
 0x8fb   : > { %v3738_v62 = vpop.xlane.xlu2 %3737  ;;  %v3732_v52 = vpop.xlane.xlu0 %3731  ;;  %6820 = vpow2.f32 %v3781_v54 }
 0x8fc   : > { %v3755_v48 = vsub.f32 %v9480_v58, %v3732_v52  ;;  %v3758_v50 = vsub.f32 %v9482_v56, %v3738_v62  ;;  %v3829_v58 = vsub.f32 1.0, %v3828_v10  ;;  %v3836_v62 = vand.u32 2147483647, %v9520_v15 }
 0x8fe   : > { %v9537_v17 = vpop.eup %6814  ;;  %v3779_v24 = vmul.f32 1.442695, %v3755_v48  ;;  %v3785_v3 = vmul.f32 1.442695, %v3758_v50  ;;  %v3830_v47 = vmul.f32 %v6813_v2, %v3829_v58  ;;  %v3839_v58 = vor.u32 1.1754944e-38, %v3838_v1 }
 0x8ff   : > { %v9539_v5 = vpop.eup %6816  ;;  %3815 = vadd.xlane.f32.xlu2 %v9537_v17  ;;  %vm3837_vm2 = vcmp.eq.f32.partialorder %v3836_v62, 8.507059e+37  ;;  %v3851_v62 = vand.u32 2147483647, %v9528_v11 }
 0x900   : > { %3809 = vadd.xlane.f32.xlu0 %v9539_v5  ;;  %6822 = vpow2.f32 %v3779_v24  ;;  %v9548_v16 = vpop.eup %6818  ;;  %v3831_v28 = vadd.f32 %v6813_v2, %v3830_v47  ;;  %v6566_v47 = vunpack.i.l.bf16 %v6565_v49 }
 0x901   : > { %v9550_v55 = vpop.eup %6820  ;;  %6824 = vrcp.f32 %v9530_v9  ;;  %v3843_v33 = vmul.f32 %v9548_v16, %v9528_v11  ;;  %vm3848_vm3 = vweird.f32 %v9548_v16  ;;  %vm3852_vm6 = vcmp.eq.f32.partialorder %v3851_v62, 8.507059e+37 }
 0x902   : > { %6826 = vpow2.f32 %v3785_v3  ;;  %v9559_v39 = vpop.xlane.xlu1 %3801  ;;  %v3835_v10 = vsel %vm3834_vm0, %v6813_v2, %v3831_v28  ;;  %v6567_v28 = vunpack.i.h.bf16 %v6565_v49  ;;  %vm3849_vm5 = vmor %vm3847_vm4, %vm3848_vm3 }
 0x903   : > { %v9546_v12 = vpop.xlane.xlu2 %3805  ;;  %v3844_v4 = vsub.f32 1.0, %v3843_v33  ;;  %6828 = vrcp.f32 %v9559_v39  ;;  %v3840_v15 = vsel %vm3837_vm2, %v3839_v58, %v3835_v10  ;;  %v3866_v58 = vand.u32 2147483647, %v9530_v9 }
 0x904   : > { %v3841_v1 = vmul.f32 %v9435_v18, %v3840_v15  ;;  %v3868_v18 = vand.u32 2147483648, %v9530_v9  ;;  %vm3877_vm12 = vweird.f32 %v9559_v39 }
 0x905   : > { %v3845_v50 = vmul.f32 %v9548_v16, %v3844_v4  ;;  %v3853_v4 = vand.u32 2147483648, %v9528_v11  ;;  %vm3867_vm10 = vcmp.eq.f32.partialorder %v3866_v58, 8.507059e+37 }
 0x906   : > { %v9552_v38 = vpop.eup %6822 }
 0x907   : > { %3811 = vadd.xlane.f32.xlu1 %v9552_v38  ;;  %v6825_v14 = vpop.eup %6824 }
 0x908   : > { %3813 = vadd.xlane.f32.xlu0 %v9550_v55  ;;  %v9565_v48 = vpop.eup %6826  ;;  %vm3863_vm7 = vweird.f32 %v6825_v14 }
 0x909   : > { %v6829_v2 = vpop.eup %6828  ;;  %vm3864_vm9 = vmor %vm3862_vm8, %vm3863_vm7 }
 0x90a   : > { %vm3878_vm11 = vweird.f32 %v6829_v2 }
 0x90b   : > { %v3740_v56 = vpop.xlane.xlu2 %3739  ;;  %vm3879_vm13 = vmor %vm3877_vm12, %vm3878_vm11 }
 0x90c   : > { %v3759_v19 = vsub.f32 %v9492_v13, %v3740_v56  ;;  %v3858_v13 = vmul.f32 %v6825_v14, %v9530_v9  ;;  %v3846_v56 = vadd.f32 %v9548_v16, %v3845_v50 }
 0x90e   : > { %v3787_v52 = vmul.f32 1.442695, %v3759_v19  ;;  %v6560_v54 = vpop.permute.xlu0 %6559  ;;  %v3859_v33 = vsub.f32 1.0, %v3858_v13  ;;  %v3850_v49 = vsel %vm3849_vm5, %v9548_v16, %v3846_v56  ;;  %v3883_v56 = vand.u32 2147483648, %v9559_v39 }
 0x90f   : > { %v6561_v24 = vunpack.i.l.bf16 %v6560_v54  ;;  %3817 = vadd.xlane.f32.xlu1 %v9565_v48  ;;  %v6562_v3 = vunpack.i.h.bf16 %v6560_v54  ;;  %v3873_v54 = vmul.f32 %v6829_v2, %v9559_v39  ;;  %vm3907_vm5 = vweird.f32 %v9546_v12 }
 0x910   : > { %6830 = vpow2.f32 %v3787_v52  ;;  %v3860_v52 = vmul.f32 %v6825_v14, %v3859_v33  ;;  %v3884_v9 = vor.u32 1.1754944e-38, %v3883_v56 }
 0x911   : > { %4127 = vmatpush.msra.mxu1 %v6561_v24  ;;  %6317 = vmatpush.msra.mxu2 %v6561_v24  ;;  %v3854_v24 = vor.u32 1.1754944e-38, %v3853_v4  ;;  %v3874_v50 = vsub.f32 1.0, %v3873_v54  ;;  %v3881_v4 = vand.u32 2147483647, %v9559_v39  ;;  %6832 = vrcp.f32 %v9546_v12 }
 0x912   : > { %v3861_v13 = vadd.f32 %v6825_v14, %v3860_v52 }
 0x913   : > { %4128 = vmatpush.msra.mxu1 %v6562_v3  ;;  %6318 = vmatpush.msra.mxu2 %v6562_v3  ;;  %v3855_v10 = vsel %vm3852_vm6, %v3854_v24, %v3850_v49  ;;  %v3875_v3 = vmul.f32 %v6829_v2, %v3874_v50  ;;  %vm3882_vm14 = vcmp.eq.f32.partialorder %v3881_v4, 8.507059e+37 }
 0x914   : > { %v3856_v11 = vmul.f32 %v9451_v31, %v3855_v10  ;;  %v3865_v15 = vsel %vm3864_vm9, %v6825_v14, %v3861_v13 }
 0x915   : > { %4129 = vmatpush.msra.mxu1 %v6566_v47  ;;  %6319 = vmatpush.msra.mxu2 %v6566_v47  ;;  %v3869_v47 = vor.u32 1.1754944e-38, %v3868_v18  ;;  %v3876_v33 = vadd.f32 %v6829_v2, %v3875_v3 }
 0x916   : > { %v9574_v19 = vpop.eup %6830 }
 0x917   : > { %3819 = vadd.xlane.f32.xlu0 %v9574_v19  ;;  %4130 = vmatpush.msra.mxu1 %v6567_v28  ;;  %v3870_v16 = vsel %vm3867_vm10, %v3869_v47, %v3865_v15  ;;  %v3880_v31 = vsel %vm3879_vm13, %v6829_v2, %v3876_v33  ;;  %v6833_v52 = vpop.eup %6832 }
 0x918   : > { %6320 = vmatpush.msra.mxu2 %v6567_v28  ;;  %4131 = vmatmul.f32.vlgmr.msra.gmra.mxu1 %v3841_v1  ;;  %v3871_v28 = vmul.f32 %v9460_v46, %v3870_v16  ;;  %v3885_v1 = vsel %vm3882_vm14, %v3884_v9, %v3880_v31  ;;  %v3903_v46 = vmul.f32 %v6833_v52, %v9546_v12  ;;  %vm3908_vm3 = vweird.f32 %v6833_v52 }
 0x919   : > { %v3886_v14 = vmul.f32 %v9486_v8, %v3885_v1  ;;  %v3913_v9 = vand.u32 2147483648, %v9546_v12  ;;  %vm3909_vm6 = vmor %vm3907_vm5, %vm3908_vm3 }
 0x91a   : > { %v3904_v10 = vsub.f32 1.0, %v3903_v46 }
 0x920   : > { %4134 = vmatmul.f32.gmra.mxu1 %v3856_v11  ;;  %v3905_v11 = vmul.f32 %v6833_v52, %v3904_v10 }
 0x928   : > { %4137 = vmatmul.f32.gmra.mxu1 %v3871_v28 }
 0x930   : > { %4140 = vmatmul.f32.gmra.mxu1 %v3886_v14 }
 0x934   : > { %v9592_v62 = vpop.xlane.xlu2 %3807 }
 0x935   : > { %vm3922_vm9 = vweird.f32 %v9592_v62 }
 0x939   : > { %v3804_v54 = vpop.xlane.xlu0 %3803 }
 0x93a   : > { %6834 = vrcp.f32 %v3804_v54  ;;  %v3898_v58 = vand.u32 2147483648, %v3804_v54  ;;  %v3896_v16 = vand.u32 2147483647, %v3804_v54  ;;  %vm3892_vm0 = vweird.f32 %v3804_v54 }
 0x93b   : > { %6836 = vrcp.f32 %v9592_v62 }
 0x93c   : > { %v3742_v39 = vpop.xlane.xlu2 %3741  ;;  %v3899_v28 = vor.u32 1.1754944e-38, %v3898_v58  ;;  %vm3897_vm4 = vcmp.eq.f32.partialorder %v3896_v16, 8.507059e+37 }
 0x93d   : > { %v3760_v2 = vsub.f32 %v9516_v34, %v3742_v39 }
 0x93f   : > { %v3789_v49 = vmul.f32 1.442695, %v3760_v2 }
 0x940   : > { %v6835_v24 = vpop.eup %6834 }
 0x941   : > { %v3888_v50 = vmul.f32 %v6835_v24, %v3804_v54  ;;  %6838 = vpow2.f32 %v3789_v49  ;;  %v6837_v8 = vpop.eup %6836  ;;  %vm3893_vm15 = vweird.f32 %v6835_v24  ;;  %v3911_v54 = vand.u32 2147483647, %v9546_v12 }
 0x942   : > { %v3918_v15 = vmul.f32 %v6837_v8, %v9592_v62  ;;  %vm3894_vm2 = vmor %vm3892_vm0, %vm3893_vm15  ;;  %vm3923_vm8 = vweird.f32 %v6837_v8  ;;  %v3926_v12 = vand.u32 2147483647, %v9592_v62 }
 0x943   : > { %v3889_v13 = vsub.f32 1.0, %v3888_v50  ;;  %v3744_v18 = vpop.xlane.xlu1 %3743  ;;  %vm3912_vm7 = vcmp.eq.f32.partialorder %v3911_v54, 8.507059e+37  ;;  %vm3924_vm10 = vmor %vm3922_vm9, %vm3923_vm8 }
 0x944   : > { %v3761_v3 = vsub.f32 %v9522_v40, %v3744_v18  ;;  %v3919_v4 = vsub.f32 1.0, %v3918_v15  ;;  %v3906_v40 = vadd.f32 %v6833_v52, %v3905_v11  ;;  %vm3927_vm11 = vcmp.eq.f32.partialorder %v3926_v12, 8.507059e+37 }
 0x945   : > { %v3890_v47 = vmul.f32 %v6835_v24, %v3889_v13 }
 0x946   : > { %v3791_v33 = vmul.f32 1.442695, %v3761_v3  ;;  %v3920_v2 = vmul.f32 %v6837_v8, %v3919_v4  ;;  %v3910_v49 = vsel %vm3909_vm6, %v6833_v52, %v3906_v40 }
 0x947   : > { %v9599_v56 = vpop.eup %6838  ;;  %v3891_v34 = vadd.f32 %v6835_v24, %v3890_v47 }
 0x948   : > { %6840 = vpow2.f32 %v3791_v33  ;;  %3821 = vadd.xlane.f32.xlu2 %v9599_v56  ;;  %v3921_v18 = vadd.f32 %v6837_v8, %v3920_v2 }
 0x949   : > { %v3895_v31 = vsel %vm3894_vm2, %v6835_v24, %v3891_v34  ;;  %v3914_v24 = vor.u32 1.1754944e-38, %v3913_v9 }
 0x94a   : > { %v3900_v1 = vsel %vm3897_vm4, %v3899_v28, %v3895_v31  ;;  %v3925_v52 = vsel %vm3924_vm10, %v6837_v8, %v3921_v18 }
 0x94b   : > { %v3746_v14 = vpop.xlane.xlu2 %3745  ;;  %v3901_v46 = vmul.f32 %v9514_v41, %v3900_v1  ;;  %v3915_v13 = vsel %vm3912_vm7, %v3914_v24, %v3910_v49  ;;  %v3928_v41 = vand.u32 2147483648, %v9592_v62 }
 0x94c   : > { %v3762_v39 = vsub.f32 %v9525_v59, %v3746_v14  ;;  %v3916_v59 = vmul.f32 %v9488_v26, %v3915_v13 }
 0x94d   : > { %4143 = vmatmul.f32.gmra.mxu1 %v3901_v46  ;;  %v3929_v58 = vor.u32 1.1754944e-38, %v3928_v41 }
 0x94e   : > { %v9607_v10 = vpop.eup %6840  ;;  %v3793_v50 = vmul.f32 1.442695, %v3762_v39 }
 0x94f   : > { %3823 = vadd.xlane.f32.xlu1 %v9607_v10  ;;  %v3930_v3 = vsel %vm3927_vm11, %v3929_v58, %v3925_v52 }
 0x950   : > { %6842 = vpow2.f32 %v3793_v50  ;;  %v3931_v15 = vmul.f32 %v9511_v42, %v3930_v3 }
 0x955   : > { %4146 = vmatmul.f32.gmra.mxu1 %v3916_v59 }
 0x956   : > { %v9614_v11 = vpop.eup %6842 }
 0x957   : > { %3825 = vadd.xlane.f32.xlu0 %v9614_v11 }
 0x95d   : > { %4149 = vmatmul.f32.gmra.mxu1 %v3931_v15 }
 0x972   : > { %v9618_v33 = vpop.xlane.xlu2 %3815 }
 0x973   : > { %v3810_v47 = vpop.xlane.xlu0 %3809  ;;  %vm3982_vm10 = vweird.f32 %v9618_v33 }
 0x974   : > { %6844 = vrcp.f32 %v3810_v47  ;;  %v3943_v4 = vand.u32 2147483648, %v3810_v47  ;;  %v3941_v31 = vand.u32 2147483647, %v3810_v47  ;;  %vm3937_vm13 = vweird.f32 %v3810_v47 }
 0x976   : > { %v3944_v1 = vor.u32 1.1754944e-38, %v3943_v4  ;;  %vm3942_vm15 = vcmp.eq.f32.partialorder %v3941_v31, 8.507059e+37 }
 0x97a   : > { %v6845_v16 = vpop.eup %6844  ;;  %v3812_v34 = vpop.xlane.xlu1 %3811 }
 0x97b   : > { %v3933_v26 = vmul.f32 %v6845_v16, %v3810_v47  ;;  %v3814_v62 = vpop.xlane.xlu0 %3813  ;;  %vm3938_vm12 = vweird.f32 %v6845_v16  ;;  %v3958_v41 = vand.u32 2147483648, %v3812_v34  ;;  %v3956_v52 = vand.u32 2147483647, %v3812_v34 }
 0x97c   : > { %6846 = vrcp.f32 %v3814_v62  ;;  %vm3939_vm14 = vmor %vm3937_vm13, %vm3938_vm12  ;;  %vm3952_vm2 = vweird.f32 %v3812_v34  ;;  %vm3967_vm6 = vweird.f32 %v3814_v62  ;;  %v3971_v31 = vand.u32 2147483647, %v3814_v62 }
 0x97d   : > { %v3934_v8 = vsub.f32 1.0, %v3933_v26  ;;  %6848 = vrcp.f32 %v3812_v34  ;;  %v3959_v15 = vor.u32 1.1754944e-38, %v3958_v41  ;;  %vm3957_vm4 = vcmp.eq.f32.partialorder %v3956_v52, 8.507059e+37 }
 0x97e   : > { %6850 = vrcp.f32 %v9618_v33  ;;  %vm3972_vm8 = vcmp.eq.f32.partialorder %v3971_v31, 8.507059e+37 }
 0x97f   : > { %v3935_v28 = vmul.f32 %v6845_v16, %v3934_v8  ;;  %v3973_v8 = vand.u32 2147483648, %v3814_v62 }
 0x981   : > { %v3936_v42 = vadd.f32 %v6845_v16, %v3935_v28 }
 0x982   : > { %v6847_v40 = vpop.eup %6846  ;;  %v9621_v2 = vpop.xlane.xlu1 %3817 }
 0x983   : > { %v6849_v9 = vpop.eup %6848  ;;  %v3963_v14 = vmul.f32 %v6847_v40, %v3814_v62  ;;  %v3940_v46 = vsel %vm3939_vm14, %v6845_v16, %v3936_v42  ;;  %6852 = vrcp.f32 %v9621_v2  ;;  %vm3968_vm5 = vweird.f32 %v6847_v40 }
 0x984   : > { %v6851_v54 = vpop.eup %6850  ;;  %v3948_v39 = vmul.f32 %v6849_v9, %v3812_v34  ;;  %v3945_v24 = vsel %vm3942_vm15, %v3944_v1, %v3940_v46  ;;  %vm3953_vm0 = vweird.f32 %v6849_v9  ;;  %vm3969_vm7 = vmor %vm3967_vm6, %vm3968_vm5  ;;  %v3986_v62 = vand.u32 2147483647, %v9618_v33 }
 0x985   : > { %v3964_v49 = vsub.f32 1.0, %v3963_v14  ;;  %v3946_v13 = vmul.f32 %v9539_v5, %v3945_v24  ;;  %v3978_v18 = vmul.f32 %v6851_v54, %v9618_v33  ;;  %vm3954_vm3 = vmor %vm3952_vm2, %vm3953_vm0  ;;  %v3974_v14 = vor.u32 1.1754944e-38, %v3973_v8 }
 0x986   : > { %v3949_v50 = vsub.f32 1.0, %v3948_v39  ;;  %vm3983_vm9 = vweird.f32 %v6851_v54  ;;  %v3988_v24 = vand.u32 2147483648, %v9618_v33  ;;  %vm3987_vm12 = vcmp.eq.f32.partialorder %v3986_v62, 8.507059e+37 }
 0x987   : > { %v3965_v59 = vmul.f32 %v6847_v40, %v3964_v49  ;;  %4152 = vmatmul.f32.gmra.mxu1 %v3946_v13  ;;  %v3979_v3 = vsub.f32 1.0, %v3978_v18  ;;  %vm3984_vm11 = vmor %vm3982_vm10, %vm3983_vm9  ;;  %v4003_v52 = vand.u32 2147483648, %v9621_v2  ;;  %vm3997_vm14 = vweird.f32 %v9621_v2 }
 0x988   : > { %v3950_v12 = vmul.f32 %v6849_v9, %v3949_v50  ;;  %v3989_v18 = vor.u32 1.1754944e-38, %v3988_v24 }
 0x989   : > { %v3966_v26 = vadd.f32 %v6847_v40, %v3965_v59  ;;  %v6853_v5 = vpop.eup %6852  ;;  %v3980_v42 = vmul.f32 %v6851_v54, %v3979_v3 }
 0x98a   : > { %v3951_v58 = vadd.f32 %v6849_v9, %v3950_v12  ;;  %v3820_v47 = vpop.xlane.xlu0 %3819  ;;  %v3993_v34 = vmul.f32 %v6853_v5, %v9621_v2  ;;  %vm3998_vm13 = vweird.f32 %v6853_v5 }
 0x98b   : > { %6854 = vrcp.f32 %v3820_v47  ;;  %v3970_v1 = vsel %vm3969_vm7, %v6847_v40, %v3966_v26  ;;  %v3981_v39 = vadd.f32 %v6851_v54, %v3980_v42  ;;  %vm3999_vm15 = vmor %vm3997_vm14, %vm3998_vm13  ;;  %v4018_v26 = vand.u32 2147483648, %v3820_v47  ;;  %v1191_v42 = vld [vmem:[#allocation10 + $0x78] sm:$0xff] }
 0x98c   : > { %v3955_v16 = vsel %vm3954_vm3, %v6849_v9, %v3951_v58  ;;  %v3975_v9 = vsel %vm3972_vm8, %v3974_v14, %v3970_v1  ;;  %v3994_v46 = vsub.f32 1.0, %v3993_v34  ;;  %vm4012_vm3 = vweird.f32 %v3820_v47  ;;  %v1190_v34 = vld [vmem:[#allocation10 + $0x70] sm:$0xff]  ;;  %4240 = vmatpush.msrb.mxu2 %v1191_v42  ;;  %v1189_v1 = vld [vmem:[#allocation10 + $0x68] sm:$0xff] }
 0x98d   : > { %v3960_v28 = vsel %vm3957_vm4, %v3959_v15, %v3955_v16  ;;  %v3985_v40 = vsel %vm3984_vm11, %v6851_v54, %v3981_v39  ;;  %v4004_v15 = vor.u32 1.1754944e-38, %v4003_v52 }
 0x98e   : > { %v3961_v4 = vmul.f32 %v9552_v38, %v3960_v28  ;;  %v3976_v38 = vmul.f32 %v9550_v55, %v3975_v9  ;;  %v3995_v50 = vmul.f32 %v6853_v5, %v3994_v46  ;;  %v3990_v41 = vsel %vm3987_vm12, %v3989_v18, %v3985_v40  ;;  %4241 = vmatpush.msrb.mxu2 %v1190_v34 }
 0x98f   : > { %v3991_v58 = vmul.f32 %v9537_v17, %v3990_v41  ;;  %v4001_v55 = vand.u32 2147483647, %v9621_v2  ;;  %v4016_v28 = vand.u32 2147483647, %v3820_v47  ;;  %v4019_v17 = vor.u32 1.1754944e-38, %v4018_v26 }
 0x990   : > { %4155 = vmatmul.f32.gmra.mxu1 %v3961_v4  ;;  %v3996_v12 = vadd.f32 %v6853_v5, %v3995_v50  ;;  %4242 = vmatpush.msrb.mxu2 %v1189_v1 }
 0x991   : > { %v6855_v49 = vpop.eup %6854  ;;  %vm4002_vm0 = vcmp.eq.f32.partialorder %v4001_v55, 8.507059e+37  ;;  %vm4017_vm5 = vcmp.eq.f32.partialorder %v4016_v28, 8.507059e+37 }
 0x992   : > { %v4008_v13 = vmul.f32 %v6855_v49, %v3820_v47  ;;  %v4000_v3 = vsel %vm3999_vm15, %v6853_v5, %v3996_v12  ;;  %vm4013_vm2 = vweird.f32 %v6855_v49 }
 0x993   : > { %v4005_v54 = vsel %vm4002_vm0, %v4004_v15, %v4000_v3  ;;  %vm4014_vm4 = vmor %vm4012_vm3, %vm4013_vm2 }
 0x994   : > { %v4009_v59 = vsub.f32 1.0, %v4008_v13  ;;  %v4006_v8 = vmul.f32 %v9565_v48, %v4005_v54  ;;  %v1188_v48 = vld [vmem:[#allocation10 + $0x60] sm:$0xff] }
 0x995   : > { %4243 = vmatpush.msrb.mxu2 %v1188_v48  ;;  %v4132_v55 = vpop.f32.mrf.mxu1 }
 0x996   : > { %v4010_v33 = vmul.f32 %v6855_v49, %v4009_v59 }
 0x998   : > { %4158 = vmatmul.f32.gmra.mxu1 %v3976_v38  ;;  %v4011_v16 = vadd.f32 %v6855_v49, %v4010_v33 }
 0x99a   : > { %v4015_v4 = vsel %vm4014_vm4, %v6855_v49, %v4011_v16 }
 0x99b   : > { %v4020_v2 = vsel %vm4017_vm5, %v4019_v17, %v4015_v4 }
 0x99c   : > { %v4021_v31 = vmul.f32 %v9574_v19, %v4020_v2 }
 0x9a0   : > { %4161 = vmatmul.f32.gmra.mxu1 %v3991_v58 }
 0x9a8   : > { %4164 = vmatmul.f32.gmra.mxu1 %v4006_v8 }
 0x9b0   : > { %4167 = vmatmul.f32.gmra.mxu1 %v4021_v31 }
 0x9bb   : > { %v3822_v5 = vpop.xlane.xlu2 %3821 }
 0x9bc   : > { %6856 = vrcp.f32 %v3822_v5  ;;  %v4033_v39 = vand.u32 2147483648, %v3822_v5  ;;  %v4031_v19 = vand.u32 2147483647, %v3822_v5  ;;  %vm4027_vm7 = vweird.f32 %v3822_v5 }
 0x9be   : > { %v4034_v62 = vor.u32 1.1754944e-38, %v4033_v39  ;;  %vm4032_vm9 = vcmp.eq.f32.partialorder %v4031_v19, 8.507059e+37 }
 0x9c2   : > { %v6857_v14 = vpop.eup %6856  ;;  %v3824_v9 = vpop.xlane.xlu1 %3823 }
 0x9c3   : > { %v4023_v47 = vmul.f32 %v6857_v14, %v3822_v5  ;;  %6858 = vrcp.f32 %v3824_v9  ;;  %vm4028_vm6 = vweird.f32 %v6857_v14  ;;  %v4048_v59 = vand.u32 2147483648, %v3824_v9  ;;  %v4135_v5 = vpop.f32.mrf.mxu1 }
 0x9c4   : > { %vm4029_vm8 = vmor %vm4027_vm7, %vm4028_vm6  ;;  %v4046_v58 = vand.u32 2147483647, %v3824_v9  ;;  %vm4042_vm11 = vweird.f32 %v3824_v9 }
 0x9c5   : > { %v4024_v46 = vsub.f32 1.0, %v4023_v47  ;;  %v4049_v15 = vor.u32 1.1754944e-38, %v4048_v59 }
 0x9c6   : > { %vm4047_vm13 = vcmp.eq.f32.partialorder %v4046_v58, 8.507059e+37 }
 0x9c7   : > { %v4025_v49 = vmul.f32 %v6857_v14, %v4024_v46  ;;  %v9647_v46 = vpop.f32.mrf.mxu3 }
 0x9c9   : > { %v6859_v24 = vpop.eup %6858  ;;  %v4026_v38 = vadd.f32 %v6857_v14, %v4025_v49 }
 0x9ca   : > { %v4038_v50 = vmul.f32 %v6859_v24, %v3824_v9  ;;  %v3826_v13 = vpop.xlane.xlu0 %3825  ;;  %vm4043_vm10 = vweird.f32 %v6859_v24 }
 0x9cb   : > { %6860 = vrcp.f32 %v3826_v13  ;;  %v4030_v40 = vsel %vm4029_vm8, %v6857_v14, %v4026_v38  ;;  %vm4044_vm12 = vmor %vm4042_vm11, %vm4043_vm10  ;;  %v4063_v4 = vand.u32 2147483648, %v3826_v13  ;;  %vm4057_vm15 = vweird.f32 %v3826_v13  ;;  %v4138_v14 = vpop.f32.mrf.mxu1 }
 0x9cc   : > { %v4039_v18 = vsub.f32 1.0, %v4038_v50  ;;  %v4035_v41 = vsel %vm4032_vm9, %v4034_v62, %v4030_v40 }
 0x9cd   : > { %v4036_v12 = vmul.f32 %v9599_v56, %v4035_v41  ;;  %v4061_v56 = vand.u32 2147483647, %v3826_v13  ;;  %v4064_v31 = vor.u32 1.1754944e-38, %v4063_v4 }
 0x9ce   : > { %v4040_v52 = vmul.f32 %v6859_v24, %v4039_v18 }
 0x9cf   : > { %4170 = vmatmul.f32.gmra.mxu1 %v4036_v12  ;;  %vm4062_vm2 = vcmp.eq.f32.partialorder %v4061_v56, 8.507059e+37  ;;  %v9650_v39 = vpop.f32.mrf.mxu3 }
 0x9d0   : > { %v4041_v33 = vadd.f32 %v6859_v24, %v4040_v52 }
 0x9d1   : > { %v6861_v3 = vpop.eup %6860 }
 0x9d2   : > { %v4045_v54 = vsel %vm4044_vm12, %v6859_v24, %v4041_v33  ;;  %v4053_v16 = vmul.f32 %v6861_v3, %v3826_v13  ;;  %vm4058_vm14 = vweird.f32 %v6861_v3  ;;  %v2656_v33 = vadd.f32 %v9250_v36, %v9446_v57 }
 0x9d3   : > { %v4050_v26 = vsel %vm4047_vm13, %v4049_v15, %v4045_v54  ;;  %vm4059_vm0 = vmor %vm4057_vm15, %vm4058_vm14  ;;  %v2662_v36 = vadd.f32 %v9265_v21, %v9462_v63  ;;  %v2668_v21 = vadd.f32 %v9279_v37, %v9497_v51 }
 0x9d4   : > { %v4054_v8 = vsub.f32 1.0, %v4053_v16  ;;  %v4051_v28 = vmul.f32 %v9607_v10, %v4050_v26  ;;  %v4141_v10 = vpop.f32.mrf.mxu1  ;;  %v7022_v26 = vld [vmem:[%s7597_s25] sm:$0xff] }
 0x9d6   : > { %v4055_v17 = vmul.f32 %v6861_v3, %v4054_v8  ;;  %4173 = vmatmul.f32.vlgmr.msra.gmra.mxu2 %v4051_v28  ;;  %v2659_v28 = vadd.f32 %v9257_v61, %v9457_v60  ;;  %v2665_v61 = vadd.f32 %v9273_v27, %v9468_v20  ;;  %v7026_v27 = vld [vmem:[%s7597_s25 + $0x20] sm:$0xff] }
 0x9d7   : > { %v9653_v19 = vpop.f32.mrf.mxu3 }
 0x9d8   : > { %v4056_v2 = vadd.f32 %v6861_v3, %v4055_v17 }
 0x9da   : > { %v4060_v42 = vsel %vm4059_vm0, %v6861_v3, %v4056_v2 }
 0x9db   : > { %v4065_v34 = vsel %vm4062_vm2, %v4064_v31, %v4060_v42  ;;  %v7023_v31 = vld [vmem:[%s7597_s25 + $0x8] sm:$0xff] }
 0x9dc   : > { %v4066_v1 = vmul.f32 %v9614_v11, %v4065_v34  ;;  %v4144_v9 = vpop.f32.mrf.mxu1 }
 0x9de   : > { %4176 = vmatmul.f32.gmra.mxu2 %v4066_v1 }
 0x9df   : > { %v9656_v38 = vpop.f32.mrf.mxu3 }
 0x9e4   : > { %v4147_v48 = vpop.f32.mrf.mxu1 }
 0x9e6   : > { %6230 = vmatmul.msk.f32.vlgmr.msrb.gmra.mxu2 %vm1192_vm1, %v4132_v55 }
 0x9e7   : > { %v9660_v50 = vpop.f32.mrf.mxu3 }
 0x9ec   : > { %v4150_v47 = vpop.f32.mrf.mxu1 }
 0x9ee   : > { %6231 = vmatmul.msk.f32.gmra.mxu2 %vm1192_vm1, %v4135_v5 }
 0x9ef   : > { %v9663_v40 = vpop.f32.mrf.mxu3 }
 0x9f6   : > { %6232 = vmatmul.msk.f32.gmra.mxu2 %vm1192_vm1, %v4138_v14  ;;  %v7024_v14 = vld [vmem:[%s7597_s25 + $0x10] sm:$0xff] }
 0x9f7   : > { %v9666_v41 = vpop.f32.mrf.mxu3 }
 0x9fe   : > { %6233 = vmatmul.msk.f32.gmra.mxu2 %vm1192_vm1, %v4141_v10 }
 0x9ff   : > { %v9669_v12 = vpop.f32.mrf.mxu3 }
 0xa04   : > { %v4153_v11 = vpop.f32.mrf.mxu1 }
 0xa06   : > { %6234 = vmatmul.msk.f32.gmra.mxu2 %vm1192_vm1, %v4144_v9 }
 0xa07   : > { %v3442_v58 = vpop.f32.mrf.mxu3 }
 0xa08   : > { %v3490_v15 = vadd.f32 %v3442_v58, %v2656_v33  ;;  %v2674_v33 = vadd.f32 %v9296_v7, %v9503_v43  ;;  %v2677_v43 = vadd.f32 %v9309_v0, %v9508_v22 }
 0xa0d   : > { %v4156_v49 = vpop.f32.mrf.mxu1 }
 0xa0e   : > { %6235 = vmatmul.msk.f32.gmra.mxu2 %vm1192_vm1, %v4147_v48 }
 0xa0f   : > { %v3445_v3 = vpop.f32.mrf.mxu3 }
 0xa10   : > { %v3491_v4 = vadd.f32 %v3445_v3, %v2659_v28 }
 0xa15   : > { %v4159_v24 = vpop.f32.mrf.mxu1 }
 0xa16   : > { %6236 = vmatmul.msk.f32.gmra.mxu2 %vm1192_vm1, %v4150_v47 }
 0xa17   : > { %v3448_v17 = vpop.f32.mrf.mxu3 }
 0xa18   : > { %v3492_v57 = vadd.f32 %v3448_v17, %v2662_v36 }
 0xa1d   : > { %v4162_v62 = vpop.f32.mrf.mxu1 }
 0xa1e   : > { %6237 = vmatmul.msk.f32.gmra.mxu2 %vm1192_vm1, %v4153_v11  ;;  %v7025_v11 = vld [vmem:[%s7597_s25 + $0x18] sm:$0xff] }
 0xa1f   : > { %v3451_v42 = vpop.f32.mrf.mxu3 }
 0xa20   : > { %v3493_v60 = vadd.f32 %v3451_v42, %v2665_v61  ;;  %v7029_v61 = vld [vmem:[%s7597_s25 + $0x38] sm:$0xff] }
 0xa25   : > { %v4165_v13 = vpop.f32.mrf.mxu1 }
 0xa26   : > { %6238 = vmatmul.msk.f32.gmra.mxu2 %vm1192_vm1, %v4156_v49 }
 0xa27   : > { %v3454_v9 = vpop.f32.mrf.mxu3 }
 0xa28   : > { %v3494_v63 = vadd.f32 %v3454_v9, %v2668_v21 }
 0xa2d   : > { %v4168_v18 = vpop.f32.mrf.mxu1 }
 0xa2e   : > { %6239 = vmatmul.msk.f32.gmra.mxu2 %vm1192_vm1, %v4159_v24 }
 0xa36   : > { %6240 = vmatmul.msk.f32.gmra.mxu2 %vm1192_vm1, %v4162_v62 }
 0xa3e   : > { %6241 = vmatmul.msk.f32.gmra.mxu2 %vm1192_vm1, %v4165_v13  ;;  %v3457_v13 = vpop.f32.mrf.mxu3 }
 0xa46   : > { %6242 = vmatmul.msk.f32.gmra.mxu2 %vm1192_vm1, %v4168_v18  ;;  %v2671_v18 = vadd.f32 %v9286_v25, %v9500_v44  ;;  %v3460_v51 = vpop.f32.mrf.mxu3 }
 0xa47   : > { %v3496_v3 = vadd.f32 %v3460_v51, %v2674_v33  ;;  %v4715_v51 = vld [vmem:[#allocation11 + $0xf0] sm:$0xff]  ;;  %v4716_v33 = vld [vmem:[#allocation11 + $0xf8] sm:$0xff] }
 0xa48   : > { %4717 = vmatpush.msrb.mxu3 %v4715_v51  ;;  %4782 = vmatpush.msra.mxu0 %v4716_v33  ;;  %v4707_v51 = vld [vmem:[#allocation11 + $0xb0] sm:$0xff]  ;;  %v4708_v33 = vld [vmem:[#allocation11 + $0xb8] sm:$0xff] }
 0xa4c   : > { %v4171_v59 = vpop.f32.mrf.mxu1 }
 0xa4e   : > { %6243 = vmatmul.msk.f32.gmra.mxu2 %vm1192_vm1, %v4171_v59  ;;  %v3495_v59 = vadd.f32 %v3457_v13, %v2671_v18  ;;  %v3463_v25 = vpop.f32.mrf.mxu3 }
 0xa4f   : > { %v3497_v36 = vadd.f32 %v3463_v25, %v2677_v43  ;;  %v5515_v25 = vld [vmem:[#allocation13 + $0xe0] sm:$0xff]  ;;  %v7032_v43 = vld [vmem:[%s7597_s25 + $0x50] sm:$0xff] }
 0xa59   : > { %v4174_v52 = vpop.f32.mrf.mxu2 }
 0xa5a   : > { %6244 = vmatmul.msk.f32.gmra.mxu2 %vm1192_vm1, %v4174_v52 }
 0xa61   : > { %v4177_v55 = vpop.f32.mrf.mxu2 }
 0xa62   : > { %6245 = vmatmul.msk.f32.gmra.mxu2 %vm1192_vm1, %v4177_v55  ;;  %v7027_v55 = vld [vmem:[%s7597_s25 + $0x28] sm:$0xff] }
 0xa69   : > { %v4245_v54 = vpop.f32.mrf.mxu2 }
 0xa6a   : > { %v4293_v16 = vadd.f32 %v4245_v54, %v3490_v15 }
 0xa6c   : > { %v4309_v8 = vadd.f32 %v7022_v26, %v4293_v16  ;;  %v7028_v16 = vld [vmem:[%s7597_s25 + $0x30] sm:$0xff] }
 0xa6e   : > { %4327 = vadd.xlane.f32.xlu2 %v4309_v8 }
 0xa71   : > { %v4248_v56 = vpop.f32.mrf.mxu2 }
 0xa72   : > { %v4294_v2 = vadd.f32 %v4248_v56, %v3491_v4  ;;  %v11182_v4 = vld [vmem:[#allocation23_spill] sm:$0xff]  ;;  %v3466_v56 = vpop.f32.mrf.mxu3 }
 0xa74   : > { %v4310_v5 = vadd.f32 %v7023_v31, %v4294_v2 }
 0xa76   : > { %4329 = vadd.xlane.f32.xlu1 %v4310_v5 }
 0xa79   : > { %v4251_v34 = vpop.f32.mrf.mxu2 }
 0xa7a   : > { %v4295_v1 = vadd.f32 %v4251_v34, %v3492_v57 }
 0xa7c   : > { %v4311_v10 = vadd.f32 %v7024_v14, %v4295_v1  ;;  %v3469_v14 = vpop.f32.mrf.mxu3 }
 0xa7e   : > { %4331 = vadd.xlane.f32.xlu0 %v4311_v10 }
 0xa81   : > { %v4254_v48 = vpop.f32.mrf.mxu2 }
 0xa82   : > { %v4296_v47 = vadd.f32 %v4254_v48, %v3493_v60 }
 0xa84   : > { %v9685_v49 = vadd.f32 %v7025_v11, %v4296_v47 }
 0xa86   : > { %4333 = vadd.xlane.f32.xlu2 %v9685_v49 }
 0xa89   : > { %v4257_v24 = vpop.f32.mrf.mxu2 }
 0xa8a   : > { %v4297_v62 = vadd.f32 %v4257_v24, %v3494_v63 }
 0xa8c   : > { %v9691_v20 = vadd.f32 %v7026_v27, %v4297_v62  ;;  %v3472_v62 = vpop.f32.mrf.mxu3 }
 0xa8e   : > { %4335 = vadd.xlane.f32.xlu1 %v9691_v20 }
 0xa91   : > { %v4260_v52 = vpop.f32.mrf.mxu2 }
 0xa92   : > { %v4298_v58 = vadd.f32 %v4260_v52, %v3495_v59 }
 0xa94   : > { %v9697_v37 = vadd.f32 %v7027_v55, %v4298_v58 }
 0xa96   : > { %4337 = vadd.xlane.f32.xlu0 %v9697_v37 }
 0xa99   : > { %v4263_v15 = vpop.f32.mrf.mxu2 }
 0xa9a   : > { %v4299_v54 = vadd.f32 %v4263_v15, %v3496_v3  ;;  %v5517_v3 = vld [vmem:[#allocation13 + $0xf0] sm:$0xff] }
 0xa9b   : > { %5519 = vmatpush.msrb.mxu1 %v5517_v3  ;;  %v5509_v3 = vld [vmem:[#allocation13 + $0xb0] sm:$0xff] }
 0xa9c   : > { %v9703_v26 = vadd.f32 %v7028_v16, %v4299_v54  ;;  %v4713_v54 = vld [vmem:[#allocation11 + $0xe0] sm:$0xff] }
 0xa9d   : > { %4718 = vmatpush.msrb.mxu3 %v4713_v54  ;;  %5520 = vmatpush.msrb.mxu1 %v5515_v25  ;;  %v4706_v54 = vld [vmem:[#allocation11 + $0xa8] sm:$0xff]  ;;  %v4704_v25 = vld [vmem:[#allocation11 + $0x98] sm:$0xff] }
 0xa9e   : > { %4339 = vadd.xlane.f32.xlu1 %v9703_v26 }
 0xaa1   : > { %v4266_v44 = vpop.f32.mrf.mxu2 }
 0xaa2   : > { %v4300_v42 = vadd.f32 %v4266_v44, %v3497_v36  ;;  %v5516_v44 = vld [vmem:[#allocation13 + $0xe8] sm:$0xff] }
 0xaa4   : > { %v9719_v60 = vadd.f32 %v7029_v61, %v4300_v42  ;;  %v7033_v61 = vld [vmem:[%s7597_s25 + $0x58] sm:$0xff] }
 0xaa9   : > { %v4269_v7 = vpop.f32.mrf.mxu2 }
 0xab1   : > { %v4272_v22 = vpop.f32.mrf.mxu2 }
 0xab9   : > { %v4275_v13 = vpop.f32.mrf.mxu2 }
 0xae1   : > { %v4328_v28 = vpop.xlane.xlu2 %4327 }
 0xae2   : > { %v4359_v17 = vmul.f32 %v4328_v28, %v11182_v4  ;;  %v3475_v28 = vpop.f32.mrf.mxu3 }
 0xae4   : > { %v9707_v2 = vsub.f32 %v4309_v8, %v4359_v17  ;;  %v2680_v8 = vadd.f32 %v8971_v45, %v9647_v46  ;;  %v2683_v45 = vadd.f32 %v8980_v29, %v9650_v39  ;;  %v7030_v46 = vld [vmem:[%s7597_s25 + $0x40] sm:$0xff]  ;;  %v2686_v29 = vadd.f32 %v8989_v6, %v9653_v19  ;;  %v7031_v39 = vld [vmem:[%s7597_s25 + $0x48] sm:$0xff]  ;;  %v4278_v17 = vpop.f32.mrf.mxu2 }
 0xae5   : > { %v4714_v6 = vld [vmem:[#allocation11 + $0xe8] sm:$0xff] }
 0xae6   : > { %v4391_v31 = vmul.f32 %v9707_v2, %v9707_v2  ;;  %v3498_v9 = vadd.f32 %v3466_v56, %v2680_v8  ;;  %v3499_v24 = vadd.f32 %v3469_v14, %v2683_v45  ;;  %v3500_v55 = vadd.f32 %v3472_v62, %v2686_v29  ;;  %4783 = vmatpush.msra.mxu0 %v4714_v6  ;;  %v4709_v29 = vld [vmem:[#allocation11 + $0xc0] sm:$0xff] }
 0xae7   : > { %v5507_v6 = vld [vmem:[#allocation13 + $0xa0] sm:$0xff] }
 0xae8   : > { %4407 = vadd.xlane.f32.xlu2 %v4391_v31  ;;  %v4301_v47 = vadd.f32 %v4269_v7, %v3498_v9  ;;  %v4302_v18 = vadd.f32 %v4272_v22, %v3499_v24  ;;  %v4303_v19 = vadd.f32 %v4275_v13, %v3500_v55  ;;  %v2689_v7 = vadd.f32 %v8997_v23, %v9656_v38  ;;  %v5512_v55 = vld [vmem:[#allocation13 + $0xc8] sm:$0xff] }
 0xae9   : > { %v4330_v57 = vpop.xlane.xlu1 %4329  ;;  %v2692_v38 = vadd.f32 %v9004_v30, %v9660_v50  ;;  %v2695_v30 = vadd.f32 %v9012_v32, %v9663_v40  ;;  %v7034_v50 = vld [vmem:[%s7597_s25 + $0x60] sm:$0xff]  ;;  %v5513_v32 = vld [vmem:[#allocation13 + $0xd0] sm:$0xff]  ;;  %v5514_v40 = vld [vmem:[#allocation13 + $0xd8] sm:$0xff] }
 0xaea   : > { %v4360_v34 = vmul.f32 %v4330_v57, %v11182_v4  ;;  %v9730_v21 = vadd.f32 %v7030_v46, %v4301_v47  ;;  %v9742_v52 = vadd.f32 %v7031_v39, %v4302_v18  ;;  %v9754_v31 = vadd.f32 %v7032_v43, %v4303_v19  ;;  %v3478_v8 = vpop.f32.mrf.mxu3  ;;  %5521 = vmatpush.msrb.mxu1 %v5513_v32  ;;  %v4710_v39 = vld [vmem:[#allocation11 + $0xc8] sm:$0xff]  ;;  %v5503_v43 = vld [vmem:[#allocation13 + $0x80] sm:$0xff] }
 0xaeb   : > { %v3501_v57 = vadd.f32 %v3475_v28, %v2689_v7  ;;  %v3502_v9 = vadd.f32 %v3478_v8, %v2692_v38  ;;  %v5508_v19 = vld [vmem:[#allocation13 + $0xa8] sm:$0xff]  ;;  %v5506_v28 = vld [vmem:[#allocation13 + $0x98] sm:$0xff]  ;;  %v4697_v8 = vld [vmem:[#allocation11 + $0x60] sm:$0xff] }
 0xaec   : > { %v9714_v1 = vsub.f32 %v4310_v5, %v4360_v34  ;;  %v4281_v23 = vpop.f32.mrf.mxu2  ;;  %v4702_v7 = vld [vmem:[#allocation11 + $0x88] sm:$0xff]  ;;  %v5499_v38 = vld [vmem:[#allocation13 + $0x60] sm:$0xff] }
 0xaed   : > { %v4304_v34 = vadd.f32 %v4278_v17, %v3501_v57  ;;  %v4305_v47 = vadd.f32 %v4281_v23, %v3502_v9  ;;  %v4701_v17 = vld [vmem:[#allocation11 + $0x80] sm:$0xff]  ;;  %v4699_v57 = vld [vmem:[#allocation11 + $0x70] sm:$0xff]  ;;  %v4698_v23 = vld [vmem:[#allocation11 + $0x68] sm:$0xff] }
 0xaee   : > { %v4392_v0 = vmul.f32 %v9714_v1, %v9714_v1  ;;  %v4696_v9 = vld [vmem:[#allocation11 + $0x58] sm:$0xff]  ;;  %v4690_v32 = vld [vmem:[#allocation11 + $0x28] sm:$0xff] }
 0xaef   : > { %v9778_v46 = vadd.f32 %v7034_v50, %v4305_v47  ;;  %v5498_v47 = vld [vmem:[#allocation13 + $0x58] sm:$0xff]  ;;  %v5496_v50 = vld [vmem:[#allocation13 + $0x48] sm:$0xff] }
 0xaf0   : > { %4409 = vadd.xlane.f32.xlu0 %v4392_v0  ;;  %4341 = vadd.xlane.f32.xlu2 %v9719_v60  ;;  %v9766_v0 = vadd.f32 %v7033_v61, %v4304_v34  ;;  %v5501_v34 = vld [vmem:[#allocation13 + $0x70] sm:$0xff]  ;;  %v5500_v61 = vld [vmem:[#allocation13 + $0x68] sm:$0xff] }
 0xaf1   : > { %v4332_v48 = vpop.xlane.xlu0 %4331 }
 0xaf2   : > { %v4361_v5 = vmul.f32 %v4332_v48, %v11182_v4  ;;  %v3481_v45 = vpop.f32.mrf.mxu3 }
 0xaf3   : > { %v3503_v62 = vadd.f32 %v3481_v45, %v2695_v30  ;;  %v4694_v45 = vld [vmem:[#allocation11 + $0x48] sm:$0xff]  ;;  %v5495_v30 = vld [vmem:[#allocation13 + $0x40] sm:$0xff] }
 0xaf4   : > { %v9725_v11 = vsub.f32 %v4311_v10, %v4361_v5  ;;  %v4284_v24 = vpop.f32.mrf.mxu2 }
 0xaf5   : > { %v4306_v13 = vadd.f32 %v4284_v24, %v3503_v62  ;;  %v4691_v24 = vld [vmem:[#allocation11 + $0x30] sm:$0xff]  ;;  %v4692_v62 = vld [vmem:[#allocation11 + $0x38] sm:$0xff] }
 0xaf6   : > { %v4393_v63 = vmul.f32 %v9725_v11, %v9725_v11 }
 0xaf8   : > { %4411 = vadd.xlane.f32.xlu1 %v4393_v63  ;;  %4343 = vadd.xlane.f32.xlu0 %v9730_v21 }
 0xaf9   : > { %v4334_v27 = vpop.xlane.xlu2 %4333 }
 0xafa   : > { %v4362_v10 = vmul.f32 %v4334_v27, %v11182_v4  ;;  %v7035_v27 = vld [vmem:[%s7597_s25 + $0x68] sm:$0xff] }
 0xafb   : > { %v9784_v18 = vadd.f32 %v7035_v27, %v4306_v13  ;;  %v5493_v13 = vld [vmem:[#allocation13 + $0x30] sm:$0xff] }
 0xafc   : > { %v9737_v59 = vsub.f32 %v9685_v49, %v4362_v10  ;;  %v5518_v49 = vld [vmem:[#allocation13 + $0xf8] sm:$0xff] }
 0xafd   : > { %5584 = vmatpush.msra.mxu2 %v5518_v49  ;;  %v4712_v10 = vld [vmem:[#allocation11 + $0xd8] sm:$0xff]  ;;  %v4705_v49 = vld [vmem:[#allocation11 + $0xa0] sm:$0xff] }
 0xafe   : > { %v4394_v58 = vmul.f32 %v9737_v59, %v9737_v59  ;;  %4784 = vmatpush.msra.mxu0 %v4712_v10  ;;  %v4689_v10 = vld [vmem:[#allocation11 + $0x20] sm:$0xff] }
 0xaff   : > { %5585 = vmatpush.msra.mxu2 %v5516_v44  ;;  %v5505_v44 = vld [vmem:[#allocation13 + $0x90] sm:$0xff] }
 0xb00   : > { %4413 = vadd.xlane.f32.xlu2 %v4394_v58  ;;  %4345 = vadd.xlane.f32.xlu1 %v9742_v52  ;;  %v5511_v58 = vld [vmem:[#allocation13 + $0xc0] sm:$0xff] }
 0xb01   : > { %v4336_v15 = vpop.xlane.xlu1 %4335  ;;  %5586 = vmatpush.msra.mxu2 %v5514_v40  ;;  %4785 = vmatpush.msra.mxu0 %v4710_v39  ;;  %v5491_v40 = vld [vmem:[#allocation13 + $0x20] sm:$0xff]  ;;  %v5492_v39 = vld [vmem:[#allocation13 + $0x28] sm:$0xff] }
 0xb02   : > { %v4363_v16 = vmul.f32 %v4336_v15, %v11182_v4  ;;  %5522 = vmatpush.msrb.mxu1 %v5511_v58  ;;  %v5510_v15 = vld [vmem:[#allocation13 + $0xb8] sm:$0xff]  ;;  %v4687_v58 = vld [vmem:[#allocation11 + $0x10] sm:$0xff] }
 0xb03   : > { %5587 = vmatpush.msra.mxu2 %v5512_v55  ;;  %4786 = vmatpush.msra.mxu0 %v4708_v33  ;;  %v4688_v55 = vld [vmem:[#allocation11 + $0x18] sm:$0xff] }
 0xb04   : > { %v9749_v56 = vsub.f32 %v9691_v20, %v4363_v16  ;;  %5523 = vmatpush.msrb.mxu1 %v5509_v3  ;;  %v4703_v16 = vld [vmem:[#allocation11 + $0x90] sm:$0xff]  ;;  %v5490_v33 = vld [vmem:[#allocation13 + $0x18] sm:$0xff]  ;;  %v4685_v3 = vld [vmem:[#allocation11] sm:$0xff] }
 0xb05   : > { %5588 = vmatpush.msra.mxu2 %v5510_v15  ;;  %4787 = vmatpush.msra.mxu0 %v4706_v54  ;;  %v4686_v15 = vld [vmem:[#allocation11 + $0x8] sm:$0xff] }
 0xb06   : > { %v4395_v36 = vmul.f32 %v9749_v56, %v9749_v56  ;;  %5524 = vmatpush.msrb.mxu1 %v5507_v6  ;;  %v5488_v54 = vld [vmem:[#allocation13 + $0x8] sm:$0xff] }
 0xb07   : > { %5589 = vmatpush.msra.mxu2 %v5508_v19  ;;  %4788 = vmatpush.msra.mxu0 %v4704_v25 }
 0xb08   : > { %4415 = vadd.xlane.f32.xlu0 %v4395_v36  ;;  %4347 = vadd.xlane.f32.xlu2 %v9754_v31  ;;  %v5504_v36 = vld [vmem:[#allocation13 + $0x88] sm:$0xff] }
 0xb09   : > { %v4338_v42 = vpop.xlane.xlu0 %4337  ;;  %5525 = vmatpush.msrb.mxu1 %v5505_v44  ;;  %5590 = vmatpush.msra.mxu2 %v5506_v28  ;;  %v3484_v44 = vpop.f32.mrf.mxu3 }
 0xb0a   : > { %v4364_v20 = vmul.f32 %v4338_v42, %v11182_v4  ;;  %4789 = vmatpush.msra.mxu0 %v4702_v7  ;;  %v4700_v42 = vld [vmem:[#allocation11 + $0x78] sm:$0xff] }
 0xb0b   : > { %5526 = vmatpush.msrb.mxu1 %v5503_v43  ;;  %5591 = vmatpush.msra.mxu2 %v5504_v36  ;;  %v4287_v43 = vpop.f32.mrf.mxu2 }
 0xb0c   : > { %v9761_v14 = vsub.f32 %v9697_v37, %v4364_v20  ;;  %4790 = vmatpush.msra.mxu0 %v4700_v42  ;;  %v5502_v20 = vld [vmem:[#allocation13 + $0x78] sm:$0xff] }
 0xb0d   : > { %5527 = vmatpush.msrb.mxu1 %v5501_v34  ;;  %5592 = vmatpush.msra.mxu2 %v5502_v20 }
 0xb0e   : > { %v4396_v22 = vmul.f32 %v9761_v14, %v9761_v14  ;;  %4791 = vmatpush.msra.mxu0 %v4698_v23 }
 0xb0f   : > { %5528 = vmatpush.msrb.mxu1 %v5499_v38  ;;  %5593 = vmatpush.msra.mxu2 %v5500_v61 }
 0xb10   : > { %4417 = vadd.xlane.f32.xlu1 %v4396_v22  ;;  %4349 = vadd.xlane.f32.xlu0 %v9766_v0  ;;  %v4695_v22 = vld [vmem:[#allocation11 + $0x50] sm:$0xff] }
 0xb11   : > { %v4340_v48 = vpop.xlane.xlu1 %4339  ;;  %4792 = vmatpush.msra.mxu0 %v4696_v9  ;;  %5594 = vmatpush.msra.mxu2 %v5498_v47  ;;  %v3487_v47 = vpop.f32.mrf.mxu3 }
 0xb12   : > { %v4365_v37 = vmul.f32 %v4340_v48, %v11182_v4  ;;  %v5497_v48 = vld [vmem:[#allocation13 + $0x50] sm:$0xff] }
 0xb13   : > { %5529 = vmatpush.msrb.mxu1 %v5497_v48  ;;  %4793 = vmatpush.msra.mxu0 %v4694_v45 }
 0xb14   : > { %v9773_v5 = vsub.f32 %v9703_v26, %v4365_v37  ;;  %v4711_v26 = vld [vmem:[#allocation11 + $0xd0] sm:$0xff]  ;;  %v4693_v37 = vld [vmem:[#allocation11 + $0x40] sm:$0xff]  ;;  %5595 = vmatpush.msra.mxu2 %v5496_v50 }
 0xb15   : > { %4719 = vmatpush.msrb.mxu3 %v4711_v26  ;;  %5530 = vmatpush.msrb.mxu1 %v5495_v30  ;;  %v5494_v26 = vld [vmem:[#allocation13 + $0x38] sm:$0xff]  ;;  %v2701_v30 = vadd.f32 %v9028_v35, %v9669_v12  ;;  %v7036_v50 = vld [vmem:[%s7597_s25 + $0x70] sm:$0xff]  ;;  %v9822_v12 = vld [vmem:[%s11183_s2] ss:$0 sm:$0xff] }
 0xb16   : > { %v4397_v63 = vmul.f32 %v9773_v5, %v9773_v5  ;;  %4794 = vmatpush.msra.mxu0 %v4692_v62  ;;  %5596 = vmatpush.msra.mxu2 %v5494_v26  ;;  %v4290_v62 = vpop.f32.mrf.mxu2 }
 0xb17   : > { %4720 = vmatpush.msrb.mxu3 %v4709_v29  ;;  %5531 = vmatpush.msrb.mxu1 %v5493_v13  ;;  %v3505_v26 = vadd.f32 %v3487_v47, %v2701_v30 }
 0xb18   : > { %4419 = vadd.xlane.f32.xlu2 %v4397_v63  ;;  %4351 = vadd.xlane.f32.xlu1 %v9778_v46 }
 0xb19   : > { %4721 = vmatpush.msrb.mxu3 %v4707_v51  ;;  %4795 = vmatpush.msra.mxu0 %v4690_v32  ;;  %v5489_v51 = vld [vmem:[#allocation13 + $0x10] sm:$0xff] }
 0xb1a   : > { %5532 = vmatpush.msrb.mxu1 %v5491_v40  ;;  %5597 = vmatpush.msra.mxu2 %v5492_v39 }
 0xb1b   : > { %4722 = vmatpush.msrb.mxu3 %v4705_v49  ;;  %4796 = vmatpush.msra.mxu0 %v4688_v55  ;;  %v5487_v49 = vld [vmem:[#allocation13] sm:$0xff] }
 0xb1c   : > { %5533 = vmatpush.msrb.mxu1 %v5489_v51  ;;  %5598 = vmatpush.msra.mxu2 %v5490_v33 }
 0xb1d   : > { %4723 = vmatpush.msrb.mxu3 %v4703_v16  ;;  %4797 = vmatpush.msra.mxu0 %v4686_v15 }
 0xb1e   : > { %5534 = vmatpush.msrb.mxu1 %v5487_v49  ;;  %5599 = vmatpush.msra.mxu2 %v5488_v54 }
 0xb1f   : > { %4724 = vmatpush.msrb.mxu3 %v4701_v17 }
 0xb20   : > { %4353 = vadd.xlane.f32.xlu2 %v9784_v18 }
 0xb21   : > { %4725 = vmatpush.msrb.mxu3 %v4699_v57  ;;  %v2698_v57 = vadd.f32 %v9020_v53, %v9666_v41 }
 0xb23   : > { %4726 = vmatpush.msrb.mxu3 %v4697_v8  ;;  %v3504_v20 = vadd.f32 %v3484_v44, %v2698_v57 }
 0xb25   : > { %4727 = vmatpush.msrb.mxu3 %v4695_v22  ;;  %v4307_v61 = vadd.f32 %v4287_v43, %v3504_v20 }
 0xb27   : > { %4728 = vmatpush.msrb.mxu3 %v4693_v37 }
 0xb29   : > { %4729 = vmatpush.msrb.mxu3 %v4691_v24  ;;  %v9812_v24 = vld [vmem:[%s11016_s10] ss:$0 sm:$0xff] }
 0xb2b   : > { %4730 = vmatpush.msrb.mxu3 %v4689_v10 }
 0xb2d   : > { %4731 = vmatpush.msrb.mxu3 %v4687_v58 }
 0xb2f   : > { %4732 = vmatpush.msrb.mxu3 %v4685_v3 }
 0xb5b   : > { %v4408_v63 = vpop.xlane.xlu2 %4407 }
 0xb5c   : > { %v4439_v27 = vmul.f32 %v4408_v63, %v11182_v4  ;;  %v9807_v63 = vadd.f32 %v7036_v50, %v4307_v61 }
 0xb5e   : > { %v4455_v29 = vadd.f32 1e-05, %v4439_v27 }
 0xb60   : > { %6862 = vrsqrt.f32 %v4455_v29  ;;  %vm4477_vm3 = vweird.f32 %v4455_v29 }
 0xb63   : > { %v4410_v6 = vpop.xlane.xlu0 %4409  ;;  %v4342_v19 = vpop.xlane.xlu2 %4341 }
 0xb64   : > { %v4440_v16 = vmul.f32 %v4410_v6, %v11182_v4  ;;  %v4366_v25 = vmul.f32 %v4342_v19, %v11182_v4  ;;  %v7037_v6 = vld [vmem:[%s7597_s25 + $0x78] sm:$0xff]  ;;  %s7296_s25 = scalar_lea.hbm %s7295_s28, 128 }
 0xb65   : > { %p7297_p1 = scmp.ne.s32.totalorder %s7295_s28, %s7296_s25  ;;  %p7302_p8 = scmp.lt.s32.totalorder %s7300_s5, %s7296_s25 }
 0xb66   : > { %v6863_v28 = vpop.eup %6862  ;;  %v4456_v17 = vadd.f32 1e-05, %v4440_v16  ;;  %v9791_v7 = vsub.f32 %v9719_v60, %v4366_v25 }
 0xb67   : > { %v4472_v36 = vmul.f32 %v6863_v28, %v4455_v29  ;;  %vm4478_vm1 = vweird.f32 %v6863_v28  ;;  %v4308_v29 = vadd.f32 %v4290_v62, %v3505_v26  ;;  %p7298_p3 = pnand %p7297_p1, %p7557_p13  ;;  %p7303_p7 = por %p7302_p8, %p7301_p12 }
 0xb68   : > { %6864 = vrsqrt.f32 %v4456_v17  ;;  %v4398_v42 = vmul.f32 %v9791_v7, %v9791_v7  ;;  %vm4479_vm4 = vmor %vm4477_vm3, %vm4478_vm1  ;;  %vm4487_vm6 = vweird.f32 %v4456_v17 }
 0xb69   : > { %v4473_v34 = vmul.f32 %v6863_v28, %v4472_v36  ;;  %v9835_v19 = vadd.f32 %v7037_v6, %v4308_v29  ;;  %p7299_p5 = pneg %p7298_p3 }
 0xb6a   : > { %4421 = vadd.xlane.f32.xlu0 %v4398_v42 }
 0xb6b   : > { %v4474_v8 = vmul.f32 0.5, %v4473_v34  ;;  %v4412_v23 = vpop.xlane.xlu1 %4411  ;;  %v4344_v38 = vpop.xlane.xlu0 %4343  ;;  %p7304_p9 = pnand %p7303_p7, %p7299_p5 }
 0xb6c   : > { %v4441_v60 = vmul.f32 %v4412_v23, %v11182_v4  ;;  %v4367_v22 = vmul.f32 %v4344_v38, %v11182_v4 }
 0xb6d   : > { %v4475_v9 = vsub.f32 1.5, %v4474_v8 }
 0xb6e   : > { %v6865_v48 = vpop.eup %6864  ;;  %v9799_v53 = vadd.f32 1e-05, %v4441_v60  ;;  %v9802_v41 = vsub.f32 %v9730_v21, %v4367_v22 }
 0xb6f   : > { %v4476_v37 = vmul.f32 %v6863_v28, %v4475_v9  ;;  %v4482_v45 = vmul.f32 %v6865_v48, %v4456_v17  ;;  %vm4488_vm5 = vweird.f32 %v6865_v48 }
 0xb70   : > { %6866 = vrsqrt.f32 %v9799_v53  ;;  %v4399_v21 = vmul.f32 %v9802_v41, %v9802_v41  ;;  %vm4489_vm7 = vmor %vm4487_vm6, %vm4488_vm5  ;;  %vm4497_vm9 = vweird.f32 %v9799_v53 }
 0xb71   : > { %v4480_v13 = vsel %vm4479_vm4, %v6863_v28, %v4476_v37  ;;  %v4483_v27 = vmul.f32 %v6865_v48, %v4482_v45 }
 0xb72   : > { %v4631_v35 = vmul.f32 %v4480_v13, %v9707_v2  ;;  %4423 = vadd.xlane.f32.xlu1 %v4399_v21  ;;  %4355 = vadd.xlane.f32.xlu0 %v9807_v63 }
 0xb73   : > { %v4484_v10 = vmul.f32 0.5, %v4483_v27  ;;  %v4414_v32 = vpop.xlane.xlu2 %4413  ;;  %v4346_v40 = vpop.xlane.xlu1 %4345 }
 0xb74   : > { %v4650_v39 = vmul.f32 %v9812_v24, %v4631_v35  ;;  %v4442_v58 = vmul.f32 %v4414_v32, %v11182_v4  ;;  %v4368_v55 = vmul.f32 %v4346_v40, %v11182_v4 }
 0xb75   : > { %v4485_v2 = vsub.f32 1.5, %v4484_v10 }
 0xb76   : > { %v6867_v51 = vpop.eup %6866  ;;  %v4458_v33 = vadd.f32 1e-05, %v4442_v58  ;;  %v9828_v3 = vsub.f32 %v9742_v52, %v4368_v55  ;;  %v9831_v15 = vadd.f32 %v9822_v12, %v4650_v39 }
 0xb77   : > { %v4486_v49 = vmul.f32 %v6865_v48, %v4485_v2  ;;  %v4492_v54 = vmul.f32 %v6867_v51, %v9799_v53  ;;  %vm4498_vm8 = vweird.f32 %v6867_v51 }
 0xb78   : > { %6868 = vrsqrt.f32 %v4458_v33  ;;  %4733 = vmatmul.f32.vlgmr.msrb.gmra.mxu3 %v9831_v15  ;;  %4798 = vmatmul.f32.vlgmr.msra.gmra.mxu0 %v9831_v15  ;;  %v4400_v52 = vmul.f32 %v9828_v3, %v9828_v3  ;;  %vm4499_vm10 = vmor %vm4497_vm9, %vm4498_vm8  ;;  %vm4507_vm12 = vweird.f32 %v4458_v33 }
 0xb79   : > { %v4490_v16 = vsel %vm4489_vm7, %v6865_v48, %v4486_v49  ;;  %v4493_v25 = vmul.f32 %v6867_v51, %v4492_v54  ;;  %5535 = vmatmul.f32.vlgmr.msrb.gmra.mxu1 %v9831_v15  ;;  %5600 = vmatmul.f32.vlgmr.msra.gmra.mxu2 %v9831_v15 }
 0xb7a   : > { %v4632_v44 = vmul.f32 %v4490_v16, %v9714_v1  ;;  %4425 = vadd.xlane.f32.xlu2 %v4400_v52  ;;  %4357 = vadd.xlane.f32.xlu1 %v9835_v19 }
 0xb7b   : > { %v4494_v28 = vmul.f32 0.5, %v4493_v25  ;;  %v4416_v17 = vpop.xlane.xlu0 %4415  ;;  %v4348_v43 = vpop.xlane.xlu2 %4347 }
 0xb7c   : > { %v4651_v36 = vmul.f32 %v9812_v24, %v4632_v44  ;;  %v4443_v57 = vmul.f32 %v4416_v17, %v11182_v4  ;;  %v4369_v42 = vmul.f32 %v4348_v43, %v11182_v4 }
 0xb7d   : > { %v4495_v34 = vsub.f32 1.5, %v4494_v28 }
 0xb7e   : > { %v6869_v20 = vpop.eup %6868  ;;  %v4459_v8 = vadd.f32 1e-05, %v4443_v57  ;;  %v9849_v23 = vsub.f32 %v9754_v31, %v4369_v42  ;;  %v9852_v1 = vadd.f32 %v9822_v12, %v4651_v36 }
 0xb7f   : > { %v4496_v38 = vmul.f32 %v6867_v51, %v4495_v34  ;;  %v4502_v61 = vmul.f32 %v6869_v20, %v4458_v33  ;;  %vm4508_vm11 = vweird.f32 %v6869_v20 }
 0xb80   : > { %6870 = vrsqrt.f32 %v4459_v8  ;;  %4736 = vmatmul.f32.gmra.mxu3 %v9852_v1  ;;  %4801 = vmatmul.f32.gmra.mxu0 %v9852_v1  ;;  %v4401_v60 = vmul.f32 %v9849_v23, %v9849_v23  ;;  %vm4509_vm13 = vmor %vm4507_vm12, %vm4508_vm11  ;;  %vm4517_vm15 = vweird.f32 %v4459_v8 }
 0xb81   : > { %v4500_v22 = vsel %vm4499_vm10, %v6867_v51, %v4496_v38  ;;  %v4503_v9 = vmul.f32 %v6869_v20, %v4502_v61  ;;  %5538 = vmatmul.f32.gmra.mxu1 %v9852_v1  ;;  %5603 = vmatmul.f32.gmra.mxu2 %v9852_v1 }
 0xb82   : > { %v4633_v31 = vmul.f32 %v4500_v22, %v9725_v11  ;;  %4427 = vadd.xlane.f32.xlu0 %v4401_v60 }
 0xb83   : > { %v4504_v48 = vmul.f32 0.5, %v4503_v9  ;;  %v4418_v53 = vpop.xlane.xlu1 %4417  ;;  %v4350_v47 = vpop.xlane.xlu0 %4349 }
 0xb84   : > { %v4652_v37 = vmul.f32 %v9812_v24, %v4633_v31  ;;  %v4444_v45 = vmul.f32 %v4418_v53, %v11182_v4  ;;  %v4370_v30 = vmul.f32 %v4350_v47, %v11182_v4 }
 0xb85   : > { %v4505_v50 = vsub.f32 1.5, %v4504_v48 }
 0xb86   : > { %v6871_v21 = vpop.eup %6870  ;;  %v4460_v62 = vadd.f32 1e-05, %v4444_v45  ;;  %v9866_v13 = vsub.f32 %v9766_v0, %v4370_v30  ;;  %v9869_v27 = vadd.f32 %v9822_v12, %v4652_v37 }
 0xb87   : > { %v4506_v11 = vmul.f32 %v6869_v20, %v4505_v50  ;;  %v4512_v26 = vmul.f32 %v6871_v21, %v4459_v8  ;;  %vm4518_vm14 = vweird.f32 %v6871_v21 }
 0xb88   : > { %6872 = vrsqrt.f32 %v4460_v62  ;;  %4739 = vmatmul.f32.gmra.mxu3 %v9869_v27  ;;  %4804 = vmatmul.f32.gmra.mxu0 %v9869_v27  ;;  %v4402_v35 = vmul.f32 %v9866_v13, %v9866_v13  ;;  %vm4519_vm0 = vmor %vm4517_vm15, %vm4518_vm14  ;;  %vm4527_vm1 = vweird.f32 %v4460_v62 }
 0xb89   : > { %v4510_v10 = vsel %vm4509_vm13, %v6869_v20, %v4506_v11  ;;  %v4513_v32 = vmul.f32 %v6871_v21, %v4512_v26  ;;  %5541 = vmatmul.f32.gmra.mxu1 %v9869_v27  ;;  %5606 = vmatmul.f32.gmra.mxu2 %v9869_v27 }
 0xb8a   : > { %v4634_v0 = vmul.f32 %v4510_v10, %v9737_v59  ;;  %4429 = vadd.xlane.f32.xlu2 %v4402_v35 }
 0xb8b   : > { %v4514_v40 = vmul.f32 0.5, %v4513_v32  ;;  %v4420_v29 = vpop.xlane.xlu2 %4419  ;;  %v4352_v39 = vpop.xlane.xlu1 %4351 }
 0xb8c   : > { %v4653_v58 = vmul.f32 %v9812_v24, %v4634_v0  ;;  %v4445_v55 = vmul.f32 %v4420_v29, %v11182_v4  ;;  %v4371_v2 = vmul.f32 %v4352_v39, %v11182_v4 }
 0xb8d   : > { %v4515_v51 = vsub.f32 1.5, %v4514_v40 }
 0xb8e   : > { %v6873_v33 = vpop.eup %6872  ;;  %v4461_v49 = vadd.f32 1e-05, %v4445_v55  ;;  %v9882_v54 = vsub.f32 %v9778_v46, %v4371_v2  ;;  %v9885_v6 = vadd.f32 %v9822_v12, %v4653_v58 }
 0xb8f   : > { %v4516_v59 = vmul.f32 %v6871_v21, %v4515_v51  ;;  %v4522_v52 = vmul.f32 %v6873_v33, %v4460_v62  ;;  %vm4528_vm2 = vweird.f32 %v6873_v33 }
 0xb90   : > { %6874 = vrsqrt.f32 %v4461_v49  ;;  %4742 = vmatmul.f32.gmra.mxu3 %v9885_v6  ;;  %4807 = vmatmul.f32.gmra.mxu0 %v9885_v6  ;;  %v4403_v16 = vmul.f32 %v9882_v54, %v9882_v54  ;;  %vm4529_vm3 = vmor %vm4527_vm1, %vm4528_vm2  ;;  %vm4537_vm5 = vweird.f32 %v4461_v49 }
 0xb91   : > { %v4520_v25 = vsel %vm4519_vm0, %v6871_v21, %v4516_v59  ;;  %v4523_v44 = vmul.f32 %v6873_v33, %v4522_v52  ;;  %5544 = vmatmul.f32.gmra.mxu1 %v9885_v6  ;;  %5609 = vmatmul.f32.gmra.mxu2 %v9885_v6 }
 0xb92   : > { %v4635_v46 = vmul.f32 %v4520_v25, %v9749_v56  ;;  %4431 = vadd.xlane.f32.xlu1 %v4403_v16 }
 0xb93   : > { %v4524_v28 = vmul.f32 0.5, %v4523_v44  ;;  %v4354_v17 = vpop.xlane.xlu2 %4353 }
 0xb94   : > { %v4654_v43 = vmul.f32 %v9812_v24, %v4635_v46  ;;  %v4372_v36 = vmul.f32 %v4354_v17, %v11182_v4 }
 0xb95   : > { %v4525_v57 = vsub.f32 1.5, %v4524_v28 }
 0xb96   : > { %v6875_v42 = vpop.eup %6874  ;;  %v9897_v34 = vsub.f32 %v9784_v18, %v4372_v36  ;;  %v9900_v20 = vadd.f32 %v9822_v12, %v4654_v43 }
 0xb97   : > { %v4526_v8 = vmul.f32 %v6873_v33, %v4525_v57  ;;  %v4532_v38 = vmul.f32 %v6875_v42, %v4461_v49  ;;  %vm4538_vm4 = vweird.f32 %v6875_v42 }
 0xb98   : > { %4745 = vmatmul.f32.gmra.mxu3 %v9900_v20  ;;  %4810 = vmatmul.f32.gmra.mxu0 %v9900_v20  ;;  %v4404_v56 = vmul.f32 %v9897_v34, %v9897_v34  ;;  %vm4539_vm6 = vmor %vm4537_vm5, %vm4538_vm4 }
 0xb99   : > { %v4530_v61 = vsel %vm4529_vm3, %v6873_v33, %v4526_v8  ;;  %v4533_v60 = vmul.f32 %v6875_v42, %v4532_v38  ;;  %5547 = vmatmul.f32.gmra.mxu1 %v9900_v20  ;;  %5612 = vmatmul.f32.gmra.mxu2 %v9900_v20 }
 0xb9a   : > { %v4636_v18 = vmul.f32 %v4530_v61, %v9761_v14  ;;  %4433 = vadd.xlane.f32.xlu0 %v4404_v56 }
 0xb9b   : > { %v4534_v22 = vmul.f32 0.5, %v4533_v60 }
 0xb9c   : > { %v4655_v9 = vmul.f32 %v9812_v24, %v4636_v18 }
 0xb9d   : > { %v4535_v31 = vsub.f32 1.5, %v4534_v22 }
 0xb9e   : > { %v9911_v48 = vadd.f32 %v9822_v12, %v4655_v9 }
 0xb9f   : > { %v4536_v53 = vmul.f32 %v6875_v42, %v4535_v31 }
 0xba0   : > { %4748 = vmatmul.f32.gmra.mxu3 %v9911_v48  ;;  %4813 = vmatmul.f32.gmra.mxu0 %v9911_v48 }
 0xba1   : > { %v4540_v47 = vsel %vm4539_vm6, %v6875_v42, %v4536_v53  ;;  %5550 = vmatmul.f32.gmra.mxu1 %v9911_v48  ;;  %5615 = vmatmul.f32.gmra.mxu2 %v9911_v48 }
 0xba2   : > { %v4637_v14 = vmul.f32 %v4540_v47, %v9773_v5 }
 0xba4   : > { %v4656_v37 = vmul.f32 %v9812_v24, %v4637_v14 }
 0xba6   : > { %v9920_v45 = vadd.f32 %v9822_v12, %v4656_v37 }
 0xba8   : > { %4751 = vmatmul.f32.gmra.mxu3 %v9920_v45  ;;  %4816 = vmatmul.f32.gmra.mxu0 %v9920_v45 }
 0xba9   : > { %5553 = vmatmul.f32.gmra.mxu1 %v9920_v45  ;;  %5618 = vmatmul.f32.gmra.mxu2 %v9920_v45 }
 0xbdd   : > { %v4422_v30 = vpop.xlane.xlu0 %4421 }
 0xbde   : > { %v4446_v50 = vmul.f32 %v4422_v30, %v11182_v4 }
 0xbe0   : > { %v4462_v21 = vadd.f32 1e-05, %v4446_v50 }
 0xbe2   : > { %6876 = vrsqrt.f32 %v4462_v21  ;;  %vm4547_vm8 = vweird.f32 %v4462_v21 }
 0xbe5   : > { %v4424_v62 = vpop.xlane.xlu1 %4423  ;;  %v4356_v5 = vpop.xlane.xlu0 %4355 }
 0xbe6   : > { %v4447_v11 = vmul.f32 %v4424_v62, %v11182_v4  ;;  %v4373_v26 = vmul.f32 %v4356_v5, %v11182_v4 }
 0xbe8   : > { %v6877_v35 = vpop.eup %6876  ;;  %v4463_v10 = vadd.f32 1e-05, %v4447_v11  ;;  %v9930_v32 = vsub.f32 %v9807_v63, %v4373_v26 }
 0xbe9   : > { %v4542_v0 = vmul.f32 %v6877_v35, %v4462_v21  ;;  %vm4548_vm7 = vweird.f32 %v6877_v35 }
 0xbea   : > { %6878 = vrsqrt.f32 %v4463_v10  ;;  %v4405_v40 = vmul.f32 %v9930_v32, %v9930_v32  ;;  %vm4549_vm9 = vmor %vm4547_vm8, %vm4548_vm7  ;;  %vm4557_vm11 = vweird.f32 %v4463_v10 }
 0xbeb   : > { %v4543_v29 = vmul.f32 %v6877_v35, %v4542_v0 }
 0xbec   : > { %4435 = vadd.xlane.f32.xlu2 %v4405_v40 }
 0xbed   : > { %v4544_v39 = vmul.f32 0.5, %v4543_v29  ;;  %v4426_v58 = vpop.xlane.xlu2 %4425  ;;  %v4358_v55 = vpop.xlane.xlu1 %4357 }
 0xbee   : > { %v4448_v2 = vmul.f32 %v4426_v58, %v11182_v4  ;;  %v4374_v51 = vmul.f32 %v4358_v55, %v11182_v4 }
 0xbef   : > { %v4545_v33 = vsub.f32 1.5, %v4544_v39 }
 0xbf0   : > { %v6879_v49 = vpop.eup %6878  ;;  %v4464_v59 = vadd.f32 1e-05, %v4448_v2  ;;  %v9937_v63 = vsub.f32 %v9835_v19, %v4374_v51 }
 0xbf1   : > { %v4546_v52 = vmul.f32 %v6877_v35, %v4545_v33  ;;  %v4552_v16 = vmul.f32 %v6879_v49, %v4463_v10  ;;  %vm4558_vm10 = vweird.f32 %v6879_v49 }
 0xbf2   : > { %6880 = vrsqrt.f32 %v4464_v59  ;;  %v4406_v25 = vmul.f32 %v9937_v63, %v9937_v63  ;;  %vm4559_vm12 = vmor %vm4557_vm11, %vm4558_vm10  ;;  %vm4567_vm14 = vweird.f32 %v4464_v59 }
 0xbf3   : > { %v4550_v44 = vsel %vm4549_vm9, %v6877_v35, %v4546_v52  ;;  %v4553_v46 = vmul.f32 %v6879_v49, %v4552_v16 }
 0xbf4   : > { %v4638_v28 = vmul.f32 %v4550_v44, %v9791_v7  ;;  %4437 = vadd.xlane.f32.xlu1 %v4406_v25 }
 0xbf5   : > { %v4554_v17 = vmul.f32 0.5, %v4553_v46  ;;  %v4428_v43 = vpop.xlane.xlu0 %4427 }
 0xbf6   : > { %v4657_v36 = vmul.f32 %v9812_v24, %v4638_v28  ;;  %v4449_v19 = vmul.f32 %v4428_v43, %v11182_v4 }
 0xbf7   : > { %v4555_v57 = vsub.f32 1.5, %v4554_v17 }
 0xbf8   : > { %v6881_v42 = vpop.eup %6880  ;;  %v4465_v8 = vadd.f32 1e-05, %v4449_v19  ;;  %v9945_v38 = vadd.f32 %v9822_v12, %v4657_v36 }
 0xbf9   : > { %v4556_v56 = vmul.f32 %v6879_v49, %v4555_v57  ;;  %v4562_v61 = vmul.f32 %v6881_v42, %v4464_v59  ;;  %vm4568_vm13 = vweird.f32 %v6881_v42 }
 0xbfa   : > { %6882 = vrsqrt.f32 %v4465_v8  ;;  %4754 = vmatmul.f32.gmra.mxu3 %v9945_v38  ;;  %4819 = vmatmul.f32.gmra.mxu0 %v9945_v38  ;;  %vm4569_vm15 = vmor %vm4567_vm14, %vm4568_vm13  ;;  %vm4577_vm2 = vweird.f32 %v4465_v8 }
 0xbfb   : > { %v4560_v7 = vsel %vm4559_vm12, %v6879_v49, %v4556_v56  ;;  %v4563_v60 = vmul.f32 %v6881_v42, %v4562_v61  ;;  %5556 = vmatmul.f32.gmra.mxu1 %v9945_v38  ;;  %5621 = vmatmul.f32.gmra.mxu2 %v9945_v38 }
 0xbfc   : > { %v4639_v18 = vmul.f32 %v4560_v7, %v9802_v41 }
 0xbfd   : > { %v4564_v22 = vmul.f32 0.5, %v4563_v60  ;;  %v4430_v9 = vpop.xlane.xlu2 %4429 }
 0xbfe   : > { %v4658_v31 = vmul.f32 %v9812_v24, %v4639_v18  ;;  %v4450_v53 = vmul.f32 %v4430_v9, %v11182_v4 }
 0xbff   : > { %v4565_v30 = vsub.f32 1.5, %v4564_v22 }
 0xc00   : > { %v6883_v47 = vpop.eup %6882  ;;  %v4466_v14 = vadd.f32 1e-05, %v4450_v53  ;;  %v9955_v37 = vadd.f32 %v9822_v12, %v4658_v31 }
 0xc01   : > { %v4572_v50 = vmul.f32 %v6883_v47, %v4465_v8  ;;  %v4566_v41 = vmul.f32 %v6881_v42, %v4565_v30  ;;  %vm4578_vm0 = vweird.f32 %v6883_v47 }
 0xc02   : > { %11184 = vst [vmem:[#allocation56_spill] sm:$0xff] %v9955_v37  ;;  %6884 = vrsqrt.f32 %v4466_v14  ;;  %4757 = vmatmul.f32.gmra.mxu3 %v9955_v37  ;;  %4822 = vmatmul.f32.gmra.mxu0 %v9955_v37  ;;  %vm4579_vm1 = vmor %vm4577_vm2, %vm4578_vm0  ;;  %vm4587_vm4 = vweird.f32 %v4466_v14 }
 0xc03   : > { %v4573_v21 = vmul.f32 %v6883_v47, %v4572_v50  ;;  %5559 = vmatmul.f32.gmra.mxu1 %v9955_v37  ;;  %5624 = vmatmul.f32.gmra.mxu2 %v9955_v37  ;;  %v4570_v35 = vsel %vm4569_vm15, %v6881_v42, %v4566_v41  ;;  %v5712_v41 = vld [vmem:[#allocation14 + $0xf8] sm:$0xff] }
 0xc04   : > { %v4640_v29 = vmul.f32 %v4570_v35, %v9828_v3  ;;  %5778 = vmatpush.msrb.mxu0 %v5712_v41 }
 0xc05   : > { %v4432_v62 = vpop.xlane.xlu1 %4431  ;;  %v4574_v5 = vmul.f32 0.5, %v4573_v21  ;;  %v5696_v21 = vld [vmem:[#allocation14 + $0x78] sm:$0xff] }
 0xc06   : > { %v4451_v26 = vmul.f32 %v4432_v62, %v11182_v4  ;;  %v4659_v2 = vmul.f32 %v9812_v24, %v4640_v29  ;;  %5713 = vmatpush.msra.mxu3 %v5696_v21  ;;  %v5695_v62 = vld [vmem:[#allocation14 + $0x70] sm:$0xff]  ;;  %v5690_v21 = vld [vmem:[#allocation14 + $0x48] sm:$0xff] }
 0xc07   : > { %v4575_v0 = vsub.f32 1.5, %v4574_v5  ;;  %v10010_v5 = vpop.f32.mrf.mxu3 }
 0xc08   : > { %v6885_v11 = vpop.eup %6884  ;;  %v4467_v39 = vadd.f32 1e-05, %v4451_v26  ;;  %v9965_v59 = vadd.f32 %v9822_v12, %v4659_v2  ;;  %5714 = vmatpush.msra.mxu3 %v5695_v62 }
 0xc09   : > { %v4582_v10 = vmul.f32 %v6885_v11, %v4466_v14  ;;  %v4576_v55 = vmul.f32 %v6883_v47, %v4575_v0  ;;  %vm4588_vm3 = vweird.f32 %v6885_v11 }
 0xc0a   : > { %6886 = vrsqrt.f32 %v4467_v39  ;;  %11185 = vst [vmem:[#allocation52_spill] sm:$0xff] %v9965_v59  ;;  %4760 = vmatmul.f32.gmra.mxu3 %v9965_v59  ;;  %4825 = vmatmul.f32.gmra.mxu0 %v9965_v59  ;;  %vm4589_vm5 = vmor %vm4587_vm4, %vm4588_vm3  ;;  %vm4597_vm7 = vweird.f32 %v4467_v39 }
 0xc0b   : > { %v4583_v40 = vmul.f32 %v6885_v11, %v4582_v10  ;;  %v4580_v33 = vsel %vm4579_vm1, %v6883_v47, %v4576_v55  ;;  %5562 = vmatmul.f32.gmra.mxu1 %v9965_v59  ;;  %5627 = vmatmul.f32.gmra.mxu2 %v9965_v59  ;;  %v6246_v10 = vmul.f32 -1.442695, %v10010_v5 }
 0xc0c   : > { %v4641_v52 = vmul.f32 %v4580_v33, %v9849_v23 }
 0xc0d   : > { %v4584_v58 = vmul.f32 0.5, %v4583_v40  ;;  %v4434_v28 = vpop.xlane.xlu0 %4433 }
 0xc0e   : > { %v4660_v44 = vmul.f32 %v9812_v24, %v4641_v52  ;;  %v4452_v43 = vmul.f32 %v4434_v28, %v11182_v4  ;;  %v5711_v52 = vld [vmem:[#allocation14 + $0xf0] sm:$0xff] }
 0xc0f   : > { %v4585_v51 = vsub.f32 1.5, %v4584_v58  ;;  %v10015_v35 = vpop.f32.mrf.mxu3  ;;  %5779 = vmatpush.msrb.mxu0 %v5711_v52 }
 0xc10   : > { %v6887_v16 = vpop.eup %6886  ;;  %v9976_v19 = vadd.f32 %v9822_v12, %v4660_v44  ;;  %v4468_v57 = vadd.f32 1e-05, %v4452_v43  ;;  %v6248_v55 = vmul.f32 -1.442695, %v10015_v35 }
 0xc11   : > { %v4586_v49 = vmul.f32 %v6885_v11, %v4585_v51  ;;  %v4592_v3 = vmul.f32 %v6887_v16, %v4467_v39  ;;  %vm4598_vm6 = vweird.f32 %v6887_v16 }
 0xc12   : > { %11186 = vst [vmem:[#allocation55_spill] sm:$0xff] %v9976_v19  ;;  %4763 = vmatmul.f32.gmra.mxu3 %v9976_v19  ;;  %4828 = vmatmul.f32.gmra.mxu0 %v9976_v19  ;;  %vm4599_vm8 = vmor %vm4597_vm7, %vm4598_vm6  ;;  %6888 = vrsqrt.f32 %v4468_v57  ;;  %vm4607_vm10 = vweird.f32 %v4468_v57 }
 0xc13   : > { %v4590_v25 = vsel %vm4589_vm5, %v6885_v11, %v4586_v49  ;;  %v4593_v46 = vmul.f32 %v6887_v16, %v4592_v3  ;;  %5565 = vmatmul.f32.gmra.mxu1 %v9976_v19  ;;  %5630 = vmatmul.f32.gmra.mxu2 %v9976_v19 }
 0xc14   : > { %v4642_v17 = vmul.f32 %v4590_v25, %v9866_v13 }
 0xc15   : > { %v4594_v23 = vmul.f32 0.5, %v4593_v46 }
 0xc16   : > { %v4661_v42 = vmul.f32 %v9812_v24, %v4642_v17 }
 0xc17   : > { %v4595_v36 = vsub.f32 1.5, %v4594_v23  ;;  %v10023_v58 = vpop.f32.mrf.mxu3 }
 0xc18   : > { %v9985_v61 = vadd.f32 %v9822_v12, %v4661_v42  ;;  %v6889_v7 = vpop.eup %6888  ;;  %v5710_v42 = vld [vmem:[#allocation14 + $0xe8] sm:$0xff] }
 0xc19   : > { %v4596_v8 = vmul.f32 %v6887_v16, %v4595_v36  ;;  %v4602_v18 = vmul.f32 %v6889_v7, %v4468_v57  ;;  %vm4608_vm9 = vweird.f32 %v6889_v7  ;;  %5780 = vmatpush.msrb.mxu0 %v5710_v42 }
 0xc1a   : > { %11187 = vst [vmem:[#allocation65_spill] sm:$0xff] %v9985_v61  ;;  %4766 = vmatmul.f32.gmra.mxu3 %v9985_v61  ;;  %4831 = vmatmul.f32.gmra.mxu0 %v9985_v61  ;;  %vm4609_vm11 = vmor %vm4607_vm10, %vm4608_vm9 }
 0xc1b   : > { %v4600_v13 = vsel %vm4599_vm8, %v6887_v16, %v4596_v8  ;;  %5568 = vmatmul.f32.gmra.mxu1 %v9985_v61  ;;  %5633 = vmatmul.f32.gmra.mxu2 %v9985_v61  ;;  %v4603_v22 = vmul.f32 %v6889_v7, %v4602_v18  ;;  %v5694_v16 = vld [vmem:[#allocation14 + $0x68] sm:$0xff]  ;;  %v5693_v8 = vld [vmem:[#allocation14 + $0x60] sm:$0xff]  ;;  %v5708_v18 = vld [vmem:[#allocation14 + $0xd8] sm:$0xff] }
 0xc1c   : > { %v4643_v56 = vmul.f32 %v4600_v13, %v9882_v54  ;;  %5715 = vmatpush.msra.mxu3 %v5694_v16  ;;  %v5709_v13 = vld [vmem:[#allocation14 + $0xe0] sm:$0xff]  ;;  %v5703_v61 = vld [vmem:[#allocation14 + $0xb0] sm:$0xff] }
 0xc1d   : > { %v4604_v9 = vmul.f32 0.5, %v4603_v22  ;;  %5781 = vmatpush.msrb.mxu0 %v5709_v13  ;;  %v5705_v16 = vld [vmem:[#allocation14 + $0xc0] sm:$0xff] }
 0xc1e   : > { %v4662_v60 = vmul.f32 %v9812_v24, %v4643_v56  ;;  %5716 = vmatpush.msra.mxu3 %v5693_v8 }
 0xc1f   : > { %v4605_v54 = vsub.f32 1.5, %v4604_v9  ;;  %v10037_v46 = vpop.f32.mrf.mxu3  ;;  %5782 = vmatpush.msrb.mxu0 %v5708_v18 }
 0xc20   : > { %v9993_v31 = vadd.f32 %v9822_v12, %v4662_v60 }
 0xc21   : > { %v4606_v53 = vmul.f32 %v6889_v7, %v4605_v54 }
 0xc22   : > { %11188 = vst [vmem:[#allocation42_spill] sm:$0xff] %v9993_v31  ;;  %4769 = vmatmul.f32.gmra.mxu3 %v9993_v31  ;;  %4834 = vmatmul.f32.gmra.mxu0 %v9993_v31 }
 0xc23   : > { %5571 = vmatmul.f32.gmra.mxu1 %v9993_v31  ;;  %5636 = vmatmul.f32.gmra.mxu2 %v9993_v31  ;;  %v4610_v47 = vsel %vm4609_vm11, %v6889_v7, %v4606_v53  ;;  %v5692_v7 = vld [vmem:[#allocation14 + $0x58] sm:$0xff]  ;;  %v5691_v53 = vld [vmem:[#allocation14 + $0x50] sm:$0xff] }
 0xc24   : > { %v4644_v14 = vmul.f32 %v4610_v47, %v9897_v34  ;;  %v10008_v34 = vpop.f32.mrf.mxu0  ;;  %5717 = vmatpush.msra.mxu3 %v5692_v7  ;;  %v5687_v31 = vld [vmem:[#allocation14 + $0x30] sm:$0xff] }
 0xc25   : > { %v6247_v11 = vmul.f32 -1.442695, %v10008_v34 }
 0xc26   : > { %v4663_v30 = vmul.f32 %v9812_v24, %v4644_v14  ;;  %v6250_v14 = vmul.f32 -1.442695, %v10023_v58  ;;  %5718 = vmatpush.msra.mxu3 %v5691_v53 }
 0xc27   : > { %6890 = vpow2.f32 %v6247_v11  ;;  %v10061_v11 = vpop.f32.mrf.mxu3 }
 0xc28   : > { %v10002_v50 = vadd.f32 %v9822_v12, %v4663_v30  ;;  %6892 = vpow2.f32 %v6246_v10  ;;  %v5707_v30 = vld [vmem:[#allocation14 + $0xd0] sm:$0xff]  ;;  %v5706_v10 = vld [vmem:[#allocation14 + $0xc8] sm:$0xff]  ;;  %5719 = vmatpush.msra.mxu3 %v5690_v21 }
 0xc29   : > { %5783 = vmatpush.msrb.mxu0 %v5707_v30 }
 0xc2a   : > { %11189 = vst [vmem:[#allocation39_spill] sm:$0xff] %v10002_v50  ;;  %4772 = vmatmul.f32.gmra.mxu3 %v10002_v50  ;;  %4837 = vmatmul.f32.gmra.mxu0 %v10002_v50 }
 0xc2b   : > { %5574 = vmatmul.f32.gmra.mxu1 %v10002_v50  ;;  %5639 = vmatmul.f32.gmra.mxu2 %v10002_v50 }
 0xc2c   : > { %v10013_v26 = vpop.f32.mrf.mxu0  ;;  %5784 = vmatpush.msrb.mxu0 %v5706_v10 }
 0xc2d   : > { %v6891_v0 = vpop.eup %6890  ;;  %v6249_v40 = vmul.f32 -1.442695, %v10013_v26 }
 0xc2e   : > { %v10021_v39 = vadd.f32 1.0, %v6891_v0  ;;  %v6893_v2 = vpop.eup %6892  ;;  %v5689_v0 = vld [vmem:[#allocation14 + $0x40] sm:$0xff]  ;;  %5785 = vmatpush.msrb.mxu0 %v5705_v16 }
 0xc2f   : > { %6894 = vpow2.f32 %v6249_v40  ;;  %v10028_v33 = vadd.f32 1.0, %v6893_v2  ;;  %5720 = vmatpush.msra.mxu3 %v5689_v0 }
 0xc30   : > { %6896 = vrcp.f32 %v10021_v39  ;;  %vm4995_vm12 = vweird.f32 %v10021_v39 }
 0xc31   : > { %6898 = vpow2.f32 %v6248_v55  ;;  %v4999_v55 = vand.u32 2147483647, %v10021_v39  ;;  %v4986_v42 = vand.u32 2147483648, %v10028_v33  ;;  %vm4980_vm15 = vweird.f32 %v10028_v33 }
 0xc33   : > { %vm10084_vm14 = vcmp.eq.f32.partialorder %v4999_v55, 8.507059e+37 }
 0xc34   : > { %v10019_v29 = vpop.f32.mrf.mxu0 }
 0xc35   : > { %v6251_v51 = vmul.f32 -1.442695, %v10019_v29  ;;  %v6895_v49 = vpop.eup %6894 }
 0xc36   : > { %v10032_v25 = vpop.eup %6896  ;;  %v10035_v44 = vadd.f32 1.0, %v6895_v49 }
 0xc37   : > { %6900 = vpow2.f32 %v6251_v51  ;;  %v6899_v28 = vpop.eup %6898  ;;  %v4991_v17 = vmul.f32 %v10032_v25, %v10021_v39  ;;  %vm4996_vm13 = vweird.f32 %v10032_v25 }
 0xc38   : > { %6902 = vrcp.f32 %v10028_v33  ;;  %v10042_v23 = vadd.f32 1.0, %v6899_v28  ;;  %vm5025_vm0 = vweird.f32 %v10035_v44  ;;  %v5031_v55 = vand.u32 2147483648, %v10035_v44  ;;  %vm10115_vm3 = vmor %vm4995_vm12, %vm4996_vm13 }
 0xc39   : > { %6904 = vrcp.f32 %v10035_v44  ;;  %v4992_v22 = vsub.f32 1.0, %v4991_v17  ;;  %v5001_v17 = vand.u32 2147483648, %v10021_v39 }
 0xc3a   : > { %6906 = vrcp.f32 %v10042_v23  ;;  %vm5010_vm10 = vweird.f32 %v10042_v23 }
 0xc3b   : > { %v4993_v40 = vmul.f32 %v10032_v25, %v4992_v22  ;;  %v5002_v30 = vor.u32 1.1754944e-38, %v5001_v17  ;;  %v5029_v17 = vand.u32 2147483647, %v10035_v44 }
 0xc3c   : > { %v10030_v3 = vpop.f32.mrf.mxu0 }
 0xc3d   : > { %v6901_v36 = vpop.eup %6900  ;;  %v6253_v62 = vmul.f32 -1.442695, %v10030_v3  ;;  %vm10166_vm8 = vcmp.eq.f32.partialorder %v5029_v17, 8.507059e+37 }
 0xc3e   : > { %v10045_v56 = vpop.eup %6902  ;;  %v10050_v9 = vadd.f32 1.0, %v6901_v36 }
 0xc3f   : > { %v4976_v47 = vmul.f32 %v10045_v56, %v10028_v33  ;;  %v10058_v41 = vpop.eup %6904  ;;  %vm4981_vm2 = vweird.f32 %v10045_v56 }
 0xc40   : > { %v5021_v49 = vmul.f32 %v10058_v41, %v10035_v44  ;;  %v10069_v28 = vpop.eup %6906  ;;  %vm10148_vm5 = vmor %vm4980_vm15, %vm4981_vm2  ;;  %vm5026_vm7 = vweird.f32 %v10058_v41 }
 0xc41   : > { %v4977_v51 = vsub.f32 1.0, %v4976_v47  ;;  %v6254_v47 = vmul.f32 -1.442695, %v10061_v11  ;;  %v5006_v21 = vmul.f32 %v10069_v28, %v10042_v23  ;;  %vm5011_vm11 = vweird.f32 %v10069_v28  ;;  %vm10189_vm12 = vmor %vm5025_vm0, %vm5026_vm7 }
 0xc42   : > { %v5022_v53 = vsub.f32 1.0, %v5021_v49  ;;  %vm10250_vm0 = vmor %vm5010_vm10, %vm5011_vm11 }
 0xc43   : > { %v4978_v22 = vmul.f32 %v10045_v56, %v4977_v51  ;;  %v5704_v51 = vld [vmem:[#allocation14 + $0xb8] sm:$0xff]  ;;  %v5007_v19 = vsub.f32 1.0, %v5006_v21  ;;  %v5702_v21 = vld [vmem:[#allocation14 + $0xa8] sm:$0xff] }
 0xc44   : > { %v10052_v54 = vpop.f32.mrf.mxu0  ;;  %5786 = vmatpush.msrb.mxu0 %v5704_v51  ;;  %v5023_v50 = vmul.f32 %v10058_v41, %v5022_v53 }
 0xc45   : > { %v6255_v7 = vmul.f32 -1.442695, %v10052_v54 }
 0xc46   : > { %5787 = vmatpush.msrb.mxu0 %v5703_v61  ;;  %v5684_v61 = vld [vmem:[#allocation14 + $0x18] sm:$0xff] }
 0xc48   : > { %5788 = vmatpush.msrb.mxu0 %v5702_v21 }
 0xc5f   : > { %v4436_v43 = vpop.xlane.xlu2 %4435 }
 0xc60   : > { %v4453_v57 = vmul.f32 %v4436_v43, %v11182_v4  ;;  %v6252_v43 = vmul.f32 -1.442695, %v10037_v46 }
 0xc62   : > { %v10047_v60 = vadd.f32 1e-05, %v4453_v57  ;;  %v4984_v57 = vand.u32 2147483647, %v10028_v33 }
 0xc64   : > { %6908 = vrsqrt.f32 %v10047_v60  ;;  %vm10107_vm1 = vcmp.eq.f32.partialorder %v4984_v57, 8.507059e+37  ;;  %v10122_v57 = vpop.f32.mrf.mxu1  ;;  %vm4617_vm6 = vweird.f32 %v10047_v60 }
 0xc65   : > { %6910 = vrcp.f32 %v10050_v9 }
 0xc66   : > { %6912 = vpow2.f32 %v6250_v14 }
 0xc67   : > { %v4438_v2 = vpop.xlane.xlu1 %4437  ;;  %6914 = vpow2.f32 %v6253_v62  ;;  %v10098_v62 = vpop.f32.mrf.mxu0 }
 0xc68   : > { %v4454_v52 = vmul.f32 %v4438_v2, %v11182_v4  ;;  %v10081_v4 = vadd.f32 %v10032_v25, %v4993_v40  ;;  %v10102_v40 = vor.u32 1.1754944e-38, %v4986_v42  ;;  %v5688_v2 = vld [vmem:[#allocation14 + $0x38] sm:$0xff] }
 0xc69   : > { %5721 = vmatpush.msra.mxu3 %v5688_v2 }
 0xc6a   : > { %v10073_v36 = vpop.eup %6908  ;;  %v10078_v8 = vadd.f32 1e-05, %v4454_v52  ;;  %v4998_v39 = vsel %vm10115_vm3, %v10032_v25, %v10081_v4  ;;  %v10138_v25 = vor.u32 1.1754944e-38, %v5031_v55  ;;  %vm5055_vm3 = vweird.f32 %v10050_v9 }
 0xc6b   : > { %v4612_v18 = vmul.f32 %v10073_v36, %v10047_v60  ;;  %v10094_v14 = vpop.eup %6910  ;;  %vm4618_vm4 = vweird.f32 %v10073_v36  ;;  %5722 = vmatpush.msra.mxu3 %v5687_v31  ;;  %v5016_v31 = vand.u32 2147483648, %v10042_v23  ;;  %v5003_v33 = vsel %vm10084_vm14, %v5002_v30, %v4998_v39  ;;  %v5685_v60 = vld [vmem:[#allocation14 + $0x20] sm:$0xff] }
 0xc6c   : > { %6916 = vrsqrt.f32 %v10078_v8  ;;  %v6913_v0 = vpop.eup %6912  ;;  %v5051_v4 = vmul.f32 %v10094_v14, %v10050_v9  ;;  %vm4619_vm9 = vmor %vm4617_vm6, %vm4618_vm4  ;;  %v10182_v51 = vmul.f32 %v5003_v33, %v10008_v34  ;;  %v5683_v33 = vld [vmem:[#allocation14 + $0x10] sm:$0xff]  ;;  %vm4627_vm14 = vweird.f32 %v10078_v8 }
 0xc6d   : > { %6918 = vpow2.f32 %v6252_v43  ;;  %v4613_v10 = vmul.f32 %v10073_v36, %v4612_v18  ;;  %v6915_v49 = vpop.eup %6914  ;;  %v10120_v43 = vpop.f32.mrf.mxu3  ;;  %v4979_v18 = vadd.f32 %v10045_v56, %v4978_v22  ;;  %vm5056_vm2 = vweird.f32 %v10094_v14 }
 0xc6e   : > { %6920 = vpow2.f32 %v6255_v7  ;;  %v10130_v7 = vpop.f32.mrf.mxu2  ;;  %v10142_v53 = vadd.f32 1.0, %v6915_v49  ;;  %v5052_v17 = vsub.f32 1.0, %v5051_v4  ;;  %v6257_v4 = vmul.f32 -1.442695, %v10098_v62  ;;  %vm10282_vm4 = vmor %vm5055_vm3, %vm5056_vm2 }
 0xc6f   : > { %v4614_v42 = vmul.f32 0.5, %v4613_v10  ;;  %6922 = vpow2.f32 %v6254_v47  ;;  %v10132_v10 = vadd.f32 1.0, %v6913_v0  ;;  %v5686_v47 = vld [vmem:[#allocation14 + $0x28] sm:$0xff]  ;;  %v4983_v16 = vsel %vm10148_vm5, %v10045_v56, %v4979_v18 }
 0xc70   : > { %5723 = vmatpush.msra.mxu3 %v5686_v47  ;;  %v5701_v47 = vld [vmem:[#allocation14 + $0xa0] sm:$0xff]  ;;  %v5008_v56 = vmul.f32 %v10069_v28, %v5007_v19  ;;  %v5700_v19 = vld [vmem:[#allocation14 + $0x98] sm:$0xff]  ;;  %v4988_v34 = vsel %vm10107_vm1, %v10102_v40, %v4983_v16  ;;  %v10214_v40 = vpop.f32.mrf.mxu1  ;;  %vm5085_vm7 = vweird.f32 %v10142_v53 }
 0xc71   : > { %v4615_v2 = vsub.f32 1.5, %v4614_v42  ;;  %v10163_v42 = vadd.f32 %v10058_v41, %v5023_v50  ;;  %6924 = vrcp.f32 %v10132_v10  ;;  %5789 = vmatpush.msrb.mxu0 %v5701_v47  ;;  %vm5040_vm6 = vweird.f32 %v10132_v10 }
 0xc72   : > { %v10135_v22 = vpop.eup %6916  ;;  %5724 = vmatpush.msra.mxu3 %v5685_v60  ;;  %6926 = vrcp.f32 %v10142_v53  ;;  %v5699_v60 = vld [vmem:[#allocation14 + $0x90] sm:$0xff]  ;;  %v10207_v47 = vadd.f32 %v10069_v28, %v5008_v56 }
 0xc73   : > { %v6919_v0 = vpop.eup %6918  ;;  %v4616_v55 = vmul.f32 %v10073_v36, %v4615_v2  ;;  %v4622_v49 = vmul.f32 %v10135_v22, %v10078_v8  ;;  %5790 = vmatpush.msrb.mxu0 %v5700_v19  ;;  %v5028_v44 = vsel %vm10189_vm12, %v10058_v41, %v10163_v42  ;;  %vm4628_vm13 = vweird.f32 %v10135_v22  ;;  %v5682_v42 = vld [vmem:[#allocation14 + $0x8] sm:$0xff]  ;;  %v5681_v8 = vld [vmem:[#allocation14] sm:$0xff] }
 0xc74   : > { %v6921_v21 = vpop.eup %6920  ;;  %v10178_v18 = vadd.f32 1.0, %v6919_v0  ;;  %v10194_v0 = vpop.f32.mrf.mxu0  ;;  %5725 = vmatpush.msra.mxu3 %v5684_v61  ;;  %v5053_v41 = vmul.f32 %v10094_v14, %v5052_v17  ;;  %v5455_v19 = vmul.f32 %v4988_v34, %v10010_v5  ;;  %vm4629_vm15 = vmor %vm4627_vm14, %vm4628_vm13  ;;  %v5033_v5 = vsel %vm10166_vm8, %v10138_v25, %v5028_v44 }
 0xc75   : > { %v4620_v50 = vsel %vm4619_vm9, %v10073_v36, %v4616_v55  ;;  %v4623_v13 = vmul.f32 %v10135_v22, %v4622_v49  ;;  %v6923_v30 = vpop.eup %6922  ;;  %v10203_v55 = vadd.f32 1.0, %v6921_v21  ;;  %5791 = vmatpush.msrb.mxu0 %v5699_v60  ;;  %v5698_v21 = vld [vmem:[#allocation14 + $0x88] sm:$0xff]  ;;  %v5013_v2 = vsel %vm10250_vm0, %v10069_v28, %v10207_v47 }
 0xc76   : > { %v4645_v39 = vmul.f32 %v4620_v50, %v9930_v32  ;;  %v10209_v50 = vadd.f32 1.0, %v6923_v30  ;;  %5726 = vmatpush.msra.mxu3 %v5683_v33  ;;  %6928 = vrcp.f32 %v10178_v18  ;;  %v5604_v30 = vpop.f32.mrf.mxu2  ;;  %v5054_v44 = vadd.f32 %v10094_v14, %v5053_v41 }
 0xc77   : > { %v4624_v32 = vmul.f32 0.5, %v4623_v13  ;;  %v10211_v13 = vpop.f32.mrf.mxu3  ;;  %v10222_v56 = vpop.eup %6924  ;;  %6930 = vpow2.f32 %v6257_v4  ;;  %5792 = vmatpush.msrb.mxu0 %v5698_v21  ;;  %v5697_v4 = vld [vmem:[#allocation14 + $0x80] sm:$0xff]  ;;  %v11205_v41 = vand.u32 2147483647, %v10042_v23  ;;  %v5649_v34 = vmul.f32 %v10122_v57, %v5455_v19 }
 0xc78   : > { %v4664_v49 = vmul.f32 %v9812_v24, %v4645_v39  ;;  %v6256_v24 = vmul.f32 -1.442695, %v10120_v43  ;;  %v6259_v39 = vmul.f32 -1.442695, %v10194_v0  ;;  %5727 = vmatpush.msra.mxu3 %v5682_v42  ;;  %v10227_v17 = vpop.eup %6926  ;;  %6932 = vrcp.f32 %v10203_v55 }
 0xc79   : > { %v4625_v52 = vsub.f32 1.5, %v4624_v32  ;;  %v6258_v36 = vmul.f32 -1.442695, %v10211_v13  ;;  %v5059_v32 = vand.u32 2147483647, %v10050_v9  ;;  %6934 = vrcp.f32 %v10209_v50  ;;  %5793 = vmatpush.msrb.mxu0 %v5697_v4 }
 0xc7a   : > { %v10220_v16 = vadd.f32 %v9822_v12, %v4664_v49  ;;  %v5017_v12 = vor.u32 1.1754944e-38, %v5016_v31  ;;  %v5036_v25 = vmul.f32 %v10222_v56, %v10132_v10  ;;  %6936 = vpow2.f32 %v6256_v24  ;;  %5728 = vmatpush.msra.mxu3 %v5681_v8  ;;  %v7038_v24 = vld [vmem:[%s11016_s10] ss:$0 sm:$0xff] }
 0xc7b   : > { %v4626_v61 = vmul.f32 %v10135_v22, %v4625_v52  ;;  %v5081_v49 = vmul.f32 %v10227_v17, %v10142_v53  ;;  %6938 = vpow2.f32 %v6259_v39  ;;  %v5458_v52 = vmul.f32 %v5033_v5, %v10013_v26 }
 0xc7c   : > { %11202 = vst [vmem:[#allocation50_spill] sm:$0xff] %v10220_v16  ;;  %4775 = vmatmul.f32.gmra.mxu3 %v10220_v16  ;;  %4840 = vmatmul.f32.gmra.mxu0 %v10220_v16  ;;  %v10265_v33 = vpop.f32.mrf.mxu0  ;;  %v10267_v60 = vpop.eup %6928  ;;  %6940 = vpow2.f32 %v6258_v36  ;;  %vm5015_vm1 = vcmp.eq.f32.partialorder %v11205_v41, 8.507059e+37  ;;  %v5046_v42 = vand.u32 2147483648, %v10132_v10  ;;  %v5037_v26 = vsub.f32 1.0, %v5036_v25  ;;  %v7039_v36 = vld [vmem:[%s11183_s2] ss:$0 sm:$0xff] }
 0xc7d   : > { %v4630_v31 = vsel %vm4629_vm15, %v10135_v22, %v4626_v61  ;;  %5577 = vmatmul.f32.gmra.mxu1 %v10220_v16  ;;  %5642 = vmatmul.f32.gmra.mxu2 %v10220_v16  ;;  %v6931_v47 = vpop.eup %6930  ;;  %v5018_v39 = vsel %vm5015_vm1, %v5017_v12, %v5013_v2  ;;  %v5058_v12 = vsel %vm10282_vm4, %v10094_v14, %v5054_v44  ;;  %v5082_v5 = vsub.f32 1.0, %v5081_v49 }
 0xc7e   : > { %v4646_v22 = vmul.f32 %v4630_v31, %v9937_v63  ;;  %v5061_v63 = vand.u32 2147483648, %v10050_v9  ;;  %v10278_v21 = vpop.eup %6932  ;;  %v5650_v9 = vmul.f32 %v10130_v7, %v10182_v51  ;;  %v5066_v4 = vmul.f32 %v10267_v60, %v10178_v18  ;;  %v5607_v57 = vpop.f32.mrf.mxu2 }
 0xc7f   : > { %v10291_v8 = vpop.eup %6934  ;;  %v10301_v25 = vmul.f32 %v5604_v30, %v5458_v52  ;;  %vm5060_vm5 = vcmp.eq.f32.partialorder %v5059_v32, 8.507059e+37  ;;  %v10308_v14 = vmul.f32 %v5018_v39, %v10015_v35  ;;  %v5044_v51 = vand.u32 2147483647, %v10132_v10  ;;  %v10314_v30 = vpop.f32.mrf.mxu3 }
 0xc80   : > { %v4665_v28 = vmul.f32 %v7038_v24, %v4646_v22  ;;  %v6937_v31 = vpop.eup %6936  ;;  %v10303_v22 = vpop.f32.mrf.mxu1  ;;  %v5062_v2 = vor.u32 1.1754944e-38, %v5061_v63  ;;  %v10312_v44 = vor.u32 1.1754944e-38, %v5046_v42  ;;  %v5038_v32 = vmul.f32 %v10222_v56, %v5037_v26 }
 0xc81   : > { %v6939_v7 = vpop.eup %6938  ;;  %v10320_v35 = vadd.f32 1.0, %v6931_v47  ;;  %v5067_v52 = vsub.f32 1.0, %v5066_v4  ;;  %v5083_v63 = vmul.f32 %v10227_v17, %v5082_v5  ;;  %v5089_v24 = vand.u32 2147483647, %v10142_v53 }
 0xc82   : > { %v10289_v23 = vadd.f32 %v7039_v36, %v4665_v28  ;;  %v6941_v19 = vpop.eup %6940  ;;  %v5063_v49 = vsel %vm5060_vm5, %v5062_v2, %v5058_v12  ;;  %v10324_v28 = vadd.f32 1.0, %v6937_v31  ;;  %v5091_v41 = vand.u32 2147483648, %v10142_v53 }
 0xc83   : > { %v5096_v42 = vmul.f32 %v10291_v8, %v10209_v50  ;;  %v5111_v39 = vmul.f32 %v10278_v21, %v10203_v55  ;;  %v10331_v26 = vadd.f32 1.0, %v6939_v7  ;;  %vm5041_vm8 = vweird.f32 %v10222_v56 }
 0xc84   : > { %11208 = vst [vmem:[#allocation48_spill] sm:$0xff] %v10289_v23  ;;  %4778 = vmatmul.f32.gmra.mxu3 %v10289_v23  ;;  %4843 = vmatmul.f32.gmra.mxu0 %v10289_v23  ;;  %vm10334_vm9 = vcmp.eq.f32.partialorder %v5044_v51, 8.507059e+37  ;;  %v5460_v61 = vmul.f32 %v5063_v49, %v10019_v29  ;;  %v5074_v36 = vand.u32 2147483647, %v10178_v18  ;;  %v10340_v12 = vadd.f32 1.0, %v6941_v19  ;;  %v10342_v4 = vpop.f32.mrf.mxu0  ;;  %vm10365_vm12 = vmor %vm5040_vm6, %vm5041_vm8 }
 0xc85   : > { %5580 = vmatmul.f32.gmra.mxu1 %v10289_v23  ;;  %5645 = vmatmul.f32.gmra.mxu2 %v10289_v23  ;;  %v5039_v5 = vadd.f32 %v10222_v56, %v5038_v32  ;;  %v5076_v31 = vand.u32 2147483648, %v10178_v18  ;;  %vm5086_vm10 = vweird.f32 %v10227_v17  ;;  %6942 = vrcp.f32 %v10320_v35 }
 0xc86   : > { %v5068_v2 = vmul.f32 %v10267_v60, %v5067_v52  ;;  %v5084_v7 = vadd.f32 %v10227_v17, %v5083_v63  ;;  %6944 = vrcp.f32 %v10324_v28  ;;  %v6261_v29 = vmul.f32 -1.442695, %v10265_v33  ;;  %vm10385_vm0 = vmor %vm5085_vm7, %vm5086_vm10 }
 0xc87   : > { %v5097_v51 = vsub.f32 1.0, %v5096_v42  ;;  %v5112_v19 = vsub.f32 1.0, %v5111_v39  ;;  %6946 = vrcp.f32 %v10331_v26  ;;  %v6260_v32 = vmul.f32 -1.442695, %v10314_v30 }
 0xc88   : > { %v10354_v49 = vmul.f32 %v5607_v57, %v5460_v61  ;;  %vm10356_vm11 = vcmp.eq.f32.partialorder %v5089_v24, 8.507059e+37  ;;  %v5092_v52 = vor.u32 1.1754944e-38, %v5091_v41  ;;  %6948 = vrcp.f32 %v10340_v12  ;;  %v10369_v42 = vpop.f32.mrf.mxu1  ;;  %v5610_v41 = vpop.f32.mrf.mxu2 }
 0xc89   : > { %vm5070_vm13 = vweird.f32 %v10178_v18  ;;  %vm5071_vm14 = vweird.f32 %v10267_v60  ;;  %vm10373_vm15 = vcmp.eq.f32.partialorder %v5074_v36, 8.507059e+37  ;;  %v5043_v57 = vsel %vm10365_vm12, %v10222_v56, %v5039_v5  ;;  %v10390_v61 = vpop.f32.mrf.mxu3 }
 0xc8a   : > { %v5069_v10 = vadd.f32 %v10267_v60, %v5068_v2  ;;  %6950 = vpow2.f32 %v6261_v29  ;;  %v6263_v39 = vmul.f32 -1.442695, %v10342_v4  ;;  %v5088_v56 = vsel %vm10385_vm0, %v10227_v17, %v5084_v7  ;;  %vm10414_vm3 = vmor %vm5070_vm13, %vm5071_vm14 }
 0xc8b   : > { %v10392_v36 = vpop.eup %6942  ;;  %v5098_v5 = vmul.f32 %v10291_v8, %v5097_v51  ;;  %v5113_v53 = vmul.f32 %v10278_v21, %v5112_v19  ;;  %6952 = vpow2.f32 %v6260_v32  ;;  %vm5100_vm2 = vweird.f32 %v10209_v50 }
 0xc8c   : > { %5729 = vmatmul.f32.vlgmr.msra.gmra.mxu3 %v5649_v34  ;;  %5794 = vmatmul.f32.vlgmr.msrb.gmra.mxu0 %v5650_v9  ;;  %v5077_v34 = vor.u32 1.1754944e-38, %v5076_v31  ;;  %v10399_v31 = vpop.eup %6944  ;;  %vm5115_vm1 = vweird.f32 %v10203_v55  ;;  %v5119_v2 = vand.u32 2147483647, %v10203_v55  ;;  %v5121_v29 = vand.u32 2147483648, %v10203_v55  ;;  %v10430_v47 = vpop.f32.mrf.mxu0 }
 0xc8d   : > { %v10405_v63 = vpop.eup %6946  ;;  %v5048_v17 = vsel %vm10334_vm9, %v10312_v44, %v5043_v57  ;;  %v5104_v51 = vand.u32 2147483647, %v10209_v50  ;;  %v5106_v19 = vand.u32 2147483648, %v10209_v50  ;;  %v5651_v32 = vmul.f32 %v10214_v40, %v10308_v14 }
 0xc8e   : > { %v10422_v24 = vpop.eup %6948  ;;  %v5073_v44 = vsel %vm10414_vm3, %v10267_v60, %v5069_v10  ;;  %v5093_v18 = vsel %vm10356_vm11, %v5092_v52, %v5088_v56  ;;  %vm5116_vm4 = vweird.f32 %v10278_v21  ;;  %6954 = vpow2.f32 %v6263_v39 }
 0xc8f   : > { %v5099_v57 = vadd.f32 %v10291_v8, %v5098_v5  ;;  %vm5101_vm5 = vweird.f32 %v10291_v8  ;;  %v5114_v40 = vadd.f32 %v10278_v21, %v5113_v53  ;;  %v5141_v14 = vmul.f32 %v10392_v36, %v10320_v35  ;;  %vm10453_vm7 = vmor %vm5115_vm1, %vm5116_vm4 }
 0xc90   : > { %v6951_v60 = vpop.eup %6950  ;;  %v5459_v23 = vmul.f32 %v5048_v17, %v10023_v58  ;;  %v5126_v52 = vmul.f32 %v10399_v31, %v10324_v28  ;;  %v5171_v10 = vmul.f32 %v10405_v63, %v10331_v26  ;;  %v6262_v39 = vmul.f32 -1.442695, %v10390_v61  ;;  %vm10465_vm8 = vmor %vm5100_vm2, %vm5101_vm5 }
 0xc91   : > { %v6953_v56 = vpop.eup %6952  ;;  %v5462_v5 = vmul.f32 %v5093_v18, %v10030_v3  ;;  %vm10445_vm6 = vcmp.eq.f32.partialorder %v5104_v51, 8.507059e+37  ;;  %v5107_v7 = vor.u32 1.1754944e-38, %v5106_v19  ;;  %v5078_v17 = vsel %vm10373_vm15, %v5077_v34, %v5073_v44  ;;  %v10484_v18 = vpop.f32.mrf.mxu2 }
 0xc92   : > { %vm10469_vm9 = vcmp.eq.f32.partialorder %v5119_v2, 8.507059e+37  ;;  %v5122_v51 = vor.u32 1.1754944e-38, %v5121_v29  ;;  %v5151_v19 = vand.u32 2147483648, %v10320_v35  ;;  %v5103_v9 = vsel %vm10465_vm8, %v10291_v8, %v5099_v57  ;;  %v10488_v37 = vpop.f32.mrf.mxu3 }
 0xc93   : > { %v5118_v50 = vsel %vm10453_vm7, %v10278_v21, %v5114_v40  ;;  %v5142_v34 = vsub.f32 1.0, %v5141_v14  ;;  %v10482_v44 = vadd.f32 1.0, %v6951_v60  ;;  %v5127_v16 = vsub.f32 1.0, %v5126_v52 }
 0xc94   : > { %5732 = vmatmul.f32.gmra.mxu3 %v5651_v32  ;;  %5797 = vmatmul.f32.gmra.mxu0 %v10301_v25  ;;  %v5156_v25 = vmul.f32 %v10422_v24, %v10340_v12  ;;  %v10474_v32 = vpop.f32.mrf.mxu1  ;;  %v6955_v2 = vpop.eup %6954  ;;  %v5172_v29 = vsub.f32 1.0, %v5171_v10  ;;  %v10486_v59 = vadd.f32 1.0, %v6953_v56  ;;  %6956 = vpow2.f32 %v6262_v39 }
 0xc95   : > { %v5461_v3 = vmul.f32 %v5078_v17, %v10037_v46  ;;  %v5656_v8 = vmul.f32 %v5610_v41, %v5462_v5  ;;  %v5653_v58 = vmul.f32 %v10303_v22, %v5459_v23  ;;  %v5123_v21 = vsel %vm10469_vm9, %v5122_v51, %v5118_v50  ;;  %v10504_v41 = vpop.f32.mrf.mxu0 }
 0xc96   : > { %v5157_v57 = vsub.f32 1.0, %v5156_v25  ;;  %vm5145_vm10 = vweird.f32 %v10320_v35  ;;  %v5149_v40 = vand.u32 2147483647, %v10320_v35  ;;  %v10496_v14 = vor.u32 1.1754944e-38, %v5151_v19 }
 0xc97   : > { %v5108_v60 = vsel %vm10445_vm6, %v5107_v7, %v5103_v9  ;;  %v5143_v52 = vmul.f32 %v10392_v36, %v5142_v34  ;;  %6958 = vrcp.f32 %v10482_v44  ;;  %v10502_v46 = vadd.f32 1.0, %v6955_v2 }
 0xc98   : > { %v5128_v22 = vmul.f32 %v10399_v31, %v5127_v16  ;;  %v5173_v23 = vmul.f32 %v10405_v63, %v5172_v29  ;;  %6960 = vrcp.f32 %v10486_v59  ;;  %v6265_v10 = vmul.f32 -1.442695, %v10430_v47 }
 0xc99   : > { %v5464_v39 = vmul.f32 %v5123_v21, %v10052_v54  ;;  %v5158_v56 = vmul.f32 %v10422_v24, %v5157_v57  ;;  %v6264_v5 = vmul.f32 -1.442695, %v10488_v37  ;;  %v5655_v53 = vmul.f32 %v10369_v42, %v5461_v3  ;;  %v5616_v3 = vpop.f32.mrf.mxu2 }
 0xc9a   : > { %v6957_v7 = vpop.eup %6956  ;;  %vm5130_vm11 = vweird.f32 %v10324_v28  ;;  %v5136_v16 = vand.u32 2147483648, %v10324_v28  ;;  %vm5146_vm12 = vweird.f32 %v10392_v36  ;;  %vm10519_vm13 = vcmp.eq.f32.partialorder %v5149_v40, 8.507059e+37  ;;  %v10542_v50 = vpop.f32.mrf.mxu3 }
 0xc9b   : > { %v5463_v54 = vmul.f32 %v5108_v60, %v10061_v11  ;;  %vm5131_vm14 = vweird.f32 %v10399_v31  ;;  %v5144_v17 = vadd.f32 %v10392_v36, %v5143_v52  ;;  %6962 = vrcp.f32 %v10502_v46  ;;  %vm10534_vm0 = vmor %vm5145_vm10, %vm5146_vm12 }
 0xc9c   : > { %5735 = vmatmul.f32.gmra.mxu3 %v5653_v58  ;;  %5800 = vmatmul.f32.gmra.mxu0 %v10354_v49  ;;  %v5134_v49 = vand.u32 2147483647, %v10324_v28  ;;  %v5129_v42 = vadd.f32 %v10399_v31, %v5128_v22  ;;  %v5174_v55 = vadd.f32 %v10405_v63, %v5173_v23  ;;  %vm5176_vm15 = vweird.f32 %v10405_v63  ;;  %v10546_v2 = vpop.f32.mrf.mxu1  ;;  %vm10552_vm1 = vmor %vm5130_vm11, %vm5131_vm14 }
 0xc9d   : > { %6964 = vpow2.f32 %v6265_v10  ;;  %v10530_v51 = vpop.eup %6958  ;;  %v5159_v11 = vadd.f32 %v10422_v24, %v5158_v56  ;;  %vm5161_vm2 = vweird.f32 %v10422_v24  ;;  %v10540_v9 = vadd.f32 1.0, %v6957_v7  ;;  %v10595_v56 = vpop.f32.mrf.mxu0 }
 0xc9e   : > { %6966 = vpow2.f32 %v6264_v5  ;;  %v10544_v34 = vpop.eup %6960  ;;  %v5137_v29 = vor.u32 1.1754944e-38, %v5136_v16  ;;  %v5166_v57 = vand.u32 2147483648, %v10340_v12  ;;  %vm5175_vm3 = vweird.f32 %v10331_v26 }
 0xc9f   : > { %v5181_v58 = vand.u32 2147483648, %v10331_v26  ;;  %v5148_v21 = vsel %vm10534_vm0, %v10392_v36, %v5144_v17  ;;  %vm5160_vm4 = vweird.f32 %v10340_v12  ;;  %v5164_v28 = vand.u32 2147483647, %v10340_v12  ;;  %vm10566_vm5 = vmor %vm5175_vm3, %vm5176_vm15 }
 0xca0   : > { %v5179_v60 = vand.u32 2147483647, %v10331_v26  ;;  %v5133_v52 = vsel %vm10552_vm1, %v10399_v31, %v5129_v42  ;;  %vm10576_vm6 = vmor %vm5160_vm4, %vm5161_vm2  ;;  %v5178_v12 = vsel %vm10566_vm5, %v10405_v63, %v5174_v55  ;;  %v5201_v22 = vmul.f32 %v10530_v51, %v10482_v44 }
 0xca1   : > { %v6267_v26 = vmul.f32 -1.442695, %v10504_v41  ;;  %v5163_v31 = vsel %vm10576_vm6, %v10422_v24, %v5159_v11  ;;  %v5186_v23 = vmul.f32 %v10544_v34, %v10486_v59  ;;  %6968 = vrcp.f32 %v10540_v9  ;;  %v5619_v40 = vpop.f32.mrf.mxu2 }
 0xca2   : > { %v6266_v10 = vmul.f32 -1.442695, %v10542_v50  ;;  %v5658_v5 = vmul.f32 %v10484_v18, %v5464_v39  ;;  %vm5135_vm7 = vcmp.eq.f32.partialorder %v5134_v49, 8.507059e+37  ;;  %v5182_v7 = vor.u32 1.1754944e-38, %v5181_v58  ;;  %v10603_v18 = vpop.f32.mrf.mxu3 }
 0xca3   : > { %v5138_v17 = vsel %vm5135_vm7, %v5137_v29, %v5133_v52  ;;  %v5153_v24 = vsel %vm10519_vm13, %v10496_v14, %v5148_v21  ;;  %vm5165_vm8 = vcmp.eq.f32.partialorder %v5164_v28, 8.507059e+37  ;;  %vm5180_vm9 = vcmp.eq.f32.partialorder %v5179_v60, 8.507059e+37 }
 0xca4   : > { %5738 = vmatmul.f32.gmra.mxu3 %v5655_v53  ;;  %5803 = vmatmul.f32.gmra.mxu0 %v5656_v8  ;;  %v10586_v8 = vpop.eup %6962  ;;  %v5167_v53 = vor.u32 1.1754944e-38, %v5166_v57  ;;  %v5183_v55 = vsel %vm5180_vm9, %v5182_v7, %v5178_v12  ;;  %v5202_v19 = vsub.f32 1.0, %v5201_v22  ;;  %6970 = vpow2.f32 %v6267_v26  ;;  %v5554_v28 = vpop.f32.mrf.mxu1 }
 0xca5   : > { %v6965_v63 = vpop.eup %6964  ;;  %v5187_v11 = vsub.f32 1.0, %v5186_v23  ;;  %6972 = vpow2.f32 %v6266_v10  ;;  %v5657_v39 = vmul.f32 %v10474_v32, %v5463_v54  ;;  %v5466_v49 = vmul.f32 %v5153_v24, %v10098_v62  ;;  %v10627_v26 = vpop.f32.mrf.mxu0 }
 0xca6   : > { %v6967_v16 = vpop.eup %6966  ;;  %v5168_v42 = vsel %vm5165_vm8, %v5167_v53, %v5163_v31  ;;  %v10601_v35 = vadd.f32 1.0, %v6965_v63  ;;  %v5231_v25 = vmul.f32 %v10586_v8, %v10502_v46  ;;  %v5465_v57 = vmul.f32 %v5138_v17, %v10120_v43 }
 0xca7   : > { %v10609_v14 = vadd.f32 1.0, %v6967_v16  ;;  %v10611_v29 = vpop.eup %6968  ;;  %v5467_v58 = vmul.f32 %v5168_v42, %v10211_v13  ;;  %v5468_v21 = vmul.f32 %v5183_v55, %v10194_v0  ;;  %v5203_v32 = vmul.f32 %v10530_v51, %v5202_v19 }
 0xca8   : > { %v6269_v62 = vmul.f32 -1.442695, %v10595_v56  ;;  %v5188_v54 = vmul.f32 %v10544_v34, %v5187_v11  ;;  %6974 = vrcp.f32 %v10601_v35  ;;  %v6268_v60 = vmul.f32 -1.442695, %v10603_v18 }
 0xca9   : > { %v5660_v43 = vmul.f32 %v5616_v3, %v5466_v49  ;;  %v5232_v36 = vsub.f32 1.0, %v5231_v25  ;;  %v5216_v0 = vmul.f32 %v10611_v29, %v10540_v9  ;;  %6976 = vrcp.f32 %v10609_v14  ;;  %v5622_v25 = vpop.f32.mrf.mxu2 }
 0xcaa   : > { %v6971_v52 = vpop.eup %6970  ;;  %v10624_v12 = vmul.f32 %v5619_v40, %v5468_v21  ;;  %v5209_v22 = vand.u32 2147483647, %v10482_v44  ;;  %v5659_v31 = vmul.f32 %v10546_v2, %v5465_v57  ;;  %v10630_v23 = vmul.f32 %v5554_v28, %v5467_v58  ;;  %v10639_v53 = vpop.f32.mrf.mxu3 }
 0xcab   : > { %v6973_v13 = vpop.eup %6972  ;;  %v5204_v10 = vadd.f32 %v10530_v51, %v5203_v32  ;;  %vm5206_vm10 = vweird.f32 %v10530_v51  ;;  %v5211_v3 = vand.u32 2147483648, %v10482_v44  ;;  %6978 = vpow2.f32 %v6269_v62 }
 0xcac   : > { %5741 = vmatmul.f32.gmra.mxu3 %v5657_v39  ;;  %5806 = vmatmul.f32.gmra.mxu0 %v5658_v5  ;;  %v5189_v63 = vadd.f32 %v10544_v34, %v5188_v54  ;;  %vm5191_vm11 = vweird.f32 %v10544_v34  ;;  %v10637_v5 = vadd.f32 1.0, %v6971_v52  ;;  %6980 = vpow2.f32 %v6268_v60  ;;  %v10662_v11 = vpop.f32.mrf.mxu1 }
 0xcad   : > { %vm5205_vm12 = vweird.f32 %v10482_v44  ;;  %v5233_v2 = vmul.f32 %v10586_v8, %v5232_v36  ;;  %v5217_v7 = vsub.f32 1.0, %v5216_v0  ;;  %v10643_v16 = vadd.f32 1.0, %v6973_v13 }
 0xcae   : > { %v10645_v17 = vpop.eup %6974  ;;  %vm5190_vm13 = vweird.f32 %v10486_v59  ;;  %v5194_v24 = vand.u32 2147483647, %v10486_v59  ;;  %v5196_v42 = vand.u32 2147483648, %v10486_v59  ;;  %vm10652_vm14 = vmor %vm5205_vm12, %vm5206_vm10  ;;  %vm10656_vm15 = vcmp.eq.f32.partialorder %v5209_v22, 8.507059e+37 }
 0xcaf   : > { %v10660_v19 = vpop.eup %6976  ;;  %vm10666_vm0 = vmor %vm5190_vm13, %vm5191_vm11  ;;  %v5208_v39 = vsel %vm10652_vm14, %v10530_v51, %v5204_v10  ;;  %v5212_v49 = vor.u32 1.1754944e-38, %v5211_v3  ;;  %v5239_v57 = vand.u32 2147483647, %v10502_v46  ;;  %v6271_v58 = vmul.f32 -1.442695, %v10627_v26 }
 0xcb0   : > { %v5193_v21 = vsel %vm10666_vm0, %v10544_v34, %v5189_v63  ;;  %vm5236_vm2 = vweird.f32 %v10586_v8  ;;  %6982 = vrcp.f32 %v10637_v5  ;;  %v6270_v28 = vmul.f32 -1.442695, %v10639_v53 }
 0xcb1   : > { %v6979_v40 = vpop.eup %6978  ;;  %v5234_v32 = vadd.f32 %v10586_v8, %v5233_v2  ;;  %v5218_v51 = vmul.f32 %v10611_v29, %v5217_v7  ;;  %v5261_v62 = vmul.f32 %v10645_v17, %v10601_v35  ;;  %6984 = vrcp.f32 %v10643_v16 }
 0xcb2   : > { %v6981_v54 = vpop.eup %6980  ;;  %vm5195_vm1 = vcmp.eq.f32.partialorder %v5194_v24, 8.507059e+37  ;;  %v5197_v60 = vor.u32 1.1754944e-38, %v5196_v42  ;;  %v5241_v34 = vand.u32 2147483648, %v10502_v46  ;;  %v5246_v52 = vmul.f32 %v10660_v19, %v10609_v14  ;;  %v10713_v2 = vpop.f32.mrf.mxu3 }
 0xcb3   : > { %vm5235_vm3 = vweird.f32 %v10502_v46  ;;  %vm10692_vm4 = vcmp.eq.f32.partialorder %v5239_v57, 8.507059e+37  ;;  %6986 = vpow2.f32 %v6271_v58  ;;  %vm5221_vm6 = vweird.f32 %v10611_v29 }
 0xcb4   : > { %5744 = vmatmul.f32.gmra.mxu3 %v5659_v31  ;;  %5809 = vmatmul.f32.gmra.mxu0 %v5660_v43  ;;  %v5213_v43 = vsel %vm10656_vm15, %v5212_v49, %v5208_v39  ;;  %v5198_v0 = vsel %vm5195_vm1, %v5197_v60, %v5193_v21  ;;  %vm10698_vm5 = vmor %vm5235_vm3, %vm5236_vm2  ;;  %v10703_v22 = vadd.f32 1.0, %v6979_v40  ;;  %6988 = vpow2.f32 %v6270_v28  ;;  %v10705_v31 = vpop.f32.mrf.mxu0 }
 0xcb5   : > { %v5238_v46 = vsel %vm10698_vm5, %v10586_v8, %v5234_v32  ;;  %v5219_v10 = vadd.f32 %v10611_v29, %v5218_v51  ;;  %v5262_v3 = vsub.f32 1.0, %v5261_v62  ;;  %v10711_v63 = vadd.f32 1.0, %v6981_v54 }
 0xcb6   : > { %v10715_v7 = vpop.eup %6982  ;;  %v5242_v24 = vor.u32 1.1754944e-38, %v5241_v34  ;;  %vm5220_vm7 = vweird.f32 %v10540_v9  ;;  %v5226_v42 = vand.u32 2147483648, %v10540_v9  ;;  %v5247_v55 = vsub.f32 1.0, %v5246_v52 }
 0xcb7   : > { %v10721_v8 = vpop.eup %6984  ;;  %v5469_v44 = vmul.f32 %v5198_v0, %v10314_v30  ;;  %v5470_v59 = vmul.f32 %v5213_v43, %v10265_v33  ;;  %v5224_v39 = vand.u32 2147483647, %v10540_v9  ;;  %v6273_v49 = vmul.f32 -1.442695, %v10705_v31  ;;  %vm10731_vm8 = vmor %vm5220_vm7, %vm5221_vm6  ;;  %v5625_v9 = vpop.f32.mrf.mxu2 }
 0xcb8   : > { %v5243_v57 = vsel %vm10692_vm4, %v5242_v24, %v5238_v46  ;;  %6990 = vrcp.f32 %v10703_v22  ;;  %v5223_v33 = vsel %vm10731_vm8, %v10611_v29, %v5219_v10  ;;  %v5263_v21 = vmul.f32 %v10645_v17, %v5262_v3 }
 0xcb9   : > { %v6987_v30 = vpop.eup %6986  ;;  %v5291_v28 = vmul.f32 %v10715_v7, %v10637_v5  ;;  %6992 = vrcp.f32 %v10711_v63  ;;  %v5227_v32 = vor.u32 1.1754944e-38, %v5226_v42  ;;  %v5248_v51 = vmul.f32 %v10660_v19, %v5247_v55 }
 0xcba   : > { %v6989_v40 = vpop.eup %6988  ;;  %v5276_v62 = vmul.f32 %v10721_v8, %v10643_v16  ;;  %v5664_v54 = vmul.f32 %v5622_v25, %v5470_v59  ;;  %vm5225_vm9 = vcmp.eq.f32.partialorder %v5224_v39, 8.507059e+37  ;;  %6994 = vpow2.f32 %v6273_v49 }
 0xcbb   : > { %v5663_v29 = vmul.f32 %v10662_v11, %v5469_v44  ;;  %v5472_v60 = vmul.f32 %v5243_v57, %v10342_v4  ;;  %v5228_v34 = vsel %vm5225_vm9, %v5227_v32, %v5223_v33  ;;  %v10749_v52 = vadd.f32 1.0, %v6987_v30 }
 0xcbc   : > { %5747 = vmatmul.f32.gmra.mxu3 %v10630_v23  ;;  %5812 = vmatmul.f32.gmra.mxu0 %v10624_v12  ;;  %v6272_v12 = vmul.f32 -1.442695, %v10713_v2  ;;  %v5560_v23 = vpop.f32.mrf.mxu1  ;;  %v5264_v43 = vadd.f32 %v10645_v17, %v5263_v21  ;;  %vm5266_vm10 = vweird.f32 %v10645_v17  ;;  %v5292_v36 = vsub.f32 1.0, %v5291_v28 }
 0xcbd   : > { %v10753_v0 = vadd.f32 1.0, %v6989_v40  ;;  %v5271_v25 = vand.u32 2147483648, %v10601_v35  ;;  %v5249_v46 = vadd.f32 %v10660_v19, %v5248_v51  ;;  %vm5251_vm11 = vweird.f32 %v10660_v19 }
 0xcbe   : > { %6996 = vpow2.f32 %v6272_v12  ;;  %v10755_v13 = vpop.eup %6990  ;;  %v5277_v4 = vsub.f32 1.0, %v5276_v62  ;;  %v5471_v10 = vmul.f32 %v5228_v34, %v10390_v61  ;;  %vm5265_vm12 = vweird.f32 %v10601_v35 }
 0xcbf   : > { %v10760_v11 = vpop.eup %6992  ;;  %v5269_v3 = vand.u32 2147483647, %v10601_v35  ;;  %v5256_v24 = vand.u32 2147483648, %v10609_v14  ;;  %vm10768_vm13 = vmor %vm5265_vm12, %vm5266_vm10  ;;  %vm5250_vm14 = vweird.f32 %v10609_v14  ;;  %v5254_v55 = vand.u32 2147483647, %v10609_v14  ;;  %v5628_v28 = vpop.f32.mrf.mxu2 }
 0xcc0   : > { %6998 = vrcp.f32 %v10749_v52  ;;  %v6995_v44 = vpop.eup %6994  ;;  %v5268_v61 = vsel %vm10768_vm13, %v10645_v17, %v5264_v43  ;;  %vm10780_vm15 = vmor %vm5250_vm14, %vm5251_vm11  ;;  %v5293_v59 = vmul.f32 %v10715_v7, %v5292_v36  ;;  %v5321_v39 = vmul.f32 %v10755_v13, %v10703_v22 }
 0xcc1   : > { %7000 = vrcp.f32 %v10753_v0  ;;  %v5272_v49 = vor.u32 1.1754944e-38, %v5271_v25  ;;  %v5253_v57 = vsel %vm10780_vm15, %v10660_v19, %v5249_v46  ;;  %v5278_v17 = vmul.f32 %v10721_v8, %v5277_v4 }
 0xcc2   : > { %v5306_v58 = vmul.f32 %v10760_v11, %v10711_v63  ;;  %v5665_v12 = vmul.f32 %v5560_v23, %v5471_v10  ;;  %v5666_v30 = vmul.f32 %v5625_v9, %v5472_v60  ;;  %vm5270_vm0 = vcmp.eq.f32.partialorder %v5269_v3, 8.507059e+37 }
 0xcc3   : > { %v5257_v21 = vor.u32 1.1754944e-38, %v5256_v24  ;;  %v5273_v40 = vsel %vm5270_vm0, %v5272_v49, %v5268_v61  ;;  %vm5255_vm2 = vcmp.eq.f32.partialorder %v5254_v55, 8.507059e+37  ;;  %vm5296_vm1 = vweird.f32 %v10715_v7 }
 0xcc4   : > { %5750 = vmatmul.f32.gmra.mxu3 %v5663_v29  ;;  %5815 = vmatmul.f32.gmra.mxu0 %v5664_v54  ;;  %v6997_v14 = vpop.eup %6996  ;;  %v5563_v33 = vpop.f32.mrf.mxu1  ;;  %v10795_v32 = vadd.f32 1.0, %v6995_v44  ;;  %v5294_v19 = vadd.f32 %v10715_v7, %v5293_v59  ;;  %v5322_v62 = vsub.f32 1.0, %v5321_v39  ;;  %v5301_v23 = vand.u32 2147483648, %v10637_v5 }
 0xcc5   : > { %v5258_v51 = vsel %vm5255_vm2, %v5257_v21, %v5253_v57  ;;  %v10798_v54 = vadd.f32 1.0, %v6997_v14  ;;  %v5279_v9 = vadd.f32 %v10721_v8, %v5278_v17  ;;  %vm5281_vm3 = vweird.f32 %v10721_v8 }
 0xcc6   : > { %v10800_v29 = vpop.eup %6998  ;;  %v5307_v60 = vsub.f32 1.0, %v5306_v58  ;;  %vm5295_vm4 = vweird.f32 %v10637_v5  ;;  %v5299_v43 = vand.u32 2147483647, %v10637_v5  ;;  %vm5280_vm5 = vweird.f32 %v10643_v16 }
 0xcc7   : > { %v10805_v34 = vpop.eup %7000  ;;  %v5286_v36 = vand.u32 2147483648, %v10643_v16  ;;  %v5474_v25 = vmul.f32 %v5273_v40, %v10430_v47  ;;  %v5473_v46 = vmul.f32 %v5258_v51, %v10488_v37  ;;  %vm10815_vm6 = vmor %vm5295_vm4, %vm5296_vm1  ;;  %v5284_v10 = vand.u32 2147483647, %v10643_v16  ;;  %v5631_v14 = vpop.f32.mrf.mxu2 }
 0xcc8   : > { %7002 = vrcp.f32 %v10795_v32  ;;  %v5298_v5 = vsel %vm10815_vm6, %v10715_v7, %v5294_v19  ;;  %vm10826_vm7 = vmor %vm5280_vm5, %vm5281_vm3  ;;  %v5323_v37 = vmul.f32 %v10755_v13, %v5322_v62  ;;  %v5351_v3 = vmul.f32 %v10800_v29, %v10749_v52 }
 0xcc9   : > { %7004 = vrcp.f32 %v10798_v54  ;;  %v5302_v16 = vor.u32 1.1754944e-38, %v5301_v23  ;;  %v5283_v24 = vsel %vm10826_vm7, %v10721_v8, %v5279_v9  ;;  %v5308_v7 = vmul.f32 %v10760_v11, %v5307_v60 }
 0xcca   : > { %v5336_v42 = vmul.f32 %v10805_v34, %v10753_v0  ;;  %vm5300_vm8 = vcmp.eq.f32.partialorder %v5299_v43, 8.507059e+37  ;;  %v5287_v55 = vor.u32 1.1754944e-38, %v5286_v36  ;;  %v5667_v44 = vmul.f32 %v5563_v33, %v5473_v46 }
 0xccb   : > { %v5668_v61 = vmul.f32 %v5628_v28, %v5474_v25  ;;  %v5303_v35 = vsel %vm5300_vm8, %v5302_v16, %v5298_v5  ;;  %vm5285_vm9 = vcmp.eq.f32.partialorder %v5284_v10, 8.507059e+37  ;;  %v5324_v49 = vadd.f32 %v10755_v13, %v5323_v37 }
 0xccc   : > { %5753 = vmatmul.f32.gmra.mxu3 %v5665_v12  ;;  %5818 = vmatmul.f32.gmra.mxu0 %v5666_v30  ;;  %v5566_v59 = vpop.f32.mrf.mxu1  ;;  %v5288_v39 = vsel %vm5285_vm9, %v5287_v55, %v5283_v24  ;;  %vm5326_vm10 = vweird.f32 %v10755_v13  ;;  %v5352_v57 = vsub.f32 1.0, %v5351_v3  ;;  %v5309_v17 = vadd.f32 %v10760_v11, %v5308_v7 }
 0xccd   : > { %vm5311_vm11 = vweird.f32 %v10760_v11  ;;  %v5337_v58 = vsub.f32 1.0, %v5336_v42  ;;  %vm5325_vm12 = vweird.f32 %v10703_v22  ;;  %v5329_v30 = vand.u32 2147483647, %v10703_v22 }
 0xcce   : > { %v10842_v8 = vpop.eup %7002  ;;  %v5331_v33 = vand.u32 2147483648, %v10703_v22  ;;  %v5316_v21 = vand.u32 2147483648, %v10711_v63  ;;  %v5476_v28 = vmul.f32 %v5303_v35, %v10504_v41  ;;  %v5475_v40 = vmul.f32 %v5288_v39, %v10542_v50  ;;  %vm10856_vm13 = vmor %vm5325_vm12, %vm5326_vm10 }
 0xccf   : > { %v10846_v12 = vpop.eup %7004  ;;  %vm5310_vm14 = vweird.f32 %v10711_v63  ;;  %v5314_v19 = vand.u32 2147483647, %v10711_v63  ;;  %v5328_v22 = vsel %vm10856_vm13, %v10755_v13, %v5324_v49  ;;  %v5353_v41 = vmul.f32 %v10800_v29, %v5352_v57  ;;  %v5634_v47 = vpop.f32.mrf.mxu2 }
 0xcd0   : > { %vm5312_vm15 = vmor %vm5310_vm14, %vm5311_vm11  ;;  %v5338_v62 = vmul.f32 %v10805_v34, %v5337_v58  ;;  %v5381_v23 = vmul.f32 %v10842_v8, %v10795_v32  ;;  %v5366_v9 = vmul.f32 %v10846_v12, %v10798_v54  ;;  %v5332_v63 = vor.u32 1.1754944e-38, %v5331_v33 }
 0xcd1   : > { %v5313_v50 = vsel %vm5312_vm15, %v10760_v11, %v5309_v17  ;;  %v5317_v60 = vor.u32 1.1754944e-38, %v5316_v21  ;;  %v5669_v43 = vmul.f32 %v5566_v59, %v5475_v40  ;;  %v5670_v36 = vmul.f32 %v5631_v14, %v5476_v28 }
 0xcd2   : > { %vm5330_vm0 = vcmp.eq.f32.partialorder %v5329_v30, 8.507059e+37  ;;  %vm5315_vm2 = vcmp.eq.f32.partialorder %v5314_v19, 8.507059e+37  ;;  %v5354_v46 = vadd.f32 %v10800_v29, %v5353_v41  ;;  %vm5356_vm1 = vweird.f32 %v10800_v29 }
 0xcd3   : > { %v5333_v13 = vsel %vm5330_vm0, %v5332_v63, %v5328_v22  ;;  %v5318_v25 = vsel %vm5315_vm2, %v5317_v60, %v5313_v50  ;;  %v5339_v11 = vadd.f32 %v10805_v34, %v5338_v62  ;;  %vm5341_vm3 = vweird.f32 %v10805_v34 }
 0xcd4   : > { %5756 = vmatmul.f32.gmra.mxu3 %v5667_v44  ;;  %5821 = vmatmul.f32.gmra.mxu0 %v5668_v61  ;;  %v5382_v4 = vsub.f32 1.0, %v5381_v23  ;;  %v5367_v10 = vsub.f32 1.0, %v5366_v9  ;;  %v5569_v5 = vpop.f32.mrf.mxu1  ;;  %vm5355_vm4 = vweird.f32 %v10749_v52  ;;  %v5359_v37 = vand.u32 2147483647, %v10749_v52 }
 0xcd5   : > { %v5361_v3 = vand.u32 2147483648, %v10749_v52  ;;  %v5346_v16 = vand.u32 2147483648, %v10753_v0  ;;  %v5478_v24 = vmul.f32 %v5333_v13, %v10595_v56  ;;  %v5477_v7 = vmul.f32 %v5318_v25, %v10603_v18  ;;  %vm5357_vm5 = vmor %vm5355_vm4, %vm5356_vm1 }
 0xcd6   : > { %vm5340_vm6 = vweird.f32 %v10753_v0  ;;  %v5344_v42 = vand.u32 2147483647, %v10753_v0  ;;  %v5358_v55 = vsel %vm5357_vm5, %v10800_v29, %v5354_v46  ;;  %v5383_v44 = vmul.f32 %v10842_v8, %v5382_v4 }
 0xcd7   : > { %vm5342_vm7 = vmor %vm5340_vm6, %vm5341_vm3  ;;  %v5368_v56 = vmul.f32 %v10846_v12, %v5367_v10  ;;  %v5362_v61 = vor.u32 1.1754944e-38, %v5361_v3  ;;  %v5347_v18 = vor.u32 1.1754944e-38, %v5346_v16  ;;  %v5671_v35 = vmul.f32 %v5569_v5, %v5477_v7  ;;  %v5637_v21 = vpop.f32.mrf.mxu2 }
 0xcd8   : > { %v5343_v52 = vsel %vm5342_vm7, %v10805_v34, %v5339_v11  ;;  %v5672_v59 = vmul.f32 %v5634_v47, %v5478_v24  ;;  %vm5360_vm8 = vcmp.eq.f32.partialorder %v5359_v37, 8.507059e+37  ;;  %vm5345_vm9 = vcmp.eq.f32.partialorder %v5344_v42, 8.507059e+37 }
 0xcd9   : > { %v5363_v39 = vsel %vm5360_vm8, %v5362_v61, %v5358_v55  ;;  %v5348_v14 = vsel %vm5345_vm9, %v5347_v18, %v5343_v52  ;;  %vm5386_vm10 = vweird.f32 %v10842_v8  ;;  %v5384_v0 = vadd.f32 %v10842_v8, %v5383_v44 }
 0xcda   : > { %v5369_v29 = vadd.f32 %v10846_v12, %v5368_v56  ;;  %vm5371_vm11 = vweird.f32 %v10846_v12  ;;  %vm5385_vm12 = vweird.f32 %v10795_v32  ;;  %v5389_v34 = vand.u32 2147483647, %v10795_v32 }
 0xcdb   : > { %v5391_v49 = vand.u32 2147483648, %v10795_v32  ;;  %v5376_v57 = vand.u32 2147483648, %v10798_v54  ;;  %v5480_v17 = vmul.f32 %v5363_v39, %v10627_v26  ;;  %v5479_v58 = vmul.f32 %v5348_v14, %v10639_v53  ;;  %vm5387_vm13 = vmor %vm5385_vm12, %vm5386_vm10 }
 0xcdc   : > { %5759 = vmatmul.f32.gmra.mxu3 %v5669_v43  ;;  %5824 = vmatmul.f32.gmra.mxu0 %v5670_v36  ;;  %vm5370_vm14 = vweird.f32 %v10798_v54  ;;  %v5374_v30 = vand.u32 2147483647, %v10798_v54  ;;  %v5572_v33 = vpop.f32.mrf.mxu1  ;;  %v5388_v28 = vsel %vm5387_vm13, %v10842_v8, %v5384_v0  ;;  %vm5390_vm0 = vcmp.eq.f32.partialorder %v5389_v34, 8.507059e+37 }
 0xcdd   : > { %vm5372_vm15 = vmor %vm5370_vm14, %vm5371_vm11  ;;  %v5392_v51 = vor.u32 1.1754944e-38, %v5391_v49  ;;  %v5377_v32 = vor.u32 1.1754944e-38, %v5376_v57  ;;  %v5673_v19 = vmul.f32 %v5572_v33, %v5479_v58  ;;  %v5674_v22 = vmul.f32 %v5637_v21, %v5480_v17 }
 0xcde   : > { %v5373_v40 = vsel %vm5372_vm15, %v10846_v12, %v5369_v29  ;;  %vm5375_vm2 = vcmp.eq.f32.partialorder %v5374_v30, 8.507059e+37 }
 0xcdf   : > { %v5393_v26 = vsel %vm5390_vm0, %v5392_v51, %v5388_v28  ;;  %v5378_v53 = vsel %vm5375_vm2, %v5377_v32, %v5373_v40  ;;  %v5640_v62 = vpop.f32.mrf.mxu2 }
 0xce0   : > { %v5482_v41 = vmul.f32 %v5393_v26, %v10705_v31  ;;  %v5481_v54 = vmul.f32 %v5378_v53, %v10713_v2 }
 0xce2   : > { %v5676_v8 = vmul.f32 %v5640_v62, %v5482_v41 }
 0xce4   : > { %5762 = vmatmul.f32.gmra.mxu3 %v5671_v35  ;;  %5827 = vmatmul.f32.gmra.mxu0 %v5672_v59  ;;  %v5575_v50 = vpop.f32.mrf.mxu1 }
 0xce5   : > { %v5675_v23 = vmul.f32 %v5575_v50, %v5481_v54 }
 0xcec   : > { %5765 = vmatmul.f32.gmra.mxu3 %v5673_v19  ;;  %5830 = vmatmul.f32.gmra.mxu0 %v5674_v22 }
 0xcf4   : > { %5768 = vmatmul.f32.gmra.mxu3 %v5675_v23  ;;  %5833 = vmatmul.f32.gmra.mxu0 %v5676_v8 }
 0xcf9   : > { %v4841_v12 = vpop.f32.mrf.mxu0 }
 0xcfa   : > { %v6275_v9 = vmul.f32 -1.442695, %v4841_v12  ;;  %v5578_v23 = vpop.f32.mrf.mxu1 }
 0xcfc   : > { %7006 = vpow2.f32 %v6275_v9 }
 0xcff   : > { %v10910_v63 = vpop.f32.mrf.mxu3 }
 0xd00   : > { %v6274_v60 = vmul.f32 -1.442695, %v10910_v63  ;;  %v5643_v30 = vpop.f32.mrf.mxu2 }
 0xd01   : > { %v10913_v43 = vpop.f32.mrf.mxu0 }
 0xd02   : > { %v7007_v36 = vpop.eup %7006  ;;  %7008 = vpow2.f32 %v6274_v60  ;;  %v6277_v31 = vmul.f32 -1.442695, %v10913_v43 }
 0xd03   : > { %v4972_v2 = vadd.f32 1.0, %v7007_v36 }
 0xd04   : > { %7010 = vpow2.f32 %v6277_v31 }
 0xd05   : > { %7012 = vrcp.f32 %v4972_v2  ;;  %v5421_v16 = vand.u32 2147483648, %v4972_v2  ;;  %v5419_v55 = vand.u32 2147483647, %v4972_v2  ;;  %vm5415_vm3 = vweird.f32 %v4972_v2 }
 0xd07   : > { %v10916_v13 = vpop.f32.mrf.mxu3  ;;  %v5422_v39 = vor.u32 1.1754944e-38, %v5421_v16  ;;  %vm5420_vm5 = vcmp.eq.f32.partialorder %v5419_v55, 8.507059e+37  ;;  %v5581_v55 = vpop.f32.mrf.mxu1 }
 0xd08   : > { %v7009_v25 = vpop.eup %7008  ;;  %v6276_v46 = vmul.f32 -1.442695, %v10916_v13 }
 0xd09   : > { %v4971_v11 = vadd.f32 1.0, %v7009_v25  ;;  %v5795_v4 = vpop.f32.mrf.mxu0 }
 0xd0a   : > { %v7011_v10 = vpop.eup %7010  ;;  %7014 = vpow2.f32 %v6276_v46 }
 0xd0b   : > { %v7013_v5 = vpop.eup %7012  ;;  %7016 = vrcp.f32 %v4971_v11  ;;  %v10919_v37 = vadd.f32 1.0, %v7011_v10  ;;  %v5406_v49 = vand.u32 2147483648, %v4971_v11  ;;  %vm5400_vm7 = vweird.f32 %v4971_v11 }
 0xd0c   : > { %v5411_v47 = vmul.f32 %v7013_v5, %v4972_v2  ;;  %vm5416_vm1 = vweird.f32 %v7013_v5 }
 0xd0d   : > { %7018 = vrcp.f32 %v10919_v37  ;;  %vm5417_vm4 = vmor %vm5415_vm3, %vm5416_vm1  ;;  %v5451_v51 = vand.u32 2147483648, %v10919_v37  ;;  %v5407_v22 = vor.u32 1.1754944e-38, %v5406_v49  ;;  %v5449_v53 = vand.u32 2147483647, %v10919_v37 }
 0xd0e   : > { %v5412_v3 = vsub.f32 1.0, %v5411_v47  ;;  %vm5445_vm11 = vweird.f32 %v10919_v37 }
 0xd0f   : > { %v5730_v24 = vpop.f32.mrf.mxu3  ;;  %v5452_v60 = vor.u32 1.1754944e-38, %v5451_v51  ;;  %vm5450_vm13 = vcmp.eq.f32.partialorder %v5449_v53, 8.507059e+37  ;;  %v11263_v53 = vld [vmem:[#allocation55_spill] sm:$0xff] }
 0xd10   : > { %v7015_v7 = vpop.eup %7014  ;;  %v5413_v42 = vmul.f32 %v7013_v5, %v5412_v3  ;;  %v5796_v52 = vadd.f32 %v5795_v4, %v5730_v24 }
 0xd11   : > { %v7017_v44 = vpop.eup %7016  ;;  %v10922_v56 = vadd.f32 1.0, %v7015_v7  ;;  %v5798_v61 = vpop.f32.mrf.mxu0 }
 0xd12   : > { %v5414_v18 = vadd.f32 %v7013_v5, %v5413_v42  ;;  %v5396_v35 = vmul.f32 %v7017_v44, %v4971_v11  ;;  %v5843_v59 = vadd.f32 %v5796_v52, %v9831_v15  ;;  %vm5401_vm6 = vweird.f32 %v7017_v44 }
 0xd13   : > { %7020 = vrcp.f32 %v10922_v56  ;;  %v7019_v14 = vpop.eup %7018  ;;  %v5404_v15 = vand.u32 2147483647, %v4971_v11  ;;  %vm5402_vm8 = vmor %vm5400_vm7, %vm5401_vm6  ;;  %v5434_v2 = vand.u32 2147483647, %v10922_v56  ;;  %v5436_v25 = vand.u32 2147483648, %v10922_v56 }
 0xd14   : > { %v5418_v0 = vsel %vm5417_vm4, %v7013_v5, %v5414_v18  ;;  %v5397_v29 = vsub.f32 1.0, %v5396_v35  ;;  %5859 = vst [vmem:[%s10928_s26] sm:$0xff] %v5843_v59  ;;  %v5441_v57 = vmul.f32 %v7019_v14, %v10919_v37  ;;  %vm5446_vm9 = vweird.f32 %v7019_v14 }
 0xd15   : > { %v5423_v34 = vsel %vm5420_vm5, %v5422_v39, %v5418_v0  ;;  %vm5405_vm10 = vcmp.eq.f32.partialorder %v5404_v15, 8.507059e+37  ;;  %vm5447_vm12 = vmor %vm5445_vm11, %vm5446_vm9  ;;  %vm5430_vm15 = vweird.f32 %v10922_v56  ;;  %v5437_v37 = vor.u32 1.1754944e-38, %v5436_v25 }
 0xd16   : > { %v5484_v17 = vmul.f32 %v5423_v34, %v4841_v12  ;;  %v5398_v58 = vmul.f32 %v7017_v44, %v5397_v29  ;;  %v5442_v33 = vsub.f32 1.0, %v5441_v57  ;;  %vm5435_vm2 = vcmp.eq.f32.partialorder %v5434_v2, 8.507059e+37 }
 0xd17   : > { %v5733_v21 = vpop.f32.mrf.mxu3 }
 0xd18   : > { %v5399_v28 = vadd.f32 %v7017_v44, %v5398_v58  ;;  %v5678_v40 = vmul.f32 %v5643_v30, %v5484_v17  ;;  %v5799_v32 = vadd.f32 %v5798_v61, %v5733_v21  ;;  %v5443_v26 = vmul.f32 %v7019_v14, %v5442_v33 }
 0xd19   : > { %v7021_v19 = vpop.eup %7020  ;;  %v5801_v41 = vpop.f32.mrf.mxu0 }
 0xd1a   : > { %v5403_v54 = vsel %vm5402_vm8, %v7017_v44, %v5399_v28  ;;  %v5426_v50 = vmul.f32 %v7021_v19, %v10922_v56  ;;  %v5844_v62 = vadd.f32 %v5799_v32, %v9852_v1  ;;  %5836 = vmatmul.f32.gmra.mxu0 %v5678_v40  ;;  %v5444_v12 = vadd.f32 %v7019_v14, %v5443_v26 }
 0xd1b   : > { %v5408_v8 = vsel %vm5405_vm10, %v5407_v22, %v5403_v54  ;;  %vm5431_vm14 = vweird.f32 %v7021_v19 }
 0xd1c   : > { %v5483_v9 = vmul.f32 %v5408_v8, %v10910_v63  ;;  %v5427_v36 = vsub.f32 1.0, %v5426_v50  ;;  %5860 = vst [vmem:[%s10928_s26 + $0x8] sm:$0xff] %v5844_v62  ;;  %v5448_v31 = vsel %vm5447_vm12, %v7019_v14, %v5444_v12  ;;  %v5646_v63 = vpop.f32.mrf.mxu2  ;;  %vm5432_vm0 = vmor %vm5430_vm15, %vm5431_vm14  ;;  %v11264_v62 = vld [vmem:[#allocation65_spill] sm:$0xff] }
 0xd1d   : > { %v5453_v1 = vsel %vm5450_vm13, %v5452_v60, %v5448_v31  ;;  %v11265_v60 = vld [vmem:[#allocation42_spill] sm:$0xff] }
 0xd1e   : > { %v5677_v46 = vmul.f32 %v5578_v23, %v5483_v9  ;;  %v5428_v11 = vmul.f32 %v7021_v19, %v5427_v36  ;;  %v5486_v4 = vmul.f32 %v5453_v1, %v10913_v43 }
 0xd1f   : > { %v5736_v10 = vpop.f32.mrf.mxu3 }
 0xd20   : > { %v5429_v5 = vadd.f32 %v7021_v19, %v5428_v11  ;;  %v5802_v47 = vadd.f32 %v5801_v41, %v5736_v10  ;;  %5771 = vmatmul.f32.gmra.mxu3 %v5677_v46  ;;  %v5680_v3 = vmul.f32 %v5646_v63, %v5486_v4  ;;  %v11266_v46 = vld [vmem:[#allocation39_spill] sm:$0xff] }
 0xd21   : > { %v5804_v16 = vpop.f32.mrf.mxu0 }
 0xd22   : > { %v5433_v24 = vsel %vm5432_vm0, %v7021_v19, %v5429_v5  ;;  %v5845_v7 = vadd.f32 %v5802_v47, %v9869_v27  ;;  %5839 = vmatmul.f32.gmra.mxu0 %v5680_v3  ;;  %v11267_v5 = vld [vmem:[#allocation50_spill] sm:$0xff] }
 0xd23   : > { %v5438_v42 = vsel %vm5435_vm2, %v5437_v37, %v5433_v24 }
 0xd24   : > { %v5485_v43 = vmul.f32 %v5438_v42, %v10916_v13  ;;  %5861 = vst [vmem:[%s10928_s26 + $0x10] sm:$0xff] %v5845_v7 }
 0xd26   : > { %v5679_v52 = vmul.f32 %v5581_v55, %v5485_v43 }
 0xd27   : > { %v5739_v44 = vpop.f32.mrf.mxu3 }
 0xd28   : > { %v5805_v56 = vadd.f32 %v5804_v16, %v5739_v44  ;;  %5774 = vmatmul.f32.gmra.mxu3 %v5679_v52  ;;  %v11269_v16 = vld [vmem:[#allocation48_spill] sm:$0xff] }
 0xd29   : > { %v5807_v61 = vpop.f32.mrf.mxu0 }
 0xd2a   : > { %v5846_v18 = vadd.f32 %v5805_v56, %v9885_v6 }
 0xd2c   : > { %5862 = vst [vmem:[%s10928_s26 + $0x18] sm:$0xff] %v5846_v18 }
 0xd2f   : > { %v5742_v35 = vpop.f32.mrf.mxu3 }
 0xd30   : > { %v5808_v59 = vadd.f32 %v5807_v61, %v5742_v35 }
 0xd31   : > { %v5810_v27 = vpop.f32.mrf.mxu0 }
 0xd32   : > { %v5847_v39 = vadd.f32 %v5808_v59, %v9900_v20 }
 0xd34   : > { %5863 = vst [vmem:[%s10928_s26 + $0x20] sm:$0xff] %v5847_v39 }
 0xd37   : > { %v5745_v13 = vpop.f32.mrf.mxu3 }
 0xd38   : > { %v5811_v14 = vadd.f32 %v5810_v27, %v5745_v13 }
 0xd39   : > { %v5813_v0 = vpop.f32.mrf.mxu0 }
 0xd3a   : > { %v5848_v29 = vadd.f32 %v5811_v14, %v9911_v48  ;;  %v11261_v48 = vld [vmem:[#allocation56_spill] sm:$0xff] }
 0xd3c   : > { %5864 = vst [vmem:[%s10928_s26 + $0x28] sm:$0xff] %v5848_v29 }
 0xd3f   : > { %v5748_v34 = vpop.f32.mrf.mxu3 }
 0xd40   : > { %v5814_v49 = vadd.f32 %v5813_v0, %v5748_v34 }
 0xd41   : > { %v5816_v57 = vpop.f32.mrf.mxu0 }
 0xd42   : > { %v5849_v6 = vadd.f32 %v5814_v49, %v9920_v45  ;;  %v11262_v45 = vld [vmem:[#allocation52_spill] sm:$0xff] }
 0xd44   : > { %5865 = vst [vmem:[%s10928_s26 + $0x30] sm:$0xff] %v5849_v6 }
 0xd47   : > { %v5751_v17 = vpop.f32.mrf.mxu3 }
 0xd48   : > { %v5817_v58 = vadd.f32 %v5816_v57, %v5751_v17 }
 0xd49   : > { %v5819_v15 = vpop.f32.mrf.mxu0 }
 0xd4a   : > { %v5850_v20 = vadd.f32 %v5817_v58, %v9945_v38 }
 0xd4c   : > { %5866 = vst [vmem:[%s10928_s26 + $0x38] sm:$0xff] %v5850_v20 }
 0xd4f   : > { %v5754_v30 = vpop.f32.mrf.mxu3 }
 0xd50   : > { %v5820_v33 = vadd.f32 %v5819_v15, %v5754_v30 }
 0xd51   : > { %v5822_v21 = vpop.f32.mrf.mxu0 }
 0xd52   : > { %v5851_v28 = vadd.f32 %v5820_v33, %v11261_v48 }
 0xd54   : > { %5867 = vst [vmem:[%s10928_s26 + $0x40] sm:$0xff] %v5851_v28 }
 0xd57   : > { %v5757_v40 = vpop.f32.mrf.mxu3 }
 0xd58   : > { %v5823_v51 = vadd.f32 %v5822_v21, %v5757_v40 }
 0xd59   : > { %v5825_v32 = vpop.f32.mrf.mxu0 }
 0xd5a   : > { %v5852_v19 = vadd.f32 %v5823_v51, %v11262_v45 }
 0xd5c   : > { %5868 = vst [vmem:[%s10928_s26 + $0x48] sm:$0xff] %v5852_v19 }
 0xd5f   : > { %v5760_v22 = vpop.f32.mrf.mxu3 }
 0xd60   : > { %v5826_v26 = vadd.f32 %v5825_v32, %v5760_v22 }
 0xd61   : > { %v5828_v41 = vpop.f32.mrf.mxu0 }
 0xd62   : > { %v5853_v38 = vadd.f32 %v5826_v26, %v11263_v53 }
 0xd64   : > { %5869 = vst [vmem:[%s10928_s26 + $0x50] sm:$0xff] %v5853_v38 }
 0xd67   : > { %v5763_v54 = vpop.f32.mrf.mxu3 }
 0xd68   : > { %v5829_v50 = vadd.f32 %v5828_v41, %v5763_v54 }
 0xd69   : > { %v5831_v8 = vpop.f32.mrf.mxu0 }
 0xd6a   : > { %v5854_v23 = vadd.f32 %v5829_v50, %v11264_v62 }
 0xd6c   : > { %5870 = vst [vmem:[%s10928_s26 + $0x58] sm:$0xff] %v5854_v23 }
 0xd6f   : > { %v5766_v12 = vpop.f32.mrf.mxu3 }
 0xd70   : > { %v5832_v9 = vadd.f32 %v5831_v8, %v5766_v12 }
 0xd71   : > { %v5834_v31 = vpop.f32.mrf.mxu0 }
 0xd72   : > { %v5855_v36 = vadd.f32 %v5832_v9, %v11265_v60 }
 0xd74   : > { %5871 = vst [vmem:[%s10928_s26 + $0x60] sm:$0xff] %v5855_v36 }
 0xd77   : > { %v5769_v2 = vpop.f32.mrf.mxu3 }
 0xd78   : > { %v5835_v25 = vadd.f32 %v5834_v31, %v5769_v2 }
 0xd7a   : > { %v5856_v1 = vadd.f32 %v5835_v25, %v11266_v46 }
 0xd7c   : > { %5872 = vst [vmem:[%s10928_s26 + $0x68] sm:$0xff] %v5856_v1 }
 0xd97   : > { %v5837_v11 = vpop.f32.mrf.mxu0 }
 0xd9f   : > { %v5840_v47 = vpop.f32.mrf.mxu0 }
 0xda3   : > { %v5772_v4 = vpop.f32.mrf.mxu3 }
 0xda4   : > { %v5838_v10 = vadd.f32 %v5837_v11, %v5772_v4 }
 0xda6   : > { %v5857_v63 = vadd.f32 %v5838_v10, %v11267_v5 }
 0xda8   : > { %5873 = vst [vmem:[%s10928_s26 + $0x70] sm:$0xff] %v5857_v63 }
 0xdab   : > { %v5775_v37 = vpop.f32.mrf.mxu3 }
 0xdac   : > { %v5841_v3 = vadd.f32 %v5840_v47, %v5775_v37 }
 0xdae   : > { %v5858_v24 = vadd.f32 %v5841_v3, %v11269_v16 }
 0xdb0   : > { %5874 = vst [vmem:[%s10928_s26 + $0x78] sm:$0xff] %v5858_v24 }
 0xdb1   : > { %7307 = shalt.err (!%p7304_p9)
}
 0xdb2   : > { %s7379_s19 = smov 128   ;;  %s7380_s26 = smov 8  }
 0xdb3   : > { %6351 = dma.vmem_to_hbm [thread:$0]  (%p7557_p13), %s5889_s13, 2048, %s5891_s20, %s5876_s15, %s7379_s19, %s7379_s19, %s7380_s26  }
 0xdb4 PF: > { %s5905_s16 = sand.u32 1, %s7350_s21   ;;  %p11270_p10 = scmp.ge.s32.totalorder %s7362_s24, 2 }
 0xdb5   : > { %s5906_s27 = scalar_lea.sflag [#allocation4], %s5905_s16 }
 0xdb6   : > { %p6380_p11 = pnand %p11270_p10, %p7562_p4 }
 0xdb8   : > { %p6381_p0 = pneg %p6380_p11 }
 0xdba   : > { %7345 = dma.done.wait (%p6381_p0), %s5906_s27, 2048  }
 0xdbb   : > { %7347 = vsyncadd (%p6381_p0), %s5906_s27, 4294965248  ;;  %p29_p2 = scmp.ge.s32.totalorder %s7537_s14, 4   ;;  %s11271_s21 = smov %s7354_s22 }
 0xdbc   : > { %s11272_s22 = smov %s7358_s23  ;;  %s11273_s23 = smov %s7549_s3 }
 0xdbd   : > { %s11274_s24 = smov %s7537_s14  ;;  %31 = sbr.rel (!%p29_p2) target bundleno = 16 (0x10), region = 141 }
 0xdc2   :  { %5912 = vsyncpa [#allocation3], 1 }
 0xdc3   :  { %5914 = vsyncpa [#allocation3 + $0x1], 1 }
 0xdc4   :  { %5915 = vsyncpa [#allocation6], 1 }
 0xdc5   :  { %5916 = vsyncpa [#allocation9], 1 }
 0xdc6   :  { %5917 = vsyncpa [#allocation12], 1 }
 0xdc7   :  { %5918 = vsyncpa [#allocation15], 1 }
 0xdc8   :  { %5919 = vsyncpa [#allocation4], 1 }
 0xdc9   :  { %5921 = vsyncpa [#allocation4 + $0x1], 1 }

</bundles_post_ra>
